<compile_context>
chip_gen: v6e
topology: v6e:2x2x1
jax: 0.10.0
libtpu: 0.0.40
codegen_flags: <defaults>
</compile_context>

<pallas_src>
import functools
import numpy as np
import jax
import jax.numpy as jnp
from jax.experimental import pallas as pl
from jax.experimental.pallas import tpu as pltpu


_LAYER_REF_NAMES = ("wfc", "wl_t", "wr", "bn_g", "bn_b", "bn_m", "bn_v")
_BIGAT_REF_NAMES = ("ws", "bs")


def _round_up(x, m=128):
    return ((x + m - 1) // m) * m


# ----------------------------------------------------------------------------
# Layer configuration (mirrors biGATNet.__init__)
# ----------------------------------------------------------------------------
def _layer_configs(net_params):
    hidden = net_params["hidden_dim"]
    heads = net_params["n_heads"]
    out_dim = net_params["out_dim"]
    L = net_params["L"]
    HD = hidden * heads
    cfgs = [("gat", HD, hidden, heads), ("bigat", HD, hidden, heads)]
    for _ in range(L - 3):
        cfgs.append(("gat", HD, hidden, heads))
    cfgs.append(("gat", HD, out_dim, 1))
    return tuple(cfgs)


# ----------------------------------------------------------------------------
# Fused forward kernel (single invocation, everything resident in VMEM)
# ----------------------------------------------------------------------------
def _fused_forward_kernel(*refs, n_in, layer_cfgs, sigma, batch_norm, residual):
    f32, bf16 = jnp.float32, jnp.bfloat16
    edge_out_ref, s_out_ref = refs[n_in], refs[n_in + 1]
    it = iter(refs[:n_in])

    h_ref, adj_ref, src_ref, dst_ref, emb_w_ref, emb_b_ref = (
        next(it) for _ in range(6))
    layer_refs = []
    for (kind, _, _, _) in layer_cfgs:
        names = _LAYER_REF_NAMES + (_BIGAT_REF_NAMES if kind == "bigat" else ())
        layer_refs.append({nm: next(it) for nm in names})
    mlp_refs = [next(it) for _ in range(6)]
    assert next(it, None) is None  # trace-time packing sanity check

    adj = adj_ref[...]                        # (N, N) 0/1, adj[dst, src]
    N = adj.shape[0]
    # Hoisted additive mask: -1e30 on non-edges, 0 on edges (built once, VPU-cheap).
    neg_mask = (1.0 - adj) * (-1e30)

    # embedding_h (+ eval-mode in_feat_dropout)
    h = jnp.dot(h_ref[...].astype(bf16), emb_w_ref[...],
                preferred_element_type=f32) + emb_b_ref[...]

    for (kind, in_dim, out_dim, heads), lr in zip(layer_cfgs, layer_refs):
        H, D = heads, out_dim
        HD = H * D
        h_in = h
        h_bf = h.astype(bf16)

        # Projections: full feature projection + NARROW per-head attention terms.
        feat = jnp.dot(h_bf, lr["wfc"][...], preferred_element_type=f32)   # (N, HD)
        er = jnp.dot(h_bf, lr["wr"][...], preferred_element_type=f32)      # (N, H)  a_r.Wh_i (dst)
        el_t = jax.lax.dot_general(                                        # (H, N)  a_l.Wh_j (src)
            lr["wl_t"][...], h_bf, (((1,), (1,)), ((), ())),
            preferred_element_type=f32)

        head_outs = []
        for hh in range(H):                    # H is 4 or 1, static
            # score[i, j] = a_l.Wh_j + a_r.Wh_i  via (N,1)+(1,N) broadcast
            s = er[:, hh:hh + 1] + el_t[hh:hh + 1, :]                      # (N, N)
            s = jnp.where(s >= 0.0, s, 0.2 * s)                            # LeakyReLU(0.2)
            s = s + neg_mask                                               # mask non-edges
            m = jnp.max(s, axis=-1, keepdims=True)                         # per-head per-dst max
            p = jnp.exp(s - m) * adj                                       # zero in-degree -> all-zero row
            denom = jnp.sum(p, axis=-1, keepdims=True)
            alpha = p * pl.reciprocal(jnp.maximum(denom, 1e-20), approx=True)
            feat_h = feat[:, hh * D:(hh + 1) * D].astype(bf16)             # (N, D)
            head_outs.append(jnp.dot(alpha.astype(bf16), feat_h,
                                     preferred_element_type=f32))          # (N, D)
        rst = head_outs[0] if H == 1 else jnp.concatenate(head_outs, axis=1)   # (N, HD)

        if batch_norm:  # eval-mode BatchNorm1d
            rst = (rst - lr["bn_m"][...]) * jax.lax.rsqrt(lr["bn_v"][...] + 1e-5) \
                  * lr["bn_g"][...] + lr["bn_b"][...]
        # ELU: exp only sees the clamped-negative branch.
        rst = jnp.where(rst > 0.0, rst, jnp.exp(jnp.minimum(rst, 0.0)) - 1.0)
        if residual and in_dim == HD:
            rst = h_in + rst
        rst = jnp.where(jnp.isinf(rst), 1e9, rst)                           # h[isinf(h)] = 1e9
        h = rst

        if kind == "bigat":
            # TODO(synk): exact biGATLayer source unavailable; modeled as GAT + soft
            #             assignment s = softmax(Linear(h_out) / sigma) over assign_dim.
            z = (jnp.dot(h.astype(bf16), lr["ws"][...], preferred_element_type=f32)
                 + lr["bs"][...]) * (1.0 / sigma)
            z = z - jnp.max(z, axis=-1, keepdims=True)
            ez = jnp.exp(z)
            s_soft = ez * pl.reciprocal(jnp.sum(ez, axis=-1, keepdims=True), approx=True)
            pad = s_out_ref.shape[1] - s_soft.shape[1]
            if pad > 0:  # lane-dense padded store; wrapper slices the real columns
                s_soft = jnp.concatenate([s_soft, jnp.zeros((N, pad), f32)], axis=1)
            s_out_ref[...] = s_soft

    # apply_edges: e_uv = MLPReadout(concat(h[src], h[dst])), inf-clamped.
    # One-hots built in-kernel from int32 edge indices (no (E,N) HBM DMA); gather
    # stays in VMEM as two MXU matmuls.
    # TODO(synk): for large / dense graphs (E ~ N^2) stream edge tiles over a grid axis
    #             instead of the full (E, N) one-hot gather.
    h_bf = h.astype(bf16)
    E = src_ref.shape[0]
    lane = jax.lax.broadcasted_iota(jnp.int32, (E, N), 1)
    oh_src = (lane == src_ref[...]).astype(bf16)                            # (E, N)
    oh_dst = (lane == dst_ref[...]).astype(bf16)                            # (E, N)
    h_src = jnp.dot(oh_src, h_bf, preferred_element_type=f32)
    h_dst = jnp.dot(oh_dst, h_bf, preferred_element_type=f32)
    ef = jnp.concatenate([h_src, h_dst], axis=1)
    w0, b0, w1, b1, w2, b2 = (r[...] for r in mlp_refs)                     # w2/b2 zero-padded to 128 lanes
    x = jnp.maximum(jnp.dot(ef.astype(bf16), w0, preferred_element_type=f32) + b0, 0.0)
    x = jnp.maximum(jnp.dot(x.astype(bf16), w1, preferred_element_type=f32) + b1, 0.0)
    x = jnp.dot(x.astype(bf16), w2, preferred_element_type=f32) + b2
    edge_out_ref[...] = jnp.where(jnp.isinf(x), 1e9, x)


# ----------------------------------------------------------------------------
# Input packing (parameter algebra precomputed outside the kernel; no structure
# constants are shipped to the kernel anymore)
# ----------------------------------------------------------------------------
def _pack_layer_inputs(p, cfg):
    kind, in_dim, out_dim, heads = cfg
    wfc = p["wfc"]                                             # (F, H*D)
    F = wfc.shape[0]
    wfc_r = wfc.reshape(F, heads, out_dim)
    wl = jnp.einsum("fhd,hd->fh", wfc_r, p["attn_l"])          # (F, H) src-attention weights
    wr = jnp.einsum("fhd,hd->fh", wfc_r, p["attn_r"])          # (F, H) dst-attention weights
    refs = {
        "wfc": wfc.astype(jnp.bfloat16),                       # (F, H*D)
        "wl_t": wl.T.astype(jnp.bfloat16),                     # (H, F)
        "wr": wr.astype(jnp.bfloat16),                         # (F, H)
        "bn_g": p["bn_gamma"], "bn_b": p["bn_beta"],
        "bn_m": p["bn_mean"], "bn_v": p["bn_var"],
    }
    names = _LAYER_REF_NAMES
    if kind == "bigat":
        refs["ws"] = p["w_assign"].astype(jnp.bfloat16)
        refs["bs"] = p["b_assign"]
        names = names + _BIGAT_REF_NAMES
    return [refs[nm] for nm in names]


def _pack_inputs(params, net_params, h, adj, edge_src, edge_dst):
    E = edge_src.shape[0]
    cfgs = _layer_configs(net_params)
    n_classes = net_params["n_classes"]
    lane_cls = _round_up(n_classes)
    # TODO(synk): adj could be shipped as int8/bool to cut HBM bytes further (v5e).
    flat = [h.astype(jnp.float32), adj.astype(jnp.float32),
            edge_src.reshape(E, 1).astype(jnp.int32),
            edge_dst.reshape(E, 1).astype(jnp.int32),
            params["emb_w"].astype(jnp.bfloat16), params["emb_b"]]
    for cfg, p in zip(cfgs, params["layers"]):
        flat += _pack_layer_inputs(p, cfg)
    (w0, b0), (w1, b1), (w2, b2) = params["mlp"]
    w2p = jnp.pad(w2, ((0, 0), (0, lane_cls - n_classes)))     # lane-dense final store
    b2p = jnp.pad(b2, ((0, 0), (0, lane_cls - n_classes)))
    flat += [w0.astype(jnp.bfloat16), b0,
             w1.astype(jnp.bfloat16), b1,
             w2p.astype(jnp.bfloat16), b2p]
    return flat, cfgs


# ----------------------------------------------------------------------------
# Full forward (mirrors biGATNet.forward) -- ONE pallas_call, no grid
# ----------------------------------------------------------------------------
def bigat_net_forward(params, net_params, adj, edge_src, edge_dst, h, e):
    del e  # edge features `e` are unused by the reference forward pass
    N = h.shape[0]
    E = edge_src.shape[0]
    n_classes = net_params["n_classes"]
    assign_dim = net_params["assign_dim"]
    heads = net_params["n_heads"]
    hd_max = max(net_params["hidden_dim"] * heads, net_params["out_dim"])

    flat_inputs, cfgs = _pack_inputs(params, net_params, h, adj, edge_src, edge_dst)
    n_in = len(flat_inputs)

    kern = functools.partial(
        _fused_forward_kernel, n_in=n_in, layer_cfgs=cfgs,
        sigma=float(net_params["sigma"]),
        batch_norm=bool(net_params["batch_norm"]),
        residual=bool(net_params["residual"]))

    # Lane-dense padded output slabs; wrapper slices the real columns.
    out_shape = (jax.ShapeDtypeStruct((E, _round_up(n_classes)), jnp.float32),
                 jax.ShapeDtypeStruct((N, _round_up(assign_dim)), jnp.float32))

    # Explicit VMEM budget computed from the resident set + temporaries estimate.
    in_bytes = sum(int(a.size) * jnp.dtype(a.dtype).itemsize for a in flat_inputs)
    out_bytes = sum(int(np.prod(s.shape)) * jnp.dtype(s.dtype).itemsize for s in out_shape)
    tmp_bytes = (16 * N * N * 4            # per-head scores / p / alpha / masks
                 + 8 * E * N * 2           # in-kernel one-hots + gather operands
                 + 16 * N * hd_max * 4     # h / feat / rst / residual copies
                 + 8 * E * 2 * hd_max * 4  # edge-MLP activations
                 + (1 << 20))
    vmem_limit = int(min(64 << 20, max(16 << 20, 2 * (in_bytes + out_bytes) + tmp_bytes)))

    vmem = pltpu.MemorySpace.VMEM
    # TODO(synk): whole-graph-in-VMEM design assumes small N (dense (N,N) adjacency);
    #             realistic TSP sizes need flash-style (dst_tile, src_tile) tiling with a
    #             'parallel' dst grid axis (v7x megacore) and graph batching along rows
    #             so matmul M >= 256 to feed the 256-wide MXU (v6e/v7x).
    edge_pad, s_pad = pl.pallas_call(
        kern,
        out_shape=out_shape,
        in_specs=[pl.BlockSpec(memory_space=vmem) for _ in flat_inputs],
        out_specs=(pl.BlockSpec(memory_space=vmem), pl.BlockSpec(memory_space=vmem)),
        compiler_params=pltpu.CompilerParams(vmem_limit_bytes=vmem_limit),
    )(*flat_inputs)
    return edge_pad[:, :n_classes], s_pad[:, :assign_dim]


# ----------------------------------------------------------------------------
# Parameter construction (deterministic, mirrors the module __init__ shapes)
# ----------------------------------------------------------------------------
def init_linear(key, fan_in, fan_out):
    k1, k2 = jax.random.split(key)
    bound = 1.0 / np.sqrt(fan_in)
    w = jax.random.uniform(k1, (fan_in, fan_out), jnp.float32, -bound, bound)
    b = jax.random.uniform(k2, (1, fan_out), jnp.float32, -bound, bound)
    return w, b


def init_gat_params(key, in_dim, out_dim, num_heads):
    k1, k2, k3 = jax.random.split(key, 3)
    HD = out_dim * num_heads
    return dict(
        wfc=jax.random.normal(k1, (in_dim, HD), jnp.float32) * (1.0 / np.sqrt(in_dim)),
        attn_l=jax.random.normal(k2, (num_heads, out_dim), jnp.float32) * 0.1,
        attn_r=jax.random.normal(k3, (num_heads, out_dim), jnp.float32) * 0.1,
        bn_gamma=jnp.ones((1, HD), jnp.float32),
        bn_beta=jnp.zeros((1, HD), jnp.float32),
        bn_mean=jnp.zeros((1, HD), jnp.float32),
        bn_var=jnp.ones((1, HD), jnp.float32),
    )


def init_bigat_net(key, net_params):
    in_dim = net_params["in_dim"]
    hidden = net_params["hidden_dim"]
    out_dim = net_params["out_dim"]
    heads = net_params["n_heads"]
    n_classes = net_params["n_classes"]
    assign_dim = net_params["assign_dim"]
    HD = hidden * heads

    cfgs = _layer_configs(net_params)
    keys = jax.random.split(key, 12)
    params = {}
    params["emb_w"], params["emb_b"] = init_linear(keys[0], in_dim, HD)

    layers = []
    for li, (kind, c_in, c_out, c_heads) in enumerate(cfgs):
        p = init_gat_params(keys[1 + li], c_in, c_out, c_heads)
        if kind == "bigat":
            p["w_assign"], p["b_assign"] = init_linear(keys[6], c_out * c_heads, assign_dim)
        layers.append(p)
    params["layers"] = layers

    # MLPReadout(2*out_dim, n_classes), L=2 halving layers
    d0 = 2 * out_dim
    mlp = [init_linear(keys[7], d0, d0 // 2),
           init_linear(keys[8], d0 // 2, d0 // 4),
           init_linear(keys[9], d0 // 4, n_classes)]
    params["mlp"] = mlp
    return params


# ----------------------------------------------------------------------------
# Main
# ----------------------------------------------------------------------------
if __name__ == "__main__":
    net_params = dict(
        in_dim=8, in_dim_edge=4, hidden_dim=16, out_dim=64, n_classes=2,
        n_heads=4, in_feat_dropout=0.0, dropout=0.0, L=4,
        edge_feat=False, sigma=1.0, pos_enc=False, assign_dim=8,
        readout="mean", batch_norm=True, residual=True, device="tpu",
    )

    N = 32
    K_NEIGH = 4  # ring graph: each node connected to 4 neighbors on each side
    adj_np = np.zeros((N, N), dtype=np.float32)  # adj[dst, src]
    for i in range(N):
        for d in range(1, K_NEIGH + 1):
            adj_np[i, (i + d) % N] = 1.0
            adj_np[i, (i - d) % N] = 1.0
    edge_dst_np, edge_src_np = np.nonzero(adj_np)  # edges (src -> dst)
    E = edge_src_np.shape[0]

    key = jax.random.PRNGKey(0)
    k_param, k_h, k_e = jax.random.split(key, 3)
    params = init_bigat_net(k_param, net_params)

    h = jax.random.normal(k_h, (N, net_params["in_dim"]), jnp.float32)
    e = jax.random.normal(k_e, (E, net_params["in_dim_edge"]), jnp.float32)
    adj = jnp.asarray(adj_np)
    edge_src = jnp.asarray(edge_src_np, dtype=jnp.int32)
    edge_dst = jnp.asarray(edge_dst_np, dtype=jnp.int32)

    edge_logits, s = bigat_net_forward(params, net_params, adj, edge_src, edge_dst, h, e)
    jax.block_until_ready((edge_logits, s))

    assert edge_logits.shape == (E, net_params["n_classes"])
    assert s.shape == (N, net_params["assign_dim"])
    assert bool(jnp.all(jnp.isfinite(edge_logits))) and bool(jnp.all(jnp.isfinite(s)))
    print("KERNEL_OK")
</pallas_src>

<mosaic_0001>
module attributes {stable_mosaic.version = 11 : i64} {
  func.func @_fused_forward_kernel(%arg0: memref<32x8xf32, #tpu.memory_space<vmem>>, %arg1: memref<32x32xf32, #tpu.memory_space<vmem>>, %arg2: memref<256x1xi32, #tpu.memory_space<vmem>>, %arg3: memref<256x1xi32, #tpu.memory_space<vmem>>, %arg4: memref<8x64xbf16, #tpu.memory_space<vmem>>, %arg5: memref<1x64xf32, #tpu.memory_space<vmem>>, %arg6: memref<64x64xbf16, #tpu.memory_space<vmem>>, %arg7: memref<4x64xbf16, #tpu.memory_space<vmem>>, %arg8: memref<64x4xbf16, #tpu.memory_space<vmem>>, %arg9: memref<1x64xf32, #tpu.memory_space<vmem>>, %arg10: memref<1x64xf32, #tpu.memory_space<vmem>>, %arg11: memref<1x64xf32, #tpu.memory_space<vmem>>, %arg12: memref<1x64xf32, #tpu.memory_space<vmem>>, %arg13: memref<64x64xbf16, #tpu.memory_space<vmem>>, %arg14: memref<4x64xbf16, #tpu.memory_space<vmem>>, %arg15: memref<64x4xbf16, #tpu.memory_space<vmem>>, %arg16: memref<1x64xf32, #tpu.memory_space<vmem>>, %arg17: memref<1x64xf32, #tpu.memory_space<vmem>>, %arg18: memref<1x64xf32, #tpu.memory_space<vmem>>, %arg19: memref<1x64xf32, #tpu.memory_space<vmem>>, %arg20: memref<64x8xbf16, #tpu.memory_space<vmem>>, %arg21: memref<1x8xf32, #tpu.memory_space<vmem>>, %arg22: memref<64x64xbf16, #tpu.memory_space<vmem>>, %arg23: memref<4x64xbf16, #tpu.memory_space<vmem>>, %arg24: memref<64x4xbf16, #tpu.memory_space<vmem>>, %arg25: memref<1x64xf32, #tpu.memory_space<vmem>>, %arg26: memref<1x64xf32, #tpu.memory_space<vmem>>, %arg27: memref<1x64xf32, #tpu.memory_space<vmem>>, %arg28: memref<1x64xf32, #tpu.memory_space<vmem>>, %arg29: memref<64x64xbf16, #tpu.memory_space<vmem>>, %arg30: memref<1x64xbf16, #tpu.memory_space<vmem>>, %arg31: memref<64x1xbf16, #tpu.memory_space<vmem>>, %arg32: memref<1x64xf32, #tpu.memory_space<vmem>>, %arg33: memref<1x64xf32, #tpu.memory_space<vmem>>, %arg34: memref<1x64xf32, #tpu.memory_space<vmem>>, %arg35: memref<1x64xf32, #tpu.memory_space<vmem>>, %arg36: memref<128x64xbf16, #tpu.memory_space<vmem>>, %arg37: memref<1x64xf32, #tpu.memory_space<vmem>>, %arg38: memref<64x32xbf16, #tpu.memory_space<vmem>>, %arg39: memref<1x32xf32, #tpu.memory_space<vmem>>, %arg40: memref<32x128xbf16, #tpu.memory_space<vmem>>, %arg41: memref<1x128xf32, #tpu.memory_space<vmem>>, %arg42: memref<256x128xf32, #tpu.memory_space<vmem>>, %arg43: memref<32x128xf32, #tpu.memory_space<vmem>>) attributes {dimension_semantics = [], scalar_prefetch = 0 : i64, scratch_operands = 0 : i64, tpu.core_type = #tpu.core_type<tc>} {
    %c0 = arith.constant 0 : index
    %c0_0 = arith.constant 0 : index
    %0 = vector.load %arg1[%c0, %c0_0] : memref<32x32xf32, #tpu.memory_space<vmem>>, vector<32x32xf32>
    %cst = arith.constant 1.000000e+00 : f32
    %1 = vector.broadcast %cst : f32 to vector<32x32xf32>
    %2 = arith.subf %1, %0 : vector<32x32xf32>
    %cst_1 = arith.constant -1.000000e+30 : f32
    %3 = vector.broadcast %cst_1 : f32 to vector<32x32xf32>
    %4 = arith.mulf %2, %3 : vector<32x32xf32>
    %c0_2 = arith.constant 0 : index
    %c0_3 = arith.constant 0 : index
    %5 = vector.load %arg0[%c0_2, %c0_3] : memref<32x8xf32, #tpu.memory_space<vmem>>, vector<32x8xf32>
    %6 = arith.truncf %5 : vector<32x8xf32> to vector<32x8xbf16>
    %c0_4 = arith.constant 0 : index
    %c0_5 = arith.constant 0 : index
    %7 = vector.load %arg4[%c0_4, %c0_5] : memref<8x64xbf16, #tpu.memory_space<vmem>>, vector<8x64xbf16>
    %cst_6 = arith.constant dense<0.000000e+00> : vector<32x64xf32>
    %8 = tpu.matmul %6, %7, %cst_6 {dimension_numbers = #tpu.dot_dimension_numbers<[1], [0], [0], [1], [0, 0, 1, 1], [], []>} : vector<32x8xbf16>, vector<8x64xbf16>, vector<32x64xf32> -> vector<32x64xf32>
    %c0_7 = arith.constant 0 : index
    %c0_8 = arith.constant 0 : index
    %9 = vector.load %arg5[%c0_7, %c0_8] : memref<1x64xf32, #tpu.memory_space<vmem>>, vector<1x64xf32>
    %10 = vector.broadcast %9 : vector<1x64xf32> to vector<32x64xf32>
    %11 = arith.addf %8, %10 : vector<32x64xf32>
    %12 = arith.truncf %11 : vector<32x64xf32> to vector<32x64xbf16>
    %c0_9 = arith.constant 0 : index
    %c0_10 = arith.constant 0 : index
    %13 = vector.load %arg6[%c0_9, %c0_10] : memref<64x64xbf16, #tpu.memory_space<vmem>>, vector<64x64xbf16>
    %cst_11 = arith.constant dense<0.000000e+00> : vector<32x64xf32>
    %14 = tpu.matmul %12, %13, %cst_11 {dimension_numbers = #tpu.dot_dimension_numbers<[1], [0], [0], [1], [0, 0, 1, 1], [], []>} : vector<32x64xbf16>, vector<64x64xbf16>, vector<32x64xf32> -> vector<32x64xf32>
    %c0_12 = arith.constant 0 : index
    %c0_13 = arith.constant 0 : index
    %15 = vector.load %arg8[%c0_12, %c0_13] : memref<64x4xbf16, #tpu.memory_space<vmem>>, vector<64x4xbf16>
    %cst_14 = arith.constant dense<0.000000e+00> : vector<32x4xf32>
    %16 = tpu.matmul %12, %15, %cst_14 {dimension_numbers = #tpu.dot_dimension_numbers<[1], [0], [0], [1], [0, 0, 1, 1], [], []>} : vector<32x64xbf16>, vector<64x4xbf16>, vector<32x4xf32> -> vector<32x4xf32>
    %c0_15 = arith.constant 0 : index
    %c0_16 = arith.constant 0 : index
    %17 = vector.load %arg7[%c0_15, %c0_16] : memref<4x64xbf16, #tpu.memory_space<vmem>>, vector<4x64xbf16>
    %cst_17 = arith.constant dense<0.000000e+00> : vector<4x32xf32>
    %18 = tpu.matmul %17, %12, %cst_17 {dimension_numbers = #tpu.dot_dimension_numbers<[1], [1], [0], [0], [0, 0, 1, 0], [], []>} : vector<4x64xbf16>, vector<32x64xbf16>, vector<4x32xf32> -> vector<4x32xf32>
    %19 = vector.extract_strided_slice %16 {offsets = [0, 0], sizes = [32, 1], strides = [1, 1]} : vector<32x4xf32> to vector<32x1xf32>
    %20 = vector.extract_strided_slice %18 {offsets = [0, 0], sizes = [1, 32], strides = [1, 1]} : vector<4x32xf32> to vector<1x32xf32>
    %21 = vector.broadcast %19 : vector<32x1xf32> to vector<32x32xf32>
    %22 = vector.broadcast %20 : vector<1x32xf32> to vector<32x32xf32>
    %23 = arith.addf %21, %22 : vector<32x32xf32>
    %cst_18 = arith.constant 0.000000e+00 : f32
    %24 = vector.broadcast %cst_18 : f32 to vector<32x32xf32>
    %25 = arith.cmpf oge, %23, %24 : vector<32x32xf32>
    %cst_19 = arith.constant 2.000000e-01 : f32
    %26 = vector.broadcast %cst_19 : f32 to vector<32x32xf32>
    %27 = arith.mulf %26, %23 : vector<32x32xf32>
    %28 = arith.select %25, %23, %27 : vector<32x32xi1>, vector<32x32xf32>
    %29 = arith.addf %28, %4 : vector<32x32xf32>
    %cst_20 = arith.constant dense<0xFF800000> : vector<32xf32>
    %30 = vector.multi_reduction <maximumf>, %29, %cst_20 [1] : vector<32x32xf32> to vector<32xf32>
    %31 = vector.shape_cast %30 : vector<32xf32> to vector<32x1xf32>
    %32 = vector.broadcast %31 : vector<32x1xf32> to vector<32x32xf32>
    %33 = arith.subf %29, %32 : vector<32x32xf32>
    %34 = math.exp %33 : vector<32x32xf32>
    %35 = arith.mulf %34, %0 : vector<32x32xf32>
    %cst_21 = arith.constant dense<0.000000e+00> : vector<32xf32>
    %36 = vector.multi_reduction <add>, %35, %cst_21 [1] : vector<32x32xf32> to vector<32xf32>
    %37 = vector.shape_cast %36 : vector<32xf32> to vector<32x1xf32>
    %cst_22 = arith.constant 9.99999968E-21 : f32
    %38 = vector.broadcast %cst_22 : f32 to vector<32x1xf32>
    %39 = arith.maximumf %37, %38 : vector<32x1xf32>
    %40 = tpu.reciprocal %39 {approx = true} : vector<32x1xf32> -> vector<32x1xf32>
    %41 = vector.broadcast %40 : vector<32x1xf32> to vector<32x32xf32>
    %42 = arith.mulf %35, %41 : vector<32x32xf32>
    %43 = vector.extract_strided_slice %14 {offsets = [0, 0], sizes = [32, 16], strides = [1, 1]} : vector<32x64xf32> to vector<32x16xf32>
    %44 = arith.truncf %43 : vector<32x16xf32> to vector<32x16xbf16>
    %45 = arith.truncf %42 : vector<32x32xf32> to vector<32x32xbf16>
    %cst_23 = arith.constant dense<0.000000e+00> : vector<32x16xf32>
    %46 = tpu.matmul %45, %44, %cst_23 {dimension_numbers = #tpu.dot_dimension_numbers<[1], [0], [0], [1], [0, 0, 1, 1], [], []>} : vector<32x32xbf16>, vector<32x16xbf16>, vector<32x16xf32> -> vector<32x16xf32>
    %47 = vector.extract_strided_slice %16 {offsets = [0, 1], sizes = [32, 1], strides = [1, 1]} : vector<32x4xf32> to vector<32x1xf32>
    %48 = vector.extract_strided_slice %18 {offsets = [1, 0], sizes = [1, 32], strides = [1, 1]} : vector<4x32xf32> to vector<1x32xf32>
    %49 = vector.broadcast %47 : vector<32x1xf32> to vector<32x32xf32>
    %50 = vector.broadcast %48 : vector<1x32xf32> to vector<32x32xf32>
    %51 = arith.addf %49, %50 : vector<32x32xf32>
    %cst_24 = arith.constant 0.000000e+00 : f32
    %52 = vector.broadcast %cst_24 : f32 to vector<32x32xf32>
    %53 = arith.cmpf oge, %51, %52 : vector<32x32xf32>
    %cst_25 = arith.constant 2.000000e-01 : f32
    %54 = vector.broadcast %cst_25 : f32 to vector<32x32xf32>
    %55 = arith.mulf %54, %51 : vector<32x32xf32>
    %56 = arith.select %53, %51, %55 : vector<32x32xi1>, vector<32x32xf32>
    %57 = arith.addf %56, %4 : vector<32x32xf32>
    %cst_26 = arith.constant dense<0xFF800000> : vector<32xf32>
    %58 = vector.multi_reduction <maximumf>, %57, %cst_26 [1] : vector<32x32xf32> to vector<32xf32>
    %59 = vector.shape_cast %58 : vector<32xf32> to vector<32x1xf32>
    %60 = vector.broadcast %59 : vector<32x1xf32> to vector<32x32xf32>
    %61 = arith.subf %57, %60 : vector<32x32xf32>
    %62 = math.exp %61 : vector<32x32xf32>
    %63 = arith.mulf %62, %0 : vector<32x32xf32>
    %cst_27 = arith.constant dense<0.000000e+00> : vector<32xf32>
    %64 = vector.multi_reduction <add>, %63, %cst_27 [1] : vector<32x32xf32> to vector<32xf32>
    %65 = vector.shape_cast %64 : vector<32xf32> to vector<32x1xf32>
    %cst_28 = arith.constant 9.99999968E-21 : f32
    %66 = vector.broadcast %cst_28 : f32 to vector<32x1xf32>
    %67 = arith.maximumf %65, %66 : vector<32x1xf32>
    %68 = tpu.reciprocal %67 {approx = true} : vector<32x1xf32> -> vector<32x1xf32>
    %69 = vector.broadcast %68 : vector<32x1xf32> to vector<32x32xf32>
    %70 = arith.mulf %63, %69 : vector<32x32xf32>
    %71 = vector.extract_strided_slice %14 {offsets = [0, 16], sizes = [32, 16], strides = [1, 1]} : vector<32x64xf32> to vector<32x16xf32>
    %72 = arith.truncf %71 : vector<32x16xf32> to vector<32x16xbf16>
    %73 = arith.truncf %70 : vector<32x32xf32> to vector<32x32xbf16>
    %cst_29 = arith.constant dense<0.000000e+00> : vector<32x16xf32>
    %74 = tpu.matmul %73, %72, %cst_29 {dimension_numbers = #tpu.dot_dimension_numbers<[1], [0], [0], [1], [0, 0, 1, 1], [], []>} : vector<32x32xbf16>, vector<32x16xbf16>, vector<32x16xf32> -> vector<32x16xf32>
    %75 = vector.extract_strided_slice %16 {offsets = [0, 2], sizes = [32, 1], strides = [1, 1]} : vector<32x4xf32> to vector<32x1xf32>
    %76 = vector.extract_strided_slice %18 {offsets = [2, 0], sizes = [1, 32], strides = [1, 1]} : vector<4x32xf32> to vector<1x32xf32>
    %77 = vector.broadcast %75 : vector<32x1xf32> to vector<32x32xf32>
    %78 = vector.broadcast %76 : vector<1x32xf32> to vector<32x32xf32>
    %79 = arith.addf %77, %78 : vector<32x32xf32>
    %cst_30 = arith.constant 0.000000e+00 : f32
    %80 = vector.broadcast %cst_30 : f32 to vector<32x32xf32>
    %81 = arith.cmpf oge, %79, %80 : vector<32x32xf32>
    %cst_31 = arith.constant 2.000000e-01 : f32
    %82 = vector.broadcast %cst_31 : f32 to vector<32x32xf32>
    %83 = arith.mulf %82, %79 : vector<32x32xf32>
    %84 = arith.select %81, %79, %83 : vector<32x32xi1>, vector<32x32xf32>
    %85 = arith.addf %84, %4 : vector<32x32xf32>
    %cst_32 = arith.constant dense<0xFF800000> : vector<32xf32>
    %86 = vector.multi_reduction <maximumf>, %85, %cst_32 [1] : vector<32x32xf32> to vector<32xf32>
    %87 = vector.shape_cast %86 : vector<32xf32> to vector<32x1xf32>
    %88 = vector.broadcast %87 : vector<32x1xf32> to vector<32x32xf32>
    %89 = arith.subf %85, %88 : vector<32x32xf32>
    %90 = math.exp %89 : vector<32x32xf32>
    %91 = arith.mulf %90, %0 : vector<32x32xf32>
    %cst_33 = arith.constant dense<0.000000e+00> : vector<32xf32>
    %92 = vector.multi_reduction <add>, %91, %cst_33 [1] : vector<32x32xf32> to vector<32xf32>
    %93 = vector.shape_cast %92 : vector<32xf32> to vector<32x1xf32>
    %cst_34 = arith.constant 9.99999968E-21 : f32
    %94 = vector.broadcast %cst_34 : f32 to vector<32x1xf32>
    %95 = arith.maximumf %93, %94 : vector<32x1xf32>
    %96 = tpu.reciprocal %95 {approx = true} : vector<32x1xf32> -> vector<32x1xf32>
    %97 = vector.broadcast %96 : vector<32x1xf32> to vector<32x32xf32>
    %98 = arith.mulf %91, %97 : vector<32x32xf32>
    %99 = vector.extract_strided_slice %14 {offsets = [0, 32], sizes = [32, 16], strides = [1, 1]} : vector<32x64xf32> to vector<32x16xf32>
    %100 = arith.truncf %99 : vector<32x16xf32> to vector<32x16xbf16>
    %101 = arith.truncf %98 : vector<32x32xf32> to vector<32x32xbf16>
    %cst_35 = arith.constant dense<0.000000e+00> : vector<32x16xf32>
    %102 = tpu.matmul %101, %100, %cst_35 {dimension_numbers = #tpu.dot_dimension_numbers<[1], [0], [0], [1], [0, 0, 1, 1], [], []>} : vector<32x32xbf16>, vector<32x16xbf16>, vector<32x16xf32> -> vector<32x16xf32>
    %103 = vector.extract_strided_slice %16 {offsets = [0, 3], sizes = [32, 1], strides = [1, 1]} : vector<32x4xf32> to vector<32x1xf32>
    %104 = vector.extract_strided_slice %18 {offsets = [3, 0], sizes = [1, 32], strides = [1, 1]} : vector<4x32xf32> to vector<1x32xf32>
    %105 = vector.broadcast %103 : vector<32x1xf32> to vector<32x32xf32>
    %106 = vector.broadcast %104 : vector<1x32xf32> to vector<32x32xf32>
    %107 = arith.addf %105, %106 : vector<32x32xf32>
    %cst_36 = arith.constant 0.000000e+00 : f32
    %108 = vector.broadcast %cst_36 : f32 to vector<32x32xf32>
    %109 = arith.cmpf oge, %107, %108 : vector<32x32xf32>
    %cst_37 = arith.constant 2.000000e-01 : f32
    %110 = vector.broadcast %cst_37 : f32 to vector<32x32xf32>
    %111 = arith.mulf %110, %107 : vector<32x32xf32>
    %112 = arith.select %109, %107, %111 : vector<32x32xi1>, vector<32x32xf32>
    %113 = arith.addf %112, %4 : vector<32x32xf32>
    %cst_38 = arith.constant dense<0xFF800000> : vector<32xf32>
    %114 = vector.multi_reduction <maximumf>, %113, %cst_38 [1] : vector<32x32xf32> to vector<32xf32>
    %115 = vector.shape_cast %114 : vector<32xf32> to vector<32x1xf32>
    %116 = vector.broadcast %115 : vector<32x1xf32> to vector<32x32xf32>
    %117 = arith.subf %113, %116 : vector<32x32xf32>
    %118 = math.exp %117 : vector<32x32xf32>
    %119 = arith.mulf %118, %0 : vector<32x32xf32>
    %cst_39 = arith.constant dense<0.000000e+00> : vector<32xf32>
    %120 = vector.multi_reduction <add>, %119, %cst_39 [1] : vector<32x32xf32> to vector<32xf32>
    %121 = vector.shape_cast %120 : vector<32xf32> to vector<32x1xf32>
    %cst_40 = arith.constant 9.99999968E-21 : f32
    %122 = vector.broadcast %cst_40 : f32 to vector<32x1xf32>
    %123 = arith.maximumf %121, %122 : vector<32x1xf32>
    %124 = tpu.reciprocal %123 {approx = true} : vector<32x1xf32> -> vector<32x1xf32>
    %125 = vector.broadcast %124 : vector<32x1xf32> to vector<32x32xf32>
    %126 = arith.mulf %119, %125 : vector<32x32xf32>
    %127 = vector.extract_strided_slice %14 {offsets = [0, 48], sizes = [32, 16], strides = [1, 1]} : vector<32x64xf32> to vector<32x16xf32>
    %128 = arith.truncf %127 : vector<32x16xf32> to vector<32x16xbf16>
    %129 = arith.truncf %126 : vector<32x32xf32> to vector<32x32xbf16>
    %cst_41 = arith.constant dense<0.000000e+00> : vector<32x16xf32>
    %130 = tpu.matmul %129, %128, %cst_41 {dimension_numbers = #tpu.dot_dimension_numbers<[1], [0], [0], [1], [0, 0, 1, 1], [], []>} : vector<32x32xbf16>, vector<32x16xbf16>, vector<32x16xf32> -> vector<32x16xf32>
    %131 = tpu.concatenate %46, %74, %102, %130 in 1 : vector<32x16xf32>, vector<32x16xf32>, vector<32x16xf32>, vector<32x16xf32> -> vector<32x64xf32>
    %c0_42 = arith.constant 0 : index
    %c0_43 = arith.constant 0 : index
    %132 = vector.load %arg11[%c0_42, %c0_43] : memref<1x64xf32, #tpu.memory_space<vmem>>, vector<1x64xf32>
    %133 = vector.broadcast %132 : vector<1x64xf32> to vector<32x64xf32>
    %134 = arith.subf %131, %133 : vector<32x64xf32>
    %c0_44 = arith.constant 0 : index
    %c0_45 = arith.constant 0 : index
    %135 = vector.load %arg12[%c0_44, %c0_45] : memref<1x64xf32, #tpu.memory_space<vmem>>, vector<1x64xf32>
    %cst_46 = arith.constant 9.99999974E-6 : f32
    %136 = vector.broadcast %cst_46 : f32 to vector<1x64xf32>
    %137 = arith.addf %135, %136 : vector<1x64xf32>
    %138 = math.rsqrt %137 : vector<1x64xf32>
    %139 = vector.broadcast %138 : vector<1x64xf32> to vector<32x64xf32>
    %140 = arith.mulf %134, %139 : vector<32x64xf32>
    %c0_47 = arith.constant 0 : index
    %c0_48 = arith.constant 0 : index
    %141 = vector.load %arg9[%c0_47, %c0_48] : memref<1x64xf32, #tpu.memory_space<vmem>>, vector<1x64xf32>
    %142 = vector.broadcast %141 : vector<1x64xf32> to vector<32x64xf32>
    %143 = arith.mulf %140, %142 : vector<32x64xf32>
    %c0_49 = arith.constant 0 : index
    %c0_50 = arith.constant 0 : index
    %144 = vector.load %arg10[%c0_49, %c0_50] : memref<1x64xf32, #tpu.memory_space<vmem>>, vector<1x64xf32>
    %145 = vector.broadcast %144 : vector<1x64xf32> to vector<32x64xf32>
    %146 = arith.addf %143, %145 : vector<32x64xf32>
    %cst_51 = arith.constant 0.000000e+00 : f32
    %147 = vector.broadcast %cst_51 : f32 to vector<32x64xf32>
    %148 = arith.cmpf ogt, %146, %147 : vector<32x64xf32>
    %cst_52 = arith.constant 0.000000e+00 : f32
    %149 = vector.broadcast %cst_52 : f32 to vector<32x64xf32>
    %150 = arith.minimumf %146, %149 : vector<32x64xf32>
    %151 = math.exp %150 : vector<32x64xf32>
    %cst_53 = arith.constant 1.000000e+00 : f32
    %152 = vector.broadcast %cst_53 : f32 to vector<32x64xf32>
    %153 = arith.subf %151, %152 : vector<32x64xf32>
    %154 = arith.select %148, %146, %153 : vector<32x64xi1>, vector<32x64xf32>
    %155 = arith.addf %11, %154 : vector<32x64xf32>
    %156 = math.absf %155 : vector<32x64xf32>
    %cst_54 = arith.constant 0x7F800000 : f32
    %157 = vector.broadcast %cst_54 : f32 to vector<32x64xf32>
    %158 = arith.cmpf oeq, %156, %157 : vector<32x64xf32>
    %cst_55 = arith.constant 1.000000e+09 : f32
    %159 = vector.broadcast %cst_55 : f32 to vector<32x64xf32>
    %160 = arith.select %158, %159, %155 : vector<32x64xi1>, vector<32x64xf32>
    %161 = arith.truncf %160 : vector<32x64xf32> to vector<32x64xbf16>
    %c0_56 = arith.constant 0 : index
    %c0_57 = arith.constant 0 : index
    %162 = vector.load %arg13[%c0_56, %c0_57] : memref<64x64xbf16, #tpu.memory_space<vmem>>, vector<64x64xbf16>
    %cst_58 = arith.constant dense<0.000000e+00> : vector<32x64xf32>
    %163 = tpu.matmul %161, %162, %cst_58 {dimension_numbers = #tpu.dot_dimension_numbers<[1], [0], [0], [1], [0, 0, 1, 1], [], []>} : vector<32x64xbf16>, vector<64x64xbf16>, vector<32x64xf32> -> vector<32x64xf32>
    %c0_59 = arith.constant 0 : index
    %c0_60 = arith.constant 0 : index
    %164 = vector.load %arg15[%c0_59, %c0_60] : memref<64x4xbf16, #tpu.memory_space<vmem>>, vector<64x4xbf16>
    %cst_61 = arith.constant dense<0.000000e+00> : vector<32x4xf32>
    %165 = tpu.matmul %161, %164, %cst_61 {dimension_numbers = #tpu.dot_dimension_numbers<[1], [0], [0], [1], [0, 0, 1, 1], [], []>} : vector<32x64xbf16>, vector<64x4xbf16>, vector<32x4xf32> -> vector<32x4xf32>
    %c0_62 = arith.constant 0 : index
    %c0_63 = arith.constant 0 : index
    %166 = vector.load %arg14[%c0_62, %c0_63] : memref<4x64xbf16, #tpu.memory_space<vmem>>, vector<4x64xbf16>
    %cst_64 = arith.constant dense<0.000000e+00> : vector<4x32xf32>
    %167 = tpu.matmul %166, %161, %cst_64 {dimension_numbers = #tpu.dot_dimension_numbers<[1], [1], [0], [0], [0, 0, 1, 0], [], []>} : vector<4x64xbf16>, vector<32x64xbf16>, vector<4x32xf32> -> vector<4x32xf32>
    %168 = vector.extract_strided_slice %165 {offsets = [0, 0], sizes = [32, 1], strides = [1, 1]} : vector<32x4xf32> to vector<32x1xf32>
    %169 = vector.extract_strided_slice %167 {offsets = [0, 0], sizes = [1, 32], strides = [1, 1]} : vector<4x32xf32> to vector<1x32xf32>
    %170 = vector.broadcast %168 : vector<32x1xf32> to vector<32x32xf32>
    %171 = vector.broadcast %169 : vector<1x32xf32> to vector<32x32xf32>
    %172 = arith.addf %170, %171 : vector<32x32xf32>
    %cst_65 = arith.constant 0.000000e+00 : f32
    %173 = vector.broadcast %cst_65 : f32 to vector<32x32xf32>
    %174 = arith.cmpf oge, %172, %173 : vector<32x32xf32>
    %cst_66 = arith.constant 2.000000e-01 : f32
    %175 = vector.broadcast %cst_66 : f32 to vector<32x32xf32>
    %176 = arith.mulf %175, %172 : vector<32x32xf32>
    %177 = arith.select %174, %172, %176 : vector<32x32xi1>, vector<32x32xf32>
    %178 = arith.addf %177, %4 : vector<32x32xf32>
    %cst_67 = arith.constant dense<0xFF800000> : vector<32xf32>
    %179 = vector.multi_reduction <maximumf>, %178, %cst_67 [1] : vector<32x32xf32> to vector<32xf32>
    %180 = vector.shape_cast %179 : vector<32xf32> to vector<32x1xf32>
    %181 = vector.broadcast %180 : vector<32x1xf32> to vector<32x32xf32>
    %182 = arith.subf %178, %181 : vector<32x32xf32>
    %183 = math.exp %182 : vector<32x32xf32>
    %184 = arith.mulf %183, %0 : vector<32x32xf32>
    %cst_68 = arith.constant dense<0.000000e+00> : vector<32xf32>
    %185 = vector.multi_reduction <add>, %184, %cst_68 [1] : vector<32x32xf32> to vector<32xf32>
    %186 = vector.shape_cast %185 : vector<32xf32> to vector<32x1xf32>
    %cst_69 = arith.constant 9.99999968E-21 : f32
    %187 = vector.broadcast %cst_69 : f32 to vector<32x1xf32>
    %188 = arith.maximumf %186, %187 : vector<32x1xf32>
    %189 = tpu.reciprocal %188 {approx = true} : vector<32x1xf32> -> vector<32x1xf32>
    %190 = vector.broadcast %189 : vector<32x1xf32> to vector<32x32xf32>
    %191 = arith.mulf %184, %190 : vector<32x32xf32>
    %192 = vector.extract_strided_slice %163 {offsets = [0, 0], sizes = [32, 16], strides = [1, 1]} : vector<32x64xf32> to vector<32x16xf32>
    %193 = arith.truncf %192 : vector<32x16xf32> to vector<32x16xbf16>
    %194 = arith.truncf %191 : vector<32x32xf32> to vector<32x32xbf16>
    %cst_70 = arith.constant dense<0.000000e+00> : vector<32x16xf32>
    %195 = tpu.matmul %194, %193, %cst_70 {dimension_numbers = #tpu.dot_dimension_numbers<[1], [0], [0], [1], [0, 0, 1, 1], [], []>} : vector<32x32xbf16>, vector<32x16xbf16>, vector<32x16xf32> -> vector<32x16xf32>
    %196 = vector.extract_strided_slice %165 {offsets = [0, 1], sizes = [32, 1], strides = [1, 1]} : vector<32x4xf32> to vector<32x1xf32>
    %197 = vector.extract_strided_slice %167 {offsets = [1, 0], sizes = [1, 32], strides = [1, 1]} : vector<4x32xf32> to vector<1x32xf32>
    %198 = vector.broadcast %196 : vector<32x1xf32> to vector<32x32xf32>
    %199 = vector.broadcast %197 : vector<1x32xf32> to vector<32x32xf32>
    %200 = arith.addf %198, %199 : vector<32x32xf32>
    %cst_71 = arith.constant 0.000000e+00 : f32
    %201 = vector.broadcast %cst_71 : f32 to vector<32x32xf32>
    %202 = arith.cmpf oge, %200, %201 : vector<32x32xf32>
    %cst_72 = arith.constant 2.000000e-01 : f32
    %203 = vector.broadcast %cst_72 : f32 to vector<32x32xf32>
    %204 = arith.mulf %203, %200 : vector<32x32xf32>
    %205 = arith.select %202, %200, %204 : vector<32x32xi1>, vector<32x32xf32>
    %206 = arith.addf %205, %4 : vector<32x32xf32>
    %cst_73 = arith.constant dense<0xFF800000> : vector<32xf32>
    %207 = vector.multi_reduction <maximumf>, %206, %cst_73 [1] : vector<32x32xf32> to vector<32xf32>
    %208 = vector.shape_cast %207 : vector<32xf32> to vector<32x1xf32>
    %209 = vector.broadcast %208 : vector<32x1xf32> to vector<32x32xf32>
    %210 = arith.subf %206, %209 : vector<32x32xf32>
    %211 = math.exp %210 : vector<32x32xf32>
    %212 = arith.mulf %211, %0 : vector<32x32xf32>
    %cst_74 = arith.constant dense<0.000000e+00> : vector<32xf32>
    %213 = vector.multi_reduction <add>, %212, %cst_74 [1] : vector<32x32xf32> to vector<32xf32>
    %214 = vector.shape_cast %213 : vector<32xf32> to vector<32x1xf32>
    %cst_75 = arith.constant 9.99999968E-21 : f32
    %215 = vector.broadcast %cst_75 : f32 to vector<32x1xf32>
    %216 = arith.maximumf %214, %215 : vector<32x1xf32>
    %217 = tpu.reciprocal %216 {approx = true} : vector<32x1xf32> -> vector<32x1xf32>
    %218 = vector.broadcast %217 : vector<32x1xf32> to vector<32x32xf32>
    %219 = arith.mulf %212, %218 : vector<32x32xf32>
    %220 = vector.extract_strided_slice %163 {offsets = [0, 16], sizes = [32, 16], strides = [1, 1]} : vector<32x64xf32> to vector<32x16xf32>
    %221 = arith.truncf %220 : vector<32x16xf32> to vector<32x16xbf16>
    %222 = arith.truncf %219 : vector<32x32xf32> to vector<32x32xbf16>
    %cst_76 = arith.constant dense<0.000000e+00> : vector<32x16xf32>
    %223 = tpu.matmul %222, %221, %cst_76 {dimension_numbers = #tpu.dot_dimension_numbers<[1], [0], [0], [1], [0, 0, 1, 1], [], []>} : vector<32x32xbf16>, vector<32x16xbf16>, vector<32x16xf32> -> vector<32x16xf32>
    %224 = vector.extract_strided_slice %165 {offsets = [0, 2], sizes = [32, 1], strides = [1, 1]} : vector<32x4xf32> to vector<32x1xf32>
    %225 = vector.extract_strided_slice %167 {offsets = [2, 0], sizes = [1, 32], strides = [1, 1]} : vector<4x32xf32> to vector<1x32xf32>
    %226 = vector.broadcast %224 : vector<32x1xf32> to vector<32x32xf32>
    %227 = vector.broadcast %225 : vector<1x32xf32> to vector<32x32xf32>
    %228 = arith.addf %226, %227 : vector<32x32xf32>
    %cst_77 = arith.constant 0.000000e+00 : f32
    %229 = vector.broadcast %cst_77 : f32 to vector<32x32xf32>
    %230 = arith.cmpf oge, %228, %229 : vector<32x32xf32>
    %cst_78 = arith.constant 2.000000e-01 : f32
    %231 = vector.broadcast %cst_78 : f32 to vector<32x32xf32>
    %232 = arith.mulf %231, %228 : vector<32x32xf32>
    %233 = arith.select %230, %228, %232 : vector<32x32xi1>, vector<32x32xf32>
    %234 = arith.addf %233, %4 : vector<32x32xf32>
    %cst_79 = arith.constant dense<0xFF800000> : vector<32xf32>
    %235 = vector.multi_reduction <maximumf>, %234, %cst_79 [1] : vector<32x32xf32> to vector<32xf32>
    %236 = vector.shape_cast %235 : vector<32xf32> to vector<32x1xf32>
    %237 = vector.broadcast %236 : vector<32x1xf32> to vector<32x32xf32>
    %238 = arith.subf %234, %237 : vector<32x32xf32>
    %239 = math.exp %238 : vector<32x32xf32>
    %240 = arith.mulf %239, %0 : vector<32x32xf32>
    %cst_80 = arith.constant dense<0.000000e+00> : vector<32xf32>
    %241 = vector.multi_reduction <add>, %240, %cst_80 [1] : vector<32x32xf32> to vector<32xf32>
    %242 = vector.shape_cast %241 : vector<32xf32> to vector<32x1xf32>
    %cst_81 = arith.constant 9.99999968E-21 : f32
    %243 = vector.broadcast %cst_81 : f32 to vector<32x1xf32>
    %244 = arith.maximumf %242, %243 : vector<32x1xf32>
    %245 = tpu.reciprocal %244 {approx = true} : vector<32x1xf32> -> vector<32x1xf32>
    %246 = vector.broadcast %245 : vector<32x1xf32> to vector<32x32xf32>
    %247 = arith.mulf %240, %246 : vector<32x32xf32>
    %248 = vector.extract_strided_slice %163 {offsets = [0, 32], sizes = [32, 16], strides = [1, 1]} : vector<32x64xf32> to vector<32x16xf32>
    %249 = arith.truncf %248 : vector<32x16xf32> to vector<32x16xbf16>
    %250 = arith.truncf %247 : vector<32x32xf32> to vector<32x32xbf16>
    %cst_82 = arith.constant dense<0.000000e+00> : vector<32x16xf32>
    %251 = tpu.matmul %250, %249, %cst_82 {dimension_numbers = #tpu.dot_dimension_numbers<[1], [0], [0], [1], [0, 0, 1, 1], [], []>} : vector<32x32xbf16>, vector<32x16xbf16>, vector<32x16xf32> -> vector<32x16xf32>
    %252 = vector.extract_strided_slice %165 {offsets = [0, 3], sizes = [32, 1], strides = [1, 1]} : vector<32x4xf32> to vector<32x1xf32>
    %253 = vector.extract_strided_slice %167 {offsets = [3, 0], sizes = [1, 32], strides = [1, 1]} : vector<4x32xf32> to vector<1x32xf32>
    %254 = vector.broadcast %252 : vector<32x1xf32> to vector<32x32xf32>
    %255 = vector.broadcast %253 : vector<1x32xf32> to vector<32x32xf32>
    %256 = arith.addf %254, %255 : vector<32x32xf32>
    %cst_83 = arith.constant 0.000000e+00 : f32
    %257 = vector.broadcast %cst_83 : f32 to vector<32x32xf32>
    %258 = arith.cmpf oge, %256, %257 : vector<32x32xf32>
    %cst_84 = arith.constant 2.000000e-01 : f32
    %259 = vector.broadcast %cst_84 : f32 to vector<32x32xf32>
    %260 = arith.mulf %259, %256 : vector<32x32xf32>
    %261 = arith.select %258, %256, %260 : vector<32x32xi1>, vector<32x32xf32>
    %262 = arith.addf %261, %4 : vector<32x32xf32>
    %cst_85 = arith.constant dense<0xFF800000> : vector<32xf32>
    %263 = vector.multi_reduction <maximumf>, %262, %cst_85 [1] : vector<32x32xf32> to vector<32xf32>
    %264 = vector.shape_cast %263 : vector<32xf32> to vector<32x1xf32>
    %265 = vector.broadcast %264 : vector<32x1xf32> to vector<32x32xf32>
    %266 = arith.subf %262, %265 : vector<32x32xf32>
    %267 = math.exp %266 : vector<32x32xf32>
    %268 = arith.mulf %267, %0 : vector<32x32xf32>
    %cst_86 = arith.constant dense<0.000000e+00> : vector<32xf32>
    %269 = vector.multi_reduction <add>, %268, %cst_86 [1] : vector<32x32xf32> to vector<32xf32>
    %270 = vector.shape_cast %269 : vector<32xf32> to vector<32x1xf32>
    %cst_87 = arith.constant 9.99999968E-21 : f32
    %271 = vector.broadcast %cst_87 : f32 to vector<32x1xf32>
    %272 = arith.maximumf %270, %271 : vector<32x1xf32>
    %273 = tpu.reciprocal %272 {approx = true} : vector<32x1xf32> -> vector<32x1xf32>
    %274 = vector.broadcast %273 : vector<32x1xf32> to vector<32x32xf32>
    %275 = arith.mulf %268, %274 : vector<32x32xf32>
    %276 = vector.extract_strided_slice %163 {offsets = [0, 48], sizes = [32, 16], strides = [1, 1]} : vector<32x64xf32> to vector<32x16xf32>
    %277 = arith.truncf %276 : vector<32x16xf32> to vector<32x16xbf16>
    %278 = arith.truncf %275 : vector<32x32xf32> to vector<32x32xbf16>
    %cst_88 = arith.constant dense<0.000000e+00> : vector<32x16xf32>
    %279 = tpu.matmul %278, %277, %cst_88 {dimension_numbers = #tpu.dot_dimension_numbers<[1], [0], [0], [1], [0, 0, 1, 1], [], []>} : vector<32x32xbf16>, vector<32x16xbf16>, vector<32x16xf32> -> vector<32x16xf32>
    %280 = tpu.concatenate %195, %223, %251, %279 in 1 : vector<32x16xf32>, vector<32x16xf32>, vector<32x16xf32>, vector<32x16xf32> -> vector<32x64xf32>
    %c0_89 = arith.constant 0 : index
    %c0_90 = arith.constant 0 : index
    %281 = vector.load %arg18[%c0_89, %c0_90] : memref<1x64xf32, #tpu.memory_space<vmem>>, vector<1x64xf32>
    %282 = vector.broadcast %281 : vector<1x64xf32> to vector<32x64xf32>
    %283 = arith.subf %280, %282 : vector<32x64xf32>
    %c0_91 = arith.constant 0 : index
    %c0_92 = arith.constant 0 : index
    %284 = vector.load %arg19[%c0_91, %c0_92] : memref<1x64xf32, #tpu.memory_space<vmem>>, vector<1x64xf32>
    %cst_93 = arith.constant 9.99999974E-6 : f32
    %285 = vector.broadcast %cst_93 : f32 to vector<1x64xf32>
    %286 = arith.addf %284, %285 : vector<1x64xf32>
    %287 = math.rsqrt %286 : vector<1x64xf32>
    %288 = vector.broadcast %287 : vector<1x64xf32> to vector<32x64xf32>
    %289 = arith.mulf %283, %288 : vector<32x64xf32>
    %c0_94 = arith.constant 0 : index
    %c0_95 = arith.constant 0 : index
    %290 = vector.load %arg16[%c0_94, %c0_95] : memref<1x64xf32, #tpu.memory_space<vmem>>, vector<1x64xf32>
    %291 = vector.broadcast %290 : vector<1x64xf32> to vector<32x64xf32>
    %292 = arith.mulf %289, %291 : vector<32x64xf32>
    %c0_96 = arith.constant 0 : index
    %c0_97 = arith.constant 0 : index
    %293 = vector.load %arg17[%c0_96, %c0_97] : memref<1x64xf32, #tpu.memory_space<vmem>>, vector<1x64xf32>
    %294 = vector.broadcast %293 : vector<1x64xf32> to vector<32x64xf32>
    %295 = arith.addf %292, %294 : vector<32x64xf32>
    %cst_98 = arith.constant 0.000000e+00 : f32
    %296 = vector.broadcast %cst_98 : f32 to vector<32x64xf32>
    %297 = arith.cmpf ogt, %295, %296 : vector<32x64xf32>
    %cst_99 = arith.constant 0.000000e+00 : f32
    %298 = vector.broadcast %cst_99 : f32 to vector<32x64xf32>
    %299 = arith.minimumf %295, %298 : vector<32x64xf32>
    %300 = math.exp %299 : vector<32x64xf32>
    %cst_100 = arith.constant 1.000000e+00 : f32
    %301 = vector.broadcast %cst_100 : f32 to vector<32x64xf32>
    %302 = arith.subf %300, %301 : vector<32x64xf32>
    %303 = arith.select %297, %295, %302 : vector<32x64xi1>, vector<32x64xf32>
    %304 = arith.addf %160, %303 : vector<32x64xf32>
    %305 = math.absf %304 : vector<32x64xf32>
    %cst_101 = arith.constant 0x7F800000 : f32
    %306 = vector.broadcast %cst_101 : f32 to vector<32x64xf32>
    %307 = arith.cmpf oeq, %305, %306 : vector<32x64xf32>
    %cst_102 = arith.constant 1.000000e+09 : f32
    %308 = vector.broadcast %cst_102 : f32 to vector<32x64xf32>
    %309 = arith.select %307, %308, %304 : vector<32x64xi1>, vector<32x64xf32>
    %310 = arith.truncf %309 : vector<32x64xf32> to vector<32x64xbf16>
    %c0_103 = arith.constant 0 : index
    %c0_104 = arith.constant 0 : index
    %311 = vector.load %arg20[%c0_103, %c0_104] : memref<64x8xbf16, #tpu.memory_space<vmem>>, vector<64x8xbf16>
    %cst_105 = arith.constant dense<0.000000e+00> : vector<32x8xf32>
    %312 = tpu.matmul %310, %311, %cst_105 {dimension_numbers = #tpu.dot_dimension_numbers<[1], [0], [0], [1], [0, 0, 1, 1], [], []>} : vector<32x64xbf16>, vector<64x8xbf16>, vector<32x8xf32> -> vector<32x8xf32>
    %c0_106 = arith.constant 0 : index
    %c0_107 = arith.constant 0 : index
    %313 = vector.load %arg21[%c0_106, %c0_107] : memref<1x8xf32, #tpu.memory_space<vmem>>, vector<1x8xf32>
    %314 = vector.broadcast %313 : vector<1x8xf32> to vector<32x8xf32>
    %315 = arith.addf %312, %314 : vector<32x8xf32>
    %cst_108 = arith.constant 1.000000e+00 : f32
    %316 = vector.broadcast %cst_108 : f32 to vector<32x8xf32>
    %317 = arith.mulf %315, %316 : vector<32x8xf32>
    %cst_109 = arith.constant dense<0xFF800000> : vector<32xf32>
    %318 = vector.multi_reduction <maximumf>, %317, %cst_109 [1] : vector<32x8xf32> to vector<32xf32>
    %319 = vector.shape_cast %318 : vector<32xf32> to vector<32x1xf32>
    %320 = vector.broadcast %319 : vector<32x1xf32> to vector<32x8xf32>
    %321 = arith.subf %317, %320 : vector<32x8xf32>
    %322 = math.exp %321 : vector<32x8xf32>
    %cst_110 = arith.constant dense<0.000000e+00> : vector<32xf32>
    %323 = vector.multi_reduction <add>, %322, %cst_110 [1] : vector<32x8xf32> to vector<32xf32>
    %324 = vector.shape_cast %323 : vector<32xf32> to vector<32x1xf32>
    %325 = tpu.reciprocal %324 {approx = true} : vector<32x1xf32> -> vector<32x1xf32>
    %326 = vector.broadcast %325 : vector<32x1xf32> to vector<32x8xf32>
    %327 = arith.mulf %322, %326 : vector<32x8xf32>
    %cst_111 = arith.constant 0.000000e+00 : f32
    %328 = vector.broadcast %cst_111 : f32 to vector<32x120xf32>
    %329 = tpu.concatenate %327, %328 in 1 : vector<32x8xf32>, vector<32x120xf32> -> vector<32x128xf32>
    %c0_112 = arith.constant 0 : index
    %c0_113 = arith.constant 0 : index
    %330 = vector.load %arg43[%c0_112, %c0_113] : memref<32x128xf32, #tpu.memory_space<vmem>>, vector<32x128xf32>
    tpu.vector_store %arg43[%c0_112, %c0_113], %329 {strides = array<i32>} : memref<32x128xf32, #tpu.memory_space<vmem>>, vector<32x128xf32>,
    %331 = arith.truncf %309 : vector<32x64xf32> to vector<32x64xbf16>
    %c0_114 = arith.constant 0 : index
    %c0_115 = arith.constant 0 : index
    %332 = vector.load %arg22[%c0_114, %c0_115] : memref<64x64xbf16, #tpu.memory_space<vmem>>, vector<64x64xbf16>
    %cst_116 = arith.constant dense<0.000000e+00> : vector<32x64xf32>
    %333 = tpu.matmul %331, %332, %cst_116 {dimension_numbers = #tpu.dot_dimension_numbers<[1], [0], [0], [1], [0, 0, 1, 1], [], []>} : vector<32x64xbf16>, vector<64x64xbf16>, vector<32x64xf32> -> vector<32x64xf32>
    %c0_117 = arith.constant 0 : index
    %c0_118 = arith.constant 0 : index
    %334 = vector.load %arg24[%c0_117, %c0_118] : memref<64x4xbf16, #tpu.memory_space<vmem>>, vector<64x4xbf16>
    %cst_119 = arith.constant dense<0.000000e+00> : vector<32x4xf32>
    %335 = tpu.matmul %331, %334, %cst_119 {dimension_numbers = #tpu.dot_dimension_numbers<[1], [0], [0], [1], [0, 0, 1, 1], [], []>} : vector<32x64xbf16>, vector<64x4xbf16>, vector<32x4xf32> -> vector<32x4xf32>
    %c0_120 = arith.constant 0 : index
    %c0_121 = arith.constant 0 : index
    %336 = vector.load %arg23[%c0_120, %c0_121] : memref<4x64xbf16, #tpu.memory_space<vmem>>, vector<4x64xbf16>
    %cst_122 = arith.constant dense<0.000000e+00> : vector<4x32xf32>
    %337 = tpu.matmul %336, %331, %cst_122 {dimension_numbers = #tpu.dot_dimension_numbers<[1], [1], [0], [0], [0, 0, 1, 0], [], []>} : vector<4x64xbf16>, vector<32x64xbf16>, vector<4x32xf32> -> vector<4x32xf32>
    %338 = vector.extract_strided_slice %335 {offsets = [0, 0], sizes = [32, 1], strides = [1, 1]} : vector<32x4xf32> to vector<32x1xf32>
    %339 = vector.extract_strided_slice %337 {offsets = [0, 0], sizes = [1, 32], strides = [1, 1]} : vector<4x32xf32> to vector<1x32xf32>
    %340 = vector.broadcast %338 : vector<32x1xf32> to vector<32x32xf32>
    %341 = vector.broadcast %339 : vector<1x32xf32> to vector<32x32xf32>
    %342 = arith.addf %340, %341 : vector<32x32xf32>
    %cst_123 = arith.constant 0.000000e+00 : f32
    %343 = vector.broadcast %cst_123 : f32 to vector<32x32xf32>
    %344 = arith.cmpf oge, %342, %343 : vector<32x32xf32>
    %cst_124 = arith.constant 2.000000e-01 : f32
    %345 = vector.broadcast %cst_124 : f32 to vector<32x32xf32>
    %346 = arith.mulf %345, %342 : vector<32x32xf32>
    %347 = arith.select %344, %342, %346 : vector<32x32xi1>, vector<32x32xf32>
    %348 = arith.addf %347, %4 : vector<32x32xf32>
    %cst_125 = arith.constant dense<0xFF800000> : vector<32xf32>
    %349 = vector.multi_reduction <maximumf>, %348, %cst_125 [1] : vector<32x32xf32> to vector<32xf32>
    %350 = vector.shape_cast %349 : vector<32xf32> to vector<32x1xf32>
    %351 = vector.broadcast %350 : vector<32x1xf32> to vector<32x32xf32>
    %352 = arith.subf %348, %351 : vector<32x32xf32>
    %353 = math.exp %352 : vector<32x32xf32>
    %354 = arith.mulf %353, %0 : vector<32x32xf32>
    %cst_126 = arith.constant dense<0.000000e+00> : vector<32xf32>
    %355 = vector.multi_reduction <add>, %354, %cst_126 [1] : vector<32x32xf32> to vector<32xf32>
    %356 = vector.shape_cast %355 : vector<32xf32> to vector<32x1xf32>
    %cst_127 = arith.constant 9.99999968E-21 : f32
    %357 = vector.broadcast %cst_127 : f32 to vector<32x1xf32>
    %358 = arith.maximumf %356, %357 : vector<32x1xf32>
    %359 = tpu.reciprocal %358 {approx = true} : vector<32x1xf32> -> vector<32x1xf32>
    %360 = vector.broadcast %359 : vector<32x1xf32> to vector<32x32xf32>
    %361 = arith.mulf %354, %360 : vector<32x32xf32>
    %362 = vector.extract_strided_slice %333 {offsets = [0, 0], sizes = [32, 16], strides = [1, 1]} : vector<32x64xf32> to vector<32x16xf32>
    %363 = arith.truncf %362 : vector<32x16xf32> to vector<32x16xbf16>
    %364 = arith.truncf %361 : vector<32x32xf32> to vector<32x32xbf16>
    %cst_128 = arith.constant dense<0.000000e+00> : vector<32x16xf32>
    %365 = tpu.matmul %364, %363, %cst_128 {dimension_numbers = #tpu.dot_dimension_numbers<[1], [0], [0], [1], [0, 0, 1, 1], [], []>} : vector<32x32xbf16>, vector<32x16xbf16>, vector<32x16xf32> -> vector<32x16xf32>
    %366 = vector.extract_strided_slice %335 {offsets = [0, 1], sizes = [32, 1], strides = [1, 1]} : vector<32x4xf32> to vector<32x1xf32>
    %367 = vector.extract_strided_slice %337 {offsets = [1, 0], sizes = [1, 32], strides = [1, 1]} : vector<4x32xf32> to vector<1x32xf32>
    %368 = vector.broadcast %366 : vector<32x1xf32> to vector<32x32xf32>
    %369 = vector.broadcast %367 : vector<1x32xf32> to vector<32x32xf32>
    %370 = arith.addf %368, %369 : vector<32x32xf32>
    %cst_129 = arith.constant 0.000000e+00 : f32
    %371 = vector.broadcast %cst_129 : f32 to vector<32x32xf32>
    %372 = arith.cmpf oge, %370, %371 : vector<32x32xf32>
    %cst_130 = arith.constant 2.000000e-01 : f32
    %373 = vector.broadcast %cst_130 : f32 to vector<32x32xf32>
    %374 = arith.mulf %373, %370 : vector<32x32xf32>
    %375 = arith.select %372, %370, %374 : vector<32x32xi1>, vector<32x32xf32>
    %376 = arith.addf %375, %4 : vector<32x32xf32>
    %cst_131 = arith.constant dense<0xFF800000> : vector<32xf32>
    %377 = vector.multi_reduction <maximumf>, %376, %cst_131 [1] : vector<32x32xf32> to vector<32xf32>
    %378 = vector.shape_cast %377 : vector<32xf32> to vector<32x1xf32>
    %379 = vector.broadcast %378 : vector<32x1xf32> to vector<32x32xf32>
    %380 = arith.subf %376, %379 : vector<32x32xf32>
    %381 = math.exp %380 : vector<32x32xf32>
    %382 = arith.mulf %381, %0 : vector<32x32xf32>
    %cst_132 = arith.constant dense<0.000000e+00> : vector<32xf32>
    %383 = vector.multi_reduction <add>, %382, %cst_132 [1] : vector<32x32xf32> to vector<32xf32>
    %384 = vector.shape_cast %383 : vector<32xf32> to vector<32x1xf32>
    %cst_133 = arith.constant 9.99999968E-21 : f32
    %385 = vector.broadcast %cst_133 : f32 to vector<32x1xf32>
    %386 = arith.maximumf %384, %385 : vector<32x1xf32>
    %387 = tpu.reciprocal %386 {approx = true} : vector<32x1xf32> -> vector<32x1xf32>
    %388 = vector.broadcast %387 : vector<32x1xf32> to vector<32x32xf32>
    %389 = arith.mulf %382, %388 : vector<32x32xf32>
    %390 = vector.extract_strided_slice %333 {offsets = [0, 16], sizes = [32, 16], strides = [1, 1]} : vector<32x64xf32> to vector<32x16xf32>
    %391 = arith.truncf %390 : vector<32x16xf32> to vector<32x16xbf16>
    %392 = arith.truncf %389 : vector<32x32xf32> to vector<32x32xbf16>
    %cst_134 = arith.constant dense<0.000000e+00> : vector<32x16xf32>
    %393 = tpu.matmul %392, %391, %cst_134 {dimension_numbers = #tpu.dot_dimension_numbers<[1], [0], [0], [1], [0, 0, 1, 1], [], []>} : vector<32x32xbf16>, vector<32x16xbf16>, vector<32x16xf32> -> vector<32x16xf32>
    %394 = vector.extract_strided_slice %335 {offsets = [0, 2], sizes = [32, 1], strides = [1, 1]} : vector<32x4xf32> to vector<32x1xf32>
    %395 = vector.extract_strided_slice %337 {offsets = [2, 0], sizes = [1, 32], strides = [1, 1]} : vector<4x32xf32> to vector<1x32xf32>
    %396 = vector.broadcast %394 : vector<32x1xf32> to vector<32x32xf32>
    %397 = vector.broadcast %395 : vector<1x32xf32> to vector<32x32xf32>
    %398 = arith.addf %396, %397 : vector<32x32xf32>
    %cst_135 = arith.constant 0.000000e+00 : f32
    %399 = vector.broadcast %cst_135 : f32 to vector<32x32xf32>
    %400 = arith.cmpf oge, %398, %399 : vector<32x32xf32>
    %cst_136 = arith.constant 2.000000e-01 : f32
    %401 = vector.broadcast %cst_136 : f32 to vector<32x32xf32>
    %402 = arith.mulf %401, %398 : vector<32x32xf32>
    %403 = arith.select %400, %398, %402 : vector<32x32xi1>, vector<32x32xf32>
    %404 = arith.addf %403, %4 : vector<32x32xf32>
    %cst_137 = arith.constant dense<0xFF800000> : vector<32xf32>
    %405 = vector.multi_reduction <maximumf>, %404, %cst_137 [1] : vector<32x32xf32> to vector<32xf32>
    %406 = vector.shape_cast %405 : vector<32xf32> to vector<32x1xf32>
    %407 = vector.broadcast %406 : vector<32x1xf32> to vector<32x32xf32>
    %408 = arith.subf %404, %407 : vector<32x32xf32>
    %409 = math.exp %408 : vector<32x32xf32>
    %410 = arith.mulf %409, %0 : vector<32x32xf32>
    %cst_138 = arith.constant dense<0.000000e+00> : vector<32xf32>
    %411 = vector.multi_reduction <add>, %410, %cst_138 [1] : vector<32x32xf32> to vector<32xf32>
    %412 = vector.shape_cast %411 : vector<32xf32> to vector<32x1xf32>
    %cst_139 = arith.constant 9.99999968E-21 : f32
    %413 = vector.broadcast %cst_139 : f32 to vector<32x1xf32>
    %414 = arith.maximumf %412, %413 : vector<32x1xf32>
    %415 = tpu.reciprocal %414 {approx = true} : vector<32x1xf32> -> vector<32x1xf32>
    %416 = vector.broadcast %415 : vector<32x1xf32> to vector<32x32xf32>
    %417 = arith.mulf %410, %416 : vector<32x32xf32>
    %418 = vector.extract_strided_slice %333 {offsets = [0, 32], sizes = [32, 16], strides = [1, 1]} : vector<32x64xf32> to vector<32x16xf32>
    %419 = arith.truncf %418 : vector<32x16xf32> to vector<32x16xbf16>
    %420 = arith.truncf %417 : vector<32x32xf32> to vector<32x32xbf16>
    %cst_140 = arith.constant dense<0.000000e+00> : vector<32x16xf32>
    %421 = tpu.matmul %420, %419, %cst_140 {dimension_numbers = #tpu.dot_dimension_numbers<[1], [0], [0], [1], [0, 0, 1, 1], [], []>} : vector<32x32xbf16>, vector<32x16xbf16>, vector<32x16xf32> -> vector<32x16xf32>
    %422 = vector.extract_strided_slice %335 {offsets = [0, 3], sizes = [32, 1], strides = [1, 1]} : vector<32x4xf32> to vector<32x1xf32>
    %423 = vector.extract_strided_slice %337 {offsets = [3, 0], sizes = [1, 32], strides = [1, 1]} : vector<4x32xf32> to vector<1x32xf32>
    %424 = vector.broadcast %422 : vector<32x1xf32> to vector<32x32xf32>
    %425 = vector.broadcast %423 : vector<1x32xf32> to vector<32x32xf32>
    %426 = arith.addf %424, %425 : vector<32x32xf32>
    %cst_141 = arith.constant 0.000000e+00 : f32
    %427 = vector.broadcast %cst_141 : f32 to vector<32x32xf32>
    %428 = arith.cmpf oge, %426, %427 : vector<32x32xf32>
    %cst_142 = arith.constant 2.000000e-01 : f32
    %429 = vector.broadcast %cst_142 : f32 to vector<32x32xf32>
    %430 = arith.mulf %429, %426 : vector<32x32xf32>
    %431 = arith.select %428, %426, %430 : vector<32x32xi1>, vector<32x32xf32>
    %432 = arith.addf %431, %4 : vector<32x32xf32>
    %cst_143 = arith.constant dense<0xFF800000> : vector<32xf32>
    %433 = vector.multi_reduction <maximumf>, %432, %cst_143 [1] : vector<32x32xf32> to vector<32xf32>
    %434 = vector.shape_cast %433 : vector<32xf32> to vector<32x1xf32>
    %435 = vector.broadcast %434 : vector<32x1xf32> to vector<32x32xf32>
    %436 = arith.subf %432, %435 : vector<32x32xf32>
    %437 = math.exp %436 : vector<32x32xf32>
    %438 = arith.mulf %437, %0 : vector<32x32xf32>
    %cst_144 = arith.constant dense<0.000000e+00> : vector<32xf32>
    %439 = vector.multi_reduction <add>, %438, %cst_144 [1] : vector<32x32xf32> to vector<32xf32>
    %440 = vector.shape_cast %439 : vector<32xf32> to vector<32x1xf32>
    %cst_145 = arith.constant 9.99999968E-21 : f32
    %441 = vector.broadcast %cst_145 : f32 to vector<32x1xf32>
    %442 = arith.maximumf %440, %441 : vector<32x1xf32>
    %443 = tpu.reciprocal %442 {approx = true} : vector<32x1xf32> -> vector<32x1xf32>
    %444 = vector.broadcast %443 : vector<32x1xf32> to vector<32x32xf32>
    %445 = arith.mulf %438, %444 : vector<32x32xf32>
    %446 = vector.extract_strided_slice %333 {offsets = [0, 48], sizes = [32, 16], strides = [1, 1]} : vector<32x64xf32> to vector<32x16xf32>
    %447 = arith.truncf %446 : vector<32x16xf32> to vector<32x16xbf16>
    %448 = arith.truncf %445 : vector<32x32xf32> to vector<32x32xbf16>
    %cst_146 = arith.constant dense<0.000000e+00> : vector<32x16xf32>
    %449 = tpu.matmul %448, %447, %cst_146 {dimension_numbers = #tpu.dot_dimension_numbers<[1], [0], [0], [1], [0, 0, 1, 1], [], []>} : vector<32x32xbf16>, vector<32x16xbf16>, vector<32x16xf32> -> vector<32x16xf32>
    %450 = tpu.concatenate %365, %393, %421, %449 in 1 : vector<32x16xf32>, vector<32x16xf32>, vector<32x16xf32>, vector<32x16xf32> -> vector<32x64xf32>
    %c0_147 = arith.constant 0 : index
    %c0_148 = arith.constant 0 : index
    %451 = vector.load %arg27[%c0_147, %c0_148] : memref<1x64xf32, #tpu.memory_space<vmem>>, vector<1x64xf32>
    %452 = vector.broadcast %451 : vector<1x64xf32> to vector<32x64xf32>
    %453 = arith.subf %450, %452 : vector<32x64xf32>
    %c0_149 = arith.constant 0 : index
    %c0_150 = arith.constant 0 : index
    %454 = vector.load %arg28[%c0_149, %c0_150] : memref<1x64xf32, #tpu.memory_space<vmem>>, vector<1x64xf32>
    %cst_151 = arith.constant 9.99999974E-6 : f32
    %455 = vector.broadcast %cst_151 : f32 to vector<1x64xf32>
    %456 = arith.addf %454, %455 : vector<1x64xf32>
    %457 = math.rsqrt %456 : vector<1x64xf32>
    %458 = vector.broadcast %457 : vector<1x64xf32> to vector<32x64xf32>
    %459 = arith.mulf %453, %458 : vector<32x64xf32>
    %c0_152 = arith.constant 0 : index
    %c0_153 = arith.constant 0 : index
    %460 = vector.load %arg25[%c0_152, %c0_153] : memref<1x64xf32, #tpu.memory_space<vmem>>, vector<1x64xf32>
    %461 = vector.broadcast %460 : vector<1x64xf32> to vector<32x64xf32>
    %462 = arith.mulf %459, %461 : vector<32x64xf32>
    %c0_154 = arith.constant 0 : index
    %c0_155 = arith.constant 0 : index
    %463 = vector.load %arg26[%c0_154, %c0_155] : memref<1x64xf32, #tpu.memory_space<vmem>>, vector<1x64xf32>
    %464 = vector.broadcast %463 : vector<1x64xf32> to vector<32x64xf32>
    %465 = arith.addf %462, %464 : vector<32x64xf32>
    %cst_156 = arith.constant 0.000000e+00 : f32
    %466 = vector.broadcast %cst_156 : f32 to vector<32x64xf32>
    %467 = arith.cmpf ogt, %465, %466 : vector<32x64xf32>
    %cst_157 = arith.constant 0.000000e+00 : f32
    %468 = vector.broadcast %cst_157 : f32 to vector<32x64xf32>
    %469 = arith.minimumf %465, %468 : vector<32x64xf32>
    %470 = math.exp %469 : vector<32x64xf32>
    %cst_158 = arith.constant 1.000000e+00 : f32
    %471 = vector.broadcast %cst_158 : f32 to vector<32x64xf32>
    %472 = arith.subf %470, %471 : vector<32x64xf32>
    %473 = arith.select %467, %465, %472 : vector<32x64xi1>, vector<32x64xf32>
    %474 = arith.addf %309, %473 : vector<32x64xf32>
    %475 = math.absf %474 : vector<32x64xf32>
    %cst_159 = arith.constant 0x7F800000 : f32
    %476 = vector.broadcast %cst_159 : f32 to vector<32x64xf32>
    %477 = arith.cmpf oeq, %475, %476 : vector<32x64xf32>
    %cst_160 = arith.constant 1.000000e+09 : f32
    %478 = vector.broadcast %cst_160 : f32 to vector<32x64xf32>
    %479 = arith.select %477, %478, %474 : vector<32x64xi1>, vector<32x64xf32>
    %480 = arith.truncf %479 : vector<32x64xf32> to vector<32x64xbf16>
    %c0_161 = arith.constant 0 : index
    %c0_162 = arith.constant 0 : index
    %481 = vector.load %arg29[%c0_161, %c0_162] : memref<64x64xbf16, #tpu.memory_space<vmem>>, vector<64x64xbf16>
    %cst_163 = arith.constant dense<0.000000e+00> : vector<32x64xf32>
    %482 = tpu.matmul %480, %481, %cst_163 {dimension_numbers = #tpu.dot_dimension_numbers<[1], [0], [0], [1], [0, 0, 1, 1], [], []>} : vector<32x64xbf16>, vector<64x64xbf16>, vector<32x64xf32> -> vector<32x64xf32>
    %c0_164 = arith.constant 0 : index
    %c0_165 = arith.constant 0 : index
    %483 = vector.load %arg31[%c0_164, %c0_165] : memref<64x1xbf16, #tpu.memory_space<vmem>>, vector<64x1xbf16>
    %cst_166 = arith.constant dense<0.000000e+00> : vector<32x1xf32>
    %484 = tpu.matmul %480, %483, %cst_166 {dimension_numbers = #tpu.dot_dimension_numbers<[1], [0], [0], [1], [0, 0, 1, 1], [], []>} : vector<32x64xbf16>, vector<64x1xbf16>, vector<32x1xf32> -> vector<32x1xf32>
    %c0_167 = arith.constant 0 : index
    %c0_168 = arith.constant 0 : index
    %485 = vector.load %arg30[%c0_167, %c0_168] : memref<1x64xbf16, #tpu.memory_space<vmem>>, vector<1x64xbf16>
    %cst_169 = arith.constant dense<0.000000e+00> : vector<1x32xf32>
    %486 = tpu.matmul %485, %480, %cst_169 {dimension_numbers = #tpu.dot_dimension_numbers<[1], [1], [0], [0], [0, 0, 1, 0], [], []>} : vector<1x64xbf16>, vector<32x64xbf16>, vector<1x32xf32> -> vector<1x32xf32>
    %487 = vector.broadcast %484 : vector<32x1xf32> to vector<32x32xf32>
    %488 = vector.broadcast %486 : vector<1x32xf32> to vector<32x32xf32>
    %489 = arith.addf %487, %488 : vector<32x32xf32>
    %cst_170 = arith.constant 0.000000e+00 : f32
    %490 = vector.broadcast %cst_170 : f32 to vector<32x32xf32>
    %491 = arith.cmpf oge, %489, %490 : vector<32x32xf32>
    %cst_171 = arith.constant 2.000000e-01 : f32
    %492 = vector.broadcast %cst_171 : f32 to vector<32x32xf32>
    %493 = arith.mulf %492, %489 : vector<32x32xf32>
    %494 = arith.select %491, %489, %493 : vector<32x32xi1>, vector<32x32xf32>
    %495 = arith.addf %494, %4 : vector<32x32xf32>
    %cst_172 = arith.constant dense<0xFF800000> : vector<32xf32>
    %496 = vector.multi_reduction <maximumf>, %495, %cst_172 [1] : vector<32x32xf32> to vector<32xf32>
    %497 = vector.shape_cast %496 : vector<32xf32> to vector<32x1xf32>
    %498 = vector.broadcast %497 : vector<32x1xf32> to vector<32x32xf32>
    %499 = arith.subf %495, %498 : vector<32x32xf32>
    %500 = math.exp %499 : vector<32x32xf32>
    %501 = arith.mulf %500, %0 : vector<32x32xf32>
    %cst_173 = arith.constant dense<0.000000e+00> : vector<32xf32>
    %502 = vector.multi_reduction <add>, %501, %cst_173 [1] : vector<32x32xf32> to vector<32xf32>
    %503 = vector.shape_cast %502 : vector<32xf32> to vector<32x1xf32>
    %cst_174 = arith.constant 9.99999968E-21 : f32
    %504 = vector.broadcast %cst_174 : f32 to vector<32x1xf32>
    %505 = arith.maximumf %503, %504 : vector<32x1xf32>
    %506 = tpu.reciprocal %505 {approx = true} : vector<32x1xf32> -> vector<32x1xf32>
    %507 = vector.broadcast %506 : vector<32x1xf32> to vector<32x32xf32>
    %508 = arith.mulf %501, %507 : vector<32x32xf32>
    %509 = arith.truncf %482 : vector<32x64xf32> to vector<32x64xbf16>
    %510 = arith.truncf %508 : vector<32x32xf32> to vector<32x32xbf16>
    %cst_175 = arith.constant dense<0.000000e+00> : vector<32x64xf32>
    %511 = tpu.matmul %510, %509, %cst_175 {dimension_numbers = #tpu.dot_dimension_numbers<[1], [0], [0], [1], [0, 0, 1, 1], [], []>} : vector<32x32xbf16>, vector<32x64xbf16>, vector<32x64xf32> -> vector<32x64xf32>
    %c0_176 = arith.constant 0 : index
    %c0_177 = arith.constant 0 : index
    %512 = vector.load %arg34[%c0_176, %c0_177] : memref<1x64xf32, #tpu.memory_space<vmem>>, vector<1x64xf32>
    %513 = vector.broadcast %512 : vector<1x64xf32> to vector<32x64xf32>
    %514 = arith.subf %511, %513 : vector<32x64xf32>
    %c0_178 = arith.constant 0 : index
    %c0_179 = arith.constant 0 : index
    %515 = vector.load %arg35[%c0_178, %c0_179] : memref<1x64xf32, #tpu.memory_space<vmem>>, vector<1x64xf32>
    %cst_180 = arith.constant 9.99999974E-6 : f32
    %516 = vector.broadcast %cst_180 : f32 to vector<1x64xf32>
    %517 = arith.addf %515, %516 : vector<1x64xf32>
    %518 = math.rsqrt %517 : vector<1x64xf32>
    %519 = vector.broadcast %518 : vector<1x64xf32> to vector<32x64xf32>
    %520 = arith.mulf %514, %519 : vector<32x64xf32>
    %c0_181 = arith.constant 0 : index
    %c0_182 = arith.constant 0 : index
    %521 = vector.load %arg32[%c0_181, %c0_182] : memref<1x64xf32, #tpu.memory_space<vmem>>, vector<1x64xf32>
    %522 = vector.broadcast %521 : vector<1x64xf32> to vector<32x64xf32>
    %523 = arith.mulf %520, %522 : vector<32x64xf32>
    %c0_183 = arith.constant 0 : index
    %c0_184 = arith.constant 0 : index
    %524 = vector.load %arg33[%c0_183, %c0_184] : memref<1x64xf32, #tpu.memory_space<vmem>>, vector<1x64xf32>
    %525 = vector.broadcast %524 : vector<1x64xf32> to vector<32x64xf32>
    %526 = arith.addf %523, %525 : vector<32x64xf32>
    %cst_185 = arith.constant 0.000000e+00 : f32
    %527 = vector.broadcast %cst_185 : f32 to vector<32x64xf32>
    %528 = arith.cmpf ogt, %526, %527 : vector<32x64xf32>
    %cst_186 = arith.constant 0.000000e+00 : f32
    %529 = vector.broadcast %cst_186 : f32 to vector<32x64xf32>
    %530 = arith.minimumf %526, %529 : vector<32x64xf32>
    %531 = math.exp %530 : vector<32x64xf32>
    %cst_187 = arith.constant 1.000000e+00 : f32
    %532 = vector.broadcast %cst_187 : f32 to vector<32x64xf32>
    %533 = arith.subf %531, %532 : vector<32x64xf32>
    %534 = arith.select %528, %526, %533 : vector<32x64xi1>, vector<32x64xf32>
    %535 = arith.addf %479, %534 : vector<32x64xf32>
    %536 = math.absf %535 : vector<32x64xf32>
    %cst_188 = arith.constant 0x7F800000 : f32
    %537 = vector.broadcast %cst_188 : f32 to vector<32x64xf32>
    %538 = arith.cmpf oeq, %536, %537 : vector<32x64xf32>
    %cst_189 = arith.constant 1.000000e+09 : f32
    %539 = vector.broadcast %cst_189 : f32 to vector<32x64xf32>
    %540 = arith.select %538, %539, %535 : vector<32x64xi1>, vector<32x64xf32>
    %541 = arith.truncf %540 : vector<32x64xf32> to vector<32x64xbf16>
    %542 = tpu.iota {dimensions = array<i32: 1>} : vector<256x32xi32>
    %c0_190 = arith.constant 0 : index
    %c0_191 = arith.constant 0 : index
    %543 = vector.load %arg2[%c0_190, %c0_191] : memref<256x1xi32, #tpu.memory_space<vmem>>, vector<256x1xi32>
    %544 = vector.broadcast %543 : vector<256x1xi32> to vector<256x32xi32>
    %545 = arith.cmpi eq, %542, %544 : vector<256x32xi32>
    %546 = arith.extui %545 : vector<256x32xi1> to vector<256x32xi32>
    %547 = arith.sitofp %546 : vector<256x32xi32> to vector<256x32xf32>
    %548 = arith.truncf %547 : vector<256x32xf32> to vector<256x32xbf16>
    %c0_192 = arith.constant 0 : index
    %c0_193 = arith.constant 0 : index
    %549 = vector.load %arg3[%c0_192, %c0_193] : memref<256x1xi32, #tpu.memory_space<vmem>>, vector<256x1xi32>
    %550 = vector.broadcast %549 : vector<256x1xi32> to vector<256x32xi32>
    %551 = arith.cmpi eq, %542, %550 : vector<256x32xi32>
    %552 = arith.extui %551 : vector<256x32xi1> to vector<256x32xi32>
    %553 = arith.sitofp %552 : vector<256x32xi32> to vector<256x32xf32>
    %554 = arith.truncf %553 : vector<256x32xf32> to vector<256x32xbf16>
    %cst_194 = arith.constant dense<0.000000e+00> : vector<256x64xf32>
    %555 = tpu.matmul %548, %541, %cst_194 {dimension_numbers = #tpu.dot_dimension_numbers<[1], [0], [0], [1], [0, 0, 1, 1], [], []>} : vector<256x32xbf16>, vector<32x64xbf16>, vector<256x64xf32> -> vector<256x64xf32>
    %cst_195 = arith.constant dense<0.000000e+00> : vector<256x64xf32>
    %556 = tpu.matmul %554, %541, %cst_195 {dimension_numbers = #tpu.dot_dimension_numbers<[1], [0], [0], [1], [0, 0, 1, 1], [], []>} : vector<256x32xbf16>, vector<32x64xbf16>, vector<256x64xf32> -> vector<256x64xf32>
    %557 = tpu.concatenate %555, %556 in 1 : vector<256x64xf32>, vector<256x64xf32> -> vector<256x128xf32>
    %c0_196 = arith.constant 0 : index
    %c0_197 = arith.constant 0 : index
    %558 = vector.load %arg36[%c0_196, %c0_197] : memref<128x64xbf16, #tpu.memory_space<vmem>>, vector<128x64xbf16>
    %c0_198 = arith.constant 0 : index
    %c0_199 = arith.constant 0 : index
    %559 = vector.load %arg37[%c0_198, %c0_199] : memref<1x64xf32, #tpu.memory_space<vmem>>, vector<1x64xf32>
    %c0_200 = arith.constant 0 : index
    %c0_201 = arith.constant 0 : index
    %560 = vector.load %arg38[%c0_200, %c0_201] : memref<64x32xbf16, #tpu.memory_space<vmem>>, vector<64x32xbf16>
    %c0_202 = arith.constant 0 : index
    %c0_203 = arith.constant 0 : index
    %561 = vector.load %arg39[%c0_202, %c0_203] : memref<1x32xf32, #tpu.memory_space<vmem>>, vector<1x32xf32>
    %c0_204 = arith.constant 0 : index
    %c0_205 = arith.constant 0 : index
    %562 = vector.load %arg40[%c0_204, %c0_205] : memref<32x128xbf16, #tpu.memory_space<vmem>>, vector<32x128xbf16>
    %c0_206 = arith.constant 0 : index
    %c0_207 = arith.constant 0 : index
    %563 = vector.load %arg41[%c0_206, %c0_207] : memref<1x128xf32, #tpu.memory_space<vmem>>, vector<1x128xf32>
    %564 = arith.truncf %557 : vector<256x128xf32> to vector<256x128xbf16>
    %cst_208 = arith.constant dense<0.000000e+00> : vector<256x64xf32>
    %565 = tpu.matmul %564, %558, %cst_208 {dimension_numbers = #tpu.dot_dimension_numbers<[1], [0], [0], [1], [0, 0, 1, 1], [], []>} : vector<256x128xbf16>, vector<128x64xbf16>, vector<256x64xf32> -> vector<256x64xf32>
    %566 = vector.broadcast %559 : vector<1x64xf32> to vector<256x64xf32>
    %567 = arith.addf %565, %566 : vector<256x64xf32>
    %cst_209 = arith.constant 0.000000e+00 : f32
    %568 = vector.broadcast %cst_209 : f32 to vector<256x64xf32>
    %569 = arith.maximumf %567, %568 : vector<256x64xf32>
    %570 = arith.truncf %569 : vector<256x64xf32> to vector<256x64xbf16>
    %cst_210 = arith.constant dense<0.000000e+00> : vector<256x32xf32>
    %571 = tpu.matmul %570, %560, %cst_210 {dimension_numbers = #tpu.dot_dimension_numbers<[1], [0], [0], [1], [0, 0, 1, 1], [], []>} : vector<256x64xbf16>, vector<64x32xbf16>, vector<256x32xf32> -> vector<256x32xf32>
    %572 = vector.broadcast %561 : vector<1x32xf32> to vector<256x32xf32>
    %573 = arith.addf %571, %572 : vector<256x32xf32>
    %cst_211 = arith.constant 0.000000e+00 : f32
    %574 = vector.broadcast %cst_211 : f32 to vector<256x32xf32>
    %575 = arith.maximumf %573, %574 : vector<256x32xf32>
    %576 = arith.truncf %575 : vector<256x32xf32> to vector<256x32xbf16>
    %cst_212 = arith.constant dense<0.000000e+00> : vector<256x128xf32>
    %577 = tpu.matmul %576, %562, %cst_212 {dimension_numbers = #tpu.dot_dimension_numbers<[1], [0], [0], [1], [0, 0, 1, 1], [], []>} : vector<256x32xbf16>, vector<32x128xbf16>, vector<256x128xf32> -> vector<256x128xf32>
    %578 = vector.broadcast %563 : vector<1x128xf32> to vector<256x128xf32>
    %579 = arith.addf %577, %578 : vector<256x128xf32>
    %580 = math.absf %579 : vector<256x128xf32>
    %cst_213 = arith.constant 0x7F800000 : f32
    %581 = vector.broadcast %cst_213 : f32 to vector<256x128xf32>
    %582 = arith.cmpf oeq, %580, %581 : vector<256x128xf32>
    %cst_214 = arith.constant 1.000000e+09 : f32
    %583 = vector.broadcast %cst_214 : f32 to vector<256x128xf32>
    %584 = arith.select %582, %583, %579 : vector<256x128xi1>, vector<256x128xf32>
    %c0_215 = arith.constant 0 : index
    %c0_216 = arith.constant 0 : index
    %585 = vector.load %arg42[%c0_215, %c0_216] : memref<256x128xf32, #tpu.memory_space<vmem>>, vector<256x128xf32>
    tpu.vector_store %arg42[%c0_215, %c0_216], %584 {strides = array<i32>} : memref<256x128xf32, #tpu.memory_space<vmem>>, vector<256x128xf32>,
    return
  }
}

</mosaic_0001>

<bundles_post_ra>
// kernel: tpu_custom_call.1
= control target key start
LH: loop header
LB: loop body
LE: loop exit
PB: predicated region body
PF: predicated region fallthrough
CT: control target
= control target key end

     0   :  { %s7377_s6 = smov 1   ;;  %s7378_s10 = smov 2   ;;  %s9601_s0 = inlined_call_operand.smem [shape: u32[44], index: -1, kind: input, shape index: {}] }
   0x1   :  { %s7445_s5 = sld [smem:[%s9601_s0]]   ;;  %s7379_s14 = smov 3  }
   0x2   :  { %s7450_s9 = sld [smem:[%s9601_s0 + %s7377_s6]]   ;;  %s7380_s18 = smov 4  }
   0x3   :  { %s7455_s13 = sld [smem:[%s9601_s0 + %s7378_s10]]   ;;  %s7381_s22 = smov 5  }
   0x4   :  { %s7460_s17 = sld [smem:[%s9601_s0 + %s7379_s14]]   ;;  %s7382_s26 = smov 6  }
   0x5   :  { %s7465_s21 = sld [smem:[%s9601_s0 + %s7380_s18]]   ;;  %s7383_s30 = smov 7  }
   0x6   :  { %s7470_s25 = sld [smem:[%s9601_s0 + %s7381_s22]]   ;;  %s7384_s4 = smov 8  }
   0x7   :  { %s7475_s29 = sld [smem:[%s9601_s0 + %s7382_s26]]   ;;  %s7385_s10 = smov 9  }
   0x8   :  { %s7480_s3 = sld [smem:[%s9601_s0 + %s7383_s30]]   ;;  %s7386_s15 = smov 10  }
   0x9   :  { %9626 = sst [smem:[#allocation8_spill]] %s7455_s13  ;;  %s7387_s20 = smov 11  }
   0xa   :  { %9627 = sst [smem:[#allocation9_spill]] %s7460_s17  ;;  %s7388_s26 = smov 12  }
   0xb   :  { %s7485_s8 = sld [smem:[%s9601_s0 + %s7384_s4]]   ;;  %s7389_s1 = smov 13  }
   0xc   :  { %s7490_s14 = sld [smem:[%s9601_s0 + %s7385_s10]]   ;;  %s7390_s7 = smov 14  }
   0xd   :  { %s7495_s19 = sld [smem:[%s9601_s0 + %s7386_s15]]   ;;  %s7391_s15 = smov 15  }
   0xe   :  { %s7500_s24 = sld [smem:[%s9601_s0 + %s7387_s20]]   ;;  %s7392_s22 = smov 16  }
   0xf   :  { %s7505_s30 = sld [smem:[%s9601_s0 + %s7388_s26]]   ;;  %s7393_s28 = smov 17  }
  0x10   :  { %s7510_s6 = sld [smem:[%s9601_s0 + %s7389_s1]]  }
  0x11   :  { %s7515_s12 = sld [smem:[%s9601_s0 + %s7390_s7]]   ;;  %s7394_s7 = smov 18  }
  0x12   :  { %s7520_s20 = sld [smem:[%s9601_s0 + %s7391_s15]]   ;;  %s7395_s15 = smov 19  }
  0x13   :  { %s7525_s27 = sld [smem:[%s9601_s0 + %s7392_s22]]   ;;  %s7396_s22 = smov 20  }
  0x14   :  { %s7530_s4 = sld [smem:[%s9601_s0 + %s7393_s28]]   ;;  %s7397_s28 = smov 21  }
  0x15   :  { %s7535_s17 = sld [smem:[%s9601_s0 + %s7394_s7]]   ;;  %s7398_s7 = smov 22  }
  0x16   :  { %s7540_s13 = sld [smem:[%s9601_s0 + %s7395_s15]]   ;;  %s7399_s15 = smov 23  }
  0x19   :  { %9628 = sst [smem:[#allocation10_spill]] %s7525_s27 }
  0x1a   :  { %9629 = sst [smem:[#allocation11_spill]] %s7530_s4 }
  0x1b   :  { %9630 = sst [smem:[#allocation12_spill]] %s7535_s17 }
  0x1c   :  { %9631 = sst [smem:[#allocation13_spill]] %s7540_s13 }
  0x1d   :  { %s7545_s27 = sld [smem:[%s9601_s0 + %s7396_s22]]   ;;  %s7400_s22 = smov 24  }
  0x1e   :  { %s7550_s4 = sld [smem:[%s9601_s0 + %s7397_s28]]   ;;  %s7401_s28 = smov 25  }
  0x1f   :  { %s7555_s17 = sld [smem:[%s9601_s0 + %s7398_s7]]   ;;  %s7402_s7 = smov 26  }
  0x20   :  { %s7560_s13 = sld [smem:[%s9601_s0 + %s7399_s15]]   ;;  %s7403_s15 = smov 27  }
  0x23   :  { %9632 = sst [smem:[#allocation14_spill]] %s7545_s27 }
  0x24   :  { %9633 = sst [smem:[#allocation15_spill]] %s7550_s4 }
  0x25   :  { %9634 = sst [smem:[#allocation16_spill]] %s7555_s17 }
  0x26   :  { %9635 = sst [smem:[#allocation17_spill]] %s7560_s13 }
  0x27   :  { %s7565_s27 = sld [smem:[%s9601_s0 + %s7400_s22]]   ;;  %s7404_s22 = smov 28  }
  0x28   :  { %s7570_s4 = sld [smem:[%s9601_s0 + %s7401_s28]]   ;;  %s7405_s28 = smov 29  }
  0x29   :  { %s7575_s17 = sld [smem:[%s9601_s0 + %s7402_s7]]   ;;  %s7406_s7 = smov 30  }
  0x2a   :  { %s7580_s13 = sld [smem:[%s9601_s0 + %s7403_s15]]   ;;  %s7407_s15 = smov 31  }
  0x2d   :  { %9636 = sst [smem:[#allocation18_spill]] %s7565_s27 }
  0x2e   :  { %9637 = sst [smem:[#allocation19_spill]] %s7570_s4 }
  0x2f   :  { %9638 = sst [smem:[#allocation20_spill]] %s7575_s17 }
  0x30   :  { %9639 = sst [smem:[#allocation21_spill]] %s7580_s13 }
  0x31   :  { %s7585_s27 = sld [smem:[%s9601_s0 + %s7404_s22]]   ;;  %s7408_s22 = smov 32  }
  0x32   :  { %s7590_s4 = sld [smem:[%s9601_s0 + %s7405_s28]]   ;;  %s7409_s28 = smov 33  }
  0x33   :  { %s7595_s17 = sld [smem:[%s9601_s0 + %s7406_s7]]   ;;  %s7410_s7 = smov 34  }
  0x34   :  { %s7600_s13 = sld [smem:[%s9601_s0 + %s7407_s15]]   ;;  %s7411_s15 = smov 35  }
  0x37   :  { %9640 = sst [smem:[#allocation22_spill]] %s7585_s27 }
  0x38   :  { %9641 = sst [smem:[#allocation23_spill]] %s7590_s4 }
  0x39   :  { %9642 = sst [smem:[#allocation24_spill]] %s7595_s17 }
  0x3a   :  { %9643 = sst [smem:[#allocation25_spill]] %s7600_s13 }
  0x3b   :  { %s7605_s27 = sld [smem:[%s9601_s0 + %s7408_s22]]   ;;  %s7412_s22 = smov 36  }
  0x3c   :  { %s7610_s4 = sld [smem:[%s9601_s0 + %s7409_s28]]   ;;  %s7413_s28 = smov 37  }
  0x3d   :  { %s7615_s17 = sld [smem:[%s9601_s0 + %s7410_s7]]   ;;  %s7414_s7 = smov 38  }
  0x3e   :  { %s7620_s13 = sld [smem:[%s9601_s0 + %s7411_s15]]   ;;  %s7415_s15 = smov 39  }
  0x41   :  { %9644 = sst [smem:[#allocation26_spill]] %s7605_s27 }
  0x42   :  { %9645 = sst [smem:[#allocation27_spill]] %s7610_s4 }
  0x43   :  { %9646 = sst [smem:[#allocation28_spill]] %s7615_s17 }
  0x44   :  { %9647 = sst [smem:[#allocation29_spill]] %s7620_s13 }
  0x45   :  { %s7625_s27 = sld [smem:[%s9601_s0 + %s7412_s22]]   ;;  %s7416_s22 = smov 40  }
  0x46   :  { %s7630_s4 = sld [smem:[%s9601_s0 + %s7413_s28]]   ;;  %s7417_s28 = smov 41  }
  0x47   :  { %s7635_s17 = sld [smem:[%s9601_s0 + %s7414_s7]]   ;;  %s7418_s7 = smov 42  }
  0x48   :  { %s7640_s13 = sld [smem:[%s9601_s0 + %s7415_s15]]   ;;  %s7419_s15 = smov 43  }
  0x4b   :  { %9648 = sst [smem:[#allocation30_spill]] %s7625_s27 }
  0x4c   :  { %9649 = sst [smem:[#allocation31_spill]] %s7630_s4 }
  0x4d   :  { %9650 = sst [smem:[#allocation32_spill]] %s7635_s17 }
  0x4e   :  { %9651 = sst [smem:[#allocation33_spill]] %s7640_s13 }
  0x4f   :  { %s7645_s27 = sld [smem:[%s9601_s0 + %s7416_s22]]  }
  0x50   :  { %s7650_s4 = sld [smem:[%s9601_s0 + %s7417_s28]]  }
  0x51   :  { %s7655_s17 = sld [smem:[%s9601_s0 + %s7418_s7]]  }
  0x52   :  { %s7660_s13 = sld [smem:[%s9601_s0 + %s7419_s15]]  }
  0x53   :  { %93 = vsyncpa [#allocation3], 0  ;;  %v198_v0 = vld [vmem:[%s7465_s21] sm:$0xf]  ;;  %vm213_vm0 = vcmask 1043456   ;;  %v193_v2 = vld [vmem:[%s7445_s5 + $0x8] sm:$0xff] }
  0x54   :  { %v192_v1 = vld [vmem:[%s7445_s5] sm:$0xff]  ;;  %vm206_vm1 = vcmask 64512   ;;  %6830 = vmatprep.subr.msk.bf16.mxu0 %vm213_vm0, %v198_v0  ;;  %v215_v3 = vsel %vm213_vm0, %v198_v0, 0  ;;  %v194_v5 = vld [vmem:[%s7445_s5 + $0x10] sm:$0xff]  ;;  %v195_v6 = vld [vmem:[%s7445_s5 + $0x18] sm:$0xff] }
  0x55   :  { %v196_v4 = vpack.c.bf16 %v193_v2, %v192_v1  ;;  %6381 = vmatpush3.bf16.msra.mxu0 %v215_v3  ;;  %v197_v7 = vpack.c.bf16 %v195_v6, %v194_v5  ;;  %v7011_v8 = vld [vmem:[%s7475_s29 + $0x18] sm:$0xff]   ;;  %v7013_v10 = vld [vmem:[%s7475_s29 + $0x10] sm:$0xff]  }
  0x56   :  { %v7012_v9 = vld [vmem:[%s7485_s8 + $0x18] sm:$0xff]   ;;  %6386 = vmatprep.subr.bf16.mxu1 %v7011_v8 }
  0x57   :  { %6382 = vmatprep.mubr.msk.bf16.mxu0 %vm206_vm1, %v196_v4  ;;  %6387 = vmatpush3.bf16.msra.mxu1 %v7011_v8 }
  0x58   :  { %6383 = vmatmul.mubr.msk.bf16.vlgmr.msra.gmra.mxu0 %vm206_vm1, %v197_v7  ;;  %6398 = vmatprep.subr.bf16.mxu0 %v7012_v9 }
  0x59   :  { %6388 = vmatprep.subr.bf16.mxu1 %v7013_v10  ;;  %6399 = vmatpush3.bf16.msra.mxu0 %v7012_v9 }
  0x5b   :  { %6389 = vmatpush3.bf16.msra.mxu1 %v7013_v10 }
  0x5c   :  { %94 = vsyncpa [#allocation5], 0  ;;  %v7014_v11 = vld [vmem:[%s7485_s8 + $0x10] sm:$0xff]   ;;  %v7015_v12 = vld [vmem:[%s7475_s29 + $0x8] sm:$0xff]   ;;  %v9617_v16 = vmov 0.0   ;;  %v7421_v17 = vmov 0   ;;  %v501_v49 = vlaneseq }
  0x5d   :  { %6400 = vmatprep.subr.bf16.mxu0 %v7014_v11  ;;  %v7016_v13 = vld [vmem:[%s7485_s8 + $0x8] sm:$0xff]   ;;  %6390 = vmatprep.subr.bf16.mxu1 %v7015_v12  ;;  %v7017_v14 = vld [vmem:[%s7475_s29] sm:$0xff]   ;;  %vm300_vm2 = vcmask 523264   ;;  %vm7422_vm3 = vmmov 0   ;;  %v7423_v32 = vmov 1   ;;  %v7424_v42 = vmov 2  }
  0x5e   :  { %6401 = vmatpush3.bf16.msra.mxu0 %v7014_v11  ;;  %v7018_v15 = vld [vmem:[%s7485_s8] sm:$0xff]   ;;  %6891 = vset.pattern.permute.xlu1 %v7421_v17  ;;  %v7425_v43 = vmov 3   ;;  %v502_v50 = vshrl.u32 %v501_v49, 7  ;;  %v7729_v52 = vld [vmem:[%s7450_s9 + $0x10] sm:$0xff]  ;;  %vm525_vm5 = vcmask 261120   ;;  %s7426_s0 = smov 112  }
  0x5f   :  { %6391 = vmatpush3.bf16.msra.mxu1 %v7015_v12  ;;  %6402 = vmatprep.subr.bf16.mxu0 %v7016_v13  ;;  %v5900_v20 = vld [vmem:[%s7470_s25] ss:$0 sm:$0xff]  ;;  %v186_v54 = vsub.f32 1.0, %v7729_v52  ;;  %s7427_s5 = smov 96   ;;  %s7428_s21 = smov 80  }
  0x60   :  { %6392 = vmatprep.subr.bf16.mxu1 %v7017_v14  ;;  %v437_v31 = vld [vmem:[%s7480_s3] sm:$0x3]  ;;  %6894 = vset.pattern.permute.xlu0 %v7423_v32  ;;  %v7726_v51 = vsub.s32 0, %v502_v50  ;;  %v7736_v55 = vsub.s32 1, %v502_v50  ;;  %v7741_v60 = vsub.s32 2, %v502_v50  ;;  %s7429_s25 = smov 32  }
  0x61   :  { %v7739_v59 = vmul.f32 -1e+30, %v186_v54  ;;  %s7430_s29 = smov 16   ;;  %s7431_s3 = smov 48  }
  0x62   :  { %6403 = vmatpush3.bf16.msra.mxu0 %v7016_v13  ;;  %s9652_s8 = sld [smem:[#allocation14_spill]] }
  0x63   :  { %6393 = vmatpush3.bf16.msra.mxu1 %v7017_v14  ;;  %6404 = vmatprep.subr.bf16.mxu0 %v7018_v15  ;;  %s9665_s22 = sld [smem:[#allocation25_spill]] }
  0x64   :  { %6410 = vmatprep.subr.bf16.mxu1 %v9617_v16  ;;  %s9666_s23 = sld [smem:[#allocation22_spill]] }
  0x65   :  { %s9667_s26 = sld [smem:[#allocation21_spill]] }
  0x66   :  { %6405 = vmatpush3.bf16.msra.mxu0 %v7018_v15  ;;  %s9668_s28 = sld [smem:[#allocation19_spill]] }
  0x67   :  { %s9669_s1 = sld [smem:[#allocation20_spill]] }
  0x68   :  { %s9670_s2 = sld [smem:[#allocation24_spill]] }
  0x69   :  { %s9671_s7 = sld [smem:[#allocation8_spill]] }
  0x6a   :  { %s9672_s10 = sld [smem:[#allocation9_spill]] }
  0x6b   :  { %s9684_s11 = sld [smem:[#allocation29_spill]] }
  0x6c   :  { %s9685_s15 = sld [smem:[#allocation28_spill]] }
  0x6d   :  { %s9688_s16 = sld [smem:[#allocation26_spill]] }
  0x6e   :  { %s9689_s18 = sld [smem:[#allocation27_spill]] }
 0x118   :  { %v6384_v18 = vpop.f32.mrf.mxu0 }
 0x119   :  { %v7682_v23 = vadd.f32 %v6384_v18, %v5900_v20 }
 0x11a   :  { %v251_v19 = vpop.f32.mrf.mxu0 }
 0x11b   :  { %v7684_v25 = vadd.f32 %v5900_v20, %v251_v19 }
 0x11c   :  { %v6385_v21 = vpop.f32.mrf.mxu0 }
 0x11d   :  { %v7680_v22 = vadd.f32 %v6385_v21, %v5900_v20 }
 0x11e   :  { %v254_v24 = vpop.f32.mrf.mxu0 }
 0x11f   :  { %v7686_v26 = vadd.f32 %v5900_v20, %v254_v24  ;;  %v267_v27 = vpack.c.bf16 %v7680_v22, %v7682_v23 }
 0x121   :  { %v266_v28 = vpack.c.bf16 %v7686_v26, %v7684_v25  ;;  %v305_v29 = vsel %vm300_vm2, %v267_v27, 0 }
 0x123   :  { %6394 = vmatprep.mubr.msk.bf16.mxu1 %vm300_vm2, %v266_v28  ;;  %6406 = vmatprep.mubr.msk.bf16.mxu0 %vm300_vm2, %v266_v28  ;;  %v302_v30 = vsel %vm300_vm2, %v266_v28, 0  ;;  %v7770_v28 = vld [vmem:[%s7450_s9] sm:$0xff] }
 0x124   :  { %6395 = vmatmul.mubr.msk.bf16.vlgmr.msra.gmra.mxu1 %vm300_vm2, %v267_v27  ;;  %6407 = vmatmul.mubr.msk.bf16.vlgmr.msra.gmra.mxu0 %vm300_vm2, %v267_v27 }
 0x125   :  { %6411 = vmatpush3.bf16.xpose.msra.mxu1 %v305_v29  ;;  %6414 = vmatprep.mubr.msk.bf16.mxu1 %vm7422_vm3, %v9617_v16 }
 0x126   :  { %6412 = vmatprep.subr.bf16.mxu1 %v9617_v16 }
 0x12d   :  { %6413 = vmatpush3.bf16.xpose.msra.mxu1 %v302_v30  ;;  %v7773_v30 = vld [vmem:[%s7450_s9 + $0x18] sm:$0xff] }
 0x134   :  { %6415 = vmatmul.mubr.msk.bf16.vlgmr.msra.gmra.mxu1 %vm300_vm2, %v437_v31 }
 0x1e4   :  { %v6396_v33 = vpop.f32.mrf.mxu1  ;;  %v6408_v34 = vpop.f32.mrf.mxu0 }
 0x1e5   :  { %493 = vperm.xlu1 %6891, %v6408_v34  }
 0x1e6   :  { %v341_v35 = vpop.f32.mrf.mxu1  ;;  %v422_v36 = vpop.f32.mrf.mxu0 }
 0x1e7   :  { %638 = vperm.xlu0 %6894, %v422_v36  }
 0x1e8   :  { %v6397_v37 = vpop.f32.mrf.mxu1  ;;  %v6409_v39 = vpop.f32.mrf.mxu0 }
 0x1e9   :  { %v7704_v38 = vpack.c.bf16 %v6397_v37, %v6396_v33  ;;  %6892 = vset.pattern.permute.xlu1 %v7423_v32  ;;  %v184_v33 = vsub.f32 1.0, %v7770_v28  ;;  %v187_v37 = vsub.f32 1.0, %v7773_v30 }
 0x1ea   :  { %646 = vperm.xlu1 %6892, %v6408_v34   ;;  %v344_v40 = vpop.f32.mrf.mxu1  ;;  %v425_v44 = vpop.f32.mrf.mxu0 }
 0x1eb   :  { %v7707_v41 = vpack.c.bf16 %v344_v40, %v341_v35  ;;  %650 = vperm.xlu0 %6894, %v6409_v39   ;;  %6418 = vmatprep.subr.bf16.mxu0 %v7704_v38 }
 0x1ec   :  { %6419 = vmatpush3.bf16.msra.mxu0 %v7704_v38 }
 0x1ed   :  { %6420 = vmatprep.subr.bf16.mxu0 %v7707_v41 }
 0x1ee   :  { %6893 = vset.pattern.permute.xlu1 %v7424_v42 }
 0x1ef   :  { %803 = vperm.xlu1 %6893, %v6408_v34   ;;  %6898 = vset.pattern.permute.xlu0 %v7425_v43 }
 0x1f0   :  { %950 = vperm.xlu0 %6898, %v422_v36   ;;  %6421 = vmatpush3.bf16.msra.mxu0 %v7707_v41 }
 0x1f3   :  { %795 = vperm.xlu1 %6893, %v422_v36  }
 0x1f4   :  { %6899 = vset.pattern.permute.xlu0 %v7424_v42  ;;  %v7716_v45 = vpop.f32.mrf.mxu1 }
 0x1f5   :  { %799 = vperm.xlu0 %6899, %v425_v44   ;;  %v7733_v53 = vrot.slane %v7716_v45, %v7726_v51  ;;  %v7745_v62 = vrot.slane %v7716_v45, %v7736_v55  ;;  %v7753_v4 = vrot.slane %v7716_v45, %v7741_v60 }
 0x1f6   :  { %v6416_v46 = vpop.f32.mrf.mxu1 }
 0x1f7   :  { %6895 = vset.pattern.permute.xlu1 %v7421_v17  ;;  %v7781_v46 = vmul.f32 -1e+30, %v184_v33 }
 0x1f8   :  { %498 = vperm.xlu1 %6895, %v6409_v39   ;;  %v478_v47 = vpop.f32.mrf.mxu1 }
 0x1f9   :  { %6901 = vset.pattern.permute.xlu0 %v7425_v43 }
 0x1fa   :  { %962 = vperm.xlu0 %6901, %v6409_v39   ;;  %v6417_v48 = vpop.f32.mrf.mxu1 }
 0x1fc   :  { %6896 = vset.pattern.permute.xlu1 %v7423_v32 }
 0x1fd   :  { %642 = vperm.xlu1 %6896, %v425_v44  }
 0x1fe   :  { %6902 = vset.pattern.permute.xlu0 %v7421_v17 }
 0x1ff   :  { %483 = vperm.xlu0 %6902, %v422_v36  }
 0x201   :  { %6897 = vset.pattern.permute.xlu1 %v7424_v42 }
 0x202   :  { %807 = vperm.xlu1 %6897, %v6409_v39   ;;  %v7779_v39 = vsub.s32 3, %v502_v50 }
 0x203   :  { %488 = vperm.xlu0 %6902, %v425_v44  }
 0x204   :  { %v968_v50 = vrot.slane %v7716_v45, %v7779_v39 }
 0x206   :  { %6900 = vset.pattern.permute.xlu1 %v7425_v43 }
 0x207   :  { %954 = vperm.xlu1 %6900, %v425_v44  }
 0x20b   :  { %958 = vperm.xlu1 %6900, %v6408_v34  }
 0x20f   :  { %6903 = vset.pattern.permute.xlu1 %v7421_v17 }
 0x260   :  { %v494_v56 = vpop.permute.xlu1 %493 }
 0x261   :  { %v507_v57 = vadd.f32 %v7733_v53, %v494_v56 }
 0x262   :  { %v639_v58 = vpop.permute.xlu0 %638 }
 0x263   :  { %v515_v61 = vmul.f32 0.2, %v507_v57  ;;  %vm511_vm4 = vcmp.ge.f32.partialorder %v507_v57, 0.0 }
 0x265   :  { %v647_v63 = vpop.permute.xlu1 %646  ;;  %v519_v0 = vsel %vm511_vm4, %v507_v57, %v515_v61  ;;  %v7787_v61 = vmul.f32 -1e+30, %v187_v37 }
 0x266   :  { %v659_v1 = vadd.f32 %v7745_v62, %v647_v63  ;;  %v651_v2 = vpop.permute.xlu0 %650  ;;  %v7749_v3 = vadd.f32 %v519_v0, %v7739_v59  ;;  %v657_v63 = vadd.f32 %v7745_v62, %v639_v58 }
 0x267   :  { %v660_v34 = vadd.f32 %v7745_v62, %v651_v2 }
 0x268   :  { %v667_v5 = vmul.f32 0.2, %v659_v1  ;;  %v532_v6 = vsel %vm525_vm5, %v7749_v3, -inf  ;;  %vm663_vm6 = vcmp.ge.f32.partialorder %v659_v1, 0.0  ;;  %vm661_vm12 = vcmp.ge.f32.partialorder %v657_v63, 0.0 }
 0x269   :  { %533 = vmax.xlane.f32.xlu0 %v532_v6  ;;  %v668_v47 = vmul.f32 0.2, %v660_v34  ;;  %vm664_vm10 = vcmp.ge.f32.partialorder %v660_v34, 0.0 }
 0x26a   :  { %v804_v7 = vpop.permute.xlu1 %803  ;;  %v671_v8 = vsel %vm663_vm6, %v659_v1, %v667_v5 }
 0x26b   :  { %v816_v9 = vadd.f32 %v7753_v4, %v804_v7  ;;  %v951_v10 = vpop.permute.xlu0 %950  ;;  %v7759_v11 = vadd.f32 %v671_v8, %v7739_v59  ;;  %v672_v7 = vsel %vm664_vm10, %v660_v34, %v668_v47  ;;  %v665_v8 = vmul.f32 0.2, %v657_v63 }
 0x26c   :  { %v7801_v58 = vadd.f32 %v672_v7, %v7787_v61  ;;  %vm1161_vm10 = vcmask 392192  }
 0x26d   :  { %v824_v12 = vmul.f32 0.2, %v816_v9  ;;  %v683_v13 = vsel %vm525_vm5, %v7759_v11, -inf  ;;  %vm820_vm7 = vcmp.ge.f32.partialorder %v816_v9, 0.0 }
 0x26e   :  { %v796_v14 = vpop.permute.xlu1 %795  ;;  %684 = vmax.xlane.f32.xlu0 %v683_v13 }
 0x26f   :  { %v828_v15 = vsel %vm820_vm7, %v816_v9, %v824_v12  ;;  %v814_v9 = vadd.f32 %v7753_v4, %v796_v14  ;;  %v7805_v14 = vld [vmem:[%s7450_s9 + $0x8] sm:$0xff] }
 0x270   :  { %v800_v18 = vpop.permute.xlu0 %799  ;;  %v7764_v19 = vadd.f32 %v828_v15, %v7739_v59 }
 0x271   :  { %v822_v33 = vmul.f32 0.2, %v814_v9  ;;  %v815_v34 = vadd.f32 %v7753_v4, %v800_v18  ;;  %vm818_vm15 = vcmp.ge.f32.partialorder %v814_v9, 0.0 }
 0x272   :  { %v840_v20 = vsel %vm525_vm5, %v7764_v19, -inf }
 0x273   :  { %v499_v21 = vpop.permute.xlu1 %498  ;;  %841 = vmax.xlane.f32.xlu0 %v840_v20  ;;  %vm819_vm6 = vcmp.ge.f32.partialorder %v815_v34, 0.0 }
 0x274   :  { %v508_v27 = vadd.f32 %v7733_v53, %v499_v21 }
 0x275   :  { %v963_v24 = vpop.permute.xlu0 %962 }
 0x276   :  { %v516_v35 = vmul.f32 0.2, %v508_v27  ;;  %vm512_vm8 = vcmp.ge.f32.partialorder %v508_v27, 0.0  ;;  %v972_v5 = vadd.f32 %v968_v50, %v963_v24  ;;  %v969_v24 = vadd.f32 %v968_v50, %v951_v10 }
 0x278   :  { %v643_v29 = vpop.permute.xlu1 %642  ;;  %v520_v56 = vsel %vm512_vm8, %v508_v27, %v516_v35  ;;  %v980_v13 = vmul.f32 0.2, %v972_v5  ;;  %vm976_vm13 = vcmp.ge.f32.partialorder %v972_v5, 0.0  ;;  %v686_v35 = vsel %vm525_vm5, %v7801_v58, -inf }
 0x279   :  { %v7795_v2 = vadd.f32 %v520_v56, %v7787_v61  ;;  %v658_v15 = vadd.f32 %v7745_v62, %v643_v29  ;;  %v977_v47 = vmul.f32 0.2, %v969_v24  ;;  %v826_v56 = vsel %vm818_vm15, %v814_v9, %v822_v33 }
 0x27a   :  { %v484_v31 = vpop.permute.xlu0 %483  ;;  %v984_v37 = vsel %vm976_vm13, %v972_v5, %v980_v13  ;;  %vm973_vm4 = vcmp.ge.f32.partialorder %v969_v24, 0.0 }
 0x27b   :  { %v505_v36 = vadd.f32 %v7733_v53, %v484_v31  ;;  %v535_v45 = vsel %vm525_vm5, %v7795_v2, -inf  ;;  %v669_v31 = vsel %vm661_vm12, %v657_v63, %v665_v8  ;;  %v666_v62 = vmul.f32 0.2, %v658_v15 }
 0x27c   :  { %vm662_vm0 = vcmp.ge.f32.partialorder %v658_v15, 0.0  ;;  %v823_v63 = vmul.f32 0.2, %v815_v34 }
 0x27d   :  { %v513_v40 = vmul.f32 0.2, %v505_v36  ;;  %v808_v44 = vpop.permute.xlu1 %807  ;;  %vm509_vm9 = vcmp.ge.f32.partialorder %v505_v36, 0.0 }
 0x27e   :  { %v817_v48 = vadd.f32 %v7753_v4, %v808_v44  ;;  %v489_v10 = vpop.permute.xlu0 %488  ;;  %v185_v44 = vsub.f32 1.0, %v7805_v14  ;;  %v7818_v4 = vadd.f32 %v669_v31, %v7781_v46  ;;  %v827_v13 = vsel %vm819_vm6, %v815_v34, %v823_v63 }
 0x27f   :  { %v517_v54 = vsel %vm509_vm9, %v505_v36, %v513_v40  ;;  %vm1152_vm9 = vcmask 130048  }
 0x280   :  { %v7785_v57 = vadd.f32 %v517_v54, %v7781_v46  ;;  %v825_v6 = vmul.f32 0.2, %v817_v48  ;;  %vm821_vm11 = vcmp.ge.f32.partialorder %v817_v48, 0.0  ;;  %v7825_v54 = vadd.f32 %v984_v37, %v7787_v61 }
 0x281   :  { %v7828_v7 = vmul.f32 -1e+30, %v185_v44  ;;  %v677_v8 = vsel %vm525_vm5, %v7818_v4, -inf }
 0x282   :  { %v955_v0 = vpop.permute.xlu1 %954  ;;  %v526_v1 = vsel %vm525_vm5, %v7785_v57, -inf  ;;  %v829_v21 = vsel %vm821_vm11, %v817_v48, %v825_v6  ;;  %v670_v6 = vsel %vm662_vm0, %v658_v15, %v666_v62 }
 0x283   :  { %527 = vmax.xlane.f32.xlu1 %v526_v1  ;;  %v7811_v36 = vadd.f32 %v829_v21, %v7787_v61  ;;  %v506_v1 = vadd.f32 %v7733_v53, %v489_v10  ;;  %v970_v5 = vadd.f32 %v968_v50, %v955_v0  ;;  %v7838_v9 = vadd.f32 %v670_v6, %v7828_v7 }
 0x284   :  { %v981_v0 = vsel %vm973_vm4, %v969_v24, %v977_v47 }
 0x285   :  { %v843_v48 = vsel %vm525_vm5, %v7811_v36, -inf  ;;  %v514_v53 = vmul.f32 0.2, %v506_v1  ;;  %vm510_vm7 = vcmp.ge.f32.partialorder %v506_v1, 0.0  ;;  %vm974_vm8 = vcmp.ge.f32.partialorder %v970_v5, 0.0 }
 0x286   :  { %v959_v12 = vpop.permute.xlu1 %958  ;;  %v7845_v21 = vadd.f32 %v981_v0, %v7781_v46 }
 0x287   :  { %v971_v20 = vadd.f32 %v968_v50, %v959_v12  ;;  %536 = vmax.xlane.f32.xlu1 %v535_v45  ;;  %v998_v12 = vsel %vm525_vm5, %v7825_v54, -inf  ;;  %v7835_v45 = vadd.f32 %v826_v56, %v7781_v46  ;;  %v978_v50 = vmul.f32 0.2, %v970_v5 }
 0x288   :  { %v518_v31 = vsel %vm510_vm7, %v506_v1, %v514_v53  ;;  %v989_v24 = vsel %vm525_vm5, %v7845_v21, -inf }
 0x289   :  { %v979_v27 = vmul.f32 0.2, %v971_v20  ;;  %vm975_vm14 = vcmp.ge.f32.partialorder %v971_v20, 0.0  ;;  %v834_v15 = vsel %vm525_vm5, %v7835_v45, -inf  ;;  %v982_v33 = vsel %vm974_vm8, %v970_v5, %v978_v50 }
 0x28a   :  { %v7858_v62 = vadd.f32 %v982_v33, %v7828_v7 }
 0x28b   :  { %687 = vmax.xlane.f32.xlu1 %v686_v35  ;;  %v983_v29 = vsel %vm975_vm14, %v971_v20, %v979_v27  ;;  %v680_v20 = vsel %vm525_vm5, %v7838_v9, -inf  ;;  %v7848_v27 = vadd.f32 %v827_v13, %v7828_v7  ;;  %v7855_v35 = vadd.f32 %v518_v31, %v7828_v7 }
 0x28c   :  { %v7814_v40 = vadd.f32 %v983_v29, %v7739_v59  ;;  %v992_v37 = vsel %vm525_vm5, %v7858_v62, -inf }
 0x28d   :  { %v837_v34 = vsel %vm525_vm5, %v7848_v27, -inf  ;;  %v529_v29 = vsel %vm525_vm5, %v7855_v35, -inf }
 0x28e   :  { %v995_v18 = vsel %vm525_vm5, %v7814_v40, -inf }
 0x28f   :  { %996 = vmax.xlane.f32.xlu0 %v995_v18  ;;  %844 = vmax.xlane.f32.xlu1 %v843_v48 }
 0x293   :  { %678 = vmax.xlane.f32.xlu0 %v677_v8  ;;  %999 = vmax.xlane.f32.xlu1 %v998_v12 }
 0x297   :  { %835 = vmax.xlane.f32.xlu0 %v834_v15  ;;  %681 = vmax.xlane.f32.xlu1 %v680_v20 }
 0x29b   :  { %990 = vmax.xlane.f32.xlu0 %v989_v24  ;;  %838 = vmax.xlane.f32.xlu1 %v837_v34 }
 0x29f   :  { %530 = vmax.xlane.f32.xlu0 %v529_v29  ;;  %993 = vmax.xlane.f32.xlu1 %v992_v37 }
 0x2b0   :  { %733 = vrot.lane.b32.xlu1 %v7707_v41, %s7426_s0 }
 0x2b4   :  { %890 = vrot.lane.b32.xlu1 %v7704_v38, %s7427_s5 }
 0x2b5   :  { %735 = vrot.lane.b32.xlu0 %v7704_v38, %s7426_s0 }
 0x2f2   :  { %v534_v10 = vpop.xlane.xlu0 %533 }
 0x2f3   :  { %v540_v44 = vsub.f32 %v7749_v3, %v534_v10 }
 0x2f5   :  { %v546_v47 = vmul.f32 1.442695, %v540_v44 }
 0x2f7   :  { %7061 = vpow2.f32 %v546_v47  ;;  %v685_v18 = vpop.xlane.xlu0 %684 }
 0x2f8   :  { %v691_v48 = vsub.f32 %v7759_v11, %v685_v18 }
 0x2fa   :  { %v697_v56 = vmul.f32 1.442695, %v691_v48 }
 0x2fc   :  { %7063 = vpow2.f32 %v697_v56  ;;  %v842_v63 = vpop.xlane.xlu0 %841 }
 0x2fd   :  { %v848_v1 = vsub.f32 %v7764_v19, %v842_v63 }
 0x2ff   :  { %v854_v5 = vmul.f32 1.442695, %v848_v1 }
 0x301   :  { %7065 = vpow2.f32 %v854_v5 }
 0x304   :  { %v7062_v6 = vpop.eup %7061 }
 0x305   :  { %v7874_v8 = vmul.f32 %v7062_v6, %v7729_v52 }
 0x307   :  { %v560_v12 = vsel %vm525_vm5, %v7874_v8, 0.0 }
 0x308   :  { %561 = vadd.xlane.f32.xlu0 %v560_v12 }
 0x309   :  { %v7064_v3 = vpop.eup %7063 }
 0x30a   :  { %v7879_v53 = vmul.f32 %v7064_v3, %v7729_v52 }
 0x30c   :  { %v528_v11 = vpop.xlane.xlu1 %527  ;;  %v711_v50 = vsel %vm525_vm5, %v7879_v53, 0.0 }
 0x30d   :  { %712 = vadd.xlane.f32.xlu0 %v711_v50  ;;  %v538_v33 = vsub.f32 %v7785_v57, %v528_v11 }
 0x30e   :  { %v7066_v19 = vpop.eup %7065 }
 0x30f   :  { %v7884_v0 = vmul.f32 %v7066_v19, %v7729_v52  ;;  %v542_v37 = vmul.f32 1.442695, %v538_v33 }
 0x310   :  { %v537_v13 = vpop.xlane.xlu1 %536 }
 0x311   :  { %v541_v15 = vsub.f32 %v7795_v2, %v537_v13  ;;  %v868_v20 = vsel %vm525_vm5, %v7884_v0, 0.0 }
 0x312   :  { %869 = vadd.xlane.f32.xlu0 %v868_v20 }
 0x313   :  { %v548_v31 = vmul.f32 1.442695, %v541_v15 }
 0x314   :  { %v688_v24 = vpop.xlane.xlu1 %687 }
 0x315   :  { %7067 = vpow2.f32 %v548_v31  ;;  %v692_v34 = vsub.f32 %v7801_v58, %v688_v24 }
 0x317   :  { %v699_v29 = vmul.f32 1.442695, %v692_v34 }
 0x318   :  { %v997_v10 = vpop.xlane.xlu0 %996  ;;  %v845_v44 = vpop.xlane.xlu1 %844 }
 0x319   :  { %7069 = vpow2.f32 %v699_v29  ;;  %v1003_v47 = vsub.f32 %v7814_v40, %v997_v10  ;;  %v849_v2 = vsub.f32 %v7811_v36, %v845_v44 }
 0x31a   :  { %7071 = vpow2.f32 %v542_v37 }
 0x31b   :  { %v1009_v18 = vmul.f32 1.442695, %v1003_v47  ;;  %v856_v48 = vmul.f32 1.442695, %v849_v2 }
 0x31c   :  { %v7893_v56 = vpop.xlane.xlu0 %678  ;;  %v1000_v63 = vpop.xlane.xlu1 %999 }
 0x31d   :  { %7073 = vpow2.f32 %v1009_v18  ;;  %v1004_v57 = vsub.f32 %v7825_v54, %v1000_v63 }
 0x31e   :  { %7075 = vpow2.f32 %v856_v48 }
 0x31f   :  { %v1011_v58 = vmul.f32 1.442695, %v1004_v57 }
 0x320   :  { %v7896_v1 = vpop.xlane.xlu0 %835  ;;  %v682_v5 = vpop.xlane.xlu1 %681 }
 0x321   :  { %7077 = vpow2.f32 %v1011_v58  ;;  %v690_v36 = vsub.f32 %v7838_v9, %v682_v5 }
 0x322   :  { %v7068_v6 = vpop.eup %7067 }
 0x323   :  { %v7899_v40 = vmul.f32 %v7068_v6, %v7773_v30  ;;  %v695_v19 = vmul.f32 1.442695, %v690_v36 }
 0x324   :  { %v7902_v12 = vpop.xlane.xlu0 %990  ;;  %v839_v3 = vpop.xlane.xlu1 %838 }
 0x325   :  { %v563_v11 = vsel %vm525_vm5, %v7899_v40, 0.0  ;;  %v847_v31 = vsub.f32 %v7848_v27, %v839_v3  ;;  %7079 = vpow2.f32 %v695_v19 }
 0x326   :  { %v7070_v50 = vpop.eup %7069  ;;  %564 = vadd.xlane.f32.xlu1 %v563_v11 }
 0x327   :  { %v7907_v54 = vmul.f32 %v7070_v50, %v7773_v30  ;;  %v7072_v20 = vpop.eup %7071 }
 0x328   :  { %v531_v13 = vpop.xlane.xlu0 %530  ;;  %v994_v15 = vpop.xlane.xlu1 %993  ;;  %v7924_v27 = vmul.f32 %v7072_v20, %v7770_v28 }
 0x329   :  { %v539_v33 = vsub.f32 %v7855_v35, %v531_v13  ;;  %v714_v9 = vsel %vm525_vm5, %v7907_v54, 0.0  ;;  %v852_v35 = vmul.f32 1.442695, %v847_v31  ;;  %v1002_v2 = vsub.f32 %v7858_v62, %v994_v15 }
 0x32a   :  { %v7074_v24 = vpop.eup %7073  ;;  %715 = vadd.xlane.f32.xlu1 %v714_v9  ;;  %v554_v62 = vsel %vm525_vm5, %v7924_v27, 0.0  ;;  %v689_v9 = vsub.f32 %v7818_v4, %v7893_v56 }
 0x32b   :  { %v7076_v34 = vpop.eup %7075  ;;  %v544_v29 = vmul.f32 1.442695, %v539_v33  ;;  %v7914_v37 = vmul.f32 %v7074_v24, %v7729_v52  ;;  %v1007_v58 = vmul.f32 1.442695, %v1002_v2 }
 0x32c   :  { %v7916_v10 = vpop.permute.xlu0 %735  ;;  %v7918_v44 = vpop.permute.xlu1 %733  ;;  %v7921_v47 = vmul.f32 %v7076_v34, %v7773_v30  ;;  %v693_v24 = vmul.f32 1.442695, %v689_v9  ;;  %v846_v34 = vsub.f32 %v7835_v45, %v7896_v1 }
 0x32d   :  { %7081 = vpow2.f32 %v544_v29  ;;  %6426 = vmatprep.subr.bf16.mxu0 %v7916_v10  ;;  %v1023_v52 = vsel %vm525_vm5, %v7914_v37, 0.0 }
 0x32e   :  { %1024 = vadd.xlane.f32.xlu0 %v1023_v52  ;;  %v871_v18 = vsel %vm525_vm5, %v7921_v47, 0.0  ;;  %v7078_v48 = vpop.eup %7077  ;;  %7083 = vpow2.f32 %v852_v35  ;;  %v850_v29 = vmul.f32 1.442695, %v846_v34 }
 0x32f   :  { %872 = vadd.xlane.f32.xlu1 %v871_v18  ;;  %v7933_v57 = vmul.f32 %v7078_v48, %v7773_v30  ;;  %7085 = vpow2.f32 %v1007_v58 }
 0x330   :  { %v891_v63 = vpop.permute.xlu1 %890  ;;  %7087 = vpow2.f32 %v693_v24 }
 0x331   :  { %6434 = vmatprep.subr.bf16.mxu1 %v891_v63  ;;  %v1026_v5 = vsel %vm525_vm5, %v7933_v57, 0.0  ;;  %7089 = vpow2.f32 %v850_v29 }
 0x332   :  { %555 = vadd.xlane.f32.xlu0 %v554_v62  ;;  %6435 = vmatpush3.bf16.msra.mxu1 %v891_v63  ;;  %v7080_v6 = vpop.eup %7079 }
 0x333   :  { %1027 = vadd.xlane.f32.xlu1 %v1026_v5  ;;  %v7945_v11 = vmul.f32 %v7080_v6, %v7805_v14 }
 0x335   :  { %v708_v19 = vsel %vm525_vm5, %v7945_v11, 0.0 }
 0x33a   :  { %v7082_v36 = vpop.eup %7081 }
 0x33b   :  { %v7940_v3 = vmul.f32 %v7082_v36, %v7805_v14  ;;  %v7084_v50 = vpop.eup %7083 }
 0x33c   :  { %v7950_v13 = vmul.f32 %v7084_v50, %v7805_v14  ;;  %v7086_v15 = vpop.eup %7085 }
 0x33d   :  { %v557_v30 = vsel %vm525_vm5, %v7940_v3, 0.0  ;;  %v7955_v31 = vmul.f32 %v7086_v15, %v7805_v14  ;;  %v1001_v14 = vsub.f32 %v7845_v21, %v7902_v12 }
 0x33e   :  { %558 = vadd.xlane.f32.xlu1 %v557_v30  ;;  %v865_v20 = vsel %vm525_vm5, %v7950_v13, 0.0 }
 0x33f   :  { %v1020_v33 = vsel %vm525_vm5, %v7955_v31, 0.0  ;;  %v1005_v35 = vmul.f32 1.442695, %v1001_v14 }
 0x341   :  { %7091 = vpow2.f32 %v1005_v35 }
 0x342   :  { %709 = vadd.xlane.f32.xlu1 %v708_v19 }
 0x346   :  { %866 = vadd.xlane.f32.xlu1 %v865_v20 }
 0x348   :  { %1045 = vrot.lane.b32.xlu0 %v7704_v38, %s7428_s21  ;;  %v7088_v38 = vpop.eup %7087 }
 0x349   :  { %v7970_v2 = vmul.f32 %v7088_v38, %v7770_v28  ;;  %v7090_v4 = vpop.eup %7089 }
 0x34a   :  { %1021 = vadd.xlane.f32.xlu1 %v1020_v33  ;;  %v7975_v45 = vmul.f32 %v7090_v4, %v7770_v28 }
 0x34b   :  { %v705_v56 = vsel %vm525_vm5, %v7970_v2, 0.0 }
 0x34c   :  { %v862_v21 = vsel %vm525_vm5, %v7975_v45, 0.0 }
 0x34e   :  { %v7092_v1 = vpop.eup %7091 }
 0x34f   :  { %v7980_v12 = vmul.f32 %v7092_v1, %v7770_v28 }
 0x351   :  { %v1017_v52 = vsel %vm525_vm5, %v7980_v12, 0.0 }
 0x35b   :  { %888 = vrot.lane.b32.xlu1 %v7707_v41, %s7427_s5 }
 0x367   :  { %706 = vadd.xlane.f32.xlu0 %v705_v56 }
 0x36b   :  { %863 = vadd.xlane.f32.xlu0 %v862_v21 }
 0x36f   :  { %1018 = vadd.xlane.f32.xlu0 %v1017_v52 }
 0x385   :  { %1043 = vrot.lane.b32.xlu0 %v7707_v41, %s7428_s21 }
 0x391   :  { %v562_v18 = vpop.xlane.xlu0 %561 }
 0x392   :  { %v568_v19 = vmax.f32 %v562_v18, 1e-20 }
 0x396   :  { %v713_v48 = vpop.xlane.xlu0 %712 }
 0x39b   :  { %v870_v58 = vpop.xlane.xlu0 %869 }
 0x3af   :  { %v565_v63 = vpop.xlane.xlu1 %564 }
 0x3b0   :  { %v569_v30 = vmax.f32 %v565_v63, 1e-20 }
 0x3b2   :  { %7093 = vrcp.f32 %v569_v30 }
 0x3b3   :  { %v716_v62 = vpop.xlane.xlu1 %715 }
 0x3b7   :  { %v1025_v5 = vpop.xlane.xlu0 %1024 }
 0x3b8   :  { %v873_v6 = vpop.xlane.xlu1 %872 }
 0x3b9   :  { %v877_v63 = vmax.f32 %v873_v6, 1e-20 }
 0x3bb   :  { %v556_v36 = vpop.xlane.xlu0 %555 }
 0x3bc   :  { %v1028_v50 = vpop.xlane.xlu1 %1027  ;;  %v566_v28 = vmax.f32 %v556_v36, 1e-20 }
 0x3be   :  { %7095 = vrcp.f32 %v566_v28  ;;  %v876_v28 = vmax.f32 %v870_v58, 1e-20 }
 0x3bf   :  { %7097 = vrcp.f32 %v568_v19  ;;  %v7094_v24 = vpop.eup %7093  ;;  %v1046_v18 = vpop.permute.xlu0 %1045 }
 0x3c0   :  { %v577_v38 = vmul.f32 %v7094_v24, %v7899_v40  ;;  %v720_v40 = vmax.f32 %v716_v62, 1e-20 }
 0x3c7   :  { %v559_v15 = vpop.xlane.xlu1 %558 }
 0x3c8   :  { %v567_v20 = vmax.f32 %v559_v15, 1e-20 }
 0x3ca   :  { %7099 = vrcp.f32 %v567_v20 }
 0x3cb   :  { %v710_v33 = vpop.xlane.xlu1 %709  ;;  %v7096_v34 = vpop.eup %7095  ;;  %7101 = vrcp.f32 %v720_v40 }
 0x3cc   :  { %v7098_v29 = vpop.eup %7097  ;;  %v574_v4 = vmul.f32 %v7096_v34, %v7924_v27  ;;  %v718_v27 = vmax.f32 %v710_v33, 1e-20 }
 0x3cd   :  { %v576_v1 = vmul.f32 %v7098_v29, %v7874_v8 }
 0x3ce   :  { %7103 = vrcp.f32 %v718_v27 }
 0x3cf   :  { %v867_v41 = vpop.xlane.xlu1 %866  ;;  %v581_v52 = vpack.c.bf16 %v577_v38, %v576_v1 }
 0x3d0   :  { %v875_v36 = vmax.f32 %v867_v41, 1e-20 }
 0x3d3   :  { %v1022_v9 = vpop.xlane.xlu1 %1021 }
 0x3d4   :  { %v1030_v15 = vmax.f32 %v1022_v9, 1e-20 }
 0x3d7   :  { %v7100_v14 = vpop.eup %7099  ;;  %v889_v35 = vpop.permute.xlu1 %888 }
 0x3d8   :  { %6436 = vmatprep.subr.bf16.mxu1 %v889_v35  ;;  %v575_v56 = vmul.f32 %v7100_v14, %v7940_v3  ;;  %v719_v3 = vmax.f32 %v713_v48, 1e-20  ;;  %v7102_v6 = vpop.eup %7101 }
 0x3d9   :  { %6437 = vmatpush3.bf16.msra.mxu1 %v889_v35  ;;  %v728_v24 = vmul.f32 %v7102_v6, %v7907_v54 }
 0x3da   :  { %v580_v21 = vpack.c.bf16 %v575_v56, %v574_v4  ;;  %7105 = vrcp.f32 %v719_v3 }
 0x3db   :  { %v7104_v33 = vpop.eup %7103 }
 0x3dc   :  { %6422 = vmatprep.mubr.msk.bf16.mxu0 %vm525_vm5, %v580_v21  ;;  %v726_v9 = vmul.f32 %v7104_v33, %v7945_v11  ;;  %v7019_v33 = vld [vmem:[%s7510_s6 + $0x18] sm:$0xff]  }
 0x3dd   :  { %6423 = vmatmul.mubr.msk.bf16.vlgmr.msra.gmra.mxu0 %vm525_vm5, %v581_v52  ;;  %6450 = vmatprep.subr.bf16.mxu1 %v7019_v33 }
 0x3de   :  { %6427 = vmatpush3.bf16.msra.mxu0 %v7916_v10  ;;  %v1032_v10 = vmax.f32 %v1028_v50, 1e-20 }
 0x3df   :  { %6428 = vmatprep.subr.bf16.mxu0 %v7918_v44 }
 0x3e2   :  { %6429 = vmatpush3.bf16.msra.mxu0 %v7918_v44  ;;  %v1031_v44 = vmax.f32 %v1025_v5, 1e-20 }
 0x3e3   :  { %6442 = vmatprep.subr.bf16.mxu0 %v1046_v18 }
 0x3e7   :  { %v7106_v41 = vpop.eup %7105 }
 0x3e8   :  { %v727_v5 = vmul.f32 %v7106_v41, %v7879_v53  ;;  %v7020_v41 = vld [vmem:[%s7520_s20 + $0x18] sm:$0xff]  }
 0x3ea   :  { %v730_v4 = vpack.c.bf16 %v728_v24, %v727_v5  ;;  %v7022_v24 = vld [vmem:[%s7520_s20 + $0x10] sm:$0xff]   ;;  %v1177_v5 = vld [vmem:[%s7505_s30] sm:$0x1]  ;;  %s9656_s30 = sld [smem:[#allocation12_spill]] }
 0x3f0   :  { %v707_v8 = vpop.xlane.xlu0 %706 }
 0x3f1   :  { %v717_v30 = vmax.f32 %v707_v8, 1e-20 }
 0x3f3   :  { %7107 = vrcp.f32 %v717_v30 }
 0x3f4   :  { %7109 = vrcp.f32 %v877_v63  ;;  %v864_v19 = vpop.xlane.xlu0 %863 }
 0x3f5   :  { %7111 = vrcp.f32 %v875_v36  ;;  %v874_v20 = vmax.f32 %v864_v19, 1e-20 }
 0x3f6   :  { %7113 = vrcp.f32 %v876_v28 }
 0x3f7   :  { %7115 = vrcp.f32 %v874_v20 }
 0x3f8   :  { %7117 = vrcp.f32 %v1032_v10  ;;  %v1019_v48 = vpop.xlane.xlu0 %1018 }
 0x3f9   :  { %7119 = vrcp.f32 %v1030_v15  ;;  %v1029_v62 = vmax.f32 %v1019_v48, 1e-20 }
 0x3fa   :  { %7121 = vrcp.f32 %v1031_v44 }
 0x3fb   :  { %7123 = vrcp.f32 %v1029_v62 }
 0x3fc   :  { %v1044_v53 = vpop.permute.xlu0 %1043 }
 0x400   :  { %v7108_v58 = vpop.eup %7107 }
 0x401   :  { %v7110_v50 = vpop.eup %7109  ;;  %v725_v34 = vmul.f32 %v7108_v58, %v7970_v2  ;;  %v7021_v58 = vld [vmem:[%s7510_s6 + $0x10] sm:$0xff]  }
 0x402   :  { %v7112_v29 = vpop.eup %7111  ;;  %v885_v56 = vmul.f32 %v7110_v50, %v7921_v47  ;;  %v7023_v50 = vld [vmem:[%s7510_s6 + $0x8] sm:$0xff]  }
 0x403   :  { %v7114_v14 = vpop.eup %7113  ;;  %v729_v35 = vpack.c.bf16 %v726_v9, %v725_v34  ;;  %v883_v54 = vmul.f32 %v7112_v29, %v7950_v13  ;;  %v7024_v34 = vld [vmem:[%s7520_s20 + $0x8] sm:$0xff]   ;;  %v7025_v9 = vld [vmem:[%s7510_s6] sm:$0xff]   ;;  %s9657_s6 = sld [smem:[#allocation10_spill]] }
 0x404   :  { %v7116_v38 = vpop.eup %7115  ;;  %v884_v11 = vmul.f32 %v7114_v14, %v7884_v0  ;;  %v7026_v29 = vld [vmem:[%s7520_s20] sm:$0xff]   ;;  %v1178_v14 = vadd.f32 1e-05, %v1177_v5  ;;  %s9659_s20 = sld [smem:[#allocation17_spill]] }
 0x405   :  { %v7118_v1 = vpop.eup %7117  ;;  %6430 = vmatprep.mubr.msk.bf16.mxu0 %vm525_vm5, %v729_v35  ;;  %v882_v21 = vmul.f32 %v7116_v38, %v7975_v45 }
 0x406   :  { %v7120_v52 = vpop.eup %7119  ;;  %6431 = vmatmul.mubr.msk.bf16.vlgmr.msra.gmra.mxu0 %vm525_vm5, %v730_v4  ;;  %v887_v3 = vpack.c.bf16 %v885_v56, %v884_v11  ;;  %v1040_v47 = vmul.f32 %v7118_v1, %v7933_v57  ;;  %7125 = vrsqrt.f32 %v1178_v14 }
 0x407   :  { %v7122_v2 = vpop.eup %7121  ;;  %6443 = vmatpush3.bf16.msra.mxu0 %v1046_v18  ;;  %v886_v40 = vpack.c.bf16 %v883_v54, %v882_v21  ;;  %v1038_v13 = vmul.f32 %v7120_v52, %v7955_v31 }
 0x408   :  { %v7124_v27 = vpop.eup %7123  ;;  %6444 = vmatprep.subr.bf16.mxu0 %v1044_v53  ;;  %v1039_v63 = vmul.f32 %v7122_v2, %v7914_v37  ;;  %v5924_v2 = vld [vmem:[%s7500_s24] ss:$0 sm:$0xff]  ;;  %s9655_s24 = sld [smem:[#allocation13_spill]] }
 0x409   :  { %6438 = vmatprep.mubr.msk.bf16.mxu1 %vm525_vm5, %v886_v40  ;;  %v1037_v45 = vmul.f32 %v7124_v27, %v7980_v12 }
 0x40a   :  { %6439 = vmatmul.mubr.msk.bf16.vlgmr.msra.gmra.mxu1 %vm525_vm5, %v887_v3  ;;  %v1042_v8 = vpack.c.bf16 %v1040_v47, %v1039_v63 }
 0x40b   :  { %6445 = vmatpush3.bf16.msra.mxu0 %v1044_v53  ;;  %v1041_v0 = vpack.c.bf16 %v1038_v13, %v1037_v45  ;;  %6451 = vmatpush3.bf16.msra.mxu1 %v7019_v33 }
 0x40c   :  { %6462 = vmatprep.subr.bf16.mxu0 %v7020_v41  ;;  %6452 = vmatprep.subr.bf16.mxu1 %v7021_v58 }
 0x40d   :  { %6446 = vmatprep.mubr.msk.bf16.mxu0 %vm525_vm5, %v1041_v0  ;;  %v5925_v0 = vld [vmem:[%s7490_s14] ss:$0 sm:$0xff]  ;;  %s9653_s14 = sld [smem:[#allocation16_spill]] }
 0x40e   :  { %6447 = vmatmul.mubr.msk.bf16.vlgmr.msra.gmra.mxu0 %vm525_vm5, %v1042_v8 }
 0x40f   :  { %6463 = vmatpush3.bf16.msra.mxu0 %v7020_v41  ;;  %6453 = vmatpush3.bf16.msra.mxu1 %v7021_v58 }
 0x410   :  { %6464 = vmatprep.subr.bf16.mxu0 %v7022_v24  ;;  %6454 = vmatprep.subr.bf16.mxu1 %v7023_v50 }
 0x413   :  { %6465 = vmatpush3.bf16.msra.mxu0 %v7022_v24  ;;  %6455 = vmatpush3.bf16.msra.mxu1 %v7023_v50  ;;  %v7126_v52 = vpop.eup %7125 }
 0x414   :  { %6466 = vmatprep.subr.bf16.mxu0 %v7024_v34  ;;  %6456 = vmatprep.subr.bf16.mxu1 %v7025_v9  ;;  %v1184_v40 = vrot.slane %v7126_v52, %v7726_v51 }
 0x417   :  { %6467 = vmatpush3.bf16.msra.mxu0 %v7024_v34  ;;  %6457 = vmatpush3.bf16.msra.mxu1 %v7025_v9 }
 0x418   :  { %6468 = vmatprep.subr.bf16.mxu0 %v7026_v29  ;;  %6474 = vmatprep.subr.bf16.mxu1 %v9617_v16 }
 0x41b   :  { %6469 = vmatpush3.bf16.msra.mxu0 %v7026_v29 }
 0x49d   :  { %v8013_v18 = vpop.f32.mrf.mxu0 }
 0x49f   :  { %v8015_v57 = vpop.f32.mrf.mxu0 }
 0x4a1   :  { %v8017_v36 = vpop.f32.mrf.mxu0 }
 0x4a3   :  { %v8019_v12 = vpop.f32.mrf.mxu0 }
 0x4c6   :  { %v6432_v31 = vpop.f32.mrf.mxu0 }
 0x4c8   :  { %v779_v30 = vpop.f32.mrf.mxu0 }
 0x4ca   :  { %v6433_v28 = vpop.f32.mrf.mxu0  ;;  %v6440_v10 = vpop.f32.mrf.mxu1 }
 0x4cb   :  { %1128 = vrot.lane.b32.xlu1 %v6440_v10, %s7429_s25 }
 0x4cc   :  { %v934_v37 = vpop.f32.mrf.mxu1  ;;  %v782_v19 = vpop.f32.mrf.mxu0 }
 0x4ce   :  { %v6441_v15 = vpop.f32.mrf.mxu1  ;;  %v6448_v20 = vpop.f32.mrf.mxu0 }
 0x4cf   :  { %1124 = vrot.lane.b32.xlu1 %v934_v37, %s7429_s25  ;;  %1130 = vrot.lane.b32.xlu0 %v6441_v15, %s7429_s25  ;;  %v5926_v37 = vld [vmem:[%s7495_s19] ss:$0 sm:$0xff]  ;;  %s9654_s19 = sld [smem:[#allocation18_spill]] }
 0x4d0   :  { %v937_v44 = vpop.f32.mrf.mxu1  ;;  %v1089_v48 = vpop.f32.mrf.mxu0 }
 0x4d2   :  { %v6449_v62 = vpop.f32.mrf.mxu0 }
 0x4d3   :  { %1112 = vrot.lane.b32.xlu1 %v6432_v31, %s7430_s29  ;;  %1126 = vrot.lane.b32.xlu0 %v937_v44, %s7429_s25 }
 0x4d4   :  { %v1092_v6 = vpop.f32.mrf.mxu0 }
 0x4d7   :  { %1108 = vrot.lane.b32.xlu1 %v779_v30, %s7430_s29  ;;  %1114 = vrot.lane.b32.xlu0 %v6433_v28, %s7430_s29 }
 0x4db   :  { %1140 = vrot.lane.b32.xlu1 %v1089_v48, %s7431_s3  ;;  %1110 = vrot.lane.b32.xlu0 %v782_v19, %s7430_s29 }
 0x4df   :  { %1144 = vrot.lane.b32.xlu1 %v6448_v20, %s7431_s3  ;;  %1142 = vrot.lane.b32.xlu0 %v1092_v6, %s7431_s3 }
 0x4e3   :  { %1146 = vrot.lane.b32.xlu0 %v6449_v62, %s7431_s3 }
 0x53d   :  { %v1129_v35 = vpop.permute.xlu1 %1128 }
 0x541   :  { %v1125_v38 = vpop.permute.xlu1 %1124  ;;  %v1131_v4 = vpop.permute.xlu0 %1130 }
 0x545   :  { %v1113_v56 = vpop.permute.xlu1 %1112  ;;  %v1127_v1 = vpop.permute.xlu0 %1126 }
 0x546   :  { %v1155_v47 = vsel %vm1152_vm9, %v8013_v18, %v1113_v56 }
 0x549   :  { %v1109_v21 = vpop.permute.xlu1 %1108  ;;  %v1115_v54 = vpop.permute.xlu0 %1114 }
 0x54a   :  { %v1153_v11 = vsel %vm1152_vm9, %v8015_v57, %v1109_v21  ;;  %v1159_v57 = vsel %vm525_vm5, %v1155_v47, %v1129_v35  ;;  %v1156_v10 = vsel %vm1152_vm9, %v8017_v36, %v1115_v54 }
 0x54b   :  { %v1157_v53 = vsel %vm525_vm5, %v1153_v11, %v1125_v38  ;;  %v1160_v6 = vsel %vm525_vm5, %v1156_v10, %v1131_v4 }
 0x54d   :  { %v1141_v27 = vpop.permute.xlu1 %1140  ;;  %v1111_v3 = vpop.permute.xlu0 %1110 }
 0x54e   :  { %v1162_v45 = vsel %vm1161_vm10, %v1157_v53, %v1141_v27  ;;  %v1154_v13 = vsel %vm1152_vm9, %v8019_v12, %v1111_v3 }
 0x54f   :  { %v1173_v63 = vsub.f32 %v1162_v45, %v5924_v2  ;;  %v1158_v30 = vsel %vm525_vm5, %v1154_v13, %v1127_v1 }
 0x551   :  { %v1186_v8 = vmul.f32 %v1184_v40, %v1173_v63  ;;  %v1145_v31 = vpop.permute.xlu1 %1144  ;;  %v1143_v28 = vpop.permute.xlu0 %1142 }
 0x552   :  { %v1164_v18 = vsel %vm1161_vm10, %v1159_v57, %v1145_v31  ;;  %v1163_v19 = vsel %vm1161_vm10, %v1158_v30, %v1143_v28 }
 0x553   :  { %v1197_v15 = vmul.f32 %v5925_v0, %v1186_v8  ;;  %v1175_v20 = vsub.f32 %v1164_v18, %v5924_v2  ;;  %v1174_v12 = vsub.f32 %v1163_v19, %v5924_v2 }
 0x555   :  { %v1208_v44 = vadd.f32 %v5926_v37, %v1197_v15  ;;  %v1188_v48 = vmul.f32 %v1184_v40, %v1175_v20  ;;  %v1187_v62 = vmul.f32 %v1184_v40, %v1174_v12  ;;  %v1147_v33 = vpop.permute.xlu0 %1146 }
 0x556   :  { %v1165_v41 = vsel %vm1161_vm10, %v1160_v6, %v1147_v33 }
 0x557   :  { %v1216_v58 = vmin.f32 %v1208_v44, 0.0  ;;  %v1199_v24 = vmul.f32 %v5925_v0, %v1188_v48  ;;  %v1198_v50 = vmul.f32 %v5925_v0, %v1187_v62  ;;  %v1176_v36 = vsub.f32 %v1165_v41, %v5924_v2 }
 0x558   :  { %vm1212_vm11 = vcmp.gt.f32.partialorder %v1208_v44, 0.0 }
 0x559   :  { %v1220_v34 = vmul.f32 1.442695, %v1216_v58  ;;  %v1210_v9 = vadd.f32 %v5926_v37, %v1199_v24  ;;  %v1209_v29 = vadd.f32 %v5926_v37, %v1198_v50  ;;  %v1189_v5 = vmul.f32 %v1184_v40, %v1176_v36 }
 0x55b   :  { %7127 = vpow2.f32 %v1220_v34  ;;  %v1218_v14 = vmin.f32 %v1210_v9, 0.0  ;;  %v1217_v35 = vmin.f32 %v1209_v29, 0.0  ;;  %v1200_v38 = vmul.f32 %v5925_v0, %v1189_v5 }
 0x55c   :  { %vm1214_vm12 = vcmp.gt.f32.partialorder %v1210_v9, 0.0  ;;  %vm1213_vm13 = vcmp.gt.f32.partialorder %v1209_v29, 0.0 }
 0x55d   :  { %v1224_v56 = vmul.f32 1.442695, %v1218_v14  ;;  %v1222_v1 = vmul.f32 1.442695, %v1217_v35  ;;  %v1211_v21 = vadd.f32 %v5926_v37, %v1200_v38 }
 0x55f   :  { %7129 = vpow2.f32 %v1224_v56  ;;  %v1219_v4 = vmin.f32 %v1211_v21, 0.0  ;;  %vm1215_vm14 = vcmp.gt.f32.partialorder %v1211_v21, 0.0 }
 0x560   :  { %7131 = vpow2.f32 %v1222_v1 }
 0x561   :  { %v1226_v54 = vmul.f32 1.442695, %v1219_v4 }
 0x563   :  { %7133 = vpow2.f32 %v1226_v54 }
 0x568   :  { %v7128_v52 = vpop.eup %7127 }
 0x569   :  { %v5927_v11 = vadd.f32 -1.0, %v7128_v52 }
 0x56b   :  { %v1232_v2 = vsel %vm1212_vm11, %v1208_v44, %v5927_v11  ;;  %v1422_v44 = vld [vmem:[%s7515_s12] sm:$0x3]  ;;  %s9658_s12 = sld [smem:[#allocation11_spill]] }
 0x56c   :  { %v7130_v53 = vpop.eup %7129  ;;  %v1236_v27 = vadd.f32 %v1232_v2, %v7684_v25 }
 0x56d   :  { %v7132_v40 = vpop.eup %7131  ;;  %v5929_v3 = vadd.f32 -1.0, %v7130_v53 }
 0x56e   :  { %v5928_v47 = vadd.f32 -1.0, %v7132_v40  ;;  %v1240_v13 = vand.u32 2147483647, %v1236_v27 }
 0x56f   :  { %v1234_v45 = vsel %vm1214_vm12, %v1210_v9, %v5929_v3 }
 0x570   :  { %v1238_v63 = vadd.f32 %v1234_v45, %v7682_v23  ;;  %v1233_v0 = vsel %vm1213_vm13, %v1209_v29, %v5928_v47  ;;  %v7134_v8 = vpop.eup %7133  ;;  %vm1244_vm15 = vcmp.eq.f32.partialorder %v1240_v13, inf }
 0x571   :  { %v1237_v57 = vadd.f32 %v1233_v0, %v7686_v26  ;;  %v5930_v31 = vadd.f32 -1.0, %v7134_v8  ;;  %v8067_v37 = vsel %vm1244_vm15, 1e+09, %v1236_v27 }
 0x572   :  { %v1242_v28 = vand.u32 2147483647, %v1238_v63 }
 0x573   :  { %v1241_v30 = vand.u32 2147483647, %v1237_v57  ;;  %v1235_v10 = vsel %vm1215_vm14, %v1211_v21, %v5930_v31 }
 0x574   :  { %v1239_v25 = vadd.f32 %v1235_v10, %v7680_v22  ;;  %vm1246_vm4 = vcmp.eq.f32.partialorder %v1242_v28, inf }
 0x575   :  { %vm1245_vm0 = vcmp.eq.f32.partialorder %v1241_v30, inf  ;;  %v8075_v26 = vsel %vm1246_vm4, 1e+09, %v1238_v63 }
 0x576   :  { %v8069_v18 = vsel %vm1245_vm0, 1e+09, %v1237_v57  ;;  %v1243_v19 = vand.u32 2147483647, %v1239_v25 }
 0x577   :  { %v1252_v23 = vpack.c.bf16 %v8069_v18, %v8067_v37 }
 0x578   :  { %vm1247_vm6 = vcmp.eq.f32.partialorder %v1243_v19, inf }
 0x579   :  { %6458 = vmatprep.mubr.msk.bf16.mxu1 %vm300_vm2, %v1252_v23  ;;  %6470 = vmatprep.mubr.msk.bf16.mxu0 %vm300_vm2, %v1252_v23  ;;  %v8077_v15 = vsel %vm1247_vm6, 1e+09, %v1239_v25  ;;  %v1287_v12 = vsel %vm300_vm2, %v1252_v23, 0 }
 0x57a   :  { %v1253_v22 = vpack.c.bf16 %v8077_v15, %v8075_v26 }
 0x57c   :  { %6459 = vmatmul.mubr.msk.bf16.vlgmr.msra.gmra.mxu1 %vm300_vm2, %v1253_v22  ;;  %6471 = vmatmul.mubr.msk.bf16.vlgmr.msra.gmra.mxu0 %vm300_vm2, %v1253_v22  ;;  %v1290_v20 = vsel %vm300_vm2, %v1253_v22, 0 }
 0x57d   :  { %6475 = vmatpush3.bf16.xpose.msra.mxu1 %v1290_v20  ;;  %6478 = vmatprep.mubr.msk.bf16.mxu1 %vm7422_vm3, %v9617_v16 }
 0x57e   :  { %6476 = vmatprep.subr.bf16.mxu1 %v9617_v16 }
 0x585   :  { %6477 = vmatpush3.bf16.xpose.msra.mxu1 %v1287_v12 }
 0x58c   :  { %6479 = vmatmul.mubr.msk.bf16.vlgmr.msra.gmra.mxu1 %vm300_vm2, %v1422_v44 }
 0x63c   :  { %v6460_v48 = vpop.f32.mrf.mxu1  ;;  %v6472_v62 = vpop.f32.mrf.mxu0 }
 0x63d   :  { %1478 = vperm.xlu1 %6903, %v6472_v62  }
 0x63e   :  { %v1326_v6 = vpop.f32.mrf.mxu1  ;;  %v1407_v33 = vpop.f32.mrf.mxu0 }
 0x640   :  { %v6461_v41 = vpop.f32.mrf.mxu1  ;;  %v6473_v58 = vpop.f32.mrf.mxu0 }
 0x641   :  { %v8090_v24 = vpack.c.bf16 %v6461_v41, %v6460_v48  ;;  %6904 = vset.pattern.permute.xlu1 %v7423_v32 }
 0x642   :  { %1630 = vperm.xlu1 %6904, %v6472_v62   ;;  %v1329_v50 = vpop.f32.mrf.mxu1  ;;  %v1410_v36 = vpop.f32.mrf.mxu0 }
 0x643   :  { %v8093_v34 = vpack.c.bf16 %v1329_v50, %v1326_v6  ;;  %1473 = vperm.xlu0 %6902, %v1410_v36   ;;  %6482 = vmatprep.subr.bf16.mxu0 %v8090_v24 }
 0x644   :  { %6483 = vmatpush3.bf16.msra.mxu0 %v8090_v24 }
 0x645   :  { %6484 = vmatprep.subr.bf16.mxu0 %v8093_v34 }
 0x646   :  { %6905 = vset.pattern.permute.xlu1 %v7424_v42 }
 0x647   :  { %1787 = vperm.xlu1 %6905, %v6472_v62   ;;  %6911 = vset.pattern.permute.xlu0 %v7425_v43 }
 0x648   :  { %1934 = vperm.xlu0 %6911, %v1407_v33   ;;  %6485 = vmatpush3.bf16.msra.mxu0 %v8093_v34 }
 0x64b   :  { %6906 = vset.pattern.permute.xlu1 %v7421_v17 }
 0x64c   :  { %1468 = vperm.xlu1 %6906, %v1407_v33   ;;  %6912 = vset.pattern.permute.xlu0 %v7424_v42  ;;  %v8103_v9 = vpop.f32.mrf.mxu1 }
 0x64d   :  { %1783 = vperm.xlu0 %6912, %v1410_v36   ;;  %v8115_v35 = vrot.slane %v8103_v9, %v7726_v51  ;;  %v8120_v1 = vrot.slane %v8103_v9, %v7736_v55  ;;  %v8130_v53 = vrot.slane %v8103_v9, %v7741_v60  ;;  %v1952_v41 = vrot.slane %v8103_v9, %v7779_v39 }
 0x64e   :  { %v6480_v29 = vpop.f32.mrf.mxu1 }
 0x650   :  { %6907 = vset.pattern.permute.xlu1 %v7424_v42  ;;  %v1463_v5 = vpop.f32.mrf.mxu1 }
 0x651   :  { %1779 = vperm.xlu1 %6907, %v1407_v33   ;;  %6914 = vset.pattern.permute.xlu0 %v7425_v43 }
 0x652   :  { %1946 = vperm.xlu0 %6914, %v6473_v58   ;;  %v6481_v14 = vpop.f32.mrf.mxu1 }
 0x655   :  { %6908 = vset.pattern.permute.xlu1 %v7421_v17 }
 0x656   :  { %1483 = vperm.xlu1 %6908, %v6473_v58   ;;  %6915 = vset.pattern.permute.xlu0 %v7423_v32 }
 0x657   :  { %1622 = vperm.xlu0 %6915, %v1407_v33  }
 0x65a   :  { %6909 = vset.pattern.permute.xlu1 %v7423_v32 }
 0x65b   :  { %1626 = vperm.xlu1 %6909, %v1410_v36   ;;  %1634 = vperm.xlu0 %6915, %v6473_v58  }
 0x65f   :  { %6910 = vset.pattern.permute.xlu1 %v7424_v42 }
 0x660   :  { %1791 = vperm.xlu1 %6910, %v6473_v58  }
 0x664   :  { %6913 = vset.pattern.permute.xlu1 %v7425_v43 }
 0x665   :  { %1938 = vperm.xlu1 %6913, %v1410_v36  }
 0x669   :  { %1942 = vperm.xlu1 %6913, %v6472_v62  }
 0x66d   :  { %6916 = vset.pattern.permute.xlu1 %v7421_v17 }
 0x6b8   :  { %v1479_v38 = vpop.permute.xlu1 %1478 }
 0x6b9   :  { %v1492_v56 = vadd.f32 %v8115_v35, %v1479_v38 }
 0x6bb   :  { %v1500_v21 = vmul.f32 0.2, %v1492_v56  ;;  %vm1496_vm7 = vcmp.ge.f32.partialorder %v1492_v56, 0.0 }
 0x6bd   :  { %v1631_v4 = vpop.permute.xlu1 %1630  ;;  %v1504_v54 = vsel %vm1496_vm7, %v1492_v56, %v1500_v21 }
 0x6be   :  { %v1643_v52 = vadd.f32 %v8120_v1, %v1631_v4  ;;  %v8123_v11 = vpop.permute.xlu0 %1473  ;;  %v8126_v2 = vadd.f32 %v1504_v54, %v7739_v59 }
 0x6c0   :  { %v1651_v27 = vmul.f32 0.2, %v1643_v52  ;;  %v1516_v40 = vsel %vm525_vm5, %v8126_v2, -inf  ;;  %vm1647_vm8 = vcmp.ge.f32.partialorder %v1643_v52, 0.0 }
 0x6c1   :  { %1517 = vmax.xlane.f32.xlu0 %v1516_v40 }
 0x6c2   :  { %v1788_v3 = vpop.permute.xlu1 %1787  ;;  %v1655_v47 = vsel %vm1647_vm8, %v1643_v52, %v1651_v27 }
 0x6c3   :  { %v1800_v45 = vadd.f32 %v8130_v53, %v1788_v3  ;;  %v8135_v13 = vpop.permute.xlu0 %1934  ;;  %v8138_v63 = vadd.f32 %v1655_v47, %v7739_v59 }
 0x6c5   :  { %v1808_v0 = vmul.f32 0.2, %v1800_v45  ;;  %v1667_v8 = vsel %vm525_vm5, %v8138_v63, -inf  ;;  %vm1804_vm11 = vcmp.ge.f32.partialorder %v1800_v45, 0.0 }
 0x6c6   :  { %1668 = vmax.xlane.f32.xlu0 %v1667_v8 }
 0x6c7   :  { %v1469_v57 = vpop.permute.xlu1 %1468  ;;  %v1812_v31 = vsel %vm1804_vm11, %v1800_v45, %v1808_v0 }
 0x6c8   :  { %v1490_v30 = vadd.f32 %v8115_v35, %v1469_v57  ;;  %v1784_v28 = vpop.permute.xlu0 %1783  ;;  %v8144_v10 = vadd.f32 %v1812_v31, %v7739_v59 }
 0x6c9   :  { %v1799_v47 = vadd.f32 %v8130_v53, %v1784_v28 }
 0x6ca   :  { %v1498_v25 = vmul.f32 0.2, %v1490_v30  ;;  %v1824_v23 = vsel %vm525_vm5, %v8144_v10, -inf  ;;  %vm1494_vm12 = vcmp.ge.f32.partialorder %v1490_v30, 0.0 }
 0x6cb   :  { %1825 = vmax.xlane.f32.xlu0 %v1824_v23  ;;  %vm1803_vm6 = vcmp.ge.f32.partialorder %v1799_v47, 0.0 }
 0x6cc   :  { %v1780_v19 = vpop.permute.xlu1 %1779  ;;  %v1502_v22 = vsel %vm1494_vm12, %v1490_v30, %v1498_v25 }
 0x6cd   :  { %v1947_v20 = vpop.permute.xlu0 %1946  ;;  %v8149_v12 = vadd.f32 %v1502_v22, %v7781_v46  ;;  %v1807_v22 = vmul.f32 0.2, %v1799_v47 }
 0x6ce   :  { %v1956_v14 = vadd.f32 %v1952_v41, %v1947_v20 }
 0x6cf   :  { %v1510_v44 = vsel %vm525_vm5, %v8149_v12, -inf }
 0x6d0   :  { %1511 = vmax.xlane.f32.xlu1 %v1510_v44  ;;  %v1964_v54 = vmul.f32 0.2, %v1956_v14  ;;  %vm1960_vm15 = vcmp.ge.f32.partialorder %v1956_v14, 0.0 }
 0x6d1   :  { %v1484_v48 = vpop.permute.xlu1 %1483 }
 0x6d2   :  { %v1493_v62 = vadd.f32 %v8115_v35, %v1484_v48  ;;  %v1623_v6 = vpop.permute.xlu0 %1622  ;;  %v1968_v57 = vsel %vm1960_vm15, %v1956_v14, %v1964_v54  ;;  %v1798_v48 = vadd.f32 %v8130_v53, %v1780_v19  ;;  %v1491_v54 = vadd.f32 %v8115_v35, %v8123_v11 }
 0x6d3   :  { %v1641_v31 = vadd.f32 %v8120_v1, %v1623_v6  ;;  %v8177_v23 = vadd.f32 %v1968_v57, %v7787_v61 }
 0x6d4   :  { %v1501_v33 = vmul.f32 0.2, %v1493_v62  ;;  %vm1497_vm13 = vcmp.ge.f32.partialorder %v1493_v62, 0.0  ;;  %v1806_v14 = vmul.f32 0.2, %v1798_v48  ;;  %vm1802_vm12 = vcmp.ge.f32.partialorder %v1798_v48, 0.0 }
 0x6d5   :  { %vm1645_vm7 = vcmp.ge.f32.partialorder %v1641_v31, 0.0 }
 0x6d6   :  { %v1627_v58 = vpop.permute.xlu1 %1626  ;;  %v1635_v50 = vpop.permute.xlu0 %1634  ;;  %v1505_v36 = vsel %vm1497_vm13, %v1493_v62, %v1501_v33  ;;  %v1649_v62 = vmul.f32 0.2, %v1641_v31  ;;  %v1982_v33 = vsel %vm525_vm5, %v8177_v23, -inf }
 0x6d7   :  { %v1644_v29 = vadd.f32 %v8120_v1, %v1635_v50  ;;  %v8158_v5 = vadd.f32 %v1505_v36, %v7787_v61  ;;  %v1642_v9 = vadd.f32 %v8120_v1, %v1627_v58  ;;  %v1953_v50 = vadd.f32 %v1952_v41, %v8135_v13 }
 0x6d9   :  { %v1652_v38 = vmul.f32 0.2, %v1644_v29  ;;  %v1519_v56 = vsel %vm525_vm5, %v8158_v5, -inf  ;;  %vm1648_vm14 = vcmp.ge.f32.partialorder %v1644_v29, 0.0  ;;  %v1650_v45 = vmul.f32 0.2, %v1642_v9 }
 0x6da   :  { %1520 = vmax.xlane.f32.xlu1 %v1519_v56  ;;  %vm1646_vm4 = vcmp.ge.f32.partialorder %v1642_v9, 0.0  ;;  %vm1957_vm13 = vcmp.ge.f32.partialorder %v1953_v50, 0.0 }
 0x6db   :  { %v1792_v21 = vpop.permute.xlu1 %1791  ;;  %v1656_v4 = vsel %vm1648_vm14, %v1644_v29, %v1652_v38  ;;  %v1654_v28 = vsel %vm1646_vm4, %v1642_v9, %v1650_v45  ;;  %v1811_v29 = vsel %vm1803_vm6, %v1799_v47, %v1807_v22  ;;  %v1961_v9 = vmul.f32 0.2, %v1953_v50 }
 0x6dc   :  { %v1801_v52 = vadd.f32 %v8130_v53, %v1792_v21  ;;  %v8165_v27 = vadd.f32 %v1656_v4, %v7787_v61  ;;  %v8183_v58 = vadd.f32 %v1654_v28, %v7828_v7  ;;  %v1653_v53 = vsel %vm1645_vm7, %v1641_v31, %v1649_v62 }
 0x6dd   :  { %v8192_v21 = vadd.f32 %v1811_v29, %v7828_v7  ;;  %v1965_v35 = vsel %vm1957_vm13, %v1953_v50, %v1961_v9  ;;  %vm1495_vm14 = vcmp.ge.f32.partialorder %v1491_v54, 0.0 }
 0x6de   :  { %v1809_v40 = vmul.f32 0.2, %v1801_v52  ;;  %v1670_v3 = vsel %vm525_vm5, %v8165_v27, -inf  ;;  %vm1805_vm0 = vcmp.ge.f32.partialorder %v1801_v52, 0.0  ;;  %v1664_v56 = vsel %vm525_vm5, %v8183_v58, -inf }
 0x6df   :  { %1671 = vmax.xlane.f32.xlu1 %v1670_v3  ;;  %v8216_v57 = vadd.f32 %v1965_v35, %v7781_v46 }
 0x6e0   :  { %v1939_v0 = vpop.permute.xlu1 %1938  ;;  %v1813_v8 = vsel %vm1805_vm0, %v1801_v52, %v1809_v40  ;;  %v1810_v52 = vsel %vm1802_vm12, %v1798_v48, %v1806_v14  ;;  %v1821_v40 = vsel %vm525_vm5, %v8192_v21, -inf  ;;  %v8235_v14 = vld [vmem:[%s7450_s9 + $0x10] sm:$0xff] }
 0x6e1   :  { %v8172_v30 = vadd.f32 %v1813_v8, %v7787_v61  ;;  %v1954_v20 = vadd.f32 %v1952_v41, %v1939_v0  ;;  %v8209_v45 = vadd.f32 %v1810_v52, %v7781_v46  ;;  %v1499_v0 = vmul.f32 0.2, %v1491_v54 }
 0x6e3   :  { %v1827_v25 = vsel %vm525_vm5, %v8172_v30, -inf  ;;  %v1962_v36 = vmul.f32 0.2, %v1954_v20  ;;  %vm1958_vm11 = vcmp.ge.f32.partialorder %v1954_v20, 0.0  ;;  %v1818_v8 = vsel %vm525_vm5, %v8209_v45, -inf }
 0x6e4   :  { %v1943_v44 = vpop.permute.xlu1 %1942  ;;  %1828 = vmax.xlane.f32.xlu1 %v1827_v25  ;;  %v1503_v31 = vsel %vm1495_vm14, %v1491_v54, %v1499_v0  ;;  %v1973_v25 = vsel %vm525_vm5, %v8216_v57, -inf }
 0x6e5   :  { %v1955_v1 = vadd.f32 %v1952_v41, %v1943_v44  ;;  %v8197_v41 = vadd.f32 %v1653_v53, %v7781_v46  ;;  %v1966_v4 = vsel %vm1958_vm11, %v1954_v20, %v1962_v36  ;;  %v8221_v22 = vadd.f32 %v1503_v31, %v7828_v7 }
 0x6e6   :  { %v8204_v3 = vadd.f32 %v1966_v4, %v7828_v7 }
 0x6e7   :  { %v1963_v6 = vmul.f32 0.2, %v1955_v1  ;;  %vm1959_vm8 = vcmp.ge.f32.partialorder %v1955_v1, 0.0  ;;  %v1661_v47 = vsel %vm525_vm5, %v8197_v41, -inf  ;;  %v1513_v20 = vsel %vm525_vm5, %v8221_v22, -inf }
 0x6e8   :  { %1983 = vmax.xlane.f32.xlu1 %v1982_v33  ;;  %v1976_v11 = vsel %vm525_vm5, %v8204_v3, -inf }
 0x6e9   :  { %v1967_v38 = vsel %vm1959_vm8, %v1955_v1, %v1963_v6 }
 0x6ea   :  { %v8187_v19 = vadd.f32 %v1967_v38, %v7739_v59 }
 0x6ec   :  { %1665 = vmax.xlane.f32.xlu1 %v1664_v56  ;;  %v1979_v13 = vsel %vm525_vm5, %v8187_v19, -inf }
 0x6ed   :  { %1980 = vmax.xlane.f32.xlu0 %v1979_v13 }
 0x6f0   :  { %1822 = vmax.xlane.f32.xlu1 %v1821_v40 }
 0x6f1   :  { %1662 = vmax.xlane.f32.xlu0 %v1661_v47 }
 0x6f4   :  { %1977 = vmax.xlane.f32.xlu1 %v1976_v11 }
 0x6f5   :  { %1819 = vmax.xlane.f32.xlu0 %v1818_v8 }
 0x6f9   :  { %1974 = vmax.xlane.f32.xlu0 %v1973_v25 }
 0x6fd   :  { %1514 = vmax.xlane.f32.xlu0 %v1513_v20 }
 0x705   :  { %1717 = vrot.lane.b32.xlu1 %v8093_v34, %s7426_s0 }
 0x709   :  { %1874 = vrot.lane.b32.xlu1 %v8090_v24, %s7427_s5 }
 0x713   :  { %1719 = vrot.lane.b32.xlu0 %v8090_v24, %s7426_s0 }
 0x74a   :  { %v1518_v44 = vpop.xlane.xlu0 %1517 }
 0x74b   :  { %v1524_v28 = vsub.f32 %v8126_v2, %v1518_v44 }
 0x74d   :  { %v1530_v48 = vmul.f32 1.442695, %v1524_v28 }
 0x74f   :  { %7135 = vpow2.f32 %v1530_v48  ;;  %v1669_v62 = vpop.xlane.xlu0 %1668 }
 0x750   :  { %v1675_v1 = vsub.f32 %v8138_v63, %v1669_v62 }
 0x752   :  { %v1681_v6 = vmul.f32 1.442695, %v1675_v1  ;;  %v7326_v1 = vld [vmem:[%s7450_s9 + $0x18] sm:$0xff] }
 0x754   :  { %7137 = vpow2.f32 %v1681_v6  ;;  %v1826_v33 = vpop.xlane.xlu0 %1825 }
 0x755   :  { %v1832_v50 = vsub.f32 %v8144_v10, %v1826_v33 }
 0x757   :  { %v1838_v36 = vmul.f32 1.442695, %v1832_v50 }
 0x759   :  { %7139 = vpow2.f32 %v1838_v36  ;;  %v1512_v53 = vpop.xlane.xlu1 %1511 }
 0x75a   :  { %v1522_v25 = vsub.f32 %v8149_v12, %v1512_v53 }
 0x75c   :  { %v7136_v29 = vpop.eup %7135  ;;  %v1526_v48 = vmul.f32 1.442695, %v1522_v25 }
 0x75d   :  { %v8238_v38 = vmul.f32 %v8235_v14, %v7136_v29 }
 0x75f   :  { %v1544_v2 = vsel %vm525_vm5, %v8238_v38, 0.0 }
 0x760   :  { %1545 = vadd.xlane.f32.xlu0 %v1544_v2 }
 0x761   :  { %v7138_v56 = vpop.eup %7137 }
 0x762   :  { %v8243_v63 = vmul.f32 %v8235_v14, %v7138_v56 }
 0x763   :  { %v1521_v13 = vpop.xlane.xlu1 %1520 }
 0x764   :  { %v1525_v10 = vsub.f32 %v8158_v5, %v1521_v13  ;;  %v1695_v4 = vsel %vm525_vm5, %v8243_v63, 0.0 }
 0x765   :  { %1696 = vadd.xlane.f32.xlu0 %v1695_v4 }
 0x766   :  { %v7140_v54 = vpop.eup %7139  ;;  %v1532_v9 = vmul.f32 1.442695, %v1525_v10 }
 0x767   :  { %v8249_v52 = vmul.f32 %v8235_v14, %v7140_v54 }
 0x768   :  { %7141 = vpow2.f32 %v1532_v9  ;;  %v1672_v40 = vpop.xlane.xlu1 %1671 }
 0x769   :  { %v1676_v47 = vsub.f32 %v8165_v27, %v1672_v40  ;;  %v1852_v0 = vsel %vm525_vm5, %v8249_v52, 0.0 }
 0x76a   :  { %1853 = vadd.xlane.f32.xlu0 %v1852_v0 }
 0x76b   :  { %v1683_v35 = vmul.f32 1.442695, %v1676_v47 }
 0x76d   :  { %7143 = vpow2.f32 %v1683_v35  ;;  %v1829_v5 = vpop.xlane.xlu1 %1828 }
 0x76e   :  { %v1833_v11 = vsub.f32 %v8172_v30, %v1829_v5 }
 0x770   :  { %v1840_v8 = vmul.f32 1.442695, %v1833_v11 }
 0x771   :  { %v1984_v31 = vpop.xlane.xlu1 %1983 }
 0x772   :  { %7145 = vpow2.f32 %v1840_v8  ;;  %v1988_v20 = vsub.f32 %v8177_v23, %v1984_v31 }
 0x774   :  { %v1995_v44 = vmul.f32 1.442695, %v1988_v20 }
 0x775   :  { %v7142_v28 = vpop.eup %7141  ;;  %v1666_v27 = vpop.xlane.xlu1 %1665 }
 0x776   :  { %7147 = vpow2.f32 %v1995_v44  ;;  %v1981_v62 = vpop.xlane.xlu0 %1980  ;;  %v8258_v6 = vmul.f32 %v7326_v1, %v7142_v28  ;;  %v1674_v4 = vsub.f32 %v8183_v58, %v1666_v27  ;;  %v7327_v27 = vld [vmem:[%s7450_s9] sm:$0xff] }
 0x777   :  { %v1987_v33 = vsub.f32 %v8187_v19, %v1981_v62  ;;  %7149 = vpow2.f32 %v1526_v48 }
 0x778   :  { %v1547_v30 = vsel %vm525_vm5, %v8258_v6, 0.0  ;;  %v1679_v35 = vmul.f32 1.442695, %v1674_v4 }
 0x779   :  { %v1993_v50 = vmul.f32 1.442695, %v1987_v33  ;;  %1548 = vadd.xlane.f32.xlu1 %v1547_v30  ;;  %v1823_v12 = vpop.xlane.xlu1 %1822 }
 0x77a   :  { %v7144_v36 = vpop.eup %7143  ;;  %v8263_v23 = vpop.xlane.xlu0 %1662  ;;  %v1831_v31 = vsub.f32 %v8192_v21, %v1823_v12 }
 0x77b   :  { %7151 = vpow2.f32 %v1993_v50  ;;  %v8265_v29 = vmul.f32 %v7326_v1, %v7144_v36  ;;  %v7328_v50 = vld [vmem:[%s7450_s9 + $0x8] sm:$0xff] }
 0x77c   :  { %7153 = vpow2.f32 %v1679_v35  ;;  %v1836_v62 = vmul.f32 1.442695, %v1831_v31  ;;  %v1673_v35 = vsub.f32 %v8197_v41, %v8263_v23 }
 0x77d   :  { %v1978_v53 = vpop.xlane.xlu1 %1977  ;;  %v1698_v2 = vsel %vm525_vm5, %v8265_v29, 0.0 }
 0x77e   :  { %v1820_v56 = vpop.xlane.xlu0 %1819  ;;  %1699 = vadd.xlane.f32.xlu1 %v1698_v2 }
 0x77f   :  { %v7146_v19 = vpop.eup %7145 }
 0x780   :  { %v8269_v13 = vmul.f32 %v7326_v1, %v7146_v19 }
 0x781   :  { %v8271_v10 = vpop.permute.xlu1 %1717 }
 0x782   :  { %v1975_v54 = vpop.xlane.xlu0 %1974  ;;  %v1855_v9 = vsel %vm525_vm5, %v8269_v13, 0.0 }
 0x783   :  { %v7148_v40 = vpop.eup %7147  ;;  %1856 = vadd.xlane.f32.xlu1 %v1855_v9  ;;  %v1985_v31 = vsub.f32 %v8216_v57, %v1975_v54 }
 0x784   :  { %v8276_v47 = vmul.f32 %v7326_v1, %v7148_v40  ;;  %v7150_v8 = vpop.eup %7149  ;;  %v1986_v1 = vsub.f32 %v8204_v3, %v1978_v53 }
 0x785   :  { %v1875_v0 = vpop.permute.xlu1 %1874  ;;  %v8288_v48 = vmul.f32 %v7327_v27, %v7150_v8 }
 0x786   :  { %v1515_v5 = vpop.xlane.xlu0 %1514  ;;  %6498 = vmatprep.subr.bf16.mxu1 %v1875_v0  ;;  %v2010_v11 = vsel %vm525_vm5, %v8276_v47, 0.0 }
 0x787   :  { %v1523_v58 = vsub.f32 %v8221_v22, %v1515_v5  ;;  %2011 = vadd.xlane.f32.xlu1 %v2010_v11  ;;  %6499 = vmatpush3.bf16.msra.mxu1 %v1875_v0  ;;  %v1991_v22 = vmul.f32 1.442695, %v1986_v1  ;;  %v1677_v5 = vmul.f32 1.442695, %v1673_v35  ;;  %v1830_v11 = vsub.f32 %v8209_v45, %v1820_v56 }
 0x788   :  { %v7152_v25 = vpop.eup %7151 }
 0x789   :  { %v1528_v20 = vmul.f32 1.442695, %v1523_v58  ;;  %v8283_v44 = vmul.f32 %v8235_v14, %v7152_v25  ;;  %v1538_v14 = vsel %vm525_vm5, %v8288_v48, 0.0  ;;  %v7154_v33 = vpop.eup %7153  ;;  %v1834_v8 = vmul.f32 1.442695, %v1830_v11 }
 0x78a   :  { %v8285_v28 = vpop.permute.xlu0 %1719  ;;  %v8301_v36 = vmul.f32 %v7328_v50, %v7154_v33  ;;  %v1989_v58 = vmul.f32 1.442695, %v1985_v31 }
 0x78b   :  { %7155 = vpow2.f32 %v1528_v20  ;;  %6490 = vmatprep.subr.bf16.mxu0 %v8285_v28  ;;  %v2007_v21 = vsel %vm525_vm5, %v8283_v44, 0.0 }
 0x78c   :  { %2008 = vadd.xlane.f32.xlu0 %v2007_v21  ;;  %7157 = vpow2.f32 %v1836_v62  ;;  %v1692_v2 = vsel %vm525_vm5, %v8301_v36, 0.0 }
 0x78d   :  { %7159 = vpow2.f32 %v1991_v22 }
 0x78e   :  { %7161 = vpow2.f32 %v1677_v5 }
 0x78f   :  { %7163 = vpow2.f32 %v1834_v8 }
 0x790   :  { %1539 = vadd.xlane.f32.xlu0 %v1538_v14  ;;  %7165 = vpow2.f32 %v1989_v58 }
 0x798   :  { %v7156_v30 = vpop.eup %7155 }
 0x799   :  { %v8297_v12 = vmul.f32 %v7328_v50, %v7156_v30  ;;  %v7158_v53 = vpop.eup %7157 }
 0x79a   :  { %v8305_v19 = vmul.f32 %v7328_v50, %v7158_v53  ;;  %v7160_v4 = vpop.eup %7159 }
 0x79b   :  { %v1541_v3 = vsel %vm525_vm5, %v8297_v12, 0.0  ;;  %v8309_v40 = vmul.f32 %v7328_v50, %v7160_v4 }
 0x79c   :  { %1542 = vadd.xlane.f32.xlu1 %v1541_v3  ;;  %v1849_v9 = vsel %vm525_vm5, %v8305_v19, 0.0 }
 0x79d   :  { %v2004_v0 = vsel %vm525_vm5, %v8309_v40, 0.0 }
 0x7a0   :  { %1693 = vadd.xlane.f32.xlu1 %v1692_v2 }
 0x7a4   :  { %1850 = vadd.xlane.f32.xlu1 %v1849_v9 }
 0x7a6   :  { %2029 = vrot.lane.b32.xlu0 %v8090_v24, %s7428_s21  ;;  %v7162_v24 = vpop.eup %7161 }
 0x7a7   :  { %v8321_v25 = vmul.f32 %v7327_v27, %v7162_v24  ;;  %v7164_v20 = vpop.eup %7163 }
 0x7a8   :  { %2005 = vadd.xlane.f32.xlu1 %v2004_v0  ;;  %v8325_v23 = vmul.f32 %v7327_v27, %v7164_v20  ;;  %v7166_v45 = vpop.eup %7165 }
 0x7a9   :  { %v1689_v41 = vsel %vm525_vm5, %v8321_v25, 0.0  ;;  %v8329_v56 = vmul.f32 %v7327_v27, %v7166_v45 }
 0x7aa   :  { %v1846_v57 = vsel %vm525_vm5, %v8325_v23, 0.0 }
 0x7ab   :  { %v2001_v54 = vsel %vm525_vm5, %v8329_v56, 0.0 }
 0x7b9   :  { %1872 = vrot.lane.b32.xlu1 %v8093_v34, %s7427_s5 }
 0x7c5   :  { %1690 = vadd.xlane.f32.xlu0 %v1689_v41 }
 0x7c9   :  { %1847 = vadd.xlane.f32.xlu0 %v1846_v57 }
 0x7cd   :  { %2002 = vadd.xlane.f32.xlu0 %v2001_v54 }
 0x7e3   :  { %2027 = vrot.lane.b32.xlu0 %v8093_v34, %s7428_s21 }
 0x7e9   :  { %v1546_v62 = vpop.xlane.xlu0 %1545 }
 0x7ea   :  { %v1552_v2 = vmax.f32 %v1546_v62, 1e-20 }
 0x7ee   :  { %v1697_v1 = vpop.xlane.xlu0 %1696 }
 0x7f3   :  { %v1854_v22 = vpop.xlane.xlu0 %1853 }
 0x802   :  { %v1549_v21 = vpop.xlane.xlu1 %1548 }
 0x803   :  { %v1553_v3 = vmax.f32 %v1549_v21, 1e-20 }
 0x805   :  { %7167 = vrcp.f32 %v1553_v3 }
 0x807   :  { %v1700_v14 = vpop.xlane.xlu1 %1699 }
 0x80c   :  { %v1857_v30 = vpop.xlane.xlu1 %1856 }
 0x80d   :  { %v1861_v21 = vmax.f32 %v1857_v30, 1e-20 }
 0x810   :  { %v2012_v53 = vpop.xlane.xlu1 %2011 }
 0x812   :  { %v7168_v5 = vpop.eup %7167 }
 0x813   :  { %v1561_v24 = vmul.f32 %v7168_v5, %v8258_v6  ;;  %v1704_v6 = vmax.f32 %v1700_v14, 1e-20 }
 0x815   :  { %v2009_v33 = vpop.xlane.xlu0 %2008 }
 0x819   :  { %v1540_v50 = vpop.xlane.xlu0 %1539 }
 0x81a   :  { %v1550_v27 = vmax.f32 %v1540_v50, 1e-20 }
 0x81c   :  { %7169 = vrcp.f32 %v1550_v27  ;;  %v1860_v27 = vmax.f32 %v1854_v22, 1e-20 }
 0x81d   :  { %7171 = vrcp.f32 %v1552_v2  ;;  %v2030_v62 = vpop.permute.xlu0 %2029 }
 0x825   :  { %v1543_v4 = vpop.xlane.xlu1 %1542 }
 0x826   :  { %v1551_v9 = vmax.f32 %v1543_v4, 1e-20 }
 0x828   :  { %7173 = vrcp.f32 %v1551_v9 }
 0x829   :  { %v1694_v0 = vpop.xlane.xlu1 %1693  ;;  %v7170_v11 = vpop.eup %7169  ;;  %7175 = vrcp.f32 %v1704_v6 }
 0x82a   :  { %v7172_v8 = vpop.eup %7171  ;;  %v1558_v20 = vmul.f32 %v7170_v11, %v8288_v48  ;;  %v1702_v48 = vmax.f32 %v1694_v0, 1e-20 }
 0x82b   :  { %v1560_v45 = vmul.f32 %v7172_v8, %v8238_v38 }
 0x82c   :  { %7177 = vrcp.f32 %v1702_v48 }
 0x82d   :  { %v1851_v34 = vpop.xlane.xlu1 %1850  ;;  %v1565_v54 = vpack.c.bf16 %v1561_v24, %v1560_v45 }
 0x82e   :  { %v1859_v50 = vmax.f32 %v1851_v34, 1e-20 }
 0x831   :  { %v2006_v35 = vpop.xlane.xlu1 %2005 }
 0x832   :  { %v2014_v4 = vmax.f32 %v2006_v35, 1e-20 }
 0x835   :  { %v7174_v31 = vpop.eup %7173  ;;  %v1873_v58 = vpop.permute.xlu1 %1872 }
 0x836   :  { %6500 = vmatprep.subr.bf16.mxu1 %v1873_v58  ;;  %v1559_v41 = vmul.f32 %v7174_v31, %v8297_v12  ;;  %v1703_v12 = vmax.f32 %v1697_v1, 1e-20  ;;  %v7176_v30 = vpop.eup %7175 }
 0x837   :  { %6501 = vmatpush3.bf16.msra.mxu1 %v1873_v58  ;;  %v1712_v5 = vmul.f32 %v7176_v30, %v8265_v29 }
 0x838   :  { %v1564_v57 = vpack.c.bf16 %v1559_v41, %v1558_v20  ;;  %7179 = vrcp.f32 %v1703_v12 }
 0x839   :  { %v7178_v0 = vpop.eup %7177 }
 0x83a   :  { %6486 = vmatprep.mubr.msk.bf16.mxu0 %vm525_vm5, %v1564_v57  ;;  %v1710_v35 = vmul.f32 %v7178_v0, %v8301_v36  ;;  %v7027_v0 = vld [vmem:[%s9652_s8 + $0x18] sm:$0xff]  }
 0x83b   :  { %6487 = vmatmul.mubr.msk.bf16.vlgmr.msra.gmra.mxu0 %vm525_vm5, %v1565_v54  ;;  %6514 = vmatprep.subr.bf16.mxu1 %v7027_v0 }
 0x83c   :  { %6491 = vmatpush3.bf16.msra.mxu0 %v8285_v28  ;;  %v2015_v28 = vmax.f32 %v2009_v33, 1e-20 }
 0x83d   :  { %6492 = vmatprep.subr.bf16.mxu0 %v8271_v10 }
 0x840   :  { %6493 = vmatpush3.bf16.msra.mxu0 %v8271_v10  ;;  %v2016_v10 = vmax.f32 %v2012_v53, 1e-20 }
 0x841   :  { %6506 = vmatprep.subr.bf16.mxu0 %v2030_v62 }
 0x845   :  { %v7180_v34 = vpop.eup %7179 }
 0x846   :  { %v1711_v53 = vmul.f32 %v7180_v34, %v8243_v63  ;;  %v7028_v34 = vld [vmem:[%s9653_s14 + $0x18] sm:$0xff]  }
 0x848   :  { %v1714_v20 = vpack.c.bf16 %v1712_v5, %v1711_v53  ;;  %v7030_v5 = vld [vmem:[%s9653_s14 + $0x10] sm:$0xff]   ;;  %v8391_v53 = vld [vmem:[%s9654_s19 + $0x18] sm:$0xff]  }
 0x84e   :  { %v1691_v38 = vpop.xlane.xlu0 %1690 }
 0x84f   :  { %v1701_v3 = vmax.f32 %v1691_v38, 1e-20 }
 0x851   :  { %7181 = vrcp.f32 %v1701_v3 }
 0x852   :  { %7183 = vrcp.f32 %v1861_v21  ;;  %v1848_v2 = vpop.xlane.xlu0 %1847 }
 0x853   :  { %7185 = vrcp.f32 %v1859_v50  ;;  %v1858_v9 = vmax.f32 %v1848_v2, 1e-20 }
 0x854   :  { %7187 = vrcp.f32 %v1860_v27 }
 0x855   :  { %7189 = vrcp.f32 %v1858_v9 }
 0x856   :  { %7191 = vrcp.f32 %v2015_v28  ;;  %v2003_v1 = vpop.xlane.xlu0 %2002 }
 0x857   :  { %7193 = vrcp.f32 %v2014_v4  ;;  %v2013_v14 = vmax.f32 %v2003_v1, 1e-20 }
 0x858   :  { %7195 = vrcp.f32 %v2016_v10 }
 0x859   :  { %7197 = vrcp.f32 %v2013_v14 }
 0x85a   :  { %v2028_v63 = vpop.permute.xlu0 %2027 }
 0x85e   :  { %v7182_v22 = vpop.eup %7181 }
 0x85f   :  { %v7184_v33 = vpop.eup %7183  ;;  %v1709_v11 = vmul.f32 %v7182_v22, %v8321_v25  ;;  %v7029_v22 = vld [vmem:[%s9652_s8 + $0x10] sm:$0xff]  }
 0x860   :  { %v7186_v8 = vpop.eup %7185  ;;  %v1869_v41 = vmul.f32 %v7184_v33, %v8269_v13  ;;  %v7031_v33 = vld [vmem:[%s9652_s8 + $0x8] sm:$0xff]  }
 0x861   :  { %v7188_v31 = vpop.eup %7187  ;;  %v1713_v58 = vpack.c.bf16 %v1710_v35, %v1709_v11  ;;  %v1867_v29 = vmul.f32 %v7186_v8, %v8305_v19  ;;  %v7032_v11 = vld [vmem:[%s9653_s14 + $0x8] sm:$0xff]   ;;  %v7033_v35 = vld [vmem:[%s9652_s8] sm:$0xff]  }
 0x862   :  { %v7190_v24 = vpop.eup %7189  ;;  %v1868_v36 = vmul.f32 %v7188_v31, %v8249_v52  ;;  %v7034_v8 = vld [vmem:[%s9653_s14] sm:$0xff]  }
 0x863   :  { %v7192_v45 = vpop.eup %7191  ;;  %6494 = vmatprep.mubr.msk.bf16.mxu0 %vm525_vm5, %v1713_v58  ;;  %v1866_v57 = vmul.f32 %v7190_v24, %v8325_v23  ;;  %v2159_v31 = vld [vmem:[%s9655_s24] sm:$0x1] }
 0x864   :  { %v7194_v54 = vpop.eup %7193  ;;  %6495 = vmatmul.mubr.msk.bf16.vlgmr.msra.gmra.mxu0 %vm525_vm5, %v1714_v20  ;;  %v1871_v12 = vpack.c.bf16 %v1869_v41, %v1868_v36  ;;  %v2023_v13 = vmul.f32 %v7192_v45, %v8283_v44  ;;  %v2160_v58 = vadd.f32 1e-05, %v2159_v31 }
 0x865   :  { %v7196_v25 = vpop.eup %7195  ;;  %6507 = vmatpush3.bf16.msra.mxu0 %v2030_v62  ;;  %v1870_v6 = vpack.c.bf16 %v1867_v29, %v1866_v57  ;;  %v2022_v19 = vmul.f32 %v7194_v54, %v8309_v40 }
 0x866   :  { %v7198_v48 = vpop.eup %7197  ;;  %6508 = vmatprep.subr.bf16.mxu0 %v2028_v63  ;;  %v2024_v21 = vmul.f32 %v7196_v25, %v8276_v47  ;;  %7199 = vrsqrt.f32 %v2160_v58 }
 0x867   :  { %6502 = vmatprep.mubr.msk.bf16.mxu1 %vm525_vm5, %v1870_v6  ;;  %v2021_v23 = vmul.f32 %v7198_v48, %v8329_v56 }
 0x868   :  { %6503 = vmatmul.mubr.msk.bf16.vlgmr.msra.gmra.mxu1 %vm525_vm5, %v1871_v12  ;;  %v2026_v38 = vpack.c.bf16 %v2024_v21, %v2023_v13 }
 0x869   :  { %6509 = vmatpush3.bf16.msra.mxu0 %v2028_v63  ;;  %v2025_v52 = vpack.c.bf16 %v2022_v19, %v2021_v23  ;;  %6515 = vmatpush3.bf16.msra.mxu1 %v7027_v0  ;;  %v5952_v63 = vld [vmem:[%s9656_s30] ss:$0 sm:$0xff] }
 0x86a   :  { %6526 = vmatprep.subr.bf16.mxu0 %v7028_v34  ;;  %6516 = vmatprep.subr.bf16.mxu1 %v7029_v22 }
 0x86b   :  { %6510 = vmatprep.mubr.msk.bf16.mxu0 %vm525_vm5, %v2025_v52 }
 0x86c   :  { %6511 = vmatmul.mubr.msk.bf16.vlgmr.msra.gmra.mxu0 %vm525_vm5, %v2026_v38  ;;  %v5953_v38 = vld [vmem:[%s9657_s6] ss:$0 sm:$0xff] }
 0x86d   :  { %6527 = vmatpush3.bf16.msra.mxu0 %v7028_v34  ;;  %6517 = vmatpush3.bf16.msra.mxu1 %v7029_v22 }
 0x86e   :  { %6528 = vmatprep.subr.bf16.mxu0 %v7030_v5  ;;  %6518 = vmatprep.subr.bf16.mxu1 %v7031_v33 }
 0x871   :  { %6529 = vmatpush3.bf16.msra.mxu0 %v7030_v5  ;;  %6519 = vmatpush3.bf16.msra.mxu1 %v7031_v33 }
 0x872   :  { %6530 = vmatprep.subr.bf16.mxu0 %v7032_v11  ;;  %6520 = vmatprep.subr.bf16.mxu1 %v7033_v35 }
 0x873   :  { %v7200_v36 = vpop.eup %7199 }
 0x874   :  { %v2166_v48 = vrot.slane %v7200_v36, %v7726_v51 }
 0x875   :  { %6531 = vmatpush3.bf16.msra.mxu0 %v7032_v11  ;;  %6521 = vmatpush3.bf16.msra.mxu1 %v7033_v35 }
 0x876   :  { %6532 = vmatprep.subr.bf16.mxu0 %v7034_v8  ;;  %6538 = vmatprep.subr.bf16.mxu1 %v8391_v53 }
 0x879   :  { %6533 = vmatpush3.bf16.msra.mxu0 %v7034_v8 }
 0x87a   :  { %6550 = vmatprep.subr.bf16.mxu0 %v9617_v16 }
 0x8fb   :  { %v8362_v62 = vpop.f32.mrf.mxu0 }
 0x8fd   :  { %v8364_v44 = vpop.f32.mrf.mxu0 }
 0x8ff   :  { %v8366_v50 = vpop.f32.mrf.mxu0 }
 0x901   :  { %v8368_v56 = vpop.f32.mrf.mxu0 }
 0x924   :  { %v6496_v40 = vpop.f32.mrf.mxu0 }
 0x926   :  { %v1763_v3 = vpop.f32.mrf.mxu0 }
 0x928   :  { %v6497_v27 = vpop.f32.mrf.mxu0  ;;  %v6504_v28 = vpop.f32.mrf.mxu1 }
 0x929   :  { %2112 = vrot.lane.b32.xlu1 %v6504_v28, %s7429_s25 }
 0x92a   :  { %v1918_v47 = vpop.f32.mrf.mxu1  ;;  %v1766_v2 = vpop.f32.mrf.mxu0 }
 0x92c   :  { %v6505_v4 = vpop.f32.mrf.mxu1  ;;  %v6512_v9 = vpop.f32.mrf.mxu0 }
 0x92d   :  { %2108 = vrot.lane.b32.xlu1 %v1918_v47, %s7429_s25  ;;  %2114 = vrot.lane.b32.xlu0 %v6505_v4, %s7429_s25 }
 0x92e   :  { %v1921_v10 = vpop.f32.mrf.mxu1  ;;  %v2073_v1 = vpop.f32.mrf.mxu0 }
 0x930   :  { %v6513_v14 = vpop.f32.mrf.mxu0 }
 0x931   :  { %2096 = vrot.lane.b32.xlu1 %v6496_v40, %s7430_s29  ;;  %2110 = vrot.lane.b32.xlu0 %v1921_v10, %s7429_s25 }
 0x932   :  { %v2076_v30 = vpop.f32.mrf.mxu0 }
 0x935   :  { %2092 = vrot.lane.b32.xlu1 %v1763_v3, %s7430_s29  ;;  %2098 = vrot.lane.b32.xlu0 %v6497_v27, %s7430_s29 }
 0x939   :  { %2124 = vrot.lane.b32.xlu1 %v2073_v1, %s7431_s3  ;;  %2094 = vrot.lane.b32.xlu0 %v1766_v2, %s7430_s29  ;;  %v5954_v2 = vld [vmem:[%s9658_s12] ss:$0 sm:$0xff] }
 0x93d   :  { %2128 = vrot.lane.b32.xlu1 %v6512_v9, %s7431_s3  ;;  %2126 = vrot.lane.b32.xlu0 %v2076_v30, %s7431_s3 }
 0x941   :  { %2130 = vrot.lane.b32.xlu0 %v6513_v14, %s7431_s3 }
 0x99b   :  { %v2113_v24 = vpop.permute.xlu1 %2112 }
 0x99f   :  { %v2109_v20 = vpop.permute.xlu1 %2108  ;;  %v2115_v41 = vpop.permute.xlu0 %2114 }
 0x9a3   :  { %v2097_v45 = vpop.permute.xlu1 %2096  ;;  %v2111_v57 = vpop.permute.xlu0 %2110 }
 0x9a4   :  { %v2138_v23 = vsel %vm1152_vm9, %v8362_v62, %v2097_v45 }
 0x9a7   :  { %v2093_v29 = vpop.permute.xlu1 %2092  ;;  %v2099_v54 = vpop.permute.xlu0 %2098 }
 0x9a8   :  { %v2136_v25 = vsel %vm1152_vm9, %v8364_v44, %v2093_v29  ;;  %v2142_v44 = vsel %vm525_vm5, %v2138_v23, %v2113_v24  ;;  %v2139_v47 = vsel %vm1152_vm9, %v8366_v50, %v2099_v54 }
 0x9a9   :  { %v2140_v6 = vsel %vm525_vm5, %v2136_v25, %v2109_v20  ;;  %v2143_v0 = vsel %vm525_vm5, %v2139_v47, %v2115_v41 }
 0x9ab   :  { %v2125_v12 = vpop.permute.xlu1 %2124  ;;  %v2095_v13 = vpop.permute.xlu0 %2094 }
 0x9ac   :  { %v2144_v19 = vsel %vm1161_vm10, %v2140_v6, %v2125_v12  ;;  %v2137_v21 = vsel %vm1152_vm9, %v8368_v56, %v2095_v13 }
 0x9ad   :  { %v2155_v52 = vsub.f32 %v2144_v19, %v5952_v63  ;;  %v2141_v27 = vsel %vm525_vm5, %v2137_v21, %v2111_v57 }
 0x9af   :  { %v2168_v40 = vmul.f32 %v2166_v48, %v2155_v52  ;;  %v2129_v3 = vpop.permute.xlu1 %2128  ;;  %v2127_v28 = vpop.permute.xlu0 %2126 }
 0x9b0   :  { %v2146_v62 = vsel %vm1161_vm10, %v2142_v44, %v2129_v3  ;;  %v2145_v4 = vsel %vm1161_vm10, %v2141_v27, %v2127_v28 }
 0x9b1   :  { %v2179_v9 = vmul.f32 %v5953_v38, %v2168_v40  ;;  %v2157_v10 = vsub.f32 %v2146_v62, %v5952_v63  ;;  %v2156_v56 = vsub.f32 %v2145_v4, %v5952_v63 }
 0x9b3   :  { %v2190_v1 = vadd.f32 %v5954_v2, %v2179_v9  ;;  %v2170_v14 = vmul.f32 %v2166_v48, %v2157_v10  ;;  %v2169_v30 = vmul.f32 %v2166_v48, %v2156_v56  ;;  %v2131_v34 = vpop.permute.xlu0 %2130  ;;  %v7036_v56 = vld [vmem:[%s9654_s19 + $0x10] sm:$0xff]  }
 0x9b4   :  { %v2147_v22 = vsel %vm1161_vm10, %v2143_v0, %v2131_v34 }
 0x9b5   :  { %v2198_v5 = vmin.f32 %v2190_v1, 0.0  ;;  %v2181_v33 = vmul.f32 %v5953_v38, %v2170_v14  ;;  %v2180_v11 = vmul.f32 %v5953_v38, %v2169_v30  ;;  %v2158_v50 = vsub.f32 %v2147_v22, %v5952_v63  ;;  %v7037_v14 = vld [vmem:[%s9654_s19 + $0x8] sm:$0xff]   ;;  %v7038_v30 = vld [vmem:[%s9654_s19] sm:$0xff]  }
 0x9b6   :  { %vm2194_vm15 = vcmp.gt.f32.partialorder %v2190_v1, 0.0 }
 0x9b7   :  { %v2202_v35 = vmul.f32 1.442695, %v2198_v5  ;;  %v2192_v8 = vadd.f32 %v5954_v2, %v2181_v33  ;;  %v2191_v31 = vadd.f32 %v5954_v2, %v2180_v11  ;;  %v2171_v58 = vmul.f32 %v2166_v48, %v2158_v50 }
 0x9b9   :  { %7201 = vpow2.f32 %v2202_v35  ;;  %v2200_v24 = vmin.f32 %v2192_v8, 0.0  ;;  %v2199_v20 = vmin.f32 %v2191_v31, 0.0  ;;  %v2182_v45 = vmul.f32 %v5953_v38, %v2171_v58 }
 0x9ba   :  { %vm2196_vm0 = vcmp.gt.f32.partialorder %v2192_v8, 0.0  ;;  %vm2195_vm4 = vcmp.gt.f32.partialorder %v2191_v31, 0.0 }
 0x9bb   :  { %v2206_v57 = vmul.f32 1.442695, %v2200_v24  ;;  %v2204_v29 = vmul.f32 1.442695, %v2199_v20  ;;  %v2193_v54 = vadd.f32 %v5954_v2, %v2182_v45 }
 0x9bd   :  { %7203 = vpow2.f32 %v2206_v57  ;;  %v2201_v41 = vmin.f32 %v2193_v54, 0.0  ;;  %vm2197_vm6 = vcmp.gt.f32.partialorder %v2193_v54, 0.0 }
 0x9be   :  { %7205 = vpow2.f32 %v2204_v29 }
 0x9bf   :  { %v2208_v36 = vmul.f32 1.442695, %v2201_v41 }
 0x9c1   :  { %7207 = vpow2.f32 %v2208_v36 }
 0x9c6   :  { %v7202_v25 = vpop.eup %7201 }
 0x9c7   :  { %v5955_v6 = vadd.f32 -1.0, %v7202_v25 }
 0x9c9   :  { %v2214_v63 = vsel %vm2194_vm15, %v2190_v1, %v5955_v6 }
 0x9ca   :  { %v7204_v12 = vpop.eup %7203  ;;  %v2218_v13 = vadd.f32 %v2214_v63, %v8067_v37 }
 0x9cb   :  { %v7206_v48 = vpop.eup %7205  ;;  %v5957_v23 = vadd.f32 -1.0, %v7204_v12 }
 0x9cc   :  { %v5956_v19 = vadd.f32 -1.0, %v7206_v48  ;;  %v2222_v52 = vand.u32 2147483647, %v2218_v13 }
 0x9cd   :  { %v2216_v21 = vsel %vm2196_vm0, %v2192_v8, %v5957_v23 }
 0x9ce   :  { %v2220_v38 = vadd.f32 %v2216_v21, %v8075_v26  ;;  %v2215_v40 = vsel %vm2195_vm4, %v2191_v31, %v5956_v19  ;;  %v7208_v44 = vpop.eup %7207  ;;  %vm2226_vm7 = vcmp.eq.f32.partialorder %v2222_v52, inf }
 0x9cf   :  { %v2219_v3 = vadd.f32 %v2215_v40, %v8069_v18  ;;  %v5958_v27 = vadd.f32 -1.0, %v7208_v44  ;;  %v8420_v62 = vsel %vm2226_vm7, 1e+09, %v2218_v13 }
 0x9d0   :  { %v2224_v47 = vand.u32 2147483647, %v2220_v38 }
 0x9d1   :  { %v2223_v28 = vand.u32 2147483647, %v2219_v3  ;;  %v2217_v37 = vsel %vm2197_vm6, %v2193_v54, %v5958_v27 }
 0x9d2   :  { %v2221_v2 = vadd.f32 %v2217_v37, %v8077_v15  ;;  %vm2228_vm11 = vcmp.eq.f32.partialorder %v2224_v47, inf }
 0x9d3   :  { %vm2227_vm8 = vcmp.eq.f32.partialorder %v2223_v28, inf  ;;  %v8428_v18 = vsel %vm2228_vm11, 1e+09, %v2220_v38 }
 0x9d4   :  { %v8422_v4 = vsel %vm2227_vm8, 1e+09, %v2219_v3  ;;  %v2225_v9 = vand.u32 2147483647, %v2221_v2 }
 0x9d5   :  { %v2234_v26 = vpack.c.bf16 %v8422_v4, %v8420_v62 }
 0x9d6   :  { %vm2229_vm12 = vcmp.eq.f32.partialorder %v2225_v9, inf }
 0x9d7   :  { %6522 = vmatprep.mubr.msk.bf16.mxu1 %vm300_vm2, %v2234_v26  ;;  %6534 = vmatprep.mubr.msk.bf16.mxu0 %vm300_vm2, %v2234_v26  ;;  %v8430_v15 = vsel %vm2229_vm12, 1e+09, %v2221_v2  ;;  %v2276_v0 = vsel %vm300_vm2, %v2234_v26, 0 }
 0x9d8   :  { %v2235_v10 = vpack.c.bf16 %v8430_v15, %v8428_v18 }
 0x9da   :  { %6523 = vmatmul.mubr.msk.bf16.vlgmr.msra.gmra.mxu1 %vm300_vm2, %v2235_v10  ;;  %6535 = vmatmul.mubr.msk.bf16.vlgmr.msra.gmra.mxu0 %vm300_vm2, %v2235_v10  ;;  %v2279_v1 = vsel %vm300_vm2, %v2235_v10, 0 }
 0x9db   :  { %6539 = vmatpush3.bf16.msra.mxu1 %v8391_v53  ;;  %6546 = vmatprep.mubr.msk.bf16.mxu1 %vm300_vm2, %v2234_v26  ;;  %v2544_v53 = vld [vmem:[%s9659_s20] sm:$0x3] }
 0x9dc   :  { %6551 = vmatpush3.bf16.xpose.msra.mxu0 %v2279_v1  ;;  %6540 = vmatprep.subr.bf16.mxu1 %v7036_v56 }
 0x9dd   :  { %6552 = vmatprep.subr.bf16.mxu0 %v9617_v16  ;;  %6554 = vmatprep.mubr.msk.bf16.mxu0 %vm7422_vm3, %v9617_v16 }
 0x9df   :  { %6541 = vmatpush3.bf16.msra.mxu1 %v7036_v56 }
 0x9e0   :  { %6542 = vmatprep.subr.bf16.mxu1 %v7037_v14 }
 0x9e3   :  { %6543 = vmatpush3.bf16.msra.mxu1 %v7037_v14 }
 0x9e4   :  { %6553 = vmatpush3.bf16.xpose.msra.mxu0 %v2276_v0  ;;  %6544 = vmatprep.subr.bf16.mxu1 %v7038_v30 }
 0x9e7   :  { %6545 = vmatpush3.bf16.msra.mxu1 %v7038_v30 }
 0x9ea   :  { %6547 = vmatmul.mubr.msk.bf16.vlgmr.msra.gmra.mxu1 %vm300_vm2, %v2235_v10 }
 0x9eb   :  { %6555 = vmatmul.mubr.msk.bf16.vlgmr.msra.gmra.mxu0 %vm300_vm2, %v2544_v53 }
 0xa9a   :  { %v6536_v34 = vpop.f32.mrf.mxu0  ;;  %v8449_v22 = vpop.f32.mrf.mxu1 }
 0xa9b   :  { %9660 = vst [vmem:[#allocation34_spill] sm:$0xff] %v8449_v22 }
 0xa9c   :  { %v2448_v5 = vpop.f32.mrf.mxu0  ;;  %v8453_v50 = vpop.f32.mrf.mxu1 }
 0xa9d   :  { %9661 = vst [vmem:[#allocation35_spill] sm:$0xff] %v8453_v50 }
 0xa9e   :  { %v6537_v33 = vpop.f32.mrf.mxu0  ;;  %v8460_v31 = vpop.f32.mrf.mxu1 }
 0xa9f   :  { %v8451_v11 = vpack.c.bf16 %v6537_v33, %v6536_v34  ;;  %9662 = vst [vmem:[#allocation36_spill] sm:$0xff] %v8460_v31 }
 0xaa0   :  { %v2451_v35 = vpop.f32.mrf.mxu0  ;;  %v8463_v58 = vpop.f32.mrf.mxu1 }
 0xaa1   :  { %v8455_v8 = vpack.c.bf16 %v2451_v35, %v2448_v5  ;;  %6558 = vmatprep.subr.bf16.mxu1 %v8451_v11  ;;  %9663 = vst [vmem:[#allocation37_spill] sm:$0xff] %v8463_v58 }
 0xaa2   :  { %6559 = vmatpush3.bf16.msra.mxu1 %v8451_v11 }
 0xaa3   :  { %6560 = vmatprep.subr.bf16.mxu1 %v8455_v8 }
 0xaa6   :  { %6561 = vmatpush3.bf16.msra.mxu1 %v8455_v8 }
 0xaaa   :  { %v6548_v24 = vpop.f32.mrf.mxu1 }
 0xaab   :  { %2600 = vperm.xlu1 %6916, %v6548_v24   ;;  %v8465_v20 = vpop.f32.mrf.mxu0 }
 0xaac   :  { %v2529_v45 = vpop.f32.mrf.mxu1  ;;  %v2611_v25 = vrot.slane %v8465_v20, %v7726_v51  ;;  %v8485_v6 = vrot.slane %v8465_v20, %v7736_v55  ;;  %v8504_v37 = vrot.slane %v8465_v20, %v7741_v60  ;;  %v8511_v53 = vrot.slane %v8465_v20, %v7779_v39 }
 0xaad   :  { %2744 = vperm.xlu0 %6915, %v2529_v45   ;;  %v6556_v57 = vpop.f32.mrf.mxu0 }
 0xaae   :  { %v6549_v54 = vpop.f32.mrf.mxu1 }
 0xaaf   :  { %6917 = vset.pattern.permute.xlu1 %v7423_v32  ;;  %v2585_v29 = vpop.f32.mrf.mxu0 }
 0xab0   :  { %2752 = vperm.xlu1 %6917, %v6548_v24   ;;  %v2532_v36 = vpop.f32.mrf.mxu1 }
 0xab1   :  { %2756 = vperm.xlu0 %6915, %v6549_v54   ;;  %v6557_v41 = vpop.f32.mrf.mxu0 }
 0xab4   :  { %6918 = vset.pattern.permute.xlu1 %v7424_v42 }
 0xab5   :  { %2909 = vperm.xlu1 %6918, %v6548_v24   ;;  %6922 = vset.pattern.permute.xlu0 %v7421_v17 }
 0xab6   :  { %2595 = vperm.xlu0 %6922, %v2532_v36  }
 0xab9   :  { %6919 = vset.pattern.permute.xlu1 %v7421_v17 }
 0xaba   :  { %2590 = vperm.xlu1 %6919, %v2529_v45   ;;  %6925 = vset.pattern.permute.xlu0 %v7425_v43 }
 0xabb   :  { %3056 = vperm.xlu0 %6925, %v2529_v45  }
 0xabe   :  { %6920 = vset.pattern.permute.xlu1 %v7424_v42 }
 0xabf   :  { %2901 = vperm.xlu1 %6920, %v2529_v45   ;;  %6926 = vset.pattern.permute.xlu0 %v7424_v42 }
 0xac0   :  { %2905 = vperm.xlu0 %6926, %v2532_v36  }
 0xac3   :  { %6921 = vset.pattern.permute.xlu1 %v7421_v17 }
 0xac4   :  { %2605 = vperm.xlu1 %6921, %v6549_v54   ;;  %6928 = vset.pattern.permute.xlu0 %v7425_v43 }
 0xac5   :  { %3068 = vperm.xlu0 %6928, %v6549_v54  }
 0xac8   :  { %6923 = vset.pattern.permute.xlu1 %v7423_v32 }
 0xac9   :  { %2748 = vperm.xlu1 %6923, %v2532_v36   ;;  %6930 = vset.pattern.permute.xlu0 %v7421_v17 }
 0xacd   :  { %6924 = vset.pattern.permute.xlu1 %v7424_v42 }
 0xace   :  { %2913 = vperm.xlu1 %6924, %v6549_v54  }
 0xad2   :  { %6927 = vset.pattern.permute.xlu1 %v7425_v43 }
 0xad3   :  { %3060 = vperm.xlu1 %6927, %v2532_v36  }
 0xad7   :  { %3064 = vperm.xlu1 %6927, %v6548_v24  }
 0xadb   :  { %6929 = vset.pattern.permute.xlu1 %v7421_v17 }
 0xb26   :  { %v2601_v32 = vpop.permute.xlu1 %2600 }
 0xb27   :  { %v2614_v63 = vadd.f32 %v2611_v25, %v2601_v32 }
 0xb28   :  { %v2745_v12 = vpop.permute.xlu0 %2744 }
 0xb29   :  { %vm2618_vm13 = vcmp.ge.f32.partialorder %v2614_v63, 0.0  ;;  %v2622_v13 = vmul.f32 0.2, %v2614_v63  ;;  %v2763_v42 = vadd.f32 %v8485_v6, %v2745_v12 }
 0xb2b   :  { %v2753_v48 = vpop.permute.xlu1 %2752  ;;  %v2626_v43 = vsel %vm2618_vm13, %v2614_v63, %v2622_v13  ;;  %v2771_v23 = vmul.f32 0.2, %v2763_v42  ;;  %vm2767_vm14 = vcmp.ge.f32.partialorder %v2763_v42, 0.0 }
 0xb2c   :  { %v2765_v19 = vadd.f32 %v8485_v6, %v2753_v48  ;;  %v2757_v17 = vpop.permute.xlu0 %2756  ;;  %v8490_v21 = vadd.f32 %v2626_v43, %v7739_v59 }
 0xb2d   :  { %v2775_v44 = vsel %vm2767_vm14, %v2763_v42, %v2771_v23  ;;  %v2766_v33 = vadd.f32 %v8485_v6, %v2757_v17 }
 0xb2e   :  { %vm2769_vm15 = vcmp.ge.f32.partialorder %v2765_v19, 0.0  ;;  %v2773_v55 = vmul.f32 0.2, %v2765_v19  ;;  %v2638_v52 = vsel %vm525_vm5, %v8490_v21, -inf  ;;  %v8500_v47 = vadd.f32 %v2775_v44, %v7781_v46 }
 0xb2f   :  { %2639 = vmax.xlane.f32.xlu0 %v2638_v52  ;;  %v2774_v41 = vmul.f32 0.2, %v2766_v33  ;;  %vm2770_vm8 = vcmp.ge.f32.partialorder %v2766_v33, 0.0 }
 0xb30   :  { %v2910_v38 = vpop.permute.xlu1 %2909  ;;  %v2777_v40 = vsel %vm2769_vm15, %v2765_v19, %v2773_v55  ;;  %v2783_v56 = vsel %vm525_vm5, %v8500_v47, -inf }
 0xb31   :  { %v2596_v3 = vpop.permute.xlu0 %2595  ;;  %v8495_v27 = vadd.f32 %v2777_v40, %v7739_v59  ;;  %v2922_v14 = vadd.f32 %v8504_v37, %v2910_v38 }
 0xb32   :  { %v2613_v9 = vadd.f32 %v2611_v25, %v2596_v3 }
 0xb33   :  { %v2789_v28 = vsel %vm525_vm5, %v8495_v27, -inf  ;;  %v2930_v35 = vmul.f32 0.2, %v2922_v14  ;;  %vm2926_vm7 = vcmp.ge.f32.partialorder %v2922_v14, 0.0 }
 0xb34   :  { %2790 = vmax.xlane.f32.xlu0 %v2789_v28  ;;  %v2621_v60 = vmul.f32 0.2, %v2613_v9  ;;  %vm2617_vm4 = vcmp.ge.f32.partialorder %v2613_v9, 0.0 }
 0xb35   :  { %v2591_v2 = vpop.permute.xlu1 %2590  ;;  %v2934_v63 = vsel %vm2926_vm7, %v2922_v14, %v2930_v35 }
 0xb36   :  { %v2612_v26 = vadd.f32 %v2611_v25, %v2591_v2  ;;  %v3057_v10 = vpop.permute.xlu0 %3056  ;;  %v2625_v54 = vsel %vm2617_vm4, %v2613_v9, %v2621_v60  ;;  %v8533_v55 = vadd.f32 %v2934_v63, %v7739_v59 }
 0xb37   :  { %v3075_v39 = vadd.f32 %v8511_v53, %v3057_v10  ;;  %v8527_v42 = vadd.f32 %v2625_v54, %v7828_v7 }
 0xb38   :  { %vm2616_vm0 = vcmp.ge.f32.partialorder %v2612_v26, 0.0  ;;  %v2620_v1 = vmul.f32 0.2, %v2612_v26  ;;  %2784 = vmax.xlane.f32.xlu0 %v2783_v56  ;;  %v2946_v2 = vsel %vm525_vm5, %v8533_v55, -inf }
 0xb39   :  { %v3083_v48 = vmul.f32 0.2, %v3075_v39  ;;  %vm3079_vm12 = vcmp.ge.f32.partialorder %v3075_v39, 0.0  ;;  %v2635_v38 = vsel %vm525_vm5, %v8527_v42, -inf }
 0xb3a   :  { %v2902_v30 = vpop.permute.xlu1 %2901  ;;  %v2624_v0 = vsel %vm2616_vm0, %v2612_v26, %v2620_v1 }
 0xb3b   :  { %v2920_v34 = vadd.f32 %v8504_v37, %v2902_v30  ;;  %v8515_v5 = vadd.f32 %v2624_v0, %v7781_v46  ;;  %v2906_v45 = vpop.permute.xlu0 %2905  ;;  %v3087_v3 = vsel %vm3079_vm12, %v3075_v39, %v3083_v48 }
 0xb3c   :  { %v8548_v56 = vadd.f32 %v3087_v3, %v7781_v46  ;;  %v2921_v30 = vadd.f32 %v8504_v37, %v2906_v45 }
 0xb3d   :  { %vm2924_vm6 = vcmp.ge.f32.partialorder %v2920_v34, 0.0  ;;  %v2928_v24 = vmul.f32 0.2, %v2920_v34  ;;  %v2632_v57 = vsel %vm525_vm5, %v8515_v5, -inf }
 0xb3e   :  { %2633 = vmax.xlane.f32.xlu1 %v2632_v57  ;;  %v2929_v39 = vmul.f32 0.2, %v2921_v30  ;;  %vm2925_vm0 = vcmp.ge.f32.partialorder %v2921_v30, 0.0 }
 0xb3f   :  { %v2606_v20 = vpop.permute.xlu1 %2605  ;;  %v2932_v29 = vsel %vm2924_vm6, %v2920_v34, %v2928_v24 }
 0xb40   :  { %v2615_v36 = vadd.f32 %v2611_v25, %v2606_v20  ;;  %v8522_v32 = vadd.f32 %v2932_v29, %v7781_v46  ;;  %v3069_v43 = vpop.permute.xlu0 %3068  ;;  %v2778_v25 = vsel %vm2770_vm8, %v2766_v33, %v2774_v41 }
 0xb41   :  { %v3078_v52 = vadd.f32 %v8511_v53, %v3069_v43  ;;  %v8541_v44 = vadd.f32 %v2778_v25, %v7787_v61 }
 0xb42   :  { %vm2619_vm11 = vcmp.ge.f32.partialorder %v2615_v36, 0.0  ;;  %v2623_v12 = vmul.f32 0.2, %v2615_v36  ;;  %v2940_v13 = vsel %vm525_vm5, %v8522_v32, -inf }
 0xb43   :  { %2941 = vmax.xlane.f32.xlu0 %v2940_v13  ;;  %v3086_v26 = vmul.f32 0.2, %v3078_v52  ;;  %vm3082_vm13 = vcmp.ge.f32.partialorder %v3078_v52, 0.0  ;;  %v2792_v1 = vsel %vm525_vm5, %v8541_v44, -inf }
 0xb44   :  { %v2749_v23 = vpop.permute.xlu1 %2748  ;;  %v2627_v19 = vsel %vm2619_vm11, %v2615_v36, %v2623_v12  ;;  %v2933_v12 = vsel %vm2925_vm0, %v2921_v30, %v2929_v39 }
 0xb45   :  { %v8530_v17 = vadd.f32 %v2627_v19, %v7787_v61  ;;  %v2764_v9 = vadd.f32 %v8485_v6, %v2749_v23  ;;  %v3095_v6 = vsel %vm525_vm5, %v8548_v56, -inf  ;;  %v3090_v33 = vsel %vm3082_vm13, %v3078_v52, %v3086_v26 }
 0xb46   :  { %v8561_v57 = vadd.f32 %v3090_v33, %v7787_v61 }
 0xb47   :  { %2636 = vmax.xlane.f32.xlu0 %v2635_v38  ;;  %v2641_v40 = vsel %vm525_vm5, %v8530_v17, -inf  ;;  %v2772_v0 = vmul.f32 0.2, %v2764_v9  ;;  %vm2768_vm15 = vcmp.ge.f32.partialorder %v2764_v9, 0.0 }
 0xb48   :  { %2642 = vmax.xlane.f32.xlu1 %v2641_v40  ;;  %v3104_v41 = vsel %vm525_vm5, %v8561_v57, -inf }
 0xb49   :  { %v2914_v28 = vpop.permute.xlu1 %2913  ;;  %v2776_v20 = vsel %vm2768_vm15, %v2764_v9, %v2772_v0 }
 0xb4a   :  { %v2923_v10 = vadd.f32 %v8504_v37, %v2914_v28  ;;  %v8568_v36 = vadd.f32 %v2776_v20, %v7828_v7 }
 0xb4b   :  { %2947 = vmax.xlane.f32.xlu0 %v2946_v2 }
 0xb4c   :  { %vm2927_vm14 = vcmp.ge.f32.partialorder %v2923_v10, 0.0  ;;  %v2931_v14 = vmul.f32 0.2, %v2923_v10  ;;  %2793 = vmax.xlane.f32.xlu1 %v2792_v1  ;;  %v2786_v43 = vsel %vm525_vm5, %v8568_v36, -inf }
 0xb4e   :  { %v3061_v60 = vpop.permute.xlu1 %3060  ;;  %v2935_v34 = vsel %vm2927_vm14, %v2923_v10, %v2931_v14  ;;  %v8598_v14 = vld [vmem:[%s7450_s9 + $0x10] sm:$0xff] }
 0xb4f   :  { %3096 = vmax.xlane.f32.xlu0 %v3095_v6  ;;  %v8556_v35 = vadd.f32 %v2935_v34, %v7787_v61  ;;  %v3076_v37 = vadd.f32 %v8511_v53, %v3061_v60 }
 0xb51   :  { %v2949_v24 = vsel %vm525_vm5, %v8556_v35, -inf  ;;  %v3084_v63 = vmul.f32 0.2, %v3076_v37  ;;  %vm3080_vm6 = vcmp.ge.f32.partialorder %v3076_v37, 0.0 }
 0xb52   :  { %v3065_v45 = vpop.permute.xlu1 %3064  ;;  %2950 = vmax.xlane.f32.xlu1 %v2949_v24 }
 0xb53   :  { %v3077_v29 = vadd.f32 %v8511_v53, %v3065_v45  ;;  %v8576_v53 = vadd.f32 %v2933_v12, %v7828_v7  ;;  %v3088_v19 = vsel %vm3080_vm6, %v3076_v37, %v3084_v63 }
 0xb54   :  { %v8583_v52 = vadd.f32 %v3088_v19, %v7828_v7 }
 0xb55   :  { %vm3081_vm4 = vcmp.ge.f32.partialorder %v3077_v29, 0.0  ;;  %v3085_v54 = vmul.f32 0.2, %v3077_v29  ;;  %v2943_v25 = vsel %vm525_vm5, %v8576_v53, -inf }
 0xb56   :  { %3105 = vmax.xlane.f32.xlu1 %v3104_v41  ;;  %v3098_v38 = vsel %vm525_vm5, %v8583_v52, -inf }
 0xb57   :  { %v3089_v13 = vsel %vm3081_vm4, %v3077_v29, %v3085_v54 }
 0xb58   :  { %v8571_v48 = vadd.f32 %v3089_v13, %v7739_v59 }
 0xb5a   :  { %2787 = vmax.xlane.f32.xlu1 %v2786_v43  ;;  %v3101_v23 = vsel %vm525_vm5, %v8571_v48, -inf }
 0xb5b   :  { %3102 = vmax.xlane.f32.xlu0 %v3101_v23 }
 0xb5e   :  { %2944 = vmax.xlane.f32.xlu1 %v2943_v25 }
 0xb62   :  { %3099 = vmax.xlane.f32.xlu1 %v3098_v38 }
 0xb71   :  { %2841 = vrot.lane.b32.xlu0 %v8451_v11, %s7426_s0 }
 0xb73   :  { %2839 = vrot.lane.b32.xlu1 %v8455_v8, %s7426_s0  ;;  %s9701_s0 = sld [smem:[#allocation30_spill]] }
 0xb75   :  { %3151 = vrot.lane.b32.xlu0 %v8451_v11, %s7428_s21 }
 0xb77   :  { %2996 = vrot.lane.b32.xlu1 %v8451_v11, %s7427_s5 }
 0xbb8   :  { %v2640_v40 = vpop.xlane.xlu0 %2639 }
 0xbb9   :  { %v2646_v3 = vsub.f32 %v8490_v21, %v2640_v40 }
 0xbbb   :  { %v2652_v28 = vmul.f32 1.442695, %v2646_v3 }
 0xbbd   :  { %7209 = vpow2.f32 %v2652_v28  ;;  %v2791_v2 = vpop.xlane.xlu0 %2790 }
 0xbbe   :  { %v2797_v26 = vsub.f32 %v8495_v27, %v2791_v2 }
 0xbc0   :  { %v2803_v9 = vmul.f32 1.442695, %v2797_v26 }
 0xbc1   :  { %v2785_v10 = vpop.xlane.xlu0 %2784 }
 0xbc2   :  { %7211 = vpow2.f32 %v2803_v9 }
 0xbc7   :  { %v2634_v11 = vpop.xlane.xlu1 %2633 }
 0xbc8   :  { %v2644_v43 = vsub.f32 %v8515_v5, %v2634_v11  ;;  %v2795_v5 = vsub.f32 %v8500_v47, %v2785_v10 }
 0xbca   :  { %v7210_v1 = vpop.eup %7209  ;;  %v2648_v40 = vmul.f32 1.442695, %v2644_v43 }
 0xbcb   :  { %v8601_v30 = vmul.f32 %v8598_v14, %v7210_v1 }
 0xbcc   :  { %v8603_v0 = vpop.xlane.xlu0 %2941 }
 0xbcd   :  { %v2666_v21 = vsel %vm525_vm5, %v8601_v30, 0.0  ;;  %v2952_v10 = vsub.f32 %v8522_v32, %v8603_v0 }
 0xbce   :  { %2667 = vadd.xlane.f32.xlu0 %v2666_v21 }
 0xbcf   :  { %v7212_v60 = vpop.eup %7211 }
 0xbd0   :  { %v2637_v6 = vpop.xlane.xlu0 %2636  ;;  %v8608_v27 = vmul.f32 %v8598_v14, %v7212_v60 }
 0xbd1   :  { %v2643_v34 = vpop.xlane.xlu1 %2642  ;;  %v2645_v63 = vsub.f32 %v8527_v42, %v2637_v6 }
 0xbd2   :  { %v2647_v33 = vsub.f32 %v8530_v17, %v2643_v34  ;;  %v2817_v24 = vsel %vm525_vm5, %v8608_v27, 0.0 }
 0xbd3   :  { %2818 = vadd.xlane.f32.xlu0 %v2817_v24  ;;  %v2650_v23 = vmul.f32 1.442695, %v2645_v63 }
 0xbd4   :  { %v2654_v39 = vmul.f32 1.442695, %v2647_v33  ;;  %v2948_v37 = vpop.xlane.xlu0 %2947 }
 0xbd5   :  { %v2954_v45 = vsub.f32 %v8533_v55, %v2948_v37  ;;  %v2794_v20 = vpop.xlane.xlu1 %2793 }
 0xbd6   :  { %7213 = vpow2.f32 %v2654_v39  ;;  %v2798_v29 = vsub.f32 %v8541_v44, %v2794_v20  ;;  %v2956_v20 = vmul.f32 1.442695, %v2952_v10 }
 0xbd7   :  { %v2960_v54 = vmul.f32 1.442695, %v2954_v45 }
 0xbd8   :  { %v2805_v41 = vmul.f32 1.442695, %v2798_v29  ;;  %v3097_v55 = vpop.xlane.xlu0 %3096 }
 0xbd9   :  { %7215 = vpow2.f32 %v2960_v54  ;;  %v3107_v32 = vsub.f32 %v8548_v56, %v3097_v55 }
 0xbda   :  { %7217 = vpow2.f32 %v2805_v41 }
 0xbdb   :  { %v2951_v12 = vpop.xlane.xlu1 %2950 }
 0xbdc   :  { %v2955_v17 = vsub.f32 %v8556_v35, %v2951_v12  ;;  %v8621_v35 = vld [vmem:[%s7450_s9 + $0x18] sm:$0xff] }
 0xbde   :  { %v2962_v13 = vmul.f32 1.442695, %v2955_v17 }
 0xbdf   :  { %v3106_v19 = vpop.xlane.xlu1 %3105 }
 0xbe0   :  { %7219 = vpow2.f32 %v2962_v13  ;;  %v3110_v25 = vsub.f32 %v8561_v57, %v3106_v19  ;;  %v8662_v19 = vld [vmem:[%s7450_s9 + $0x8] sm:$0xff] }
 0xbe1   :  { %7221 = vpow2.f32 %v2650_v23 }
 0xbe2   :  { %v3117_v44 = vmul.f32 1.442695, %v3110_v25 }
 0xbe3   :  { %v7214_v38 = vpop.eup %7213  ;;  %v2788_v3 = vpop.xlane.xlu1 %2787 }
 0xbe4   :  { %7223 = vpow2.f32 %v3117_v44  ;;  %v2796_v42 = vsub.f32 %v8568_v36, %v2788_v3  ;;  %v3103_v28 = vpop.xlane.xlu0 %3102  ;;  %v8624_v2 = vmul.f32 %v8621_v35, %v7214_v38 }
 0xbe5   :  { %v3109_v26 = vsub.f32 %v8571_v48, %v3103_v28  ;;  %7225 = vpow2.f32 %v2648_v40  ;;  %v2799_v48 = vmul.f32 1.442695, %v2795_v5  ;;  %v8678_v5 = vld [vmem:[%s7450_s9] sm:$0xff]  ;;  %s9664_s9 = sld [smem:[#allocation23_spill]] }
 0xbe6   :  { %v7216_v9 = vpop.eup %7215  ;;  %v2801_v57 = vmul.f32 1.442695, %v2796_v42  ;;  %v2669_v1 = vsel %vm525_vm5, %v8624_v2, 0.0 }
 0xbe7   :  { %v7218_v11 = vpop.eup %7217  ;;  %v3115_v21 = vmul.f32 1.442695, %v3109_v26  ;;  %2670 = vadd.xlane.f32.xlu1 %v2669_v1  ;;  %v2945_v36 = vpop.xlane.xlu1 %2944  ;;  %v8631_v60 = vmul.f32 %v8598_v14, %v7216_v9 }
 0xbe8   :  { %7227 = vpow2.f32 %v2801_v57  ;;  %v2953_v6 = vsub.f32 %v8576_v53, %v2945_v36  ;;  %v2842_v34 = vpop.permute.xlu0 %2841  ;;  %v8635_v47 = vmul.f32 %v8621_v35, %v7218_v11 }
 0xbe9   :  { %7229 = vpow2.f32 %v3115_v21  ;;  %6566 = vmatprep.subr.bf16.mxu0 %v2842_v34  ;;  %v2974_v33 = vsel %vm525_vm5, %v8631_v60, 0.0 }
 0xbea   :  { %v2958_v24 = vmul.f32 1.442695, %v2953_v6  ;;  %2975 = vadd.xlane.f32.xlu0 %v2974_v33  ;;  %6567 = vmatpush3.bf16.msra.mxu0 %v2842_v34  ;;  %v2820_v39 = vsel %vm525_vm5, %v8635_v47, 0.0 }
 0xbeb   :  { %2821 = vadd.xlane.f32.xlu1 %v2820_v39  ;;  %v3100_v53 = vpop.xlane.xlu1 %3099 }
 0xbec   :  { %7231 = vpow2.f32 %v2958_v24  ;;  %v3108_v37 = vsub.f32 %v8583_v52, %v3100_v53  ;;  %v3111_v52 = vmul.f32 1.442695, %v3107_v32  ;;  %v8650_v17 = vpop.permute.xlu0 %3151 }
 0xbed   :  { %v7220_v45 = vpop.eup %7219  ;;  %7233 = vpow2.f32 %v2799_v48 }
 0xbee   :  { %v3113_v0 = vmul.f32 1.442695, %v3108_v37  ;;  %v8646_v29 = vmul.f32 %v8621_v35, %v7220_v45  ;;  %v7222_v41 = vpop.eup %7221 }
 0xbef   :  { %v2840_v54 = vpop.permute.xlu1 %2839  ;;  %v8665_v55 = vmul.f32 %v8662_v19, %v7222_v41 }
 0xbf0   :  { %7235 = vpow2.f32 %v3113_v0  ;;  %6568 = vmatprep.subr.bf16.mxu0 %v2840_v54  ;;  %v2977_v63 = vsel %vm525_vm5, %v8646_v29, 0.0 }
 0xbf1   :  { %v7224_v12 = vpop.eup %7223  ;;  %7237 = vpow2.f32 %v2956_v20  ;;  %2978 = vadd.xlane.f32.xlu1 %v2977_v63  ;;  %6569 = vmatpush3.bf16.msra.mxu0 %v2840_v54  ;;  %v2663_v40 = vsel %vm525_vm5, %v8665_v55, 0.0 }
 0xbf2   :  { %6582 = vmatprep.subr.bf16.mxu0 %v8650_v17  ;;  %v8654_v56 = vmul.f32 %v8621_v35, %v7224_v12  ;;  %v7226_v43 = vpop.eup %7225  ;;  %7239 = vpow2.f32 %v3111_v52 }
 0xbf3   :  { %v8656_v13 = vpop.permute.xlu1 %2996  ;;  %v8681_v26 = vmul.f32 %v8678_v5, %v7226_v43 }
 0xbf4   :  { %6574 = vmatprep.subr.bf16.mxu1 %v8656_v13  ;;  %v3132_v23 = vsel %vm525_vm5, %v8654_v56, 0.0 }
 0xbf5   :  { %v7228_v25 = vpop.eup %7227  ;;  %3133 = vadd.xlane.f32.xlu1 %v3132_v23  ;;  %v2660_v21 = vsel %vm525_vm5, %v8681_v26, 0.0 }
 0xbf6   :  { %v7230_v44 = vpop.eup %7229  ;;  %v8673_v3 = vmul.f32 %v8662_v19, %v7228_v25 }
 0xbf7   :  { %v8668_v38 = vmul.f32 %v8598_v14, %v7230_v44 }
 0xbf8   :  { %v2814_v57 = vsel %vm525_vm5, %v8673_v3, 0.0 }
 0xbf9   :  { %v7232_v42 = vpop.eup %7231  ;;  %2664 = vadd.xlane.f32.xlu1 %v2663_v40  ;;  %v3129_v28 = vsel %vm525_vm5, %v8668_v38, 0.0 }
 0xbfa   :  { %v7234_v9 = vpop.eup %7233  ;;  %3130 = vadd.xlane.f32.xlu0 %v3129_v28  ;;  %v8686_v1 = vmul.f32 %v8662_v19, %v7232_v42 }
 0xbfb   :  { %v8691_v36 = vmul.f32 %v8678_v5, %v7234_v9 }
 0xbfc   :  { %v2971_v34 = vsel %vm525_vm5, %v8686_v1, 0.0 }
 0xbfd   :  { %v7236_v11 = vpop.eup %7235  ;;  %2815 = vadd.xlane.f32.xlu1 %v2814_v57  ;;  %v2811_v10 = vsel %vm525_vm5, %v8691_v36, 0.0 }
 0xbfe   :  { %v7238_v6 = vpop.eup %7237  ;;  %2661 = vadd.xlane.f32.xlu0 %v2660_v21  ;;  %v8696_v48 = vmul.f32 %v8662_v19, %v7236_v11 }
 0xbff   :  { %v8701_v33 = vmul.f32 %v8678_v5, %v7238_v6  ;;  %v7240_v24 = vpop.eup %7239 }
 0xc00   :  { %v3126_v39 = vsel %vm525_vm5, %v8696_v48, 0.0  ;;  %v8708_v37 = vmul.f32 %v8678_v5, %v7240_v24 }
 0xc01   :  { %2972 = vadd.xlane.f32.xlu1 %v2971_v34  ;;  %v2968_v53 = vsel %vm525_vm5, %v8701_v33, 0.0 }
 0xc02   :  { %2812 = vadd.xlane.f32.xlu0 %v2811_v10  ;;  %v3123_v45 = vsel %vm525_vm5, %v8708_v37, 0.0 }
 0xc05   :  { %3127 = vadd.xlane.f32.xlu1 %v3126_v39 }
 0xc06   :  { %2969 = vadd.xlane.f32.xlu0 %v2968_v53 }
 0xc0a   :  { %3124 = vadd.xlane.f32.xlu0 %v3123_v45 }
 0xc16   :  { %2994 = vrot.lane.b32.xlu1 %v8455_v8, %s7427_s5  ;;  %s7432_s5 = smov 64  }
 0xc20   :  { %3149 = vrot.lane.b32.xlu0 %v8455_v8, %s7428_s21  ;;  %s9728_s21 = sld [smem:[#allocation15_spill]] }
 0xc57   :  { %v2668_v32 = vpop.xlane.xlu0 %2667 }
 0xc58   :  { %v2674_v44 = vmax.f32 %v2668_v32, 1e-20 }
 0xc5c   :  { %v2819_v41 = vpop.xlane.xlu0 %2818 }
 0xc5d   :  { %v2825_v8 = vmax.f32 %v2819_v41, 1e-20 }
 0xc70   :  { %v2671_v20 = vpop.xlane.xlu1 %2670 }
 0xc71   :  { %v2675_v43 = vmax.f32 %v2671_v20, 1e-20 }
 0xc73   :  { %v2976_v12 = vpop.xlane.xlu0 %2975  ;;  %7241 = vrcp.f32 %v2675_v43 }
 0xc74   :  { %v2822_v0 = vpop.xlane.xlu1 %2821  ;;  %v2982_v24 = vmax.f32 %v2976_v12, 1e-20 }
 0xc75   :  { %v2826_v42 = vmax.f32 %v2822_v0, 1e-20 }
 0xc7a   :  { %v2979_v54 = vpop.xlane.xlu1 %2978 }
 0xc7b   :  { %v2983_v21 = vmax.f32 %v2979_v54, 1e-20 }
 0xc7e   :  { %v3134_v63 = vpop.xlane.xlu1 %3133 }
 0xc7f   :  { %v3138_v0 = vmax.f32 %v3134_v63, 1e-20 }
 0xc80   :  { %v7242_v54 = vpop.eup %7241 }
 0xc82   :  { %v2665_v52 = vpop.xlane.xlu1 %2664 }
 0xc83   :  { %v3131_v23 = vpop.xlane.xlu0 %3130  ;;  %v2673_v25 = vmax.f32 %v2665_v52, 1e-20 }
 0xc84   :  { %v3137_v53 = vmax.f32 %v3131_v23, 1e-20 }
 0xc85   :  { %7243 = vrcp.f32 %v2673_v25 }
 0xc86   :  { %v2816_v40 = vpop.xlane.xlu1 %2815  ;;  %7245 = vrcp.f32 %v2674_v44  ;;  %v2683_v44 = vmul.f32 %v7242_v54, %v8624_v2 }
 0xc87   :  { %v2662_v28 = vpop.xlane.xlu0 %2661  ;;  %v2824_v9 = vmax.f32 %v2816_v40, 1e-20 }
 0xc88   :  { %v2672_v57 = vmax.f32 %v2662_v28, 1e-20 }
 0xc8a   :  { %7247 = vrcp.f32 %v2672_v57  ;;  %v2973_v11 = vpop.xlane.xlu1 %2972 }
 0xc8b   :  { %7249 = vrcp.f32 %v2826_v42  ;;  %v2813_v6 = vpop.xlane.xlu0 %2812  ;;  %v2981_v34 = vmax.f32 %v2973_v11, 1e-20 }
 0xc8c   :  { %7251 = vrcp.f32 %v2824_v9  ;;  %v2823_v10 = vmax.f32 %v2813_v6, 1e-20 }
 0xc8d   :  { %7253 = vrcp.f32 %v2825_v8 }
 0xc8e   :  { %7255 = vrcp.f32 %v2823_v10  ;;  %v3128_v39 = vpop.xlane.xlu1 %3127 }
 0xc8f   :  { %7257 = vrcp.f32 %v2983_v21  ;;  %v2970_v45 = vpop.xlane.xlu0 %2969  ;;  %v3136_v20 = vmax.f32 %v3128_v39, 1e-20 }
 0xc90   :  { %7259 = vrcp.f32 %v2981_v34  ;;  %v2980_v32 = vmax.f32 %v2970_v45, 1e-20 }
 0xc91   :  { %7261 = vrcp.f32 %v2982_v24 }
 0xc92   :  { %7263 = vrcp.f32 %v2980_v32  ;;  %v7244_v43 = vpop.eup %7243 }
 0xc93   :  { %7265 = vrcp.f32 %v3137_v53  ;;  %v3125_v41 = vpop.xlane.xlu0 %3124  ;;  %v7246_v25 = vpop.eup %7245  ;;  %v2681_v42 = vmul.f32 %v7244_v43, %v8665_v55 }
 0xc94   :  { %7267 = vrcp.f32 %v3136_v20  ;;  %v3135_v52 = vmax.f32 %v3125_v41, 1e-20  ;;  %v2682_v63 = vmul.f32 %v7246_v25, %v8601_v30  ;;  %v2995_v30 = vpop.permute.xlu1 %2994 }
 0xc95   :  { %7269 = vrcp.f32 %v3138_v0 }
 0xc96   :  { %7271 = vrcp.f32 %v3135_v52  ;;  %v2687_v11 = vpack.c.bf16 %v2683_v44, %v2682_v63 }
 0xc97   :  { %v7248_v12 = vpop.eup %7247 }
 0xc98   :  { %v7250_v23 = vpop.eup %7249  ;;  %v2680_v40 = vmul.f32 %v7248_v12, %v8681_v26 }
 0xc99   :  { %v7252_v28 = vpop.eup %7251  ;;  %v2834_v21 = vmul.f32 %v7250_v23, %v8635_v47 }
 0xc9a   :  { %v7254_v9 = vpop.eup %7253  ;;  %v2686_v57 = vpack.c.bf16 %v2681_v42, %v2680_v40  ;;  %v2832_v2 = vmul.f32 %v7252_v28, %v8673_v3 }
 0xc9b   :  { %v7256_v8 = vpop.eup %7255  ;;  %v2833_v55 = vmul.f32 %v7254_v9, %v8608_v27 }
 0xc9c   :  { %v7258_v6 = vpop.eup %7257  ;;  %6562 = vmatprep.mubr.msk.bf16.mxu1 %vm525_vm5, %v2686_v57  ;;  %v2831_v34 = vmul.f32 %v7256_v8, %v8691_v36 }
 0xc9d   :  { %v7260_v10 = vpop.eup %7259  ;;  %6563 = vmatmul.mubr.msk.bf16.vlgmr.msra.gmra.mxu1 %vm525_vm5, %v2687_v11  ;;  %v2836_v47 = vpack.c.bf16 %v2834_v21, %v2833_v55  ;;  %v2991_v53 = vmul.f32 %v7258_v6, %v8646_v29  ;;  %v7039_v11 = vld [vmem:[%s9664_s9 + $0x18] sm:$0xff]   ;;  %v7041_v6 = vld [vmem:[%s9664_s9 + $0x10] sm:$0xff]   ;;  %v7045_v55 = vld [vmem:[%s9664_s9] sm:$0xff]  }
 0xc9e   :  { %v7262_v26 = vpop.eup %7261  ;;  %6575 = vmatpush3.bf16.msra.mxu1 %v8656_v13  ;;  %v2835_v24 = vpack.c.bf16 %v2832_v2, %v2831_v34  ;;  %v2989_v36 = vmul.f32 %v7260_v10, %v8686_v1  ;;  %v3150_v13 = vpop.permute.xlu0 %3149  ;;  %v7040_v21 = vld [vmem:[%s9665_s22 + $0x18] sm:$0xff]   ;;  %v7042_v34 = vld [vmem:[%s9665_s22 + $0x10] sm:$0xff]   ;;  %v7043_v2 = vld [vmem:[%s9664_s9 + $0x8] sm:$0xff]  }
 0xc9f   :  { %v7264_v39 = vpop.eup %7263  ;;  %6576 = vmatprep.subr.bf16.mxu1 %v2995_v30  ;;  %v2990_v27 = vmul.f32 %v7262_v26, %v8631_v60  ;;  %v7044_v10 = vld [vmem:[%s9665_s22 + $0x8] sm:$0xff]   ;;  %v7046_v26 = vld [vmem:[%s9665_s22] sm:$0xff]  }
 0xca0   :  { %v7266_v45 = vpop.eup %7265  ;;  %6570 = vmatprep.mubr.msk.bf16.mxu0 %vm525_vm5, %v2835_v24  ;;  %v2988_v3 = vmul.f32 %v7264_v39, %v8701_v33 }
 0xca1   :  { %v7268_v20 = vpop.eup %7267  ;;  %6571 = vmatmul.mubr.msk.bf16.vlgmr.msra.gmra.mxu0 %vm525_vm5, %v2836_v47  ;;  %v2993_v29 = vpack.c.bf16 %v2991_v53, %v2990_v27  ;;  %v3145_v54 = vmul.f32 %v7266_v45, %v8668_v38 }
 0xca2   :  { %v7270_v32 = vpop.eup %7269  ;;  %6577 = vmatpush3.bf16.msra.mxu1 %v2995_v30  ;;  %6583 = vmatpush3.bf16.msra.mxu0 %v8650_v17  ;;  %v2992_v0 = vpack.c.bf16 %v2989_v36, %v2988_v3  ;;  %v3144_v33 = vmul.f32 %v7268_v20, %v8696_v48  ;;  %v3281_v30 = vld [vmem:[%s9666_s23] sm:$0x1] }
 0xca3   :  { %v7272_v41 = vpop.eup %7271  ;;  %6584 = vmatprep.subr.bf16.mxu0 %v3150_v13  ;;  %v3146_v60 = vmul.f32 %v7270_v32, %v8654_v56  ;;  %6590 = vmatprep.subr.bf16.mxu1 %v7039_v11  ;;  %v3282_v24 = vadd.f32 1e-05, %v3281_v30 }
 0xca4   :  { %6578 = vmatprep.mubr.msk.bf16.mxu1 %vm525_vm5, %v2992_v0  ;;  %v3143_v1 = vmul.f32 %v7272_v41, %v8708_v37 }
 0xca5   :  { %6579 = vmatmul.mubr.msk.bf16.vlgmr.msra.gmra.mxu1 %vm525_vm5, %v2993_v29  ;;  %v3148_v43 = vpack.c.bf16 %v3146_v60, %v3145_v54  ;;  %7273 = vrsqrt.f32 %v3282_v24 }
 0xca6   :  { %6585 = vmatpush3.bf16.msra.mxu0 %v3150_v13  ;;  %v3147_v52 = vpack.c.bf16 %v3144_v33, %v3143_v1  ;;  %6591 = vmatpush3.bf16.msra.mxu1 %v7039_v11  ;;  %v5987_v13 = vld [vmem:[%s9667_s26] ss:$0 sm:$0xff] }
 0xca7   :  { %6602 = vmatprep.subr.bf16.mxu0 %v7040_v21  ;;  %6592 = vmatprep.subr.bf16.mxu1 %v7041_v6 }
 0xca8   :  { %6586 = vmatprep.mubr.msk.bf16.mxu0 %vm525_vm5, %v3147_v52 }
 0xca9   :  { %6587 = vmatmul.mubr.msk.bf16.vlgmr.msra.gmra.mxu0 %vm525_vm5, %v3148_v43  ;;  %v5988_v43 = vld [vmem:[%s9668_s28] ss:$0 sm:$0xff] }
 0xcaa   :  { %6603 = vmatpush3.bf16.msra.mxu0 %v7040_v21  ;;  %6593 = vmatpush3.bf16.msra.mxu1 %v7041_v6 }
 0xcab   :  { %6604 = vmatprep.subr.bf16.mxu0 %v7042_v34  ;;  %6594 = vmatprep.subr.bf16.mxu1 %v7043_v2 }
 0xcae   :  { %6605 = vmatpush3.bf16.msra.mxu0 %v7042_v34  ;;  %6595 = vmatpush3.bf16.msra.mxu1 %v7043_v2 }
 0xcaf   :  { %6606 = vmatprep.subr.bf16.mxu0 %v7044_v10  ;;  %6596 = vmatprep.subr.bf16.mxu1 %v7045_v55 }
 0xcb2   :  { %6607 = vmatpush3.bf16.msra.mxu0 %v7044_v10  ;;  %6597 = vmatpush3.bf16.msra.mxu1 %v7045_v55  ;;  %v7274_v27 = vpop.eup %7273 }
 0xcb3   :  { %6608 = vmatprep.subr.bf16.mxu0 %v7046_v26  ;;  %6614 = vmatprep.subr.bf16.mxu1 %v9617_v16  ;;  %v3288_v29 = vrot.slane %v7274_v27, %v7726_v51 }
 0xcb6   :  { %6609 = vmatpush3.bf16.msra.mxu0 %v7046_v26 }
 0xd5d   :  { %v8742_v17 = vpop.f32.mrf.mxu1 }
 0xd5f   :  { %v8744_v38 = vpop.f32.mrf.mxu1 }
 0xd61   :  { %v8746_v25 = vpop.f32.mrf.mxu1  ;;  %v6572_v37 = vpop.f32.mrf.mxu0 }
 0xd62   :  { %3218 = vrot.lane.b32.xlu1 %v6572_v37, %s7430_s29 }
 0xd63   :  { %v8749_v48 = vpop.f32.mrf.mxu1  ;;  %v2885_v12 = vpop.f32.mrf.mxu0 }
 0xd65   :  { %v6573_v56 = vpop.f32.mrf.mxu0  ;;  %v6580_v44 = vpop.f32.mrf.mxu1 }
 0xd66   :  { %3214 = vrot.lane.b32.xlu1 %v2885_v12, %s7430_s29  ;;  %3220 = vrot.lane.b32.xlu0 %v6573_v56, %s7430_s29 }
 0xd67   :  { %v2888_v23 = vpop.f32.mrf.mxu0  ;;  %v3040_v40 = vpop.f32.mrf.mxu1 }
 0xd69   :  { %v6588_v42 = vpop.f32.mrf.mxu0  ;;  %v6581_v28 = vpop.f32.mrf.mxu1 }
 0xd6a   :  { %3234 = vrot.lane.b32.xlu1 %v6580_v44, %s7429_s25  ;;  %3216 = vrot.lane.b32.xlu0 %v2888_v23, %s7430_s29  ;;  %v5989_v23 = vld [vmem:[%s9669_s1] ss:$0 sm:$0xff]  ;;  %s9734_s29 = sld [smem:[#allocation31_spill]] }
 0xd6b   :  { %v3195_v63 = vpop.f32.mrf.mxu0  ;;  %v3043_v9 = vpop.f32.mrf.mxu1 }
 0xd6d   :  { %v6589_v57 = vpop.f32.mrf.mxu0 }
 0xd6e   :  { %3230 = vrot.lane.b32.xlu1 %v3040_v40, %s7429_s25  ;;  %3236 = vrot.lane.b32.xlu0 %v6581_v28, %s7429_s25 }
 0xd6f   :  { %v3198_v8 = vpop.f32.mrf.mxu0 }
 0xd72   :  { %3232 = vrot.lane.b32.xlu0 %v3043_v9, %s7429_s25  ;;  %3246 = vrot.lane.b32.xlu1 %v3195_v63, %s7431_s3  ;;  %s9733_s25 = sld [smem:[#allocation32_spill]] }
 0xd76   :  { %3250 = vrot.lane.b32.xlu1 %v6588_v42, %s7431_s3  ;;  %3248 = vrot.lane.b32.xlu0 %v3198_v8, %s7431_s3 }
 0xd7a   :  { %3252 = vrot.lane.b32.xlu0 %v6589_v57, %s7431_s3  ;;  %s7433_s3 = smov [#allocation4]  }
 0xd7b   :  { %s5842_s8 = sshll.u32 %s7433_s3, 4  ;;  %s5843_s8 = int_to_ptr.vmem [resolvable:$true] %s5842_s8 }
 0xd7c   :  { %s7333_s14 = scalar_lea.vmem %s5843_s8, 512  ;;  %p7338_p1 = scmp.lt.s32.totalorder %s5843_s8, %s5843_s8 }
 0xd7d   :  { %p7334_p0 = scmp.ne.s32.totalorder %s5843_s8, %s7333_s14  ;;  %p7339_p2 = scmp.lt.s32.totalorder %s7333_s14, %s7333_s14 }
 0xd7f   :  { %p7340_p3 = por %p7339_p2, %p7338_p1 }
 0xd81   :  { %p7341_p4 = pnand %p7340_p3, %p7334_p0 }
 0xdd4   :  { %v3219_v39 = vpop.permute.xlu1 %3218 }
 0xdd5   :  { %v3260_v60 = vsel %vm1152_vm9, %v8742_v17, %v3219_v39 }
 0xdd8   :  { %v3215_v47 = vpop.permute.xlu1 %3214  ;;  %v3221_v53 = vpop.permute.xlu0 %3220 }
 0xdd9   :  { %v3258_v32 = vsel %vm1152_vm9, %v8744_v38, %v3215_v47  ;;  %v3261_v17 = vsel %vm1152_vm9, %v8746_v25, %v3221_v53 }
 0xddc   :  { %v3235_v45 = vpop.permute.xlu1 %3234  ;;  %v3217_v3 = vpop.permute.xlu0 %3216 }
 0xddd   :  { %v3259_v52 = vsel %vm1152_vm9, %v8749_v48, %v3217_v3  ;;  %v3264_v38 = vsel %vm525_vm5, %v3260_v60, %v3235_v45 }
 0xde0   :  { %v3231_v36 = vpop.permute.xlu1 %3230  ;;  %v3237_v20 = vpop.permute.xlu0 %3236 }
 0xde1   :  { %v3262_v0 = vsel %vm525_vm5, %v3258_v32, %v3231_v36  ;;  %v3265_v48 = vsel %vm525_vm5, %v3261_v17, %v3237_v20 }
 0xde4   :  { %v3233_v41 = vpop.permute.xlu0 %3232  ;;  %v3247_v54 = vpop.permute.xlu1 %3246 }
 0xde5   :  { %v3266_v1 = vsel %vm1161_vm10, %v3262_v0, %v3247_v54  ;;  %v3263_v37 = vsel %vm525_vm5, %v3259_v52, %v3233_v41 }
 0xde6   :  { %v3277_v33 = vsub.f32 %v3266_v1, %v5987_v13 }
 0xde8   :  { %v3290_v12 = vmul.f32 %v3288_v29, %v3277_v33  ;;  %v3251_v56 = vpop.permute.xlu1 %3250  ;;  %v3249_v44 = vpop.permute.xlu0 %3248 }
 0xde9   :  { %v3268_v40 = vsel %vm1161_vm10, %v3264_v38, %v3251_v56  ;;  %v3267_v42 = vsel %vm1161_vm10, %v3263_v37, %v3249_v44 }
 0xdea   :  { %v3301_v28 = vmul.f32 %v5988_v43, %v3290_v12  ;;  %v3279_v63 = vsub.f32 %v3268_v40, %v5987_v13  ;;  %v3278_v9 = vsub.f32 %v3267_v42, %v5987_v13 }
 0xdec   :  { %v3312_v57 = vadd.f32 %v5989_v23, %v3301_v28  ;;  %v3292_v8 = vmul.f32 %v3288_v29, %v3279_v63  ;;  %v3291_v11 = vmul.f32 %v3288_v29, %v3278_v9  ;;  %v3253_v21 = vpop.permute.xlu0 %3252 }
 0xded   :  { %v3269_v6 = vsel %vm1161_vm10, %v3265_v48, %v3253_v21 }
 0xdee   :  { %v3320_v34 = vmin.f32 %v3312_v57, 0.0  ;;  %v3303_v2 = vmul.f32 %v5988_v43, %v3292_v8  ;;  %v3302_v10 = vmul.f32 %v5988_v43, %v3291_v11  ;;  %v3280_v55 = vsub.f32 %v3269_v6, %v5987_v13 }
 0xdef   :  { %vm3316_vm9 = vcmp.gt.f32.partialorder %v3312_v57, 0.0 }
 0xdf0   :  { %v3324_v26 = vmul.f32 1.442695, %v3320_v34  ;;  %v3314_v30 = vadd.f32 %v5989_v23, %v3303_v2  ;;  %v3313_v24 = vadd.f32 %v5989_v23, %v3302_v10  ;;  %v3293_v39 = vmul.f32 %v3288_v29, %v3280_v55 }
 0xdf2   :  { %7275 = vpow2.f32 %v3324_v26  ;;  %v3322_v47 = vmin.f32 %v3314_v30, 0.0  ;;  %v3321_v45 = vmin.f32 %v3313_v24, 0.0  ;;  %v3304_v25 = vmul.f32 %v5988_v43, %v3293_v39 }
 0xdf3   :  { %vm3318_vm10 = vcmp.gt.f32.partialorder %v3314_v30, 0.0  ;;  %vm3317_vm7 = vcmp.gt.f32.partialorder %v3313_v24, 0.0 }
 0xdf4   :  { %v3328_v53 = vmul.f32 1.442695, %v3322_v47  ;;  %v3326_v3 = vmul.f32 1.442695, %v3321_v45  ;;  %v3315_v36 = vadd.f32 %v5989_v23, %v3304_v25 }
 0xdf6   :  { %7277 = vpow2.f32 %v3328_v53  ;;  %v3323_v20 = vmin.f32 %v3315_v36, 0.0  ;;  %vm3319_vm8 = vcmp.gt.f32.partialorder %v3315_v36, 0.0 }
 0xdf7   :  { %7279 = vpow2.f32 %v3326_v3 }
 0xdf8   :  { %v3330_v27 = vmul.f32 1.442695, %v3323_v20 }
 0xdfa   :  { %7281 = vpow2.f32 %v3330_v27 }
 0xdff   :  { %v7276_v32 = vpop.eup %7275 }
 0xe00   :  { %v5990_v0 = vadd.f32 -1.0, %v7276_v32 }
 0xe02   :  { %v3336_v13 = vsel %vm3316_vm9, %v3312_v57, %v5990_v0  ;;  %v3526_v57 = vld [vmem:[%s9670_s2] sm:$0x1] }
 0xe03   :  { %v7278_v41 = vpop.eup %7277  ;;  %v3340_v54 = vadd.f32 %v3336_v13, %v8420_v62 }
 0xe04   :  { %v7280_v29 = vpop.eup %7279  ;;  %v5992_v1 = vadd.f32 -1.0, %v7278_v41 }
 0xe05   :  { %v5991_v33 = vadd.f32 -1.0, %v7280_v29  ;;  %v3344_v52 = vand.u32 2147483647, %v3340_v54 }
 0xe06   :  { %v3338_v60 = vsel %vm3318_vm10, %v3314_v30, %v5992_v1 }
 0xe07   :  { %v3342_v43 = vadd.f32 %v3338_v60, %v8428_v18  ;;  %v3337_v38 = vsel %vm3317_vm7, %v3313_v24, %v5991_v33  ;;  %v7282_v37 = vpop.eup %7281  ;;  %vm3348_vm11 = vcmp.eq.f32.partialorder %v3344_v52, inf }
 0xe08   :  { %v3341_v12 = vadd.f32 %v3337_v38, %v8422_v4  ;;  %v5993_v56 = vadd.f32 -1.0, %v7282_v37  ;;  %v8796_v42 = vsel %vm3348_vm11, 1e+09, %v3340_v54 }
 0xe09   :  { %v3346_v23 = vand.u32 2147483647, %v3342_v43 }
 0xe0a   :  { %v3345_v44 = vand.u32 2147483647, %v3341_v12  ;;  %v3339_v40 = vsel %vm3319_vm8, %v3315_v36, %v5993_v56 }
 0xe0b   :  { %v3343_v62 = vadd.f32 %v3339_v40, %v8430_v15  ;;  %vm3350_vm13 = vcmp.eq.f32.partialorder %v3346_v23, inf }
 0xe0c   :  { %vm3349_vm12 = vcmp.eq.f32.partialorder %v3345_v44, inf  ;;  %v8804_v4 = vsel %vm3350_vm13, 1e+09, %v3342_v43 }
 0xe0d   :  { %v8798_v28 = vsel %vm3349_vm12, 1e+09, %v3341_v12  ;;  %v3347_v63 = vand.u32 2147483647, %v3343_v62 }
 0xe0e   :  { %v3356_v18 = vpack.c.bf16 %v8798_v28, %v8796_v42 }
 0xe0f   :  { %vm3351_vm14 = vcmp.eq.f32.partialorder %v3347_v63, inf }
 0xe10   :  { %6598 = vmatprep.mubr.msk.bf16.mxu1 %vm300_vm2, %v3356_v18  ;;  %6610 = vmatprep.mubr.msk.bf16.mxu0 %vm300_vm2, %v3356_v18  ;;  %v8806_v9 = vsel %vm3351_vm14, 1e+09, %v3343_v62  ;;  %v3391_v48 = vsel %vm300_vm2, %v3356_v18, 0 }
 0xe11   :  { %v3357_v15 = vpack.c.bf16 %v8806_v9, %v8804_v4 }
 0xe13   :  { %6599 = vmatmul.mubr.msk.bf16.vlgmr.msra.gmra.mxu1 %vm300_vm2, %v3357_v15  ;;  %6611 = vmatmul.mubr.msk.bf16.vlgmr.msra.gmra.mxu0 %vm300_vm2, %v3357_v15  ;;  %v3394_v17 = vsel %vm300_vm2, %v3357_v15, 0 }
 0xe14   :  { %6615 = vmatpush3.bf16.xpose.msra.mxu1 %v3394_v17  ;;  %6618 = vmatprep.mubr.msk.bf16.mxu1 %vm7422_vm3, %v9617_v16 }
 0xe15   :  { %6616 = vmatprep.subr.bf16.mxu1 %v9617_v16 }
 0xe1c   :  { %6617 = vmatpush3.bf16.xpose.msra.mxu1 %v3391_v48 }
 0xe23   :  { %6619 = vmatmul.mubr.msk.bf16.vlgmr.msra.gmra.mxu1 %vm300_vm2, %v3526_v57 }
 0xed3   :  { %v6600_v8 = vpop.f32.mrf.mxu1  ;;  %v6612_v11 = vpop.f32.mrf.mxu0 }
 0xed5   :  { %v3430_v21 = vpop.f32.mrf.mxu1  ;;  %v3511_v6 = vpop.f32.mrf.mxu0 }
 0xed6   :  { %3572 = vperm.xlu1 %6929, %v3511_v6  }
 0xed7   :  { %v6601_v34 = vpop.f32.mrf.mxu1  ;;  %v6613_v2 = vpop.f32.mrf.mxu0 }
 0xed8   :  { %v3667_v10 = vpack.c.bf16 %v6601_v34, %v6600_v8 }
 0xed9   :  { %v3433_v55 = vpop.f32.mrf.mxu1  ;;  %v3514_v26 = vpop.f32.mrf.mxu0 }
 0xeda   :  { %v3666_v30 = vpack.c.bf16 %v3433_v55, %v3430_v21  ;;  %3582 = vperm.xlu1 %6929, %v6612_v11   ;;  %3577 = vperm.xlu0 %6930, %v3514_v26  }
 0xedb   :  { %6622 = vmatprep.subr.bf16.mxu0 %v3667_v10 }
 0xedc   :  { %6623 = vmatpush3.bf16.msra.mxu0 %v3667_v10 }
 0xedd   :  { %6624 = vmatprep.subr.bf16.mxu0 %v3666_v30 }
 0xede   :  { %3587 = vperm.xlu1 %6929, %v6613_v2  }
 0xee0   :  { %6625 = vmatpush3.bf16.msra.mxu0 %v3666_v30 }
 0xee3   :  { %v3564_v24 = vpop.f32.mrf.mxu1 }
 0xee4   :  { %v3593_v25 = vrot.slane %v3564_v24, %v7726_v51 }
 0xee5   :  { %v6620_v39 = vpop.f32.mrf.mxu1 }
 0xee7   :  { %v3567_v47 = vpop.f32.mrf.mxu1 }
 0xee8   :  { %v3833_v47 = vld [vmem:[%s9671_s7 + $0x90] sm:$0xff] }
 0xee9   :  { %v6621_v45 = vpop.f32.mrf.mxu1 }
 0xeea   :  { %v3834_v45 = vld [vmem:[%s9671_s7 + $0x98] sm:$0xff] }
 0xf51   :  { %v3573_v53 = vpop.permute.xlu1 %3572 }
 0xf52   :  { %v3594_v3 = vadd.f32 %v3593_v25, %v3573_v53  ;;  %v3836_v53 = vld [vmem:[%s9671_s7 + $0xa8] sm:$0xff] }
 0xf54   :  { %vm3598_vm3 = vcmp.ge.f32.partialorder %v3594_v3, 0.0  ;;  %v3602_v36 = vmul.f32 0.2, %v3594_v3 }
 0xf55   :  { %v3583_v20 = vpop.permute.xlu1 %3582  ;;  %v3578_v27 = vpop.permute.xlu0 %3577 }
 0xf56   :  { %v3596_v32 = vadd.f32 %v3593_v25, %v3583_v20  ;;  %v3595_v0 = vadd.f32 %v3593_v25, %v3578_v27  ;;  %v3606_v13 = vsel %vm3598_vm3, %v3594_v3, %v3602_v36  ;;  %v3838_v3 = vld [vmem:[%s9671_s7 + $0xb8] sm:$0xff]  ;;  %v3837_v36 = vld [vmem:[%s9671_s7 + $0xb0] sm:$0xff]  ;;  %v3840_v20 = vld [vmem:[%s9671_s7 + $0xc8] sm:$0xff] }
 0xf57   :  { %v3610_v41 = vadd.f32 %v3606_v13, %v7781_v46  ;;  %v3839_v27 = vld [vmem:[%s9671_s7 + $0xc0] sm:$0xff]  ;;  %v3844_v13 = vld [vmem:[%s9671_s7 + $0xe8] sm:$0xff] }
 0xf58   :  { %vm3600_vm15 = vcmp.ge.f32.partialorder %v3596_v32, 0.0  ;;  %v3604_v54 = vmul.f32 0.2, %v3596_v32  ;;  %vm3599_vm0 = vcmp.ge.f32.partialorder %v3595_v0, 0.0  ;;  %v3603_v29 = vmul.f32 0.2, %v3595_v0 }
 0xf59   :  { %v3588_v1 = vpop.permute.xlu1 %3587  ;;  %v3614_v33 = vsel %vm525_vm5, %v3610_v41, -inf }
 0xf5a   :  { %v3597_v60 = vadd.f32 %v3593_v25, %v3588_v1  ;;  %3615 = vmax.xlane.f32.xlu0 %v3614_v33  ;;  %v3607_v52 = vsel %vm3599_vm0, %v3595_v0, %v3603_v29  ;;  %v3608_v43 = vsel %vm3600_vm15, %v3596_v32, %v3604_v54  ;;  %v3832_v25 = vld [vmem:[%s9671_s7 + $0x88] sm:$0xff]  ;;  %v3842_v32 = vld [vmem:[%s9671_s7 + $0xd8] sm:$0xff]  ;;  %v3841_v0 = vld [vmem:[%s9671_s7 + $0xd0] sm:$0xff] }
 0xf5b   :  { %v3611_v38 = vadd.f32 %v3607_v52, %v7828_v7  ;;  %v3612_v37 = vadd.f32 %v3608_v43, %v7739_v59  ;;  %v3846_v54 = vld [vmem:[%s9671_s7 + $0xf8] sm:$0xff]  ;;  %v3845_v29 = vld [vmem:[%s9671_s7 + $0xf0] sm:$0xff]  ;;  %v4056_v1 = vld [vmem:[%s9672_s10 + $0x8] sm:$0xff] }
 0xf5c   :  { %vm3601_vm4 = vcmp.ge.f32.partialorder %v3597_v60, 0.0  ;;  %v3605_v12 = vmul.f32 0.2, %v3597_v60  ;;  %v4055_v33 = vld [vmem:[%s9672_s10] sm:$0xff]  ;;  %v4057_v52 = vld [vmem:[%s9672_s10 + $0x10] sm:$0xff]  ;;  %v4060_v43 = vld [vmem:[%s9672_s10 + $0x28] sm:$0xff] }
 0xf5d   :  { %v3617_v56 = vsel %vm525_vm5, %v3611_v38, -inf  ;;  %v3620_v46 = vsel %vm525_vm5, %v3612_v37, -inf }
 0xf5e   :  { %3618 = vmax.xlane.f32.xlu1 %v3617_v56  ;;  %3621 = vmax.xlane.f32.xlu0 %v3620_v46  ;;  %v3609_v44 = vsel %vm3601_vm4, %v3597_v60, %v3605_v12  ;;  %v4058_v60 = vld [vmem:[%s9672_s10 + $0x18] sm:$0xff]  ;;  %v4061_v12 = vld [vmem:[%s9672_s10 + $0x30] sm:$0xff]  ;;  %v4064_v56 = vld [vmem:[%s9672_s10 + $0x48] sm:$0xff] }
 0xf5f   :  { %v3613_v23 = vadd.f32 %v3609_v44, %v7787_v61  ;;  %v4063_v46 = vld [vmem:[%s9672_s10 + $0x40] sm:$0xff]  ;;  %v4066_v44 = vld [vmem:[%s9672_s10 + $0x58] sm:$0xff] }
 0xf61   :  { %v3623_v40 = vsel %vm525_vm5, %v3613_v23, -inf }
 0xf62   :  { %3624 = vmax.xlane.f32.xlu0 %v3623_v40  ;;  %v4068_v40 = vld [vmem:[%s9672_s10 + $0x68] sm:$0xff] }
 0xfe3   :  { %v3616_v62 = vpop.xlane.xlu0 %3615 }
 0xfe4   :  { %v3626_v18 = vsub.f32 %v3610_v41, %v3616_v62  ;;  %v3843_v41 = vld [vmem:[%s9671_s7 + $0xe0] sm:$0xff] }
 0xfe5   :  { %v4067_v62 = vld [vmem:[%s9672_s10 + $0x60] sm:$0xff] }
 0xfe6   :  { %v3630_v63 = vmul.f32 1.442695, %v3626_v18  ;;  %v4070_v18 = vld [vmem:[%s9672_s10 + $0x78] sm:$0xff] }
 0xfe7   :  { %v3619_v7 = vpop.xlane.xlu1 %3618  ;;  %v3622_v15 = vpop.xlane.xlu0 %3621 }
 0xfe8   :  { %7283 = vpow2.f32 %v3630_v63  ;;  %v3627_v59 = vsub.f32 %v3611_v38, %v3619_v7  ;;  %v3628_v17 = vsub.f32 %v3612_v37, %v3622_v15  ;;  %v4059_v38 = vld [vmem:[%s9672_s10 + $0x20] sm:$0xff]  ;;  %v4062_v37 = vld [vmem:[%s9672_s10 + $0x38] sm:$0xff]  ;;  %v4069_v63 = vld [vmem:[%s9672_s10 + $0x70] sm:$0xff] }
 0xfe9   :  { %v4072_v7 = vld [vmem:[%s9672_s10 + $0x88] sm:$0xff]  ;;  %v4071_v15 = vld [vmem:[%s9672_s10 + $0x80] sm:$0xff] }
 0xfea   :  { %v3632_v48 = vmul.f32 1.442695, %v3627_v59  ;;  %v3634_v57 = vmul.f32 1.442695, %v3628_v17  ;;  %v4074_v59 = vld [vmem:[%s9672_s10 + $0x98] sm:$0xff]  ;;  %v4073_v17 = vld [vmem:[%s9672_s10 + $0x90] sm:$0xff] }
 0xfeb   :  { %v3625_v8 = vpop.xlane.xlu0 %3624 }
 0xfec   :  { %7285 = vpow2.f32 %v3632_v48  ;;  %v3629_v11 = vsub.f32 %v3613_v23, %v3625_v8  ;;  %v4065_v23 = vld [vmem:[%s9672_s10 + $0x50] sm:$0xff]  ;;  %v4076_v48 = vld [vmem:[%s9672_s10 + $0xa8] sm:$0xff]  ;;  %v4078_v8 = vld [vmem:[%s9672_s10 + $0xb8] sm:$0xff] }
 0xfed   :  { %7287 = vpow2.f32 %v3634_v57  ;;  %v4075_v57 = vld [vmem:[%s9672_s10 + $0xa0] sm:$0xff] }
 0xfee   :  { %v3636_v21 = vmul.f32 1.442695, %v3629_v11  ;;  %v4077_v11 = vld [vmem:[%s9672_s10 + $0xb0] sm:$0xff] }
 0xff0   :  { %7289 = vpow2.f32 %v3636_v21  ;;  %v4080_v21 = vld [vmem:[%s9672_s10 + $0xc8] sm:$0xff] }
 0xff5   :  { %v7284_v61 = vpop.eup %7283 }
 0xff6   :  { %v8829_v6 = vmul.f32 %v8678_v5, %v7284_v61  ;;  %v4079_v61 = vld [vmem:[%s9672_s10 + $0xc0] sm:$0xff] }
 0xff8   :  { %v3642_v34 = vsel %vm525_vm5, %v8829_v6, 0.0 }
 0xff9   :  { %v7286_v2 = vpop.eup %7285  ;;  %3643 = vadd.xlane.f32.xlu1 %v3642_v34  ;;  %v4082_v34 = vld [vmem:[%s9672_s10 + $0xd8] sm:$0xff] }
 0xffa   :  { %v7288_v10 = vpop.eup %7287  ;;  %v8834_v55 = vmul.f32 %v8662_v19, %v7286_v2  ;;  %v3831_v19 = vld [vmem:[%s9671_s7 + $0x80] sm:$0xff]  ;;  %v4081_v2 = vld [vmem:[%s9672_s10 + $0xd0] sm:$0xff] }
 0xffb   :  { %v8837_v26 = vmul.f32 %v8598_v14, %v7288_v10  ;;  %v4084_v10 = vld [vmem:[%s9672_s10 + $0xe8] sm:$0xff] }
 0xffc   :  { %v3645_v30 = vsel %vm525_vm5, %v8834_v55, 0.0 }
 0xffd   :  { %v7290_v5 = vpop.eup %7289  ;;  %3646 = vadd.xlane.f32.xlu0 %v3645_v30  ;;  %v3648_v24 = vsel %vm525_vm5, %v8837_v26, 0.0  ;;  %v4083_v30 = vld [vmem:[%s9672_s10 + $0xe0] sm:$0xff] }
 0xffe   :  { %3649 = vadd.xlane.f32.xlu1 %v3648_v24  ;;  %v8844_v39 = vmul.f32 %v8621_v35, %v7290_v5  ;;  %v3835_v35 = vld [vmem:[%s9671_s7 + $0xa0] sm:$0xff]  ;;  %v4086_v5 = vld [vmem:[%s9672_s10 + $0xf8] sm:$0xff]  ;;  %v4085_v24 = vld [vmem:[%s9672_s10 + $0xf0] sm:$0xff] }
0x1000   :  { %v3651_v14 = vsel %vm525_vm5, %v8844_v39, 0.0 }
0x1001   :  { %3652 = vadd.xlane.f32.xlu0 %v3651_v14  ;;  %v3816_v14 = vld [vmem:[%s9671_s7 + $0x8] sm:$0xff] }
0x100f   :  { %3896 = vperm.xlu1 %6929, %v3831_v19   ;;  %v3815_v19 = vld [vmem:[%s9671_s7] sm:$0xff] }
0x1013   :  { %3902 = vperm.xlu1 %6929, %v3833_v47   ;;  %v3818_v47 = vld [vmem:[%s9671_s7 + $0x18] sm:$0xff] }
0x1017   :  { %3905 = vperm.xlu1 %6929, %v3834_v45   ;;  %3899 = vperm.xlu0 %6930, %v3832_v25   ;;  %v3817_v45 = vld [vmem:[%s9671_s7 + $0x10] sm:$0xff]  ;;  %v3820_v25 = vld [vmem:[%s9671_s7 + $0x28] sm:$0xff] }
0x101b   :  { %3911 = vperm.xlu1 %6929, %v3836_v53   ;;  %3908 = vperm.xlu0 %6930, %v3835_v35   ;;  %v3819_v53 = vld [vmem:[%s9671_s7 + $0x20] sm:$0xff]  ;;  %v3822_v35 = vld [vmem:[%s9671_s7 + $0x38] sm:$0xff] }
0x101f   :  { %3917 = vperm.xlu1 %6929, %v3838_v3   ;;  %3914 = vperm.xlu0 %6930, %v3837_v36   ;;  %v3821_v3 = vld [vmem:[%s9671_s7 + $0x30] sm:$0xff]  ;;  %v3824_v36 = vld [vmem:[%s9671_s7 + $0x48] sm:$0xff] }
0x1023   :  { %3923 = vperm.xlu1 %6929, %v3840_v20   ;;  %3920 = vperm.xlu0 %6930, %v3839_v27   ;;  %v3823_v20 = vld [vmem:[%s9671_s7 + $0x40] sm:$0xff] }
0x1027   :  { %3929 = vperm.xlu1 %6929, %v3842_v32   ;;  %3926 = vperm.xlu0 %6930, %v3841_v0   ;;  %v3826_v0 = vld [vmem:[%s9671_s7 + $0x58] sm:$0xff] }
0x102b   :  { %3935 = vperm.xlu1 %6929, %v3844_v13   ;;  %3932 = vperm.xlu0 %6930, %v3843_v41   ;;  %v3825_v13 = vld [vmem:[%s9671_s7 + $0x50] sm:$0xff] }
0x102f   :  { %3941 = vperm.xlu1 %6929, %v3846_v54   ;;  %3938 = vperm.xlu0 %6930, %v3845_v29  }
0x1033   :  { %4091 = vperm.xlu1 %6929, %v4056_v1   ;;  %4088 = vperm.xlu0 %6930, %v4055_v33   ;;  %v3828_v33 = vld [vmem:[%s9671_s7 + $0x68] sm:$0xff] }
0x1037   :  { %4097 = vperm.xlu1 %6929, %v4058_v60   ;;  %4094 = vperm.xlu0 %6930, %v4057_v52   ;;  %v3827_v60 = vld [vmem:[%s9671_s7 + $0x60] sm:$0xff] }
0x103b   :  { %4103 = vperm.xlu1 %6929, %v4060_v43   ;;  %4100 = vperm.xlu0 %6930, %v4059_v38  }
0x103f   :  { %4109 = vperm.xlu1 %6929, %v4062_v37   ;;  %4106 = vperm.xlu0 %6930, %v4061_v12   ;;  %v3830_v37 = vld [vmem:[%s9671_s7 + $0x78] sm:$0xff]  ;;  %v3829_v12 = vld [vmem:[%s9671_s7 + $0x70] sm:$0xff] }
0x1043   :  { %4115 = vperm.xlu1 %6929, %v4064_v56   ;;  %4112 = vperm.xlu0 %6930, %v4063_v46   ;;  %v8913_v56 = vand.u32 127, %v501_v49 }
0x1047   :  { %4121 = vperm.xlu1 %6929, %v4066_v44   ;;  %4118 = vperm.xlu0 %6930, %v4065_v23  }
0x104b   :  { %4127 = vperm.xlu1 %6929, %v4068_v40   ;;  %4124 = vperm.xlu0 %6930, %v4067_v62  }
0x104f   :  { %4133 = vperm.xlu1 %6929, %v4070_v18   ;;  %4130 = vperm.xlu0 %6930, %v4069_v63  }
0x1053   :  { %4139 = vperm.xlu1 %6929, %v4072_v7   ;;  %4136 = vperm.xlu0 %6930, %v4071_v15  }
0x1057   :  { %4145 = vperm.xlu1 %6929, %v4074_v59   ;;  %4142 = vperm.xlu0 %6930, %v4073_v17   ;;  %v3736_v59 = vld [vmem:[%s9684_s11] sm:$0x1] }
0x1058   :  { %v3737_v31 = vadd.f32 1e-05, %v3736_v59 }
0x105b   :  { %4151 = vperm.xlu1 %6929, %v4076_v48   ;;  %4148 = vperm.xlu0 %6930, %v4075_v57  }
0x105f   :  { %4157 = vperm.xlu1 %6929, %v4078_v8   ;;  %4154 = vperm.xlu0 %6930, %v4077_v11  }
0x1063   :  { %4163 = vperm.xlu1 %6929, %v4080_v21   ;;  %4160 = vperm.xlu0 %6930, %v4079_v61  }
0x1067   :  { %4169 = vperm.xlu1 %6929, %v4082_v34   ;;  %4166 = vperm.xlu0 %6930, %v4081_v2  }
0x106b   :  { %4175 = vperm.xlu1 %6929, %v4084_v10   ;;  %4172 = vperm.xlu0 %6930, %v4083_v30  }
0x106f   :  { %4181 = vperm.xlu1 %6929, %v4086_v5   ;;  %4178 = vperm.xlu0 %6930, %v4085_v24  }
0x1073   :  { %3851 = vperm.xlu1 %6929, %v3816_v14   ;;  %3848 = vperm.xlu0 %6930, %v3815_v19  }
0x1077   :  { %3857 = vperm.xlu1 %6929, %v3818_v47   ;;  %3854 = vperm.xlu0 %6930, %v3817_v45  }
0x107b   :  { %3863 = vperm.xlu1 %6929, %v3820_v25   ;;  %3860 = vperm.xlu0 %6930, %v3819_v53  }
0x107f   :  { %3869 = vperm.xlu1 %6929, %v3822_v35   ;;  %3866 = vperm.xlu0 %6930, %v3821_v3  }
0x1082   :  { %v3644_v27 = vpop.xlane.xlu1 %3643 }
0x1083   :  { %v3654_v32 = vmax.f32 %v3644_v27, 1e-20  ;;  %3875 = vperm.xlu1 %6929, %v3824_v36   ;;  %3872 = vperm.xlu0 %6930, %v3823_v20  }
0x1085   :  { %7291 = vrcp.f32 %v3654_v32 }
0x1086   :  { %v3647_v41 = vpop.xlane.xlu0 %3646 }
0x1087   :  { %3881 = vperm.xlu1 %6929, %v3826_v0   ;;  %v3650_v54 = vpop.xlane.xlu1 %3649  ;;  %v3655_v29 = vmax.f32 %v3647_v41, 1e-20  ;;  %3878 = vperm.xlu0 %6930, %v3825_v13  }
0x1088   :  { %v3656_v1 = vmax.f32 %v3650_v54, 1e-20 }
0x1089   :  { %7293 = vrcp.f32 %v3655_v29 }
0x108a   :  { %v3653_v52 = vpop.xlane.xlu0 %3652  ;;  %7295 = vrcp.f32 %v3656_v1 }
0x108b   :  { %3887 = vperm.xlu1 %6929, %v3828_v33   ;;  %v3897_v43 = vpop.permute.xlu1 %3896  ;;  %v3657_v38 = vmax.f32 %v3653_v52, 1e-20  ;;  %3884 = vperm.xlu0 %6930, %v3827_v60  }
0x108c   :  { %vm3959_vm6 = vcmp.eq.s32.totalorder %v8913_v56, %v3897_v43 }
0x108d   :  { %7297 = vrcp.f32 %v3657_v38  ;;  %v6032_v62 = vsel %vm3959_vm6, 1.0, %v9617_v16 }
0x108e   :  { %7299 = vrsqrt.f32 %v3737_v31 }
0x108f   :  { %3893 = vperm.xlu1 %6929, %v3830_v37   ;;  %v3903_v46 = vpop.permute.xlu1 %3902  ;;  %3890 = vperm.xlu0 %6930, %v3829_v12  }
0x1090   :  { %vm3961_vm9 = vcmp.eq.s32.totalorder %v8913_v56, %v3903_v46 }
0x1091   :  { %v8922_v18 = vsel %vm3961_vm9, 1.0, %v9617_v16 }
0x1092   :  { %v3900_v44 = vpop.permute.xlu0 %3899  ;;  %v7292_v40 = vpop.eup %7291 }
0x1093   :  { %v3906_v23 = vpop.permute.xlu1 %3905  ;;  %vm3960_vm10 = vcmp.eq.s32.totalorder %v8913_v56, %v3900_v44  ;;  %v3662_v57 = vmul.f32 %v7292_v40, %v8829_v6 }
0x1094   :  { %vm3962_vm7 = vcmp.eq.s32.totalorder %v8913_v56, %v3906_v23  ;;  %v6033_v49 = vsel %vm3960_vm10, 1.0, %v9617_v16 }
0x1095   :  { %v8925_v63 = vsel %vm3962_vm7, 1.0, %v9617_v16  ;;  %v4047_v7 = vpack.c.bf16 %v6033_v49, %v6032_v62 }
0x1096   :  { %v7294_v15 = vpop.eup %7293  ;;  %v3909_v17 = vpop.permute.xlu0 %3908 }
0x1097   :  { %v3912_v48 = vpop.permute.xlu1 %3911  ;;  %vm3963_vm8 = vcmp.eq.s32.totalorder %v8913_v56, %v3909_v17  ;;  %6650 = vmatprep.mubr.msk.bf16.mxu1 %vm525_vm5, %v4047_v7  ;;  %v3663_v8 = vmul.f32 %v7294_v15, %v8834_v55  ;;  %v7296_v11 = vpop.eup %7295 }
0x1098   :  { %vm3964_vm11 = vcmp.eq.s32.totalorder %v8913_v56, %v3912_v48  ;;  %v8935_v21 = vsel %vm3963_vm8, 1.0, %v9617_v16  ;;  %v3664_v6 = vmul.f32 %v7296_v11, %v8837_v26 }
0x1099   :  { %v8938_v61 = vsel %vm3964_vm11, 1.0, %v9617_v16  ;;  %v3668_v34 = vpack.c.bf16 %v3663_v8, %v3662_v57 }
0x109a   :  { %v7298_v2 = vpop.eup %7297  ;;  %v3915_v30 = vpop.permute.xlu0 %3914 }
0x109b   :  { %v3918_v5 = vpop.permute.xlu1 %3917  ;;  %vm3965_vm12 = vcmp.eq.s32.totalorder %v8913_v56, %v3915_v30  ;;  %6626 = vmatprep.mubr.msk.bf16.mxu0 %vm525_vm5, %v3668_v34  ;;  %v3665_v55 = vmul.f32 %v7298_v2, %v8844_v39  ;;  %v7300_v22 = vpop.eup %7299 }
0x109c   :  { %vm3966_vm13 = vcmp.eq.s32.totalorder %v8913_v56, %v3918_v5  ;;  %v8948_v24 = vsel %vm3965_vm12, 1.0, %v9617_v16  ;;  %v3743_v58 = vrot.slane %v7300_v22, %v7726_v51 }
0x109d   :  { %v8951_v14 = vsel %vm3966_vm13, 1.0, %v9617_v16  ;;  %v3669_v19 = vpack.c.bf16 %v3665_v55, %v3664_v6 }
0x109e   :  { %v3921_v45 = vpop.permute.xlu0 %3920 }
0x109f   :  { %v3924_v25 = vpop.permute.xlu1 %3923  ;;  %vm3967_vm14 = vcmp.eq.s32.totalorder %v8913_v56, %v3921_v45  ;;  %6627 = vmatmul.mubr.msk.bf16.vlgmr.msra.gmra.mxu0 %vm525_vm5, %v3669_v19 }
0x10a0   :  { %vm3968_vm3 = vcmp.eq.s32.totalorder %v8913_v56, %v3924_v25  ;;  %v8959_v26 = vsel %vm3967_vm14, 1.0, %v9617_v16 }
0x10a1   :  { %v8962_v39 = vsel %vm3968_vm3, 1.0, %v9617_v16 }
0x10a2   :  { %v3927_v35 = vpop.permute.xlu0 %3926 }
0x10a3   :  { %v3930_v3 = vpop.permute.xlu1 %3929  ;;  %vm3969_vm15 = vcmp.eq.s32.totalorder %v8913_v56, %v3927_v35 }
0x10a4   :  { %vm3970_vm0 = vcmp.eq.s32.totalorder %v8913_v56, %v3930_v3  ;;  %v8969_v36 = vsel %vm3969_vm15, 1.0, %v9617_v16 }
0x10a5   :  { %v8972_v20 = vsel %vm3970_vm0, 1.0, %v9617_v16 }
0x10a6   :  { %v3933_v32 = vpop.permute.xlu0 %3932 }
0x10a7   :  { %v3936_v0 = vpop.permute.xlu1 %3935  ;;  %vm3971_vm4 = vcmp.eq.s32.totalorder %v8913_v56, %v3933_v32 }
0x10a8   :  { %vm3972_vm6 = vcmp.eq.s32.totalorder %v8913_v56, %v3936_v0  ;;  %v8979_v13 = vsel %vm3971_vm4, 1.0, %v9617_v16 }
0x10a9   :  { %v8982_v41 = vsel %vm3972_vm6, 1.0, %v9617_v16 }
0x10aa   :  { %v3939_v29 = vpop.permute.xlu0 %3938 }
0x10ab   :  { %v3942_v1 = vpop.permute.xlu1 %3941  ;;  %vm3973_vm9 = vcmp.eq.s32.totalorder %v8913_v56, %v3939_v29 }
0x10ac   :  { %vm3974_vm10 = vcmp.eq.s32.totalorder %v8913_v56, %v3942_v1  ;;  %v8989_v33 = vsel %vm3973_vm9, 1.0, %v9617_v16 }
0x10ad   :  { %v8992_v60 = vsel %vm3974_vm10, 1.0, %v9617_v16 }
0x10ae   :  { %v4089_v43 = vpop.permute.xlu0 %4088 }
0x10af   :  { %v4092_v38 = vpop.permute.xlu1 %4091  ;;  %vm4183_vm7 = vcmp.eq.s32.totalorder %v8913_v56, %v4089_v43 }
0x10b0   :  { %vm4184_vm8 = vcmp.eq.s32.totalorder %v8913_v56, %v4092_v38  ;;  %v8999_v37 = vsel %vm4183_vm7, 1.0, %v9617_v16 }
0x10b1   :  { %v9002_v12 = vsel %vm4184_vm8, 1.0, %v9617_v16 }
0x10b2   :  { %v4095_v44 = vpop.permute.xlu0 %4094 }
0x10b3   :  { %v4098_v23 = vpop.permute.xlu1 %4097  ;;  %vm4185_vm11 = vcmp.eq.s32.totalorder %v8913_v56, %v4095_v44 }
0x10b4   :  { %vm4186_vm12 = vcmp.eq.s32.totalorder %v8913_v56, %v4098_v23  ;;  %v9009_v40 = vsel %vm4185_vm11, 1.0, %v9617_v16 }
0x10b5   :  { %v9012_v62 = vsel %vm4186_vm12, 1.0, %v9617_v16 }
0x10b6   :  { %v4101_v7 = vpop.permute.xlu0 %4100 }
0x10b7   :  { %v4104_v15 = vpop.permute.xlu1 %4103  ;;  %vm4187_vm13 = vcmp.eq.s32.totalorder %v8913_v56, %v4101_v7 }
0x10b8   :  { %vm4188_vm14 = vcmp.eq.s32.totalorder %v8913_v56, %v4104_v15  ;;  %v9019_v17 = vsel %vm4187_vm13, 1.0, %v9617_v16 }
0x10b9   :  { %v9022_v48 = vsel %vm4188_vm14, 1.0, %v9617_v16 }
0x10ba   :  { %v4107_v8 = vpop.permute.xlu0 %4106 }
0x10bb   :  { %v4110_v11 = vpop.permute.xlu1 %4109  ;;  %vm4189_vm3 = vcmp.eq.s32.totalorder %v8913_v56, %v4107_v8 }
0x10bc   :  { %vm4190_vm15 = vcmp.eq.s32.totalorder %v8913_v56, %v4110_v11  ;;  %v9029_v34 = vsel %vm4189_vm3, 1.0, %v9617_v16 }
0x10bd   :  { %v9032_v2 = vsel %vm4190_vm15, 1.0, %v9617_v16 }
0x10be   :  { %v4113_v5 = vpop.permute.xlu0 %4112 }
0x10bf   :  { %v4116_v6 = vpop.permute.xlu1 %4115  ;;  %vm4191_vm0 = vcmp.eq.s32.totalorder %v8913_v56, %v4113_v5 }
0x10c0   :  { %vm4192_vm4 = vcmp.eq.s32.totalorder %v8913_v56, %v4116_v6  ;;  %v9039_v55 = vsel %vm4191_vm0, 1.0, %v9617_v16 }
0x10c1   :  { %v9042_v19 = vsel %vm4192_vm4, 1.0, %v9617_v16 }
0x10c2   :  { %v4119_v25 = vpop.permute.xlu0 %4118 }
0x10c3   :  { %v4122_v35 = vpop.permute.xlu1 %4121  ;;  %vm4193_vm6 = vcmp.eq.s32.totalorder %v8913_v56, %v4119_v25 }
0x10c4   :  { %vm4194_vm9 = vcmp.eq.s32.totalorder %v8913_v56, %v4122_v35  ;;  %v9049_v3 = vsel %vm4193_vm6, 1.0, %v9617_v16 }
0x10c5   :  { %v9052_v32 = vsel %vm4194_vm9, 1.0, %v9617_v16 }
0x10c6   :  { %v4125_v29 = vpop.permute.xlu0 %4124 }
0x10c7   :  { %v4128_v1 = vpop.permute.xlu1 %4127  ;;  %vm4195_vm10 = vcmp.eq.s32.totalorder %v8913_v56, %v4125_v29 }
0x10c8   :  { %vm4196_vm7 = vcmp.eq.s32.totalorder %v8913_v56, %v4128_v1  ;;  %v9059_v43 = vsel %vm4195_vm10, 1.0, %v9617_v16 }
0x10c9   :  { %v9062_v38 = vsel %vm4196_vm7, 1.0, %v9617_v16 }
0x10ca   :  { %v4131_v23 = vpop.permute.xlu0 %4130 }
0x10cb   :  { %v4134_v7 = vpop.permute.xlu1 %4133  ;;  %vm4197_vm8 = vcmp.eq.s32.totalorder %v8913_v56, %v4131_v23 }
0x10cc   :  { %vm4198_vm11 = vcmp.eq.s32.totalorder %v8913_v56, %v4134_v7  ;;  %v9069_v15 = vsel %vm4197_vm8, 1.0, %v9617_v16 }
0x10cd   :  { %v9072_v8 = vsel %vm4198_vm11, 1.0, %v9617_v16 }
0x10ce   :  { %v4137_v5 = vpop.permute.xlu0 %4136 }
0x10cf   :  { %v4140_v6 = vpop.permute.xlu1 %4139  ;;  %vm4199_vm12 = vcmp.eq.s32.totalorder %v8913_v56, %v4137_v5 }
0x10d0   :  { %vm4200_vm13 = vcmp.eq.s32.totalorder %v8913_v56, %v4140_v6  ;;  %v9079_v25 = vsel %vm4199_vm12, 1.0, %v9617_v16 }
0x10d1   :  { %v9082_v35 = vsel %vm4200_vm13, 1.0, %v9617_v16 }
0x10d2   :  { %v4143_v1 = vpop.permute.xlu0 %4142 }
0x10d3   :  { %v4146_v23 = vpop.permute.xlu1 %4145  ;;  %vm4201_vm14 = vcmp.eq.s32.totalorder %v8913_v56, %v4143_v1 }
0x10d4   :  { %vm4202_vm3 = vcmp.eq.s32.totalorder %v8913_v56, %v4146_v23  ;;  %v9089_v7 = vsel %vm4201_vm14, 1.0, %v9617_v16 }
0x10d5   :  { %9673 = vst [vmem:[#allocation38_spill] sm:$0xff] %v9089_v7  ;;  %v9092_v5 = vsel %vm4202_vm3, 1.0, %v9617_v16 }
0x10d6   :  { %v4149_v11 = vpop.permute.xlu0 %4148 }
0x10d7   :  { %v4152_v44 = vpop.permute.xlu1 %4151  ;;  %vm4203_vm15 = vcmp.eq.s32.totalorder %v8913_v56, %v4149_v11 }
0x10d8   :  { %vm4204_vm0 = vcmp.eq.s32.totalorder %v8913_v56, %v4152_v44  ;;  %v9099_v29 = vsel %vm4203_vm15, 1.0, %v9617_v16 }
0x10d9   :  { %9674 = vst [vmem:[#allocation39_spill] sm:$0xff] %v9099_v29  ;;  %v9102_v1 = vsel %vm4204_vm0, 1.0, %v9617_v16 }
0x10da   :  { %9675 = vst [vmem:[#allocation40_spill] sm:$0xff] %v9102_v1  ;;  %v4155_v0 = vpop.permute.xlu0 %4154 }
0x10db   :  { %v4158_v45 = vpop.permute.xlu1 %4157  ;;  %vm4205_vm4 = vcmp.eq.s32.totalorder %v8913_v56, %v4155_v0 }
0x10dc   :  { %vm4206_vm6 = vcmp.eq.s32.totalorder %v8913_v56, %v4158_v45  ;;  %v9109_v6 = vsel %vm4205_vm4, 1.0, %v9617_v16 }
0x10dd   :  { %9676 = vst [vmem:[#allocation41_spill] sm:$0xff] %v9109_v6  ;;  %v9112_v44 = vsel %vm4206_vm6, 1.0, %v9617_v16 }
0x10de   :  { %9677 = vst [vmem:[#allocation42_spill] sm:$0xff] %v9112_v44  ;;  %v4161_v30 = vpop.permute.xlu0 %4160 }
0x10df   :  { %v4164_v57 = vpop.permute.xlu1 %4163  ;;  %vm4207_vm9 = vcmp.eq.s32.totalorder %v8913_v56, %v4161_v30  ;;  %v6009_v30 = vld [vmem:[%s9685_s15] ss:$0 sm:$0xff] }
0x10e0   :  { %vm4208_vm10 = vcmp.eq.s32.totalorder %v8913_v56, %v4164_v57  ;;  %v9119_v23 = vsel %vm4207_vm9, 1.0, %v9617_v16 }
0x10e1   :  { %9678 = vst [vmem:[#allocation43_spill] sm:$0xff] %v9119_v23  ;;  %v9122_v45 = vsel %vm4208_vm10, 1.0, %v9617_v16 }
0x10e2   :  { %9679 = vst [vmem:[#allocation44_spill] sm:$0xff] %v9122_v45  ;;  %v4167_v49 = vpop.permute.xlu0 %4166 }
0x10e3   :  { %v4170_v46 = vpop.permute.xlu1 %4169  ;;  %vm4209_vm7 = vcmp.eq.s32.totalorder %v8913_v56, %v4167_v49 }
0x10e4   :  { %vm4210_vm8 = vcmp.eq.s32.totalorder %v8913_v56, %v4170_v46  ;;  %v9129_v11 = vsel %vm4209_vm7, 1.0, %v9617_v16 }
0x10e5   :  { %9680 = vst [vmem:[#allocation45_spill] sm:$0xff] %v9129_v11  ;;  %v9132_v57 = vsel %vm4210_vm8, 1.0, %v9617_v16 }
0x10e6   :  { %9681 = vst [vmem:[#allocation46_spill] sm:$0xff] %v9132_v57  ;;  %v4173_v52 = vpop.permute.xlu0 %4172 }
0x10e7   :  { %v4176_v54 = vpop.permute.xlu1 %4175  ;;  %vm4211_vm11 = vcmp.eq.s32.totalorder %v8913_v56, %v4173_v52 }
0x10e8   :  { %vm4212_vm12 = vcmp.eq.s32.totalorder %v8913_v56, %v4176_v54  ;;  %v9139_v0 = vsel %vm4211_vm11, 1.0, %v9617_v16 }
0x10e9   :  { %9682 = vst [vmem:[#allocation47_spill] sm:$0xff] %v9139_v0  ;;  %v9142_v46 = vsel %vm4212_vm12, 1.0, %v9617_v16 }
0x10ea   :  { %9683 = vst [vmem:[#allocation48_spill] sm:$0xff] %v9142_v46  ;;  %v4179_v27 = vpop.permute.xlu0 %4178  ;;  %v6011_v46 = vld [vmem:[%s9689_s18] ss:$0 sm:$0xff] }
0x10eb   :  { %v4182_v53 = vpop.permute.xlu1 %4181  ;;  %vm4213_vm13 = vcmp.eq.s32.totalorder %v8913_v56, %v4179_v27 }
0x10ec   :  { %vm4214_vm14 = vcmp.eq.s32.totalorder %v8913_v56, %v4182_v53  ;;  %v9149_v52 = vsel %vm4213_vm13, 1.0, %v9617_v16 }
0x10ed   :  { %9686 = vst [vmem:[#allocation49_spill] sm:$0xff] %v9149_v52  ;;  %v9152_v54 = vsel %vm4214_vm14, 1.0, %v9617_v16 }
0x10ee   :  { %9687 = vst [vmem:[#allocation50_spill] sm:$0xff] %v9152_v54  ;;  %v3849_v47 = vpop.permute.xlu0 %3848 }
0x10ef   :  { %v3852_v49 = vpop.permute.xlu1 %3851  ;;  %vm3943_vm3 = vcmp.eq.s32.totalorder %v8913_v56, %v3849_v47  ;;  %v6010_v47 = vld [vmem:[%s9688_s16] ss:$0 sm:$0xff] }
0x10f0   :  { %vm3944_vm15 = vcmp.eq.s32.totalorder %v8913_v56, %v3852_v49  ;;  %v6016_v27 = vsel %vm3943_vm3, 1.0, %v9617_v16 }
0x10f1   :  { %v6017_v53 = vsel %vm3944_vm15, 1.0, %v9617_v16 }
0x10f2   :  { %v4039_v10 = vpack.c.bf16 %v6017_v53, %v6016_v27 }
0x10f4   :  { %6634 = vmatprep.mubr.msk.bf16.mxu0 %vm525_vm5, %v4039_v10 }
0x115f   :  { %v6628_v50 = vpop.f32.mrf.mxu0 }
0x1160   :  { %v3734_v52 = vsub.f32 %v6628_v50, %v6009_v30 }
0x1161   :  { %v3710_v54 = vpop.f32.mrf.mxu0 }
0x1162   :  { %v3747_v49 = vmul.f32 %v3743_v58, %v3734_v52  ;;  %v3732_v0 = vsub.f32 %v3710_v54, %v6009_v30 }
0x1163   :  { %v6629_v11 = vpop.f32.mrf.mxu0 }
0x1164   :  { %v3758_v57 = vmul.f32 %v6010_v47, %v3747_v49  ;;  %v3745_v16 = vmul.f32 %v3743_v58, %v3732_v0  ;;  %v3735_v27 = vsub.f32 %v6629_v11, %v6009_v30  ;;  %v3855_v49 = vpop.permute.xlu0 %3854 }
0x1165   :  { %v3713_v53 = vpop.f32.mrf.mxu0  ;;  %vm3945_vm13 = vcmp.eq.s32.totalorder %v8913_v56, %v3855_v49 }
0x1166   :  { %v3769_v10 = vadd.f32 %v6011_v46, %v3758_v57  ;;  %v3756_v23 = vmul.f32 %v6010_v47, %v3745_v16  ;;  %v3748_v59 = vmul.f32 %v3743_v58, %v3735_v27  ;;  %v3733_v31 = vsub.f32 %v3713_v53, %v6009_v30  ;;  %v3858_v30 = vpop.permute.xlu1 %3857 }
0x1167   :  { %vm3946_vm12 = vcmp.eq.s32.totalorder %v8913_v56, %v3858_v30 }
0x1168   :  { %v3777_v45 = vmin.f32 %v3769_v10, 0.0  ;;  %v3767_v6 = vadd.f32 %v6011_v46, %v3756_v23  ;;  %v3759_v44 = vmul.f32 %v6010_v47, %v3748_v59  ;;  %v3746_v51 = vmul.f32 %v3743_v58, %v3733_v31  ;;  %v3861_v59 = vpop.permute.xlu0 %3860 }
0x1169   :  { %vm3773_vm0 = vcmp.gt.f32.partialorder %v3769_v10, 0.0  ;;  %vm3947_vm3 = vcmp.eq.s32.totalorder %v8913_v56, %v3861_v59 }
0x116a   :  { %v3783_v22 = vmul.f32 1.442695, %v3777_v45  ;;  %v3775_v50 = vmin.f32 %v3767_v6, 0.0  ;;  %v3770_v29 = vadd.f32 %v6011_v46, %v3759_v44  ;;  %v3757_v1 = vmul.f32 %v6010_v47, %v3746_v51 }
0x116b   :  { %vm3771_vm4 = vcmp.gt.f32.partialorder %v3767_v6, 0.0 }
0x116c   :  { %7301 = vpow2.f32 %v3783_v22  ;;  %v3779_v52 = vmul.f32 1.442695, %v3775_v50  ;;  %v3778_v54 = vmin.f32 %v3770_v29, 0.0  ;;  %v3768_v7 = vadd.f32 %v6011_v46, %v3757_v1  ;;  %v3864_v46 = vpop.permute.xlu1 %3863 }
0x116d   :  { %vm3774_vm6 = vcmp.gt.f32.partialorder %v3770_v29, 0.0  ;;  %vm3948_vm14 = vcmp.eq.s32.totalorder %v8913_v56, %v3864_v46 }
0x116e   :  { %7303 = vpow2.f32 %v3779_v52  ;;  %v3785_v0 = vmul.f32 1.442695, %v3778_v54  ;;  %v3776_v11 = vmin.f32 %v3768_v7, 0.0  ;;  %vm3772_vm10 = vcmp.gt.f32.partialorder %v3768_v7, 0.0 }
0x1170   :  { %7305 = vpow2.f32 %v3785_v0  ;;  %v3781_v57 = vmul.f32 1.442695, %v3776_v11 }
0x1172   :  { %7307 = vpow2.f32 %v3781_v57  ;;  %v3867_v57 = vpop.permute.xlu0 %3866 }
0x1179   :  { %v7302_v16 = vpop.eup %7301 }
0x117a   :  { %v6014_v23 = vadd.f32 -1.0, %v7302_v16 }
0x117b   :  { %v7304_v27 = vpop.eup %7303 }
0x117c   :  { %v3793_v58 = vsel %vm3773_vm0, %v3769_v10, %v6014_v23  ;;  %v6012_v45 = vadd.f32 -1.0, %v7304_v27  ;;  %vm3949_vm0 = vcmp.eq.s32.totalorder %v8913_v56, %v3867_v57 }
0x117d   :  { %v7306_v44 = vpop.eup %7305  ;;  %v3797_v47 = vadd.f32 %v3793_v58, %v8804_v4  ;;  %v3873_v58 = vpop.permute.xlu0 %3872 }
0x117e   :  { %v3791_v53 = vsel %vm3771_vm4, %v3767_v6, %v6012_v45  ;;  %v6015_v1 = vadd.f32 -1.0, %v7306_v44  ;;  %v3870_v6 = vpop.permute.xlu1 %3869  ;;  %v9690_v45 = vmov 0.0  }
0x117f   :  { %v3801_v31 = vand.u32 2147483647, %v3797_v47  ;;  %v3795_v51 = vadd.f32 %v3791_v53, %v8796_v42  ;;  %v7308_v22 = vpop.eup %7307  ;;  %v6019_v44 = vsel %vm3946_vm12, 1.0, %v9690_v45  ;;  %v6021_v30 = vsel %vm3948_vm14, 1.0, %v9690_v45 }
0x1180   :  { %v3794_v50 = vsel %vm3774_vm6, %v3770_v29, %v6015_v1  ;;  %v6013_v54 = vadd.f32 -1.0, %v7308_v22  ;;  %v6020_v49 = vsel %vm3947_vm3, 1.0, %v9690_v45  ;;  %vm3950_vm15 = vcmp.eq.s32.totalorder %v8913_v56, %v3870_v6 }
0x1181   :  { %v3798_v52 = vadd.f32 %v3794_v50, %v8806_v9  ;;  %vm3805_vm9 = vcmp.eq.f32.partialorder %v3801_v31, inf  ;;  %v3799_v10 = vand.u32 2147483647, %v3795_v51  ;;  %v4041_v1 = vpack.c.bf16 %v6021_v30, %v6020_v49  ;;  %v3879_v59 = vpop.permute.xlu0 %3878  ;;  %v7048_v49 = vld [vmem:[%s9701_s0 + $0x30] sm:$0xff]  }
0x1182   :  { %v3792_v11 = vsel %vm3772_vm10, %v3768_v7, %v6013_v54  ;;  %v3809_v16 = vsel %vm3805_vm9, 1e+09, %v3797_v47  ;;  %v3876_v7 = vpop.permute.xlu1 %3875  ;;  %v6018_v47 = vsel %vm3945_vm13, 1.0, %v9690_v45  ;;  %v9691_v31 = vpack.c.bf16 %v8925_v63, %v8922_v18 }
0x1183   :  { %v3802_v0 = vand.u32 2147483647, %v3798_v52  ;;  %v3796_v4 = vadd.f32 %v3792_v11, %v8798_v28  ;;  %vm3803_vm8 = vcmp.eq.f32.partialorder %v3799_v10, inf  ;;  %v4040_v53 = vpack.c.bf16 %v6019_v44, %v6018_v47  ;;  %v7047_v44 = vld [vmem:[%s9701_s0 + $0x38] sm:$0xff]  }
0x1184   :  { %v3807_v9 = vsel %vm3803_vm8, 1e+09, %v3795_v51  ;;  %vm3952_vm4 = vcmp.eq.s32.totalorder %v8913_v56, %v3876_v7  ;;  %vm3951_vm6 = vcmp.eq.s32.totalorder %v8913_v56, %v3873_v58  ;;  %v9692_v51 = vpack.c.bf16 %v8938_v61, %v8935_v21  ;;  %v9726_v7 = vld [vmem:[#allocation49_spill] sm:$0xff] }
0x1185   :  { %vm3806_vm7 = vcmp.eq.f32.partialorder %v3802_v0, inf  ;;  %v3800_v42 = vand.u32 2147483647, %v3796_v4  ;;  %v6023_v22 = vsel %vm3950_vm15, 1.0, %v9690_v45  ;;  %v6022_v50 = vsel %vm3949_vm0, 1.0, %v9690_v45  ;;  %v3885_v10 = vpop.permute.xlu0 %3884 }
0x1186   :  { %v3810_v23 = vsel %vm3806_vm7, 1e+09, %v3798_v52  ;;  %v3882_v46 = vpop.permute.xlu1 %3881  ;;  %v6025_v18 = vsel %vm3952_vm4, 1.0, %v9690_v45  ;;  %v6024_v63 = vsel %vm3951_vm6, 1.0, %v9690_v45  ;;  %v4042_v52 = vpack.c.bf16 %v6023_v22, %v6022_v50  ;;  %v7051_v22 = vld [vmem:[%s9701_s0 + $0x18] sm:$0xff]  }
0x1187   :  { %v3812_v27 = vpack.c.bf16 %v3810_v23, %v3809_v16  ;;  %vm3804_vm11 = vcmp.eq.f32.partialorder %v3800_v42, inf  ;;  %v4043_v0 = vpack.c.bf16 %v6025_v18, %v6024_v63  ;;  %vm3954_vm9 = vcmp.eq.s32.totalorder %v8913_v56, %v3882_v46  ;;  %v7049_v46 = vld [vmem:[%s9701_s0 + $0x28] sm:$0xff]   ;;  %v7052_v63 = vld [vmem:[%s9701_s0 + $0x10] sm:$0xff]  }
0x1188   :  { %v3808_v29 = vsel %vm3804_vm11, 1e+09, %v3796_v4  ;;  %vm3953_vm10 = vcmp.eq.s32.totalorder %v8913_v56, %v3879_v59  ;;  %v9693_v21 = vpack.c.bf16 %v8951_v14, %v8948_v24  ;;  %vm3955_vm8 = vcmp.eq.s32.totalorder %v8913_v56, %v3885_v10  ;;  %v7050_v59 = vld [vmem:[%s9701_s0 + $0x20] sm:$0xff]  }
0x1189   :  { %6630 = vmatprep.subr.bf16.mxu0 %v3812_v27  ;;  %6826 = vmatprep.subr.bf16.mxu1 %v3812_v27  ;;  %v3811_v28 = vpack.c.bf16 %v3808_v29, %v3807_v9  ;;  %v9694_v61 = vpack.c.bf16 %v8962_v39, %v8959_v26  ;;  %v6027_v11 = vsel %vm3954_vm9, 1.0, %v9690_v45  ;;  %v6026_v4 = vsel %vm3953_vm10, 1.0, %v9690_v45  ;;  %v3891_v57 = vpop.permute.xlu0 %3890 }
0x118a   :  { %6631 = vmatpush3.bf16.msra.mxu0 %v3812_v27  ;;  %6828 = vmatpush3.bf16.msra.mxu1 %v3812_v27  ;;  %v3888_v54 = vpop.permute.xlu1 %3887  ;;  %v6028_v24 = vsel %vm3955_vm8, 1.0, %v9690_v45  ;;  %v4044_v16 = vpack.c.bf16 %v6027_v11, %v6026_v4  ;;  %vm3957_vm12 = vcmp.eq.s32.totalorder %v8913_v56, %v3891_v57  ;;  %v9695_v26 = vpack.c.bf16 %v8972_v20, %v8969_v36  ;;  %v7054_v4 = vld [vmem:[%s9701_s0] sm:$0xff]  }
0x118b   :  { %6632 = vmatprep.subr.bf16.mxu0 %v3811_v28  ;;  %6827 = vmatprep.subr.bf16.mxu1 %v3811_v28  ;;  %vm3956_vm7 = vcmp.eq.s32.totalorder %v8913_v56, %v3888_v54  ;;  %v9696_v39 = vpack.c.bf16 %v8982_v41, %v8979_v13  ;;  %v9698_v36 = vpack.c.bf16 %v9002_v12, %v8999_v37 }
0x118c   :  { %v6029_v6 = vsel %vm3956_vm7, 1.0, %v9690_v45  ;;  %v9699_v20 = vpack.c.bf16 %v9012_v62, %v9009_v40  ;;  %v9700_v13 = vpack.c.bf16 %v9022_v48, %v9019_v17  ;;  %v9702_v41 = vpack.c.bf16 %v9032_v2, %v9029_v34  ;;  %v9708_v62 = vld [vmem:[#allocation38_spill] sm:$0xff]  ;;  %v9710_v48 = vld [vmem:[#allocation40_spill] sm:$0xff]  ;;  %v9711_v34 = vld [vmem:[#allocation39_spill] sm:$0xff] }
0x118d   :  { %v4045_v23 = vpack.c.bf16 %v6029_v6, %v6028_v24  ;;  %v9705_v37 = vpack.c.bf16 %v9062_v38, %v9059_v43  ;;  %v9706_v12 = vpack.c.bf16 %v9072_v8, %v9069_v15  ;;  %v9707_v40 = vpack.c.bf16 %v9082_v35, %v9079_v25  ;;  %v9717_v43 = vld [vmem:[#allocation43_spill] sm:$0xff]  ;;  %v9719_v15 = vld [vmem:[#allocation46_spill] sm:$0xff]  ;;  %v9720_v8 = vld [vmem:[#allocation45_spill] sm:$0xff] }
0x118e   :  { %6633 = vmatpush3.bf16.msra.mxu0 %v3811_v28  ;;  %6829 = vmatpush3.bf16.msra.mxu1 %v3811_v28  ;;  %v3894_v14 = vpop.permute.xlu1 %3893  ;;  %v9709_v17 = vpack.c.bf16 %v9092_v5, %v9708_v62  ;;  %v9712_v2 = vpack.c.bf16 %v9710_v48, %v9711_v34  ;;  %v9721_v25 = vpack.c.bf16 %v9719_v15, %v9720_v8  ;;  %v9722_v35 = vld [vmem:[#allocation48_spill] sm:$0xff]  ;;  %v9723_v5 = vld [vmem:[#allocation47_spill] sm:$0xff] }
0x118f   :  { %6666 = vmatprep.subr.bf16.mxu1 %v3812_v27  ;;  %vm3958_vm11 = vcmp.eq.s32.totalorder %v8913_v56, %v3894_v14  ;;  %v9697_v56 = vpack.c.bf16 %v8992_v60, %v8989_v33  ;;  %v9703_v33 = vpack.c.bf16 %v9042_v19, %v9039_v55  ;;  %v9704_v60 = vpack.c.bf16 %v9052_v32, %v9049_v3  ;;  %v9713_v55 = vld [vmem:[#allocation42_spill] sm:$0xff]  ;;  %v9714_v19 = vld [vmem:[#allocation41_spill] sm:$0xff]  ;;  %v9716_v32 = vld [vmem:[#allocation44_spill] sm:$0xff] }
0x1190   :  { %v6031_v42 = vsel %vm3958_vm11, 1.0, %v9690_v45  ;;  %v9715_v3 = vpack.c.bf16 %v9713_v55, %v9714_v19  ;;  %v9718_v38 = vpack.c.bf16 %v9716_v32, %v9717_v43  ;;  %v9724_v29 = vpack.c.bf16 %v9722_v35, %v9723_v5  ;;  %6702 = vmatprep.subr.bf16.mxu0 %v7047_v44 }
0x1191   :  { %6635 = vmatmul.mubr.msk.bf16.vlgmr.msra.gmra.mxu0 %vm525_vm5, %v4040_v53  ;;  %6651 = vmatmul.mubr.msk.bf16.vlgmr.msra.gmra.mxu1 %vm525_vm5, %v9691_v31 }
0x1192   :  { %6638 = vmatprep.mubr.msk.bf16.mxu0 %vm525_vm5, %v4041_v1  ;;  %6654 = vmatprep.mubr.msk.bf16.mxu1 %vm525_vm5, %v9692_v51 }
0x1193   :  { %6667 = vmatpush3.bf16.msra.mxu1 %v3812_v27  ;;  %v6030_v27 = vsel %vm3957_vm12, 1.0, %v9690_v45  ;;  %6703 = vmatpush3.bf16.msra.mxu0 %v7047_v44 }
0x1194   :  { %6668 = vmatprep.subr.bf16.mxu1 %v3811_v28  ;;  %v4046_v9 = vpack.c.bf16 %v6031_v42, %v6030_v27  ;;  %6704 = vmatprep.subr.bf16.mxu0 %v7048_v49 }
0x1197   :  { %6669 = vmatpush3.bf16.msra.mxu1 %v3811_v28  ;;  %v9725_v28 = vld [vmem:[#allocation50_spill] sm:$0xff]  ;;  %6705 = vmatpush3.bf16.msra.mxu0 %v7048_v49 }
0x1198   :  { %v9727_v58 = vpack.c.bf16 %v9725_v28, %v9726_v7  ;;  %6706 = vmatprep.subr.bf16.mxu0 %v7049_v46 }
0x1199   :  { %6639 = vmatmul.mubr.msk.bf16.gmra.mxu0 %vm525_vm5, %v4042_v52  ;;  %6655 = vmatmul.mubr.msk.bf16.gmra.mxu1 %vm525_vm5, %v9693_v21  ;;  %v7053_v21 = vld [vmem:[%s9701_s0 + $0x8] sm:$0xff]  }
0x119a   :  { %6642 = vmatprep.mubr.msk.bf16.mxu0 %vm525_vm5, %v4043_v0  ;;  %6658 = vmatprep.mubr.msk.bf16.mxu1 %vm525_vm5, %v9694_v61 }
0x119b   :  { %6707 = vmatpush3.bf16.msra.mxu0 %v7049_v46 }
0x119c   :  { %6708 = vmatprep.subr.bf16.mxu0 %v7050_v59 }
0x119f   :  { %6709 = vmatpush3.bf16.msra.mxu0 %v7050_v59 }
0x11a0   :  { %6710 = vmatprep.subr.bf16.mxu0 %v7051_v22 }
0x11a1   :  { %6643 = vmatmul.mubr.msk.bf16.gmra.mxu0 %vm525_vm5, %v4044_v16  ;;  %6659 = vmatmul.mubr.msk.bf16.gmra.mxu1 %vm525_vm5, %v9695_v26 }
0x11a2   :  { %6646 = vmatprep.mubr.msk.bf16.mxu0 %vm525_vm5, %v4045_v23  ;;  %6662 = vmatprep.mubr.msk.bf16.mxu1 %vm525_vm5, %v9696_v39 }
0x11a3   :  { %6711 = vmatpush3.bf16.msra.mxu0 %v7051_v22 }
0x11a4   :  { %6712 = vmatprep.subr.bf16.mxu0 %v7052_v63 }
0x11a7   :  { %6713 = vmatpush3.bf16.msra.mxu0 %v7052_v63 }
0x11a8   :  { %6714 = vmatprep.subr.bf16.mxu0 %v7053_v21 }
0x11a9   :  { %6647 = vmatmul.mubr.msk.bf16.gmra.mxu0 %vm525_vm5, %v4046_v9  ;;  %6663 = vmatmul.mubr.msk.bf16.gmra.mxu1 %vm525_vm5, %v9697_v56 }
0x11aa   :  { %6670 = vmatprep.mubr.msk.bf16.mxu1 %vm525_vm5, %v9698_v36 }
0x11ab   :  { %6715 = vmatpush3.bf16.msra.mxu0 %v7053_v21 }
0x11ac   :  { %6716 = vmatprep.subr.bf16.mxu0 %v7054_v4 }
0x11af   :  { %6717 = vmatpush3.bf16.msra.mxu0 %v7054_v4 }
0x11b1   :  { %6671 = vmatmul.mubr.msk.bf16.vlgmr.msra.gmra.mxu1 %vm525_vm5, %v9699_v20 }
0x11b2   :  { %6674 = vmatprep.mubr.msk.bf16.mxu1 %vm525_vm5, %v9700_v13 }
0x11b9   :  { %6675 = vmatmul.mubr.msk.bf16.gmra.mxu1 %vm525_vm5, %v9702_v41 }
0x11ba   :  { %6678 = vmatprep.mubr.msk.bf16.mxu1 %vm525_vm5, %v9703_v33 }
0x11c1   :  { %6679 = vmatmul.mubr.msk.bf16.gmra.mxu1 %vm525_vm5, %v9704_v60 }
0x11c2   :  { %6682 = vmatprep.mubr.msk.bf16.mxu1 %vm525_vm5, %v9705_v37 }
0x11c9   :  { %6683 = vmatmul.mubr.msk.bf16.gmra.mxu1 %vm525_vm5, %v9706_v12 }
0x11ca   :  { %6686 = vmatprep.mubr.msk.bf16.mxu1 %vm525_vm5, %v9707_v40 }
0x11d1   :  { %6687 = vmatmul.mubr.msk.bf16.gmra.mxu1 %vm525_vm5, %v9709_v17 }
0x11d2   :  { %6690 = vmatprep.mubr.msk.bf16.mxu1 %vm525_vm5, %v9712_v2 }
0x11d9   :  { %6691 = vmatmul.mubr.msk.bf16.gmra.mxu1 %vm525_vm5, %v9715_v3 }
0x11da   :  { %6694 = vmatprep.mubr.msk.bf16.mxu1 %vm525_vm5, %v9718_v38 }
0x11e1   :  { %6695 = vmatmul.mubr.msk.bf16.gmra.mxu1 %vm525_vm5, %v9721_v25 }
0x11e2   :  { %6698 = vmatprep.mubr.msk.bf16.mxu1 %vm525_vm5, %v9724_v29 }
0x11e9   :  { %6699 = vmatmul.mubr.msk.bf16.gmra.mxu1 %vm525_vm5, %v9727_v58 }
0x1251   :  { %v9297_v45 = vpop.f32.mrf.mxu1 }
0x1253   :  { %v9300_v47 = vpop.f32.mrf.mxu1 }
0x1255   :  { %v9302_v30 = vpop.f32.mrf.mxu1 }
0x1257   :  { %v9305_v53 = vpop.f32.mrf.mxu1 }
0x1259   :  { %v9307_v1 = vpop.f32.mrf.mxu1 }
0x125b   :  { %v9311_v31 = vpop.f32.mrf.mxu1 }
0x125d   :  { %v9313_v51 = vpop.f32.mrf.mxu1 }
0x125f   :  { %v9316_v50 = vpop.f32.mrf.mxu1 }
0x1261   :  { %v9318_v18 = vpop.f32.mrf.mxu1 }
0x1263   :  { %v9321_v52 = vpop.f32.mrf.mxu1 }
0x1265   :  { %v9323_v54 = vpop.f32.mrf.mxu1 }
0x1267   :  { %v9325_v10 = vpop.f32.mrf.mxu1 }
0x1269   :  { %v9327_v0 = vpop.f32.mrf.mxu1 }
0x126b   :  { %v9330_v61 = vpop.f32.mrf.mxu1 }
0x126d   :  { %v9332_v11 = vpop.f32.mrf.mxu1 }
0x126f   :  { %v9335_v6 = vpop.f32.mrf.mxu1 }
0x1271   :  { %v6672_v24 = vpop.f32.mrf.mxu1 }
0x1273   :  { %v4586_v14 = vpop.f32.mrf.mxu1 }
0x1275   :  { %v6673_v57 = vpop.f32.mrf.mxu1 }
0x1276   :  { %v6936_v16 = vpack.i.bf16 %v6673_v57, %v6672_v24  ;;  %v6636_v24 = vpop.f32.mrf.mxu0  ;;  %v9729_v57 = vld [vmem:[#allocation35_spill] sm:$0xff] }
0x1277   :  { %v4589_v23 = vpop.f32.mrf.mxu1 }
0x1278   :  { %v6931_v26 = vpack.i.bf16 %v4589_v23, %v4586_v14  ;;  %6937 = vrot.lane.b32.xlu1 %v6936_v16, %s7432_s5  ;;  %v5959_v14 = vld [vmem:[%s9728_s21] ss:$0 sm:$0xff]  ;;  %v4377_v23 = vpop.f32.mrf.mxu0 }
0x1279   :  { %v6676_v39 = vpop.f32.mrf.mxu1  ;;  %v9355_v16 = vadd.f32 %v5959_v14, %v9729_v57 }
0x127a   :  { %6932 = vrot.lane.b32.xlu0 %v6931_v26, %s7432_s5  ;;  %v9730_v26 = vld [vmem:[#allocation37_spill] sm:$0xff] }
0x127b   :  { %v4602_v42 = vpop.f32.mrf.mxu1 }
0x127d   :  { %v6677_v27 = vpop.f32.mrf.mxu1 }
0x127e   :  { %v6946_v9 = vpack.i.bf16 %v6677_v27, %v6676_v39  ;;  %v9358_v39 = vadd.f32 %v5959_v14, %v9730_v26 }
0x127f   :  { %v4605_v56 = vpop.f32.mrf.mxu1 }
0x1280   :  { %v6941_v36 = vpack.i.bf16 %v4605_v56, %v4602_v42  ;;  %6947 = vrot.lane.b32.xlu1 %v6946_v9, %s7432_s5  ;;  %v9731_v42 = vld [vmem:[#allocation34_spill] sm:$0xff]  ;;  %v2330_v9 = vsel %vm206_vm1, %v9355_v16, -inf  ;;  %v6637_v56 = vpop.f32.mrf.mxu0 }
0x1281   :  { %v6680_v20 = vpop.f32.mrf.mxu1  ;;  %v9361_v27 = vadd.f32 %v9731_v42, %v5959_v14  ;;  %v7057_v42 = vld [vmem:[%s9733_s25 + $0x8] sm:$0xff]  }
0x1282   :  { %6942 = vrot.lane.b32.xlu0 %v6941_v36, %s7432_s5  ;;  %v2333_v36 = vsel %vm206_vm1, %v9358_v39, -inf }
0x1283   :  { %v4618_v13 = vpop.f32.mrf.mxu1 }
0x1285   :  { %v6681_v41 = vpop.f32.mrf.mxu1 }
0x1286   :  { %v6956_v33 = vpack.i.bf16 %v6681_v41, %v6680_v20  ;;  %v9732_v20 = vld [vmem:[#allocation36_spill] sm:$0xff]  ;;  %v2336_v41 = vsel %vm206_vm1, %v9361_v27, -inf }
0x1287   :  { %v4621_v60 = vpop.f32.mrf.mxu1 }
0x1288   :  { %v6951_v37 = vpack.i.bf16 %v4621_v60, %v4618_v13  ;;  %6957 = vrot.lane.b32.xlu1 %v6956_v33, %s7432_s5  ;;  %v9368_v13 = vadd.f32 %v9732_v20, %v5959_v14  ;;  %v4380_v33 = vpop.f32.mrf.mxu0 }
0x1289   :  { %v6684_v12 = vpop.f32.mrf.mxu1 }
0x128a   :  { %6952 = vrot.lane.b32.xlu0 %v6951_v37, %s7432_s5  ;;  %v2339_v60 = vsel %vm206_vm1, %v9368_v13, -inf  ;;  %v6640_v37 = vpop.f32.mrf.mxu0 }
0x128b   :  { %v4634_v40 = vpop.f32.mrf.mxu1 }
0x128d   :  { %v6685_v62 = vpop.f32.mrf.mxu1 }
0x128e   :  { %v6966_v17 = vpack.i.bf16 %v6685_v62, %v6684_v12  ;;  %v4393_v12 = vpop.f32.mrf.mxu0 }
0x128f   :  { %v4637_v48 = vpop.f32.mrf.mxu1 }
0x1290   :  { %v6961_v34 = vpack.i.bf16 %v4637_v48, %v4634_v40  ;;  %6967 = vrot.lane.b32.xlu1 %v6966_v17, %s7432_s5  ;;  %v6641_v40 = vpop.f32.mrf.mxu0 }
0x1291   :  { %v6688_v2 = vpop.f32.mrf.mxu1 }
0x1292   :  { %6962 = vrot.lane.b32.xlu0 %v6961_v34, %s7432_s5  ;;  %v4396_v62 = vpop.f32.mrf.mxu0 }
0x1293   :  { %v4650_v55 = vpop.f32.mrf.mxu1 }
0x1294   :  { %v6644_v17 = vpop.f32.mrf.mxu0 }
0x1295   :  { %v6689_v19 = vpop.f32.mrf.mxu1 }
0x1296   :  { %v6976_v3 = vpack.i.bf16 %v6689_v19, %v6688_v2 }
0x1297   :  { %v4653_v32 = vpop.f32.mrf.mxu1 }
0x1298   :  { %v6971_v43 = vpack.i.bf16 %v4653_v32, %v4650_v55  ;;  %6977 = vrot.lane.b32.xlu1 %v6976_v3, %s7432_s5  ;;  %v4409_v32 = vpop.f32.mrf.mxu0 }
0x1299   :  { %v6692_v38 = vpop.f32.mrf.mxu1 }
0x129a   :  { %6972 = vrot.lane.b32.xlu0 %v6971_v43, %s7432_s5 }
0x129b   :  { %v4666_v15 = vpop.f32.mrf.mxu1 }
0x129d   :  { %v6693_v8 = vpop.f32.mrf.mxu1 }
0x129e   :  { %v6986_v25 = vpack.i.bf16 %v6693_v8, %v6692_v38 }
0x129f   :  { %v4669_v35 = vpop.f32.mrf.mxu1 }
0x12a0   :  { %v6981_v5 = vpack.i.bf16 %v4669_v35, %v4666_v15  ;;  %6987 = vrot.lane.b32.xlu1 %v6986_v25, %s7432_s5 }
0x12a1   :  { %v6696_v29 = vpop.f32.mrf.mxu1 }
0x12a2   :  { %6982 = vrot.lane.b32.xlu0 %v6981_v5, %s7432_s5  ;;  %v6645_v5 = vpop.f32.mrf.mxu0 }
0x12a3   :  { %v4682_v28 = vpop.f32.mrf.mxu1 }
0x12a5   :  { %v6697_v7 = vpop.f32.mrf.mxu1 }
0x12a6   :  { %v6996_v58 = vpack.i.bf16 %v6697_v7, %v6696_v29 }
0x12a7   :  { %v4685_v44 = vpop.f32.mrf.mxu1 }
0x12a8   :  { %v6991_v49 = vpack.i.bf16 %v4685_v44, %v4682_v28  ;;  %6997 = vrot.lane.b32.xlu1 %v6996_v58, %s7432_s5 }
0x12a9   :  { %v6700_v46 = vpop.f32.mrf.mxu1 }
0x12aa   :  { %6992 = vrot.lane.b32.xlu0 %v6991_v49, %s7432_s5 }
0x12ab   :  { %v4698_v59 = vpop.f32.mrf.mxu1 }
0x12ad   :  { %v6701_v22 = vpop.f32.mrf.mxu1 }
0x12ae   :  { %v7006_v63 = vpack.i.bf16 %v6701_v22, %v6700_v46  ;;  %v4412_v46 = vpop.f32.mrf.mxu0 }
0x12af   :  { %v4701_v21 = vpop.f32.mrf.mxu1 }
0x12b0   :  { %v7001_v4 = vpack.i.bf16 %v4701_v21, %v4698_v59  ;;  %7007 = vrot.lane.b32.xlu1 %v7006_v63, %s7432_s5  ;;  %v7055_v63 = vld [vmem:[%s9733_s25 + $0x18] sm:$0xff]   ;;  %v7056_v21 = vld [vmem:[%s9733_s25 + $0x10] sm:$0xff]  }
0x12b1   :  { %6750 = vmatprep.subr.bf16.mxu1 %v7055_v63 }
0x12b2   :  { %7002 = vrot.lane.b32.xlu0 %v7001_v4, %s7432_s5  ;;  %6751 = vmatpush3.bf16.msra.mxu1 %v7055_v63 }
0x12b3   :  { %6752 = vmatprep.subr.bf16.mxu1 %v7056_v21 }
0x12b6   :  { %6753 = vmatpush3.bf16.msra.mxu1 %v7056_v21 }
0x12b7   :  { %6754 = vmatprep.subr.bf16.mxu1 %v7057_v42 }
0x12ba   :  { %6755 = vmatpush3.bf16.msra.mxu1 %v7057_v42 }
0x12d1   :  { %2331 = vmax.xlane.f32.xlu0 %v2330_v9 }
0x12d4   :  { %2334 = vmax.xlane.f32.xlu1 %v2333_v36 }
0x12d5   :  { %2337 = vmax.xlane.f32.xlu0 %v2336_v41 }
0x12d9   :  { %2340 = vmax.xlane.f32.xlu0 %v2339_v60 }
0x12ea   :  { %v6938_v48 = vpop.permute.xlu1 %6937 }
0x12eb   :  { %v6940_v34 = vunpack.i.h.bf16 %v6938_v48  ;;  %v6939_v2 = vunpack.i.l.bf16 %v6938_v48 }
0x12ec   :  { %v6933_v55 = vpop.permute.xlu0 %6932 }
0x12ed   :  { %v6935_v19 = vunpack.i.h.bf16 %v6933_v55  ;;  %v6934_v3 = vunpack.i.l.bf16 %v6933_v55  ;;  %v4844_v43 = vsel %vm300_vm2, %v6637_v56, %v6940_v34  ;;  %v4843_v38 = vsel %vm300_vm2, %v6636_v24, %v6939_v2 }
0x12ee   :  { %v4905_v35 = vpack.c.bf16 %v4844_v43, %v4843_v38 }
0x12ef   :  { %v4841_v15 = vsel %vm300_vm2, %v4377_v23, %v6934_v3  ;;  %v4842_v8 = vsel %vm300_vm2, %v4380_v33, %v6935_v19  ;;  %v6648_v23 = vpop.f32.mrf.mxu0 }
0x12f0   :  { %v4904_v25 = vpack.c.bf16 %v4842_v8, %v4841_v15 }
0x12f1   :  { %v4425_v33 = vpop.f32.mrf.mxu0 }
0x12f2   :  { %6718 = vmatprep.mubr.bf16.mxu0 %v4904_v25  ;;  %v6948_v29 = vpop.permute.xlu1 %6947 }
0x12f3   :  { %v6950_v28 = vunpack.i.h.bf16 %v6948_v29  ;;  %v6949_v7 = vunpack.i.l.bf16 %v6948_v29  ;;  %6719 = vmatmul.mubr.bf16.vlgmr.msra.gmra.mxu0 %v4905_v35  ;;  %v6649_v2 = vpop.f32.mrf.mxu0 }
0x12f4   :  { %v6943_v58 = vpop.permute.xlu0 %6942 }
0x12f5   :  { %v6945_v44 = vunpack.i.h.bf16 %v6943_v58  ;;  %v6944_v49 = vunpack.i.l.bf16 %v6943_v58  ;;  %v4847_v59 = vsel %vm300_vm2, %v6640_v37, %v6949_v7  ;;  %v4848_v22 = vsel %vm300_vm2, %v6641_v40, %v6950_v28  ;;  %v4428_v15 = vpop.f32.mrf.mxu0 }
0x12f6   :  { %v4907_v57 = vpack.c.bf16 %v4848_v22, %v4847_v59 }
0x12f7   :  { %v4845_v4 = vsel %vm300_vm2, %v4393_v12, %v6944_v49  ;;  %v4846_v24 = vsel %vm300_vm2, %v4396_v62, %v6945_v44  ;;  %v7058_v12 = vld [vmem:[%s9733_s25] sm:$0xff]  }
0x12f8   :  { %v4906_v14 = vpack.c.bf16 %v4846_v24, %v4845_v4  ;;  %6756 = vmatprep.subr.bf16.mxu1 %v7058_v12 }
0x12f9   :  { %6757 = vmatpush3.bf16.msra.mxu1 %v7058_v12 }
0x12fa   :  { %6722 = vmatprep.mubr.bf16.mxu0 %v4906_v14  ;;  %v6958_v26 = vpop.permute.xlu1 %6957 }
0x12fb   :  { %v6960_v9 = vunpack.i.h.bf16 %v6958_v26  ;;  %v6959_v56 = vunpack.i.l.bf16 %v6958_v26  ;;  %6723 = vmatmul.mubr.bf16.gmra.mxu0 %v4907_v57 }
0x12fc   :  { %v6953_v36 = vpop.permute.xlu0 %6952 }
0x12fd   :  { %v6955_v20 = vunpack.i.h.bf16 %v6953_v36  ;;  %v6954_v41 = vunpack.i.l.bf16 %v6953_v36  ;;  %v4851_v60 = vsel %vm300_vm2, %v6644_v17, %v6959_v56  ;;  %v4852_v37 = vsel %vm300_vm2, %v6645_v5, %v6960_v9 }
0x12fe   :  { %v4909_v34 = vpack.c.bf16 %v4852_v37, %v4851_v60 }
0x12ff   :  { %v4849_v40 = vsel %vm300_vm2, %v4409_v32, %v6954_v41  ;;  %v4850_v62 = vsel %vm300_vm2, %v4412_v46, %v6955_v20 }
0x1300   :  { %v4908_v48 = vpack.c.bf16 %v4850_v62, %v4849_v40 }
0x1302   :  { %6726 = vmatprep.mubr.bf16.mxu0 %v4908_v48  ;;  %v6968_v55 = vpop.permute.xlu1 %6967 }
0x1303   :  { %v6970_v19 = vunpack.i.h.bf16 %v6968_v55  ;;  %v6969_v3 = vunpack.i.l.bf16 %v6968_v55  ;;  %6727 = vmatmul.mubr.bf16.gmra.mxu0 %v4909_v34 }
0x1304   :  { %v6963_v43 = vpop.permute.xlu0 %6962 }
0x1305   :  { %v6965_v17 = vunpack.i.h.bf16 %v6963_v43  ;;  %v6964_v38 = vunpack.i.l.bf16 %v6963_v43  ;;  %v4855_v8 = vsel %vm300_vm2, %v6648_v23, %v6969_v3  ;;  %v4856_v32 = vsel %vm300_vm2, %v6649_v2, %v6970_v19 }
0x1306   :  { %v4911_v29 = vpack.c.bf16 %v4856_v32, %v4855_v8 }
0x1307   :  { %v4853_v25 = vsel %vm300_vm2, %v4425_v33, %v6964_v38  ;;  %v4854_v35 = vsel %vm300_vm2, %v4428_v15, %v6965_v17 }
0x1308   :  { %v4910_v5 = vpack.c.bf16 %v4854_v35, %v4853_v25 }
0x130a   :  { %6730 = vmatprep.mubr.bf16.mxu0 %v4910_v5  ;;  %v6978_v28 = vpop.permute.xlu1 %6977 }
0x130b   :  { %v6980_v7 = vunpack.i.h.bf16 %v6978_v28  ;;  %v6979_v58 = vunpack.i.l.bf16 %v6978_v28  ;;  %6731 = vmatmul.mubr.bf16.gmra.mxu0 %v4911_v29 }
0x130c   :  { %v6973_v44 = vpop.permute.xlu0 %6972 }
0x130d   :  { %v6975_v49 = vunpack.i.h.bf16 %v6973_v44  ;;  %v6974_v46 = vunpack.i.l.bf16 %v6973_v44  ;;  %v4859_v59 = vsel %vm300_vm2, %v9297_v45, %v6979_v58  ;;  %v4860_v22 = vsel %vm300_vm2, %v9302_v30, %v6980_v7 }
0x130e   :  { %v4913_v24 = vpack.c.bf16 %v4860_v22, %v4859_v59 }
0x130f   :  { %v4857_v63 = vsel %vm300_vm2, %v9300_v47, %v6974_v46  ;;  %v4858_v21 = vsel %vm300_vm2, %v9305_v53, %v6975_v49  ;;  %v7059_v49 = vld [vmem:[%s7645_s27 + $0x8] sm:$0xff]   ;;  %v7060_v46 = vld [vmem:[%s7645_s27] sm:$0xff]   ;;  %s9735_s27 = sld [smem:[#allocation33_spill]] }
0x1310   :  { %v4912_v4 = vpack.c.bf16 %v4858_v21, %v4857_v63  ;;  %6790 = vmatprep.subr.bf16.mxu0 %v7059_v49  ;;  %v9449_v63 = vld [vmem:[%s9734_s29] ss:$0 sm:$0xff] }
0x1311   :  { %6791 = vmatpush3.bf16.msra.mxu0 %v7059_v49 }
0x1312   :  { %6734 = vmatprep.mubr.bf16.mxu0 %v4912_v4  ;;  %v6988_v14 = vpop.permute.xlu1 %6987  ;;  %6792 = vmatprep.subr.bf16.mxu0 %v7060_v46 }
0x1313   :  { %v6990_v57 = vunpack.i.h.bf16 %v6988_v14  ;;  %v6989_v23 = vunpack.i.l.bf16 %v6988_v14  ;;  %6735 = vmatmul.mubr.bf16.gmra.mxu0 %v4913_v24 }
0x1314   :  { %v6983_v26 = vpop.permute.xlu0 %6982 }
0x1315   :  { %v6985_v42 = vunpack.i.h.bf16 %v6983_v26  ;;  %v6984_v9 = vunpack.i.l.bf16 %v6983_v26  ;;  %v4863_v45 = vsel %vm300_vm2, %v9307_v1, %v6989_v23  ;;  %v4864_v30 = vsel %vm300_vm2, %v9313_v51, %v6990_v57  ;;  %6793 = vmatpush3.bf16.msra.mxu0 %v7060_v46 }
0x1316   :  { %v4915_v36 = vpack.c.bf16 %v4864_v30, %v4863_v45 }
0x1317   :  { %v4861_v47 = vsel %vm300_vm2, %v9311_v31, %v6984_v9  ;;  %v4862_v53 = vsel %vm300_vm2, %v9316_v50, %v6985_v42 }
0x1318   :  { %v4914_v56 = vpack.c.bf16 %v4862_v53, %v4861_v47 }
0x131a   :  { %6738 = vmatprep.mubr.bf16.mxu0 %v4914_v56  ;;  %v6998_v20 = vpop.permute.xlu1 %6997 }
0x131b   :  { %v7000_v41 = vunpack.i.h.bf16 %v6998_v20  ;;  %v6999_v33 = vunpack.i.l.bf16 %v6998_v20  ;;  %6739 = vmatmul.mubr.bf16.gmra.mxu0 %v4915_v36 }
0x131c   :  { %v6993_v60 = vpop.permute.xlu0 %6992 }
0x131d   :  { %v6995_v37 = vunpack.i.h.bf16 %v6993_v60  ;;  %v6994_v12 = vunpack.i.l.bf16 %v6993_v60  ;;  %v4867_v1 = vsel %vm300_vm2, %v9318_v18, %v6999_v33  ;;  %v4868_v51 = vsel %vm300_vm2, %v9323_v54, %v7000_v41 }
0x131e   :  { %v4917_v62 = vpack.c.bf16 %v4868_v51, %v4867_v1 }
0x131f   :  { %v4865_v31 = vsel %vm300_vm2, %v9321_v52, %v6994_v12  ;;  %v4866_v50 = vsel %vm300_vm2, %v9325_v10, %v6995_v37 }
0x1320   :  { %v4916_v40 = vpack.c.bf16 %v4866_v50, %v4865_v31 }
0x1322   :  { %6742 = vmatprep.mubr.bf16.mxu0 %v4916_v40  ;;  %v7008_v48 = vpop.permute.xlu1 %7007 }
0x1323   :  { %v7010_v34 = vunpack.i.h.bf16 %v7008_v48  ;;  %v7009_v2 = vunpack.i.l.bf16 %v7008_v48  ;;  %6743 = vmatmul.mubr.bf16.gmra.mxu0 %v4917_v62 }
0x1324   :  { %v7003_v55 = vpop.permute.xlu0 %7002 }
0x1325   :  { %v7005_v19 = vunpack.i.h.bf16 %v7003_v55  ;;  %v7004_v3 = vunpack.i.l.bf16 %v7003_v55  ;;  %v4871_v18 = vsel %vm300_vm2, %v9327_v0, %v7009_v2  ;;  %v4872_v54 = vsel %vm300_vm2, %v9332_v11, %v7010_v34 }
0x1326   :  { %v4919_v17 = vpack.c.bf16 %v4872_v54, %v4871_v18 }
0x1327   :  { %v4869_v52 = vsel %vm300_vm2, %v9330_v61, %v7004_v3  ;;  %v4870_v10 = vsel %vm300_vm2, %v9335_v6, %v7005_v19 }
0x1328   :  { %v4918_v43 = vpack.c.bf16 %v4870_v10, %v4869_v52 }
0x132a   :  { %6746 = vmatprep.mubr.bf16.mxu0 %v4918_v43 }
0x132b   :  { %6747 = vmatmul.mubr.bf16.gmra.mxu0 %v4919_v17 }
0x135a   :  { %v2332_v38 = vpop.xlane.xlu0 %2331 }
0x135b   :  { %v2342_v15 = vsub.f32 %v9355_v16, %v2332_v38 }
0x135d   :  { %v2346_v8 = vmul.f32 1.442695, %v2342_v15  ;;  %v2335_v32 = vpop.xlane.xlu1 %2334 }
0x135e   :  { %v2343_v0 = vsub.f32 %v9358_v39, %v2335_v32  ;;  %v2338_v25 = vpop.xlane.xlu0 %2337 }
0x135f   :  { %7309 = vpow2.f32 %v2346_v8  ;;  %v2344_v11 = vsub.f32 %v9361_v27, %v2338_v25 }
0x1360   :  { %v2348_v35 = vmul.f32 1.442695, %v2343_v0 }
0x1361   :  { %v2350_v61 = vmul.f32 1.442695, %v2344_v11 }
0x1362   :  { %7311 = vpow2.f32 %v2348_v35  ;;  %v2341_v5 = vpop.xlane.xlu0 %2340 }
0x1363   :  { %7313 = vpow2.f32 %v2350_v61  ;;  %v2345_v6 = vsub.f32 %v9368_v13, %v2341_v5 }
0x1365   :  { %v2352_v29 = vmul.f32 1.442695, %v2345_v6 }
0x1367   :  { %7315 = vpow2.f32 %v2352_v29 }
0x136c   :  { %v9430_v16 = vpop.eup %7309 }
0x136d   :  { %v2354_v39 = vsel %vm206_vm1, %v9430_v16, 0.0 }
0x136e   :  { %2355 = vadd.xlane.f32.xlu1 %v2354_v39 }
0x136f   :  { %v9434_v28 = vpop.eup %7311 }
0x1370   :  { %v9436_v27 = vpop.eup %7313  ;;  %v2357_v7 = vsel %vm206_vm1, %v9434_v28, 0.0 }
0x1371   :  { %2358 = vadd.xlane.f32.xlu0 %v2357_v7  ;;  %v2360_v13 = vsel %vm206_vm1, %v9436_v27, 0.0 }
0x1372   :  { %2361 = vadd.xlane.f32.xlu1 %v2360_v13 }
0x1374   :  { %v9442_v58 = vpop.eup %7315 }
0x1375   :  { %v2363_v44 = vsel %vm206_vm1, %v9442_v58, 0.0 }
0x1376   :  { %2364 = vadd.xlane.f32.xlu0 %v2363_v44 }
0x13b3   :  { %v6720_v59 = vpop.f32.mrf.mxu0 }
0x13b4   :  { %v5017_v14 = vadd.f32 %v6720_v59, %v9449_v63 }
0x13b5   :  { %v5008_v22 = vpop.f32.mrf.mxu0 }
0x13b6   :  { %v5009_v4 = vadd.f32 %v9449_v63, %v5008_v22  ;;  %v5137_v30 = vmax.f32 %v5017_v14, 0.0 }
0x13b7   :  { %v6721_v21 = vpop.f32.mrf.mxu0 }
0x13b8   :  { %v5020_v24 = vadd.f32 %v6721_v21, %v9449_v63  ;;  %v5135_v9 = vmax.f32 %v5009_v4, 0.0 }
0x13b9   :  { %v5011_v57 = vpop.f32.mrf.mxu0 }
0x13ba   :  { %v5012_v23 = vadd.f32 %v9449_v63, %v5011_v57  ;;  %v5138_v26 = vmax.f32 %v5020_v24, 0.0 }
0x13bb   :  { %v6724_v42 = vpop.f32.mrf.mxu0 }
0x13bc   :  { %v5136_v45 = vmax.f32 %v5012_v23, 0.0  ;;  %v5168_v56 = vpack.c.bf16 %v5138_v26, %v5137_v30  ;;  %v5033_v33 = vadd.f32 %v6724_v42, %v9449_v63 }
0x13bd   :  { %v5024_v47 = vpop.f32.mrf.mxu0 }
0x13be   :  { %v5167_v53 = vpack.c.bf16 %v5136_v45, %v5135_v9  ;;  %v5025_v20 = vadd.f32 %v9449_v63, %v5024_v47  ;;  %v5141_v50 = vmax.f32 %v5033_v33, 0.0 }
0x13bf   :  { %v6725_v36 = vpop.f32.mrf.mxu0 }
0x13c0   :  { %v5036_v41 = vadd.f32 %v6725_v36, %v9449_v63  ;;  %6758 = vmatprep.mubr.msk.bf16.mxu1 %vm300_vm2, %v5167_v53  ;;  %v5139_v51 = vmax.f32 %v5025_v20, 0.0 }
0x13c1   :  { %v5027_v60 = vpop.f32.mrf.mxu0  ;;  %6759 = vmatmul.mubr.msk.bf16.vlgmr.msra.gmra.mxu1 %vm300_vm2, %v5168_v56 }
0x13c2   :  { %v5028_v37 = vadd.f32 %v9449_v63, %v5027_v60  ;;  %v5142_v12 = vmax.f32 %v5036_v41, 0.0 }
0x13c3   :  { %v6728_v1 = vpop.f32.mrf.mxu0 }
0x13c4   :  { %v5140_v31 = vmax.f32 %v5028_v37, 0.0  ;;  %v5170_v48 = vpack.c.bf16 %v5142_v12, %v5141_v50  ;;  %v5049_v19 = vadd.f32 %v6728_v1, %v9449_v63 }
0x13c5   :  { %v5040_v40 = vpop.f32.mrf.mxu0 }
0x13c6   :  { %v5169_v62 = vpack.c.bf16 %v5140_v31, %v5139_v51  ;;  %v5041_v2 = vadd.f32 %v9449_v63, %v5040_v40  ;;  %v5145_v17 = vmax.f32 %v5049_v19, 0.0 }
0x13c7   :  { %v6729_v34 = vpop.f32.mrf.mxu0 }
0x13c8   :  { %v5052_v55 = vadd.f32 %v6729_v34, %v9449_v63  ;;  %6762 = vmatprep.mubr.msk.bf16.mxu1 %vm300_vm2, %v5169_v62  ;;  %v5143_v10 = vmax.f32 %v5041_v2, 0.0 }
0x13c9   :  { %v5043_v3 = vpop.f32.mrf.mxu0  ;;  %6763 = vmatmul.mubr.msk.bf16.gmra.mxu1 %vm300_vm2, %v5170_v48 }
0x13ca   :  { %v5044_v18 = vadd.f32 %v9449_v63, %v5043_v3  ;;  %v5146_v54 = vmax.f32 %v5052_v55, 0.0 }
0x13cb   :  { %v6732_v52 = vpop.f32.mrf.mxu0 }
0x13cc   :  { %v5144_v43 = vmax.f32 %v5044_v18, 0.0  ;;  %v5172_v8 = vpack.c.bf16 %v5146_v54, %v5145_v17  ;;  %v5065_v11 = vadd.f32 %v6732_v52, %v9449_v63 }
0x13cd   :  { %v5056_v38 = vpop.f32.mrf.mxu0 }
0x13ce   :  { %v5171_v15 = vpack.c.bf16 %v5144_v43, %v5143_v10  ;;  %v5057_v0 = vadd.f32 %v9449_v63, %v5056_v38  ;;  %v5149_v7 = vmax.f32 %v5065_v11, 0.0 }
0x13cf   :  { %v6733_v32 = vpop.f32.mrf.mxu0 }
0x13d0   :  { %v5068_v25 = vadd.f32 %v6733_v32, %v9449_v63  ;;  %6766 = vmatprep.mubr.msk.bf16.mxu1 %vm300_vm2, %v5171_v15  ;;  %v5147_v29 = vmax.f32 %v5057_v0, 0.0 }
0x13d1   :  { %v5059_v35 = vpop.f32.mrf.mxu0  ;;  %6767 = vmatmul.mubr.msk.bf16.gmra.mxu1 %vm300_vm2, %v5172_v8 }
0x13d2   :  { %v5060_v61 = vadd.f32 %v9449_v63, %v5059_v35  ;;  %v5150_v5 = vmax.f32 %v5068_v25, 0.0 }
0x13d3   :  { %v6736_v6 = vpop.f32.mrf.mxu0 }
0x13d4   :  { %v5148_v39 = vmax.f32 %v5060_v61, 0.0  ;;  %v5174_v49 = vpack.c.bf16 %v5150_v5, %v5149_v7  ;;  %v5081_v21 = vadd.f32 %v6736_v6, %v9449_v63 }
0x13d5   :  { %v5072_v13 = vpop.f32.mrf.mxu0 }
0x13d6   :  { %v5173_v44 = vpack.c.bf16 %v5148_v39, %v5147_v29  ;;  %v5073_v59 = vadd.f32 %v9449_v63, %v5072_v13  ;;  %v5153_v42 = vmax.f32 %v5081_v21, 0.0 }
0x13d7   :  { %v6737_v46 = vpop.f32.mrf.mxu0 }
0x13d8   :  { %v5084_v22 = vadd.f32 %v6737_v46, %v9449_v63  ;;  %6770 = vmatprep.mubr.msk.bf16.mxu1 %vm300_vm2, %v5173_v44  ;;  %v5151_v23 = vmax.f32 %v5073_v59, 0.0 }
0x13d9   :  { %v5075_v4 = vpop.f32.mrf.mxu0  ;;  %6771 = vmatmul.mubr.msk.bf16.gmra.mxu1 %vm300_vm2, %v5174_v49 }
0x13da   :  { %v5076_v24 = vadd.f32 %v9449_v63, %v5075_v4  ;;  %v5154_v14 = vmax.f32 %v5084_v22, 0.0 }
0x13db   :  { %v6740_v57 = vpop.f32.mrf.mxu0 }
0x13dc   :  { %v5152_v26 = vmax.f32 %v5076_v24, 0.0  ;;  %v5176_v30 = vpack.c.bf16 %v5154_v14, %v5153_v42  ;;  %v5097_v36 = vadd.f32 %v6740_v57, %v9449_v63 }
0x13dd   :  { %v5088_v9 = vpop.f32.mrf.mxu0 }
0x13de   :  { %v5175_v45 = vpack.c.bf16 %v5152_v26, %v5151_v23  ;;  %v5089_v53 = vadd.f32 %v9449_v63, %v5088_v9  ;;  %v5157_v1 = vmax.f32 %v5097_v36, 0.0  ;;  %v9508_v9 = vld [vmem:[%s9735_s27] ss:$0 sm:$0xff] }
0x13df   :  { %v6741_v47 = vpop.f32.mrf.mxu0 }
0x13e0   :  { %v5100_v56 = vadd.f32 %v6741_v47, %v9449_v63  ;;  %6774 = vmatprep.mubr.msk.bf16.mxu1 %vm300_vm2, %v5175_v45  ;;  %v5155_v37 = vmax.f32 %v5089_v53, 0.0 }
0x13e1   :  { %v5091_v20 = vpop.f32.mrf.mxu0  ;;  %6775 = vmatmul.mubr.msk.bf16.gmra.mxu1 %vm300_vm2, %v5176_v30 }
0x13e2   :  { %v5092_v41 = vadd.f32 %v9449_v63, %v5091_v20  ;;  %v5158_v33 = vmax.f32 %v5100_v56, 0.0 }
0x13e3   :  { %v6744_v60 = vpop.f32.mrf.mxu0 }
0x13e4   :  { %v5156_v12 = vmax.f32 %v5092_v41, 0.0  ;;  %v5178_v50 = vpack.c.bf16 %v5158_v33, %v5157_v1  ;;  %v5113_v34 = vadd.f32 %v6744_v60, %v9449_v63 }
0x13e5   :  { %v5104_v51 = vpop.f32.mrf.mxu0 }
0x13e6   :  { %v5177_v31 = vpack.c.bf16 %v5156_v12, %v5155_v37  ;;  %v5105_v62 = vadd.f32 %v9449_v63, %v5104_v51  ;;  %v5161_v52 = vmax.f32 %v5113_v34, 0.0 }
0x13e7   :  { %v6745_v40 = vpop.f32.mrf.mxu0 }
0x13e8   :  { %v5116_v48 = vadd.f32 %v6745_v40, %v9449_v63  ;;  %6778 = vmatprep.mubr.msk.bf16.mxu1 %vm300_vm2, %v5177_v31  ;;  %v5159_v18 = vmax.f32 %v5105_v62, 0.0 }
0x13e9   :  { %v5107_v2 = vpop.f32.mrf.mxu0  ;;  %6779 = vmatmul.mubr.msk.bf16.gmra.mxu1 %vm300_vm2, %v5178_v50 }
0x13ea   :  { %v5108_v55 = vadd.f32 %v9449_v63, %v5107_v2  ;;  %v5162_v19 = vmax.f32 %v5116_v48, 0.0 }
0x13eb   :  { %v6748_v3 = vpop.f32.mrf.mxu0 }
0x13ec   :  { %v5160_v54 = vmax.f32 %v5108_v55, 0.0  ;;  %v5180_v17 = vpack.c.bf16 %v5162_v19, %v5161_v52  ;;  %v5129_v32 = vadd.f32 %v6748_v3, %v9449_v63 }
0x13ed   :  { %v5120_v10 = vpop.f32.mrf.mxu0 }
0x13ee   :  { %v5179_v43 = vpack.c.bf16 %v5160_v54, %v5159_v18  ;;  %v5121_v15 = vadd.f32 %v9449_v63, %v5120_v10  ;;  %v5165_v5 = vmax.f32 %v5129_v32, 0.0 }
0x13ef   :  { %v6749_v38 = vpop.f32.mrf.mxu0 }
0x13f0   :  { %v5132_v8 = vadd.f32 %v6749_v38, %v9449_v63  ;;  %6782 = vmatprep.mubr.msk.bf16.mxu1 %vm300_vm2, %v5179_v43  ;;  %v5163_v35 = vmax.f32 %v5121_v15, 0.0 }
0x13f1   :  { %v5123_v0 = vpop.f32.mrf.mxu0  ;;  %6783 = vmatmul.mubr.msk.bf16.gmra.mxu1 %vm300_vm2, %v5180_v17 }
0x13f2   :  { %v5124_v25 = vadd.f32 %v9449_v63, %v5123_v0  ;;  %v5166_v11 = vmax.f32 %v5132_v8, 0.0 }
0x13f4   :  { %v5164_v61 = vmax.f32 %v5124_v25, 0.0  ;;  %v5182_v29 = vpack.c.bf16 %v5166_v11, %v5165_v5 }
0x13f6   :  { %v5181_v6 = vpack.c.bf16 %v5164_v61, %v5163_v35 }
0x13f7   :  { %v2356_v39 = vpop.xlane.xlu1 %2355 }
0x13f8   :  { %7317 = vrcp.f32 %v2356_v39  ;;  %6786 = vmatprep.mubr.msk.bf16.mxu1 %vm300_vm2, %v5181_v6 }
0x13f9   :  { %6787 = vmatmul.mubr.msk.bf16.gmra.mxu1 %vm300_vm2, %v5182_v29 }
0x13fa   :  { %v2359_v7 = vpop.xlane.xlu0 %2358 }
0x13fb   :  { %7319 = vrcp.f32 %v2359_v7  ;;  %v2362_v13 = vpop.xlane.xlu1 %2361 }
0x13fc   :  { %7321 = vrcp.f32 %v2362_v13 }
0x13ff   :  { %v2365_v44 = vpop.xlane.xlu0 %2364 }
0x1400   :  { %7323 = vrcp.f32 %v2365_v44 }
0x1405   :  { %v7318_v49 = vpop.eup %7317 }
0x1406   :  { %v2370_v63 = vmul.f32 %v7318_v49, %v9430_v16 }
0x1408   :  { %v7320_v46 = vpop.eup %7319  ;;  %v2374_v59 = vsel %vm206_vm1, %v2370_v63, 0.0 }
0x1409   :  { %v7322_v22 = vpop.eup %7321  ;;  %v2371_v21 = vmul.f32 %v7320_v46, %v9434_v28  ;;  %2378 = vst [vmem:[#allocation4] sm:$0xff] %v2374_v59 }
0x140a   :  { %v2372_v4 = vmul.f32 %v7322_v22, %v9436_v27 }
0x140b   :  { %v2375_v24 = vsel %vm206_vm1, %v2371_v21, 0.0 }
0x140c   :  { %v2376_v14 = vsel %vm206_vm1, %v2372_v4, 0.0  ;;  %2379 = vst [vmem:[#allocation4 + $0x8] sm:$0xff] %v2375_v24 }
0x140d   :  { %v7324_v57 = vpop.eup %7323  ;;  %2380 = vst [vmem:[#allocation4 + $0x10] sm:$0xff] %v2376_v14 }
0x140e   :  { %v2373_v23 = vmul.f32 %v7324_v57, %v9442_v58 }
0x1410   :  { %v2377_v16 = vsel %vm206_vm1, %v2373_v23, 0.0 }
0x1411   :  { %2381 = vst [vmem:[#allocation4 + $0x18] sm:$0xff] %v2377_v16 }
0x1481   :  { %v6760_v26 = vpop.f32.mrf.mxu1 }
0x1482   :  { %v5304_v30 = vadd.f32 %v6760_v26, %v9508_v9 }
0x1483   :  { %v5295_v42 = vpop.f32.mrf.mxu1 }
0x1484   :  { %v5296_v45 = vadd.f32 %v9508_v9, %v5295_v42  ;;  %v5424_v41 = vmax.f32 %v5304_v30, 0.0 }
0x1485   :  { %v6761_v28 = vpop.f32.mrf.mxu1 }
0x1486   :  { %v5307_v27 = vadd.f32 %v6761_v28, %v9508_v9  ;;  %v5422_v58 = vmax.f32 %v5296_v45, 0.0 }
0x1487   :  { %v5298_v47 = vpop.f32.mrf.mxu1 }
0x1488   :  { %v5299_v53 = vadd.f32 %v9508_v9, %v5298_v47  ;;  %v5425_v56 = vmax.f32 %v5307_v27, 0.0 }
0x1489   :  { %v6764_v36 = vpop.f32.mrf.mxu1 }
0x148a   :  { %v5423_v20 = vmax.f32 %v5299_v53, 0.0  ;;  %v5455_v37 = vpack.c.bf16 %v5425_v56, %v5424_v41  ;;  %v5320_v31 = vadd.f32 %v6764_v36, %v9508_v9 }
0x148b   :  { %v5311_v33 = vpop.f32.mrf.mxu1 }
0x148c   :  { %v5454_v60 = vpack.c.bf16 %v5423_v20, %v5422_v58  ;;  %v5312_v1 = vadd.f32 %v9508_v9, %v5311_v33  ;;  %v5428_v55 = vmax.f32 %v5320_v31, 0.0 }
0x148d   :  { %v6765_v12 = vpop.f32.mrf.mxu1 }
0x148e   :  { %v5323_v51 = vadd.f32 %v6765_v12, %v9508_v9  ;;  %6794 = vmatprep.mubr.msk.bf16.mxu0 %vm525_vm5, %v5454_v60  ;;  %v5426_v34 = vmax.f32 %v5312_v1, 0.0 }
0x148f   :  { %v5314_v50 = vpop.f32.mrf.mxu1  ;;  %6795 = vmatmul.mubr.msk.bf16.vlgmr.msra.gmra.mxu0 %vm525_vm5, %v5455_v37 }
0x1490   :  { %v5315_v40 = vadd.f32 %v9508_v9, %v5314_v50  ;;  %v5429_v62 = vmax.f32 %v5323_v51, 0.0 }
0x1491   :  { %v6768_v48 = vpop.f32.mrf.mxu1 }
0x1492   :  { %v5427_v2 = vmax.f32 %v5315_v40, 0.0  ;;  %v5457_v18 = vpack.c.bf16 %v5429_v62, %v5428_v55  ;;  %v5336_v43 = vadd.f32 %v6768_v48, %v9508_v9 }
0x1493   :  { %v5327_v19 = vpop.f32.mrf.mxu1 }
0x1494   :  { %v5456_v3 = vpack.c.bf16 %v5427_v2, %v5426_v34  ;;  %v5328_v52 = vadd.f32 %v9508_v9, %v5327_v19  ;;  %v5432_v25 = vmax.f32 %v5336_v43, 0.0 }
0x1495   :  { %v6769_v54 = vpop.f32.mrf.mxu1 }
0x1496   :  { %v5339_v10 = vadd.f32 %v6769_v54, %v9508_v9  ;;  %6798 = vmatprep.mubr.msk.bf16.mxu0 %vm525_vm5, %v5456_v3  ;;  %v5430_v32 = vmax.f32 %v5328_v52, 0.0 }
0x1497   :  { %v5330_v17 = vpop.f32.mrf.mxu1  ;;  %6799 = vmatmul.mubr.msk.bf16.gmra.mxu0 %vm525_vm5, %v5457_v18 }
0x1498   :  { %v5331_v38 = vadd.f32 %v9508_v9, %v5330_v17  ;;  %v5433_v15 = vmax.f32 %v5339_v10, 0.0 }
0x1499   :  { %v6772_v8 = vpop.f32.mrf.mxu1 }
0x149a   :  { %v5431_v0 = vmax.f32 %v5331_v38, 0.0  ;;  %v5459_v61 = vpack.c.bf16 %v5433_v15, %v5432_v25  ;;  %v5352_v39 = vadd.f32 %v6772_v8, %v9508_v9 }
0x149b   :  { %v5343_v11 = vpop.f32.mrf.mxu1 }
0x149c   :  { %v5458_v35 = vpack.c.bf16 %v5431_v0, %v5430_v32  ;;  %v5344_v6 = vadd.f32 %v9508_v9, %v5343_v11  ;;  %v5436_v59 = vmax.f32 %v5352_v39, 0.0 }
0x149d   :  { %v6773_v5 = vpop.f32.mrf.mxu1 }
0x149e   :  { %v5355_v29 = vadd.f32 %v6773_v5, %v9508_v9  ;;  %6802 = vmatprep.mubr.msk.bf16.mxu0 %vm525_vm5, %v5458_v35  ;;  %v5434_v63 = vmax.f32 %v5344_v6, 0.0 }
0x149f   :  { %v5346_v7 = vpop.f32.mrf.mxu1  ;;  %6803 = vmatmul.mubr.msk.bf16.gmra.mxu0 %vm525_vm5, %v5459_v61 }
0x14a0   :  { %v5347_v13 = vadd.f32 %v9508_v9, %v5346_v7  ;;  %v5437_v44 = vmax.f32 %v5355_v29, 0.0 }
0x14a1   :  { %v6776_v49 = vpop.f32.mrf.mxu1 }
0x14a2   :  { %v5435_v46 = vmax.f32 %v5347_v13, 0.0  ;;  %v5461_v4 = vpack.c.bf16 %v5437_v44, %v5436_v59  ;;  %v5368_v23 = vadd.f32 %v6776_v49, %v9508_v9 }
0x14a3   :  { %v5359_v22 = vpop.f32.mrf.mxu1 }
0x14a4   :  { %v5460_v21 = vpack.c.bf16 %v5435_v46, %v5434_v63  ;;  %v5360_v14 = vadd.f32 %v9508_v9, %v5359_v22  ;;  %v5440_v30 = vmax.f32 %v5368_v23, 0.0 }
0x14a5   :  { %v6777_v24 = vpop.f32.mrf.mxu1 }
0x14a6   :  { %v5371_v57 = vadd.f32 %v6777_v24, %v9508_v9  ;;  %6806 = vmatprep.mubr.msk.bf16.mxu0 %vm525_vm5, %v5460_v21  ;;  %v5438_v45 = vmax.f32 %v5360_v14, 0.0 }
0x14a7   :  { %v5362_v16 = vpop.f32.mrf.mxu1  ;;  %6807 = vmatmul.mubr.msk.bf16.gmra.mxu0 %vm525_vm5, %v5461_v4 }
0x14a8   :  { %v5363_v26 = vadd.f32 %v9508_v9, %v5362_v16  ;;  %v5441_v42 = vmax.f32 %v5371_v57, 0.0 }
0x14a9   :  { %v6780_v28 = vpop.f32.mrf.mxu1 }
0x14aa   :  { %v5439_v27 = vmax.f32 %v5363_v26, 0.0  ;;  %v5463_v56 = vpack.c.bf16 %v5441_v42, %v5440_v30  ;;  %v5384_v41 = vadd.f32 %v6780_v28, %v9508_v9 }
0x14ab   :  { %v5375_v47 = vpop.f32.mrf.mxu1 }
0x14ac   :  { %v5462_v53 = vpack.c.bf16 %v5439_v27, %v5438_v45  ;;  %v5376_v58 = vadd.f32 %v9508_v9, %v5375_v47  ;;  %v5444_v31 = vmax.f32 %v5384_v41, 0.0 }
0x14ad   :  { %v6781_v36 = vpop.f32.mrf.mxu1 }
0x14ae   :  { %v5387_v20 = vadd.f32 %v6781_v36, %v9508_v9  ;;  %6810 = vmatprep.mubr.msk.bf16.mxu0 %vm525_vm5, %v5462_v53  ;;  %v5442_v1 = vmax.f32 %v5376_v58, 0.0 }
0x14af   :  { %v5378_v33 = vpop.f32.mrf.mxu1  ;;  %6811 = vmatmul.mubr.msk.bf16.gmra.mxu0 %vm525_vm5, %v5463_v56 }
0x14b0   :  { %v5379_v60 = vadd.f32 %v9508_v9, %v5378_v33  ;;  %v5445_v37 = vmax.f32 %v5387_v20, 0.0 }
0x14b1   :  { %v6784_v12 = vpop.f32.mrf.mxu1 }
0x14b2   :  { %v5443_v51 = vmax.f32 %v5379_v60, 0.0  ;;  %v5465_v62 = vpack.c.bf16 %v5445_v37, %v5444_v31  ;;  %v5400_v55 = vadd.f32 %v6784_v12, %v9508_v9 }
0x14b3   :  { %v5391_v50 = vpop.f32.mrf.mxu1 }
0x14b4   :  { %v5464_v40 = vpack.c.bf16 %v5443_v51, %v5442_v1  ;;  %v5392_v34 = vadd.f32 %v9508_v9, %v5391_v50  ;;  %v5448_v43 = vmax.f32 %v5400_v55, 0.0 }
0x14b5   :  { %v6785_v48 = vpop.f32.mrf.mxu1 }
0x14b6   :  { %v5403_v2 = vadd.f32 %v6785_v48, %v9508_v9  ;;  %6814 = vmatprep.mubr.msk.bf16.mxu0 %vm525_vm5, %v5464_v40  ;;  %v5446_v52 = vmax.f32 %v5392_v34, 0.0 }
0x14b7   :  { %v5394_v19 = vpop.f32.mrf.mxu1  ;;  %6815 = vmatmul.mubr.msk.bf16.gmra.mxu0 %vm525_vm5, %v5465_v62 }
0x14b8   :  { %v5395_v3 = vadd.f32 %v9508_v9, %v5394_v19  ;;  %v5449_v18 = vmax.f32 %v5403_v2, 0.0 }
0x14b9   :  { %v6788_v54 = vpop.f32.mrf.mxu1 }
0x14ba   :  { %v5447_v10 = vmax.f32 %v5395_v3, 0.0  ;;  %v5467_v15 = vpack.c.bf16 %v5449_v18, %v5448_v43  ;;  %v5416_v25 = vadd.f32 %v6788_v54, %v9508_v9 }
0x14bb   :  { %v5407_v17 = vpop.f32.mrf.mxu1 }
0x14bc   :  { %v5466_v38 = vpack.c.bf16 %v5447_v10, %v5446_v52  ;;  %v5408_v32 = vadd.f32 %v9508_v9, %v5407_v17  ;;  %v5452_v29 = vmax.f32 %v5416_v25, 0.0 }
0x14bd   :  { %v6789_v8 = vpop.f32.mrf.mxu1 }
0x14be   :  { %v5419_v0 = vadd.f32 %v6789_v8, %v9508_v9  ;;  %6818 = vmatprep.mubr.msk.bf16.mxu0 %vm525_vm5, %v5466_v38  ;;  %v5450_v5 = vmax.f32 %v5408_v32, 0.0 }
0x14bf   :  { %v5410_v11 = vpop.f32.mrf.mxu1  ;;  %6819 = vmatmul.mubr.msk.bf16.gmra.mxu0 %vm525_vm5, %v5467_v15 }
0x14c0   :  { %v5411_v35 = vadd.f32 %v9508_v9, %v5410_v11  ;;  %v5453_v61 = vmax.f32 %v5419_v0, 0.0 }
0x14c2   :  { %v5451_v6 = vmax.f32 %v5411_v35, 0.0  ;;  %v5469_v7 = vpack.c.bf16 %v5453_v61, %v5452_v29 }
0x14c4   :  { %v5468_v39 = vpack.c.bf16 %v5451_v6, %v5450_v5 }
0x14c6   :  { %6822 = vmatprep.mubr.msk.bf16.mxu0 %vm525_vm5, %v5468_v39 }
0x14c7   :  { %6823 = vmatmul.mubr.msk.bf16.gmra.mxu0 %vm525_vm5, %v5469_v7 }
0x14c8   :  { %7344 = shalt.err (!%p7341_p4)
}
0x14c9   :  { %s7434_s19 = smov 128   ;;  %s7435_s24 = smov 8   ;;  %v9563_v9 = vld [vmem:[%s7650_s4] ss:$0 sm:$0xff] }
0x14ca   :  { %5848 = dma.vmem_to_hbm [thread:$0]  %s5843_s8, 512, %s7660_s13, [#allocation5], %s7434_s19, %s7434_s19, %s7435_s24  }
0x14cb   :  { %s7436_s13 = smov [#allocation2]  }
0x14cc   :  { %s5830_s4 = sshll.u32 %s7436_s13, 4  ;;  %s5831_s4 = int_to_ptr.vmem [resolvable:$true] %s5830_s4 }
0x14cd   :  { %s7353_s30 = scalar_lea.vmem %s5831_s4, 4096  ;;  %p7358_p6 = scmp.lt.s32.totalorder %s5831_s4, %s5831_s4 }
0x14ce   :  { %p7354_p5 = scmp.ne.s32.totalorder %s5831_s4, %s7353_s30  ;;  %p7359_p7 = scmp.lt.s32.totalorder %s7353_s30, %s7353_s30 }
0x14d0   :  { %p7360_p8 = por %p7359_p7, %p7358_p6 }
0x14d2   :  { %p7361_p9 = pnand %p7360_p8, %p7354_p5 }
0x154f   :  { %v6796_v13 = vpop.f32.mrf.mxu0 }
0x1550   :  { %v5579_v44 = vadd.f32 %v6796_v13, %v9563_v9 }
0x1551   :  { %v5570_v49 = vpop.f32.mrf.mxu0 }
0x1552   :  { %v5699_v63 = vand.u32 2147483647, %v5579_v44  ;;  %v5571_v46 = vadd.f32 %v9563_v9, %v5570_v49 }
0x1553   :  { %v6797_v59 = vpop.f32.mrf.mxu0 }
0x1554   :  { %vm5731_vm1 = vcmp.eq.f32.partialorder %v5699_v63, inf  ;;  %v5697_v22 = vand.u32 2147483647, %v5571_v46  ;;  %v5582_v21 = vadd.f32 %v6797_v59, %v9563_v9 }
0x1555   :  { %v5763_v4 = vsel %vm5731_vm1, 1e+09, %v5579_v44  ;;  %v5573_v24 = vpop.f32.mrf.mxu0 }
0x1556   :  { %5795 = vst [vmem:[#allocation2 + $0x10] sm:$0xff] %v5763_v4  ;;  %vm5729_vm2 = vcmp.eq.f32.partialorder %v5697_v22, inf  ;;  %v5700_v14 = vand.u32 2147483647, %v5582_v21  ;;  %v5574_v57 = vadd.f32 %v9563_v9, %v5573_v24 }
0x1557   :  { %v5761_v23 = vsel %vm5729_vm2, 1e+09, %v5571_v46  ;;  %v6800_v16 = vpop.f32.mrf.mxu0 }
0x1558   :  { %5793 = vst [vmem:[#allocation2] sm:$0xff] %v5761_v23  ;;  %vm5732_vm5 = vcmp.eq.f32.partialorder %v5700_v14, inf  ;;  %v5698_v26 = vand.u32 2147483647, %v5574_v57  ;;  %v5595_v42 = vadd.f32 %v6800_v16, %v9563_v9 }
0x1559   :  { %v5764_v28 = vsel %vm5732_vm5, 1e+09, %v5582_v21  ;;  %v5586_v45 = vpop.f32.mrf.mxu0 }
0x155a   :  { %5796 = vst [vmem:[#allocation2 + $0x18] sm:$0xff] %v5764_v28  ;;  %vm5730_vm13 = vcmp.eq.f32.partialorder %v5698_v26, inf  ;;  %v5703_v27 = vand.u32 2147483647, %v5595_v42  ;;  %v5587_v30 = vadd.f32 %v9563_v9, %v5586_v45 }
0x155b   :  { %v5762_v47 = vsel %vm5730_vm13, 1e+09, %v5574_v57  ;;  %v6801_v53 = vpop.f32.mrf.mxu0 }
0x155c   :  { %5794 = vst [vmem:[#allocation2 + $0x8] sm:$0xff] %v5762_v47  ;;  %vm5735_vm14 = vcmp.eq.f32.partialorder %v5703_v27, inf  ;;  %v5701_v56 = vand.u32 2147483647, %v5587_v30  ;;  %v5598_v36 = vadd.f32 %v6801_v53, %v9563_v9 }
0x155d   :  { %v5767_v58 = vsel %vm5735_vm14, 1e+09, %v5595_v42  ;;  %v5589_v20 = vpop.f32.mrf.mxu0 }
0x155e   :  { %5799 = vst [vmem:[#allocation2 + $0x30] sm:$0xff] %v5767_v58  ;;  %vm5733_vm3 = vcmp.eq.f32.partialorder %v5701_v56, inf  ;;  %v5704_v41 = vand.u32 2147483647, %v5598_v36  ;;  %v5590_v33 = vadd.f32 %v9563_v9, %v5589_v20 }
0x155f   :  { %v5765_v60 = vsel %vm5733_vm3, 1e+09, %v5587_v30  ;;  %v6804_v37 = vpop.f32.mrf.mxu0 }
0x1560   :  { %5797 = vst [vmem:[#allocation2 + $0x20] sm:$0xff] %v5765_v60  ;;  %vm5736_vm15 = vcmp.eq.f32.partialorder %v5704_v41, inf  ;;  %v5702_v12 = vand.u32 2147483647, %v5590_v33  ;;  %v5611_v1 = vadd.f32 %v6804_v37, %v9563_v9 }
0x1561   :  { %v5768_v51 = vsel %vm5736_vm15, 1e+09, %v5598_v36  ;;  %v5602_v31 = vpop.f32.mrf.mxu0 }
0x1562   :  { %5800 = vst [vmem:[#allocation2 + $0x38] sm:$0xff] %v5768_v51  ;;  %vm5734_vm0 = vcmp.eq.f32.partialorder %v5702_v12, inf  ;;  %v5707_v50 = vand.u32 2147483647, %v5611_v1  ;;  %v5603_v40 = vadd.f32 %v9563_v9, %v5602_v31 }
0x1563   :  { %v5766_v62 = vsel %vm5734_vm0, 1e+09, %v5590_v33  ;;  %v6805_v48 = vpop.f32.mrf.mxu0 }
0x1564   :  { %5798 = vst [vmem:[#allocation2 + $0x28] sm:$0xff] %v5766_v62  ;;  %vm5739_vm4 = vcmp.eq.f32.partialorder %v5707_v50, inf  ;;  %v5705_v34 = vand.u32 2147483647, %v5603_v40  ;;  %v5614_v2 = vadd.f32 %v6805_v48, %v9563_v9 }
0x1565   :  { %v5771_v55 = vsel %vm5739_vm4, 1e+09, %v5611_v1  ;;  %v5605_v19 = vpop.f32.mrf.mxu0 }
0x1566   :  { %5803 = vst [vmem:[#allocation2 + $0x50] sm:$0xff] %v5771_v55  ;;  %vm5737_vm6 = vcmp.eq.f32.partialorder %v5705_v34, inf  ;;  %v5708_v3 = vand.u32 2147483647, %v5614_v2  ;;  %v5606_v18 = vadd.f32 %v9563_v9, %v5605_v19 }
0x1567   :  { %v5769_v54 = vsel %vm5737_vm6, 1e+09, %v5603_v40  ;;  %v6808_v52 = vpop.f32.mrf.mxu0 }
0x1568   :  { %5801 = vst [vmem:[#allocation2 + $0x40] sm:$0xff] %v5769_v54  ;;  %vm5740_vm9 = vcmp.eq.f32.partialorder %v5708_v3, inf  ;;  %v5706_v10 = vand.u32 2147483647, %v5606_v18  ;;  %v5627_v43 = vadd.f32 %v6808_v52, %v9563_v9 }
0x1569   :  { %v5772_v17 = vsel %vm5740_vm9, 1e+09, %v5614_v2  ;;  %v5618_v38 = vpop.f32.mrf.mxu0 }
0x156a   :  { %5804 = vst [vmem:[#allocation2 + $0x58] sm:$0xff] %v5772_v17  ;;  %vm5738_vm10 = vcmp.eq.f32.partialorder %v5706_v10, inf  ;;  %v5711_v15 = vand.u32 2147483647, %v5627_v43  ;;  %v5619_v8 = vadd.f32 %v9563_v9, %v5618_v38 }
0x156b   :  { %v5770_v32 = vsel %vm5738_vm10, 1e+09, %v5606_v18  ;;  %v6809_v0 = vpop.f32.mrf.mxu0 }
0x156c   :  { %5802 = vst [vmem:[#allocation2 + $0x48] sm:$0xff] %v5770_v32  ;;  %vm5743_vm7 = vcmp.eq.f32.partialorder %v5711_v15, inf  ;;  %v5709_v25 = vand.u32 2147483647, %v5619_v8  ;;  %v5630_v11 = vadd.f32 %v6809_v0, %v9563_v9 }
0x156d   :  { %v5775_v35 = vsel %vm5743_vm7, 1e+09, %v5627_v43  ;;  %v5621_v61 = vpop.f32.mrf.mxu0 }
0x156e   :  { %5807 = vst [vmem:[#allocation2 + $0x70] sm:$0xff] %v5775_v35  ;;  %vm5741_vm8 = vcmp.eq.f32.partialorder %v5709_v25, inf  ;;  %v5712_v5 = vand.u32 2147483647, %v5630_v11  ;;  %v5622_v6 = vadd.f32 %v9563_v9, %v5621_v61 }
0x156f   :  { %v5773_v29 = vsel %vm5741_vm8, 1e+09, %v5619_v8  ;;  %v6812_v39 = vpop.f32.mrf.mxu0 }
0x1570   :  { %5805 = vst [vmem:[#allocation2 + $0x60] sm:$0xff] %v5773_v29  ;;  %vm5744_vm11 = vcmp.eq.f32.partialorder %v5712_v5, inf  ;;  %v5710_v7 = vand.u32 2147483647, %v5622_v6  ;;  %v5643_v13 = vadd.f32 %v6812_v39, %v9563_v9 }
0x1571   :  { %v5776_v44 = vsel %vm5744_vm11, 1e+09, %v5630_v11  ;;  %v5634_v49 = vpop.f32.mrf.mxu0 }
0x1572   :  { %5808 = vst [vmem:[#allocation2 + $0x78] sm:$0xff] %v5776_v44  ;;  %vm5742_vm12 = vcmp.eq.f32.partialorder %v5710_v7, inf  ;;  %v5715_v63 = vand.u32 2147483647, %v5643_v13  ;;  %v5635_v46 = vadd.f32 %v9563_v9, %v5634_v49 }
0x1573   :  { %v5774_v59 = vsel %vm5742_vm12, 1e+09, %v5622_v6  ;;  %v6813_v22 = vpop.f32.mrf.mxu0 }
0x1574   :  { %5806 = vst [vmem:[#allocation2 + $0x68] sm:$0xff] %v5774_v59  ;;  %vm5747_vm1 = vcmp.eq.f32.partialorder %v5715_v63, inf  ;;  %v5713_v21 = vand.u32 2147483647, %v5635_v46  ;;  %v5646_v4 = vadd.f32 %v6813_v22, %v9563_v9 }
0x1575   :  { %v5779_v24 = vsel %vm5747_vm1, 1e+09, %v5643_v13  ;;  %v5637_v14 = vpop.f32.mrf.mxu0 }
0x1576   :  { %5811 = vst [vmem:[#allocation2 + $0x90] sm:$0xff] %v5779_v24  ;;  %vm5745_vm2 = vcmp.eq.f32.partialorder %v5713_v21, inf  ;;  %v5716_v57 = vand.u32 2147483647, %v5646_v4  ;;  %v5638_v23 = vadd.f32 %v9563_v9, %v5637_v14 }
0x1577   :  { %v5777_v16 = vsel %vm5745_vm2, 1e+09, %v5635_v46  ;;  %v6816_v26 = vpop.f32.mrf.mxu0 }
0x1578   :  { %5809 = vst [vmem:[#allocation2 + $0x80] sm:$0xff] %v5777_v16  ;;  %vm5748_vm5 = vcmp.eq.f32.partialorder %v5716_v57, inf  ;;  %v5714_v42 = vand.u32 2147483647, %v5638_v23  ;;  %v5659_v28 = vadd.f32 %v6816_v26, %v9563_v9 }
0x1579   :  { %v5780_v45 = vsel %vm5748_vm5, 1e+09, %v5646_v4  ;;  %v5650_v27 = vpop.f32.mrf.mxu0 }
0x157a   :  { %5812 = vst [vmem:[#allocation2 + $0x98] sm:$0xff] %v5780_v45  ;;  %vm5746_vm13 = vcmp.eq.f32.partialorder %v5714_v42, inf  ;;  %v5719_v30 = vand.u32 2147483647, %v5659_v28  ;;  %v5651_v47 = vadd.f32 %v9563_v9, %v5650_v27 }
0x157b   :  { %v5778_v53 = vsel %vm5746_vm13, 1e+09, %v5638_v23  ;;  %v6817_v56 = vpop.f32.mrf.mxu0 }
0x157c   :  { %5810 = vst [vmem:[#allocation2 + $0x88] sm:$0xff] %v5778_v53  ;;  %vm5751_vm14 = vcmp.eq.f32.partialorder %v5719_v30, inf  ;;  %v5717_v36 = vand.u32 2147483647, %v5651_v47  ;;  %v5662_v58 = vadd.f32 %v6817_v56, %v9563_v9 }
0x157d   :  { %v5783_v20 = vsel %vm5751_vm14, 1e+09, %v5659_v28  ;;  %v5653_v41 = vpop.f32.mrf.mxu0 }
0x157e   :  { %5815 = vst [vmem:[#allocation2 + $0xb0] sm:$0xff] %v5783_v20  ;;  %vm5749_vm3 = vcmp.eq.f32.partialorder %v5717_v36, inf  ;;  %v5720_v33 = vand.u32 2147483647, %v5662_v58  ;;  %v5654_v60 = vadd.f32 %v9563_v9, %v5653_v41 }
0x157f   :  { %v5781_v37 = vsel %vm5749_vm3, 1e+09, %v5651_v47  ;;  %v6820_v12 = vpop.f32.mrf.mxu0 }
0x1580   :  { %5813 = vst [vmem:[#allocation2 + $0xa0] sm:$0xff] %v5781_v37  ;;  %vm5752_vm15 = vcmp.eq.f32.partialorder %v5720_v33, inf  ;;  %v5718_v1 = vand.u32 2147483647, %v5654_v60  ;;  %v5675_v51 = vadd.f32 %v6820_v12, %v9563_v9 }
0x1581   :  { %v5784_v31 = vsel %vm5752_vm15, 1e+09, %v5662_v58  ;;  %v5666_v50 = vpop.f32.mrf.mxu0 }
0x1582   :  { %5816 = vst [vmem:[#allocation2 + $0xb8] sm:$0xff] %v5784_v31  ;;  %vm5750_vm0 = vcmp.eq.f32.partialorder %v5718_v1, inf  ;;  %v5723_v40 = vand.u32 2147483647, %v5675_v51  ;;  %v5667_v62 = vadd.f32 %v9563_v9, %v5666_v50 }
0x1583   :  { %v5782_v48 = vsel %vm5750_vm0, 1e+09, %v5654_v60  ;;  %v6821_v34 = vpop.f32.mrf.mxu0 }
0x1584   :  { %5814 = vst [vmem:[#allocation2 + $0xa8] sm:$0xff] %v5782_v48  ;;  %vm5755_vm4 = vcmp.eq.f32.partialorder %v5723_v40, inf  ;;  %v5721_v2 = vand.u32 2147483647, %v5667_v62  ;;  %v5678_v55 = vadd.f32 %v6821_v34, %v9563_v9 }
0x1585   :  { %v5787_v19 = vsel %vm5755_vm4, 1e+09, %v5675_v51  ;;  %v5669_v3 = vpop.f32.mrf.mxu0 }
0x1586   :  { %5819 = vst [vmem:[#allocation2 + $0xd0] sm:$0xff] %v5787_v19  ;;  %vm5753_vm6 = vcmp.eq.f32.partialorder %v5721_v2, inf  ;;  %v5724_v18 = vand.u32 2147483647, %v5678_v55  ;;  %v5670_v54 = vadd.f32 %v9563_v9, %v5669_v3 }
0x1587   :  { %v5785_v52 = vsel %vm5753_vm6, 1e+09, %v5667_v62  ;;  %v6824_v10 = vpop.f32.mrf.mxu0 }
0x1588   :  { %5817 = vst [vmem:[#allocation2 + $0xc0] sm:$0xff] %v5785_v52  ;;  %vm5756_vm9 = vcmp.eq.f32.partialorder %v5724_v18, inf  ;;  %v5722_v43 = vand.u32 2147483647, %v5670_v54  ;;  %v5691_v17 = vadd.f32 %v6824_v10, %v9563_v9 }
0x1589   :  { %v5788_v38 = vsel %vm5756_vm9, 1e+09, %v5678_v55  ;;  %v5682_v15 = vpop.f32.mrf.mxu0 }
0x158a   :  { %5820 = vst [vmem:[#allocation2 + $0xd8] sm:$0xff] %v5788_v38  ;;  %vm5754_vm10 = vcmp.eq.f32.partialorder %v5722_v43, inf  ;;  %v5727_v8 = vand.u32 2147483647, %v5691_v17  ;;  %v5683_v32 = vadd.f32 %v9563_v9, %v5682_v15 }
0x158b   :  { %v5786_v0 = vsel %vm5754_vm10, 1e+09, %v5670_v54  ;;  %v6825_v25 = vpop.f32.mrf.mxu0 }
0x158c   :  { %5818 = vst [vmem:[#allocation2 + $0xc8] sm:$0xff] %v5786_v0  ;;  %vm5759_vm7 = vcmp.eq.f32.partialorder %v5727_v8, inf  ;;  %v5725_v11 = vand.u32 2147483647, %v5683_v32  ;;  %v5694_v35 = vadd.f32 %v6825_v25, %v9563_v9 }
0x158d   :  { %v5791_v61 = vsel %vm5759_vm7, 1e+09, %v5691_v17  ;;  %v5685_v5 = vpop.f32.mrf.mxu0 }
0x158e   :  { %5823 = vst [vmem:[#allocation2 + $0xf0] sm:$0xff] %v5791_v61  ;;  %vm5757_vm8 = vcmp.eq.f32.partialorder %v5725_v11, inf  ;;  %v5728_v6 = vand.u32 2147483647, %v5694_v35  ;;  %v5686_v29 = vadd.f32 %v9563_v9, %v5685_v5 }
0x158f   :  { %v5789_v39 = vsel %vm5757_vm8, 1e+09, %v5683_v32 }
0x1590   :  { %5821 = vst [vmem:[#allocation2 + $0xe0] sm:$0xff] %v5789_v39  ;;  %vm5760_vm11 = vcmp.eq.f32.partialorder %v5728_v6, inf  ;;  %v5726_v7 = vand.u32 2147483647, %v5686_v29 }
0x1591   :  { %v5792_v13 = vsel %vm5760_vm11, 1e+09, %v5694_v35 }
0x1592   :  { %5824 = vst [vmem:[#allocation2 + $0xf8] sm:$0xff] %v5792_v13  ;;  %vm5758_vm12 = vcmp.eq.f32.partialorder %v5726_v7, inf }
0x1593   :  { %v5790_v44 = vsel %vm5758_vm12, 1e+09, %v5686_v29 }
0x1594   :  { %5822 = vst [vmem:[#allocation2 + $0xe8] sm:$0xff] %v5790_v44 }
0x1595   :  { %7364 = shalt.err (!%p7361_p9)
}
0x1596   :  { %5836 = dma.vmem_to_hbm [thread:$0]  %s5831_s4, 4096, %s7655_s17, [#allocation3], %s7434_s19, %s7434_s19, %s7435_s24  }
0x1597   :  { %7373 = dma.done.wait [#allocation3], 4096  }
0x1598   :  { %7374 = vsyncadd [#allocation3], 4294963200 }
0x1599   :  { %7375 = dma.done.wait [#allocation5], 512  }
0x159a   :  { %7376 = vsyncadd [#allocation5], 4294966784 }
0x159b   :  { %5855 = vsyncpa [#allocation3], 1 }
0x159c   :  { %5856 = vsyncpa [#allocation5], 1 }

</bundles_post_ra>
